<compile_context>
chip_gen: v5e
topology: v5e:2x2
jax: 0.10.0
libtpu: 0.0.40
codegen_flags: <defaults>
</compile_context>

<pallas_src>
import jax
import jax.numpy as jnp
from jax import lax
from jax.experimental import pallas as pl
from jax.experimental.pallas import tpu as pltpu


LEAKY_SLOPE = 0.1
BN_EPS = 1e-5


def _leaky(x):
    return jnp.where(x > 0, x, LEAKY_SLOPE * x)


def resblock_kernel(x_ref, w1_ref, s1_ref, b1_ref, w2_ref, s2_ref, b2_ref,
                    o_ref, pad_ref):
    """B_blk batch images per grid step (NHWC, channels on the lane axis).

    x_ref  : (B, H, W, C)       bf16  input tile
    w1_ref : (C, C2)            bf16  1x1-conv weight (as a matmul)
    s1/b1  : (1, C2)            f32   folded BN1 scale / bias
    w2_ref : (9*C2, C)          bf16  3x3-conv weight, rows ordered (di, dj, c2)
    s2/b2  : (1, C)             f32   folded BN2 scale / bias
    o_ref  : (B, H, W, C)       bf16  output tile
    pad_ref: (B, H+2, W+2, C2)  bf16  zero-padded conv1 output (scratch)
    """
    B, H, W, C = x_ref.shape
    C2 = w1_ref.shape[1]
    M = B * H * W

    # ---- conv1 (1x1): one MXU matmul, bf16 operands / f32 accumulation ----
    xm = x_ref[...].reshape(M, C)                                    # bf16
    h1 = jnp.dot(xm, w1_ref[...], preferred_element_type=jnp.float32)
    h1 = _leaky(h1 * s1_ref[...] + b1_ref[...]).astype(jnp.bfloat16)  # (M, C2)

    # ---- zero-pad conv1 output (pad=1 on H and W) into bf16 scratch ----
    # Only the 1-element border must be zero; the interior is fully rewritten.
    # Re-zeroed every step: the batch axis is "parallel" (megacore-sharded),
    # so cross-step scratch state cannot be trusted.
    pad_ref[:, 0:1, :, :] = jnp.zeros((B, 1, W + 2, C2), jnp.bfloat16)
    pad_ref[:, H + 1:H + 2, :, :] = jnp.zeros((B, 1, W + 2, C2), jnp.bfloat16)
    pad_ref[:, :, 0:1, :] = jnp.zeros((B, H + 2, 1, C2), jnp.bfloat16)
    pad_ref[:, :, W + 1:W + 2, :] = jnp.zeros((B, H + 2, 1, C2), jnp.bfloat16)
    pad_ref[:, 1:H + 1, 1:W + 1, :] = h1.reshape(B, H, W, C2)

    # ---- conv2 (3x3): 9 accumulating matmuls, NO materialized im2col ----
    acc = None
    for di in range(3):
        for dj in range(3):
            k = di * 3 + dj
            tap = pad_ref[:, di:di + H, dj:dj + W, :].reshape(M, C2)  # bf16
            d = jnp.dot(tap, w2_ref[k * C2:(k + 1) * C2, :],
                        preferred_element_type=jnp.float32)
            acc = d if acc is None else acc + d                       # (M, C) f32

    # ---- fused epilogue: BN2 + leaky + residual (f32) + single bf16 cast ----
    resid = x_ref[...].reshape(M, C).astype(jnp.float32)
    y = _leaky(acc * s2_ref[...] + b2_ref[...]) + resid
    o_ref[...] = y.reshape(B, H, W, C).astype(o_ref.dtype)


def fold_bn(gamma, beta, mean, var):
    scale = gamma / jnp.sqrt(var + BN_EPS)
    bias = beta - mean * scale
    return scale, bias


def _pick_batch_block(n, h, w, c, budget_bytes=8 << 20):
    """Largest batch block that (a) divides n, (b) keeps in+out under budget,
    and (c) still leaves >= 4 grid steps (>= 2 per v7x TensorCore)."""
    per_img = h * w * c * 2 * 2   # bf16 in + bf16 out
    cands = [b for b in (16, 8, 4, 2, 1)
             if n % b == 0 and b * per_img <= budget_bytes]
    for b in cands:               # descending: first hit = largest with >=4 steps
        if n // b >= 4:
            return b
    return 1                      # otherwise maximize grid length (pipelining)


def resblock_forward_nhwc(x_nhwc, w1_oihw, bn1, w2_oihw, bn2):
    """Fast path: NHWC bf16 in -> NHWC bf16 out.  No layout round trips."""
    N, H, W, C = x_nhwc.shape
    C2 = C // 2
    x_nhwc = x_nhwc.astype(jnp.bfloat16)

    # Kernel-layout parameters: bf16 weights for the MXU, f32 BN constants.
    w1 = jnp.transpose(w1_oihw[:, :, 0, 0], (1, 0)).astype(jnp.bfloat16)   # (C, C2)
    w2 = (jnp.transpose(w2_oihw, (2, 3, 1, 0))                             # HWIO
          .reshape(9 * C2, C).astype(jnp.bfloat16))                        # (9*C2, C)
    s1, b1 = fold_bn(*bn1)
    s2, b2 = fold_bn(*bn2)
    s1 = s1.reshape(1, C2).astype(jnp.float32)
    b1 = b1.reshape(1, C2).astype(jnp.float32)
    s2 = s2.reshape(1, C).astype(jnp.float32)
    b2 = b2.reshape(1, C).astype(jnp.float32)

    b_blk = _pick_batch_block(N, H, W, C)
    grid = (N // b_blk,)

    flops = 2 * N * H * W * (C * C2 + 9 * C2 * C)
    bytes_accessed = (2 * N * H * W * C * 2                     # bf16 x in + out
                      + w1.size * 2 + w2.size * 2               # bf16 weights
                      + (s1.size + b1.size + s2.size + b2.size) * 4)

    return pl.pallas_call(
        resblock_kernel,
        out_shape=jax.ShapeDtypeStruct((N, H, W, C), jnp.bfloat16),
        grid_spec=pltpu.PrefetchScalarGridSpec(
            num_scalar_prefetch=0,
            grid=grid,
            in_specs=[
                pl.BlockSpec((b_blk, H, W, C), lambda n: (n, 0, 0, 0)),   # x
                pl.BlockSpec((C, C2), lambda n: (0, 0)),                  # w1
                pl.BlockSpec((1, C2), lambda n: (0, 0)),                  # s1
                pl.BlockSpec((1, C2), lambda n: (0, 0)),                  # b1
                pl.BlockSpec((9 * C2, C), lambda n: (0, 0)),              # w2
                pl.BlockSpec((1, C), lambda n: (0, 0)),                   # s2
                pl.BlockSpec((1, C), lambda n: (0, 0)),                   # b2
            ],
            out_specs=pl.BlockSpec((b_blk, H, W, C), lambda n: (n, 0, 0, 0)),
            scratch_shapes=[
                pltpu.VMEM((b_blk, H + 2, W + 2, C2), jnp.bfloat16),  # padded conv1 out
            ],
        ),
        compiler_params=pltpu.CompilerParams(
            dimension_semantics=("parallel",),
        ),
        cost_estimate=pl.CostEstimate(
            flops=flops, transcendentals=0, bytes_accessed=bytes_accessed),
    )(x_nhwc, w1, s1, b1, w2, s2, b2)


@jax.jit
def resblock_forward(x_nchw, w1_oihw, bn1, w2_oihw, bn2):
    """PyTorch-compat entry: NCHW f32 in -> NCHW f32 out.

    The transpose fuses the bf16 cast (single pass each way).  In a real model
    keep activations NHWC bf16 end-to-end and call resblock_forward_nhwc to
    avoid these two HBM round trips entirely.
    """
    x_nhwc = jnp.transpose(x_nchw, (0, 2, 3, 1)).astype(jnp.bfloat16)
    out_nhwc = resblock_forward_nhwc(x_nhwc, w1_oihw, bn1, w2_oihw, bn2)
    return jnp.transpose(out_nhwc, (0, 3, 1, 2)).astype(jnp.float32)


def reference_resblock(x_nchw, w1_oihw, bn1, w2_oihw, bn2):
    """Pure-JAX f32 reference (NCHW, matching PyTorch)."""
    def conv_bn_leaky(x, w_oihw, bn, pad):
        y = lax.conv_general_dilated(
            x, w_oihw, window_strides=(1, 1),
            padding=[(pad, pad), (pad, pad)],
            dimension_numbers=("NCHW", "OIHW", "NCHW"))
        gamma, beta, mean, var = bn
        scale = gamma / jnp.sqrt(var + BN_EPS)
        bias = beta - mean * scale
        y = y * scale[None, :, None, None] + bias[None, :, None, None]
        return jnp.where(y > 0, y, LEAKY_SLOPE * y)

    h = conv_bn_leaky(x_nchw, w1_oihw, bn1, pad=0)
    h = conv_bn_leaky(h, w2_oihw, bn2, pad=1)
    return h + x_nchw


if __name__ == "__main__":
    key = jax.random.PRNGKey(0)
    # C=128 is a real Darknet53 ResBlock width (lane-dense I/O).  N=8 lets the
    # wrapper pick B_blk=2 -> grid=(4,), i.e. >= 2 pipelined steps per v7x core.
    N, C, H, W = 8, 128, 16, 16
    C2 = C // 2

    keys = jax.random.split(key, 11)
    x = jax.random.normal(keys[0], (N, C, H, W), jnp.float32)

    # Parameters (deterministic, synthetic — matching nn.Module shapes).
    w1_oihw = 0.1 * jax.random.normal(keys[1], (C2, C, 1, 1), jnp.float32)
    w2_oihw = 0.1 * jax.random.normal(keys[2], (C, C2, 3, 3), jnp.float32)
    gamma1 = 0.5 + jax.random.uniform(keys[3], (C2,), jnp.float32)
    beta1 = 0.1 * jax.random.normal(keys[4], (C2,), jnp.float32)
    mean1 = 0.1 * jax.random.normal(keys[5], (C2,), jnp.float32)
    var1 = 0.5 + jax.random.uniform(keys[6], (C2,), jnp.float32)
    gamma2 = 0.5 + jax.random.uniform(keys[7], (C,), jnp.float32)
    beta2 = 0.1 * jax.random.normal(keys[8], (C,), jnp.float32)
    mean2 = 0.1 * jax.random.normal(keys[9], (C,), jnp.float32)
    var2 = 0.5 + jax.random.uniform(keys[10], (C,), jnp.float32)

    bn1 = (gamma1, beta1, mean1, var1)
    bn2 = (gamma2, beta2, mean2, var2)

    out = resblock_forward(x, w1_oihw, bn1, w2_oihw, bn2)
    out = jax.block_until_ready(out)

    ref = reference_resblock(x, w1_oihw, bn1, w2_oihw, bn2)
    ref = jax.block_until_ready(ref)

    assert out.shape == (N, C, H, W)
    # bf16 MXU operands AND bf16 activations at the kernel boundary:
    # tolerance loosened accordingly vs a pure-f32 pipeline.
    max_err = float(jnp.max(jnp.abs(out - ref)))
    rel_err = float(jnp.linalg.norm(out - ref) / jnp.linalg.norm(ref))
    assert rel_err < 3e-2 and max_err < 5e-1, (max_err, rel_err)

    print("KERNEL_OK")
</pallas_src>

<mosaic_0001>
module attributes {stable_mosaic.version = 11 : i64} {
  func.func @resblock_kernel(%arg0: i32, %arg1: memref<2x16x16x128xbf16, #tpu.memory_space<vmem>>, %arg2: memref<128x64xbf16, #tpu.memory_space<vmem>>, %arg3: memref<1x64xf32, #tpu.memory_space<vmem>>, %arg4: memref<1x64xf32, #tpu.memory_space<vmem>>, %arg5: memref<576x128xbf16, #tpu.memory_space<vmem>>, %arg6: memref<1x128xf32, #tpu.memory_space<vmem>>, %arg7: memref<1x128xf32, #tpu.memory_space<vmem>>, %arg8: memref<2x16x16x128xbf16, #tpu.memory_space<vmem>>, %arg9: memref<2x18x18x64xbf16, #tpu.memory_space<vmem>>) attributes {dimension_semantics = [#tpu.dimension_semantics<parallel>], iteration_bounds = array<i64: 4>, scalar_prefetch = 0 : i64, scratch_operands = 1 : i64, tpu.core_type = #tpu.core_type<tc>, window_params = [{transform_indices = @transform_0, window_bounds = array<i64: 2, 16, 16, 128>}, {pipeline_mode = #tpu.pipeline_mode<synchronous>, transform_indices = @transform_1, window_bounds = array<i64: 128, 64>}, {pipeline_mode = #tpu.pipeline_mode<synchronous>, transform_indices = @transform_2, window_bounds = array<i64: 1, 64>}, {pipeline_mode = #tpu.pipeline_mode<synchronous>, transform_indices = @transform_3, window_bounds = array<i64: 1, 64>}, {pipeline_mode = #tpu.pipeline_mode<synchronous>, transform_indices = @transform_4, window_bounds = array<i64: 576, 128>}, {pipeline_mode = #tpu.pipeline_mode<synchronous>, transform_indices = @transform_5, window_bounds = array<i64: 1, 128>}, {pipeline_mode = #tpu.pipeline_mode<synchronous>, transform_indices = @transform_6, window_bounds = array<i64: 1, 128>}, {transform_indices = @transform_7, window_bounds = array<i64: 2, 16, 16, 128>}]} {
    %c0 = arith.constant 0 : index
    %c0_0 = arith.constant 0 : index
    %c0_1 = arith.constant 0 : index
    %c0_2 = arith.constant 0 : index
    %0 = vector.load %arg1[%c0, %c0_0, %c0_1, %c0_2] : memref<2x16x16x128xbf16, #tpu.memory_space<vmem>>, vector<2x16x16x128xbf16>
    %1 = vector.shape_cast %0 : vector<2x16x16x128xbf16> to vector<512x128xbf16>
    %c0_3 = arith.constant 0 : index
    %c0_4 = arith.constant 0 : index
    %2 = vector.load %arg2[%c0_3, %c0_4] : memref<128x64xbf16, #tpu.memory_space<vmem>>, vector<128x64xbf16>
    %cst = arith.constant dense<0.000000e+00> : vector<512x64xf32>
    %3 = tpu.matmul %1, %2, %cst {dimension_numbers = #tpu.dot_dimension_numbers<[1], [0], [0], [1], [0, 0, 1, 1], [], []>} : vector<512x128xbf16>, vector<128x64xbf16>, vector<512x64xf32> -> vector<512x64xf32>
    %c0_5 = arith.constant 0 : index
    %c0_6 = arith.constant 0 : index
    %4 = vector.load %arg3[%c0_5, %c0_6] : memref<1x64xf32, #tpu.memory_space<vmem>>, vector<1x64xf32>
    %5 = vector.broadcast %4 : vector<1x64xf32> to vector<512x64xf32>
    %6 = arith.mulf %3, %5 : vector<512x64xf32>
    %c0_7 = arith.constant 0 : index
    %c0_8 = arith.constant 0 : index
    %7 = vector.load %arg4[%c0_7, %c0_8] : memref<1x64xf32, #tpu.memory_space<vmem>>, vector<1x64xf32>
    %8 = vector.broadcast %7 : vector<1x64xf32> to vector<512x64xf32>
    %9 = arith.addf %6, %8 : vector<512x64xf32>
    %cst_9 = arith.constant 0.000000e+00 : f32
    %10 = vector.broadcast %cst_9 : f32 to vector<512x64xf32>
    %11 = arith.cmpf ogt, %9, %10 : vector<512x64xf32>
    %cst_10 = arith.constant 1.000000e-01 : f32
    %12 = vector.broadcast %cst_10 : f32 to vector<512x64xf32>
    %13 = arith.mulf %12, %9 : vector<512x64xf32>
    %14 = arith.select %11, %9, %13 : vector<512x64xi1>, vector<512x64xf32>
    %15 = arith.truncf %14 : vector<512x64xf32> to vector<512x64xbf16>
    %cst_11 = arith.constant 0.000000e+00 : bf16
    %16 = vector.broadcast %cst_11 : bf16 to vector<2x1x18x64xbf16>
    %c0_12 = arith.constant 0 : index
    %c0_13 = arith.constant 0 : index
    %c0_14 = arith.constant 0 : index
    %c0_15 = arith.constant 0 : index
    %17 = vector.load %arg9[%c0_12, %c0_13, %c0_14, %c0_15] : memref<2x18x18x64xbf16, #tpu.memory_space<vmem>>, vector<2x1x18x64xbf16>
    tpu.vector_store %arg9[%c0_12, %c0_13, %c0_14, %c0_15], %16 {strides = array<i32>} : memref<2x18x18x64xbf16, #tpu.memory_space<vmem>>, vector<2x1x18x64xbf16>,
    %cst_16 = arith.constant 0.000000e+00 : bf16
    %18 = vector.broadcast %cst_16 : bf16 to vector<2x1x18x64xbf16>
    %c0_17 = arith.constant 0 : index
    %c17 = arith.constant 17 : index
    %c0_18 = arith.constant 0 : index
    %c0_19 = arith.constant 0 : index
    %19 = vector.load %arg9[%c0_17, %c17, %c0_18, %c0_19] : memref<2x18x18x64xbf16, #tpu.memory_space<vmem>>, vector<2x1x18x64xbf16>
    tpu.vector_store %arg9[%c0_17, %c17, %c0_18, %c0_19], %18 {strides = array<i32>} : memref<2x18x18x64xbf16, #tpu.memory_space<vmem>>, vector<2x1x18x64xbf16>,
    %cst_20 = arith.constant 0.000000e+00 : bf16
    %20 = vector.broadcast %cst_20 : bf16 to vector<2x18x1x64xbf16>
    %c0_21 = arith.constant 0 : index
    %c0_22 = arith.constant 0 : index
    %c0_23 = arith.constant 0 : index
    %c0_24 = arith.constant 0 : index
    %21 = vector.load %arg9[%c0_21, %c0_22, %c0_23, %c0_24] : memref<2x18x18x64xbf16, #tpu.memory_space<vmem>>, vector<2x18x1x64xbf16>
    tpu.vector_store %arg9[%c0_21, %c0_22, %c0_23, %c0_24], %20 {strides = array<i32>} : memref<2x18x18x64xbf16, #tpu.memory_space<vmem>>, vector<2x18x1x64xbf16>,
    %cst_25 = arith.constant 0.000000e+00 : bf16
    %22 = vector.broadcast %cst_25 : bf16 to vector<2x18x1x64xbf16>
    %c0_26 = arith.constant 0 : index
    %c0_27 = arith.constant 0 : index
    %c17_28 = arith.constant 17 : index
    %c0_29 = arith.constant 0 : index
    %23 = vector.load %arg9[%c0_26, %c0_27, %c17_28, %c0_29] : memref<2x18x18x64xbf16, #tpu.memory_space<vmem>>, vector<2x18x1x64xbf16>
    tpu.vector_store %arg9[%c0_26, %c0_27, %c17_28, %c0_29], %22 {strides = array<i32>} : memref<2x18x18x64xbf16, #tpu.memory_space<vmem>>, vector<2x18x1x64xbf16>,
    %24 = vector.shape_cast %15 : vector<512x64xbf16> to vector<2x16x16x64xbf16>
    %c0_30 = arith.constant 0 : index
    %c1 = arith.constant 1 : index
    %c1_31 = arith.constant 1 : index
    %c0_32 = arith.constant 0 : index
    %25 = vector.load %arg9[%c0_30, %c1, %c1_31, %c0_32] : memref<2x18x18x64xbf16, #tpu.memory_space<vmem>>, vector<2x16x16x64xbf16>
    tpu.vector_store %arg9[%c0_30, %c1, %c1_31, %c0_32], %24 {strides = array<i32>} : memref<2x18x18x64xbf16, #tpu.memory_space<vmem>>, vector<2x16x16x64xbf16>,
    %c0_33 = arith.constant 0 : index
    %c0_34 = arith.constant 0 : index
    %c0_35 = arith.constant 0 : index
    %c0_36 = arith.constant 0 : index
    %26 = vector.load %arg9[%c0_33, %c0_34, %c0_35, %c0_36] : memref<2x18x18x64xbf16, #tpu.memory_space<vmem>>, vector<2x16x16x64xbf16>
    %27 = vector.shape_cast %26 : vector<2x16x16x64xbf16> to vector<512x64xbf16>
    %c0_37 = arith.constant 0 : index
    %c0_38 = arith.constant 0 : index
    %28 = vector.load %arg5[%c0_37, %c0_38] : memref<576x128xbf16, #tpu.memory_space<vmem>>, vector<64x128xbf16>
    %cst_39 = arith.constant dense<0.000000e+00> : vector<512x128xf32>
    %29 = tpu.matmul %27, %28, %cst_39 {dimension_numbers = #tpu.dot_dimension_numbers<[1], [0], [0], [1], [0, 0, 1, 1], [], []>} : vector<512x64xbf16>, vector<64x128xbf16>, vector<512x128xf32> -> vector<512x128xf32>
    %c0_40 = arith.constant 0 : index
    %c0_41 = arith.constant 0 : index
    %c1_42 = arith.constant 1 : index
    %c0_43 = arith.constant 0 : index
    %30 = vector.load %arg9[%c0_40, %c0_41, %c1_42, %c0_43] : memref<2x18x18x64xbf16, #tpu.memory_space<vmem>>, vector<2x16x16x64xbf16>
    %31 = vector.shape_cast %30 : vector<2x16x16x64xbf16> to vector<512x64xbf16>
    %c64 = arith.constant 64 : index
    %c0_44 = arith.constant 0 : index
    %32 = vector.load %arg5[%c64, %c0_44] : memref<576x128xbf16, #tpu.memory_space<vmem>>, vector<64x128xbf16>
    %cst_45 = arith.constant dense<0.000000e+00> : vector<512x128xf32>
    %33 = tpu.matmul %31, %32, %cst_45 {dimension_numbers = #tpu.dot_dimension_numbers<[1], [0], [0], [1], [0, 0, 1, 1], [], []>} : vector<512x64xbf16>, vector<64x128xbf16>, vector<512x128xf32> -> vector<512x128xf32>
    %34 = arith.addf %29, %33 : vector<512x128xf32>
    %c0_46 = arith.constant 0 : index
    %c0_47 = arith.constant 0 : index
    %c2 = arith.constant 2 : index
    %c0_48 = arith.constant 0 : index
    %35 = vector.load %arg9[%c0_46, %c0_47, %c2, %c0_48] : memref<2x18x18x64xbf16, #tpu.memory_space<vmem>>, vector<2x16x16x64xbf16>
    %36 = vector.shape_cast %35 : vector<2x16x16x64xbf16> to vector<512x64xbf16>
    %c128 = arith.constant 128 : index
    %c0_49 = arith.constant 0 : index
    %37 = vector.load %arg5[%c128, %c0_49] : memref<576x128xbf16, #tpu.memory_space<vmem>>, vector<64x128xbf16>
    %cst_50 = arith.constant dense<0.000000e+00> : vector<512x128xf32>
    %38 = tpu.matmul %36, %37, %cst_50 {dimension_numbers = #tpu.dot_dimension_numbers<[1], [0], [0], [1], [0, 0, 1, 1], [], []>} : vector<512x64xbf16>, vector<64x128xbf16>, vector<512x128xf32> -> vector<512x128xf32>
    %39 = arith.addf %34, %38 : vector<512x128xf32>
    %c0_51 = arith.constant 0 : index
    %c1_52 = arith.constant 1 : index
    %c0_53 = arith.constant 0 : index
    %c0_54 = arith.constant 0 : index
    %40 = vector.load %arg9[%c0_51, %c1_52, %c0_53, %c0_54] : memref<2x18x18x64xbf16, #tpu.memory_space<vmem>>, vector<2x16x16x64xbf16>
    %41 = vector.shape_cast %40 : vector<2x16x16x64xbf16> to vector<512x64xbf16>
    %c192 = arith.constant 192 : index
    %c0_55 = arith.constant 0 : index
    %42 = vector.load %arg5[%c192, %c0_55] : memref<576x128xbf16, #tpu.memory_space<vmem>>, vector<64x128xbf16>
    %cst_56 = arith.constant dense<0.000000e+00> : vector<512x128xf32>
    %43 = tpu.matmul %41, %42, %cst_56 {dimension_numbers = #tpu.dot_dimension_numbers<[1], [0], [0], [1], [0, 0, 1, 1], [], []>} : vector<512x64xbf16>, vector<64x128xbf16>, vector<512x128xf32> -> vector<512x128xf32>
    %44 = arith.addf %39, %43 : vector<512x128xf32>
    %c0_57 = arith.constant 0 : index
    %c1_58 = arith.constant 1 : index
    %c1_59 = arith.constant 1 : index
    %c0_60 = arith.constant 0 : index
    %45 = vector.load %arg9[%c0_57, %c1_58, %c1_59, %c0_60] : memref<2x18x18x64xbf16, #tpu.memory_space<vmem>>, vector<2x16x16x64xbf16>
    %46 = vector.shape_cast %45 : vector<2x16x16x64xbf16> to vector<512x64xbf16>
    %c256 = arith.constant 256 : index
    %c0_61 = arith.constant 0 : index
    %47 = vector.load %arg5[%c256, %c0_61] : memref<576x128xbf16, #tpu.memory_space<vmem>>, vector<64x128xbf16>
    %cst_62 = arith.constant dense<0.000000e+00> : vector<512x128xf32>
    %48 = tpu.matmul %46, %47, %cst_62 {dimension_numbers = #tpu.dot_dimension_numbers<[1], [0], [0], [1], [0, 0, 1, 1], [], []>} : vector<512x64xbf16>, vector<64x128xbf16>, vector<512x128xf32> -> vector<512x128xf32>
    %49 = arith.addf %44, %48 : vector<512x128xf32>
    %c0_63 = arith.constant 0 : index
    %c1_64 = arith.constant 1 : index
    %c2_65 = arith.constant 2 : index
    %c0_66 = arith.constant 0 : index
    %50 = vector.load %arg9[%c0_63, %c1_64, %c2_65, %c0_66] : memref<2x18x18x64xbf16, #tpu.memory_space<vmem>>, vector<2x16x16x64xbf16>
    %51 = vector.shape_cast %50 : vector<2x16x16x64xbf16> to vector<512x64xbf16>
    %c320 = arith.constant 320 : index
    %c0_67 = arith.constant 0 : index
    %52 = vector.load %arg5[%c320, %c0_67] : memref<576x128xbf16, #tpu.memory_space<vmem>>, vector<64x128xbf16>
    %cst_68 = arith.constant dense<0.000000e+00> : vector<512x128xf32>
    %53 = tpu.matmul %51, %52, %cst_68 {dimension_numbers = #tpu.dot_dimension_numbers<[1], [0], [0], [1], [0, 0, 1, 1], [], []>} : vector<512x64xbf16>, vector<64x128xbf16>, vector<512x128xf32> -> vector<512x128xf32>
    %54 = arith.addf %49, %53 : vector<512x128xf32>
    %c0_69 = arith.constant 0 : index
    %c2_70 = arith.constant 2 : index
    %c0_71 = arith.constant 0 : index
    %c0_72 = arith.constant 0 : index
    %55 = vector.load %arg9[%c0_69, %c2_70, %c0_71, %c0_72] : memref<2x18x18x64xbf16, #tpu.memory_space<vmem>>, vector<2x16x16x64xbf16>
    %56 = vector.shape_cast %55 : vector<2x16x16x64xbf16> to vector<512x64xbf16>
    %c384 = arith.constant 384 : index
    %c0_73 = arith.constant 0 : index
    %57 = vector.load %arg5[%c384, %c0_73] : memref<576x128xbf16, #tpu.memory_space<vmem>>, vector<64x128xbf16>
    %cst_74 = arith.constant dense<0.000000e+00> : vector<512x128xf32>
    %58 = tpu.matmul %56, %57, %cst_74 {dimension_numbers = #tpu.dot_dimension_numbers<[1], [0], [0], [1], [0, 0, 1, 1], [], []>} : vector<512x64xbf16>, vector<64x128xbf16>, vector<512x128xf32> -> vector<512x128xf32>
    %59 = arith.addf %54, %58 : vector<512x128xf32>
    %c0_75 = arith.constant 0 : index
    %c2_76 = arith.constant 2 : index
    %c1_77 = arith.constant 1 : index
    %c0_78 = arith.constant 0 : index
    %60 = vector.load %arg9[%c0_75, %c2_76, %c1_77, %c0_78] : memref<2x18x18x64xbf16, #tpu.memory_space<vmem>>, vector<2x16x16x64xbf16>
    %61 = vector.shape_cast %60 : vector<2x16x16x64xbf16> to vector<512x64xbf16>
    %c448 = arith.constant 448 : index
    %c0_79 = arith.constant 0 : index
    %62 = vector.load %arg5[%c448, %c0_79] : memref<576x128xbf16, #tpu.memory_space<vmem>>, vector<64x128xbf16>
    %cst_80 = arith.constant dense<0.000000e+00> : vector<512x128xf32>
    %63 = tpu.matmul %61, %62, %cst_80 {dimension_numbers = #tpu.dot_dimension_numbers<[1], [0], [0], [1], [0, 0, 1, 1], [], []>} : vector<512x64xbf16>, vector<64x128xbf16>, vector<512x128xf32> -> vector<512x128xf32>
    %64 = arith.addf %59, %63 : vector<512x128xf32>
    %c0_81 = arith.constant 0 : index
    %c2_82 = arith.constant 2 : index
    %c2_83 = arith.constant 2 : index
    %c0_84 = arith.constant 0 : index
    %65 = vector.load %arg9[%c0_81, %c2_82, %c2_83, %c0_84] : memref<2x18x18x64xbf16, #tpu.memory_space<vmem>>, vector<2x16x16x64xbf16>
    %66 = vector.shape_cast %65 : vector<2x16x16x64xbf16> to vector<512x64xbf16>
    %c512 = arith.constant 512 : index
    %c0_85 = arith.constant 0 : index
    %67 = vector.load %arg5[%c512, %c0_85] : memref<576x128xbf16, #tpu.memory_space<vmem>>, vector<64x128xbf16>
    %cst_86 = arith.constant dense<0.000000e+00> : vector<512x128xf32>
    %68 = tpu.matmul %66, %67, %cst_86 {dimension_numbers = #tpu.dot_dimension_numbers<[1], [0], [0], [1], [0, 0, 1, 1], [], []>} : vector<512x64xbf16>, vector<64x128xbf16>, vector<512x128xf32> -> vector<512x128xf32>
    %69 = arith.addf %64, %68 : vector<512x128xf32>
    %c0_87 = arith.constant 0 : index
    %c0_88 = arith.constant 0 : index
    %c0_89 = arith.constant 0 : index
    %c0_90 = arith.constant 0 : index
    %70 = vector.load %arg1[%c0_87, %c0_88, %c0_89, %c0_90] : memref<2x16x16x128xbf16, #tpu.memory_space<vmem>>, vector<2x16x16x128xbf16>
    %71 = vector.shape_cast %70 : vector<2x16x16x128xbf16> to vector<512x128xbf16>
    %72 = arith.extf %71 : vector<512x128xbf16> to vector<512x128xf32>
    %c0_91 = arith.constant 0 : index
    %c0_92 = arith.constant 0 : index
    %73 = vector.load %arg6[%c0_91, %c0_92] : memref<1x128xf32, #tpu.memory_space<vmem>>, vector<1x128xf32>
    %74 = vector.broadcast %73 : vector<1x128xf32> to vector<512x128xf32>
    %75 = arith.mulf %69, %74 : vector<512x128xf32>
    %c0_93 = arith.constant 0 : index
    %c0_94 = arith.constant 0 : index
    %76 = vector.load %arg7[%c0_93, %c0_94] : memref<1x128xf32, #tpu.memory_space<vmem>>, vector<1x128xf32>
    %77 = vector.broadcast %76 : vector<1x128xf32> to vector<512x128xf32>
    %78 = arith.addf %75, %77 : vector<512x128xf32>
    %cst_95 = arith.constant 0.000000e+00 : f32
    %79 = vector.broadcast %cst_95 : f32 to vector<512x128xf32>
    %80 = arith.cmpf ogt, %78, %79 : vector<512x128xf32>
    %cst_96 = arith.constant 1.000000e-01 : f32
    %81 = vector.broadcast %cst_96 : f32 to vector<512x128xf32>
    %82 = arith.mulf %81, %78 : vector<512x128xf32>
    %83 = arith.select %80, %78, %82 : vector<512x128xi1>, vector<512x128xf32>
    %84 = arith.addf %83, %72 : vector<512x128xf32>
    %85 = vector.shape_cast %84 : vector<512x128xf32> to vector<2x16x16x128xf32>
    %86 = arith.truncf %85 : vector<2x16x16x128xf32> to vector<2x16x16x128xbf16>
    %c0_97 = arith.constant 0 : index
    %c0_98 = arith.constant 0 : index
    %c0_99 = arith.constant 0 : index
    %c0_100 = arith.constant 0 : index
    %87 = vector.load %arg8[%c0_97, %c0_98, %c0_99, %c0_100] : memref<2x16x16x128xbf16, #tpu.memory_space<vmem>>, vector<2x16x16x128xbf16>
    tpu.vector_store %arg8[%c0_97, %c0_98, %c0_99, %c0_100], %86 {strides = array<i32>} : memref<2x16x16x128xbf16, #tpu.memory_space<vmem>>, vector<2x16x16x128xbf16>,
    return
  }
  func.func @transform_0(%arg0: i32) -> (i32, i32, i32, i32) {
    %c0_i32 = arith.constant 0 : i32
    %c0_i32_0 = arith.constant 0 : i32
    %c0_i32_1 = arith.constant 0 : i32
    %c0_i32_2 = arith.constant 0 : i32
    return %arg0, %c0_i32, %c0_i32_0, %c0_i32_1 : i32, i32, i32, i32
  }
  func.func @transform_1(%arg0: i32) -> (i32, i32) {
    %c0_i32 = arith.constant 0 : i32
    %c0_i32_0 = arith.constant 0 : i32
    %c0_i32_1 = arith.constant 0 : i32
    return %c0_i32, %c0_i32_0 : i32, i32
  }
  func.func @transform_2(%arg0: i32) -> (i32, i32) {
    %c0_i32 = arith.constant 0 : i32
    %c0_i32_0 = arith.constant 0 : i32
    %c0_i32_1 = arith.constant 0 : i32
    return %c0_i32, %c0_i32_0 : i32, i32
  }
  func.func @transform_3(%arg0: i32) -> (i32, i32) {
    %c0_i32 = arith.constant 0 : i32
    %c0_i32_0 = arith.constant 0 : i32
    %c0_i32_1 = arith.constant 0 : i32
    return %c0_i32, %c0_i32_0 : i32, i32
  }
  func.func @transform_4(%arg0: i32) -> (i32, i32) {
    %c0_i32 = arith.constant 0 : i32
    %c0_i32_0 = arith.constant 0 : i32
    %c0_i32_1 = arith.constant 0 : i32
    return %c0_i32, %c0_i32_0 : i32, i32
  }
  func.func @transform_5(%arg0: i32) -> (i32, i32) {
    %c0_i32 = arith.constant 0 : i32
    %c0_i32_0 = arith.constant 0 : i32
    %c0_i32_1 = arith.constant 0 : i32
    return %c0_i32, %c0_i32_0 : i32, i32
  }
  func.func @transform_6(%arg0: i32) -> (i32, i32) {
    %c0_i32 = arith.constant 0 : i32
    %c0_i32_0 = arith.constant 0 : i32
    %c0_i32_1 = arith.constant 0 : i32
    return %c0_i32, %c0_i32_0 : i32, i32
  }
  func.func @transform_7(%arg0: i32) -> (i32, i32, i32, i32) {
    %c0_i32 = arith.constant 0 : i32
    %c0_i32_0 = arith.constant 0 : i32
    %c0_i32_1 = arith.constant 0 : i32
    %c0_i32_2 = arith.constant 0 : i32
    return %arg0, %c0_i32, %c0_i32_0, %c0_i32_1 : i32, i32, i32, i32
  }
}

</mosaic_0001>

<bundles_post_ra>
// kernel: resblock_forward.1
= control target key start
LH: loop header
LB: loop body
LE: loop exit
PB: predicated region body
PF: predicated region fallthrough
CT: control target
= control target key end

     0   :  { %s12780_s24 = smov 0   ;;  %s16502_s0 = inlined_call_operand.vmem [shape: bf16[8,16,16,128], index: 0, kind: input, shape index: {}]   ;;  %s16503_s1 = inlined_call_operand.vmem [shape: bf16[128,64], index: 1, kind: input, shape index: {}]   ;;  %s16504_s2 = inlined_call_operand.vmem [shape: f32[1,64], index: 2, kind: input, shape index: {}]   ;;  %s16505_s3 = inlined_call_operand.vmem [shape: f32[1,64], index: 3, kind: input, shape index: {}]   ;;  %s16506_s4 = inlined_call_operand.vmem [shape: bf16[576,128], index: 4, kind: input, shape index: {}]   ;;  %s16507_s5 = inlined_call_operand.vmem [shape: f32[1,128], index: 5, kind: input, shape index: {}]   ;;  %s16508_s6 = inlined_call_operand.vmem [shape: f32[1,128], index: 6, kind: input, shape index: {}]   ;;  %s16509_s7 = inlined_call_operand.vmem [shape: bf16[8,16,16,128], index: 7, kind: output, shape index: {}]  }
   0x1 LB: > { %s10909_s25 = sadd.s32 4294967295, %s12737_s24   ;;  %p10913_p0 = scmp.ge.s32.totalorder %s12737_s24, 1  ;;  %s12737_s24 = sphi %s12780_s24, %s17_s24  }
   0x2   : > { %p239_p1 = scmp.lt.s32.totalorder %s12737_s24, 5 }
   0x4   : > { %p240_p2 = pnand %p10913_p0, %p239_p1 }
   0x6   : > { %243 = sbr.rel (%p240_p2) target bundleno = 1879 (0x757), region = 48 }
   0xb   : > { %v12035_v0 = vld [vmem:[%s16503_s1 + $0x38] sm:$0xff]  ;;  %v12034_v1 = vld [vmem:[%s16503_s1 + $0x30] sm:$0xff]  ;;  %v12033_v2 = vld [vmem:[%s16503_s1 + $0x28] sm:$0xff]  ;;  %s10914_s11 = sshll.u32 %s10909_s25, 1  ;;  %vm1169_vm0 = vcmask 519168   ;;  %v12739_v15 = vmov 0  }
   0xc   : > { %608 = vmatpush.bf16.msra.mxu0 %v12035_v0  ;;  %v12032_v3 = vld [vmem:[%s16503_s1 + $0x20] sm:$0xff]  ;;  %v12031_v4 = vld [vmem:[%s16503_s1 + $0x18] sm:$0xff]  ;;  %p274_p3 = scmp.lt.s32.totalorder %s10914_s11, 7  ;;  %v12030_v5 = vld [vmem:[%s16503_s1 + $0x10] sm:$0xff]  ;;  %1170 = vst.msk [vmem:[#allocation2] sm:$0xf] %vm1169_vm0, %v12739_v15 }
   0xd   : > { %v12029_v6 = vld [vmem:[%s16503_s1 + $0x8] sm:$0xff]  ;;  %v12028_v7 = vld [vmem:[%s16503_s1] sm:$0xff]  ;;  %1171 = vst.msk [vmem:[#allocation2 + $0x4] sm:$0xf] %vm1169_vm0, %v12739_v15  ;;  %vm1172_vm1 = vcmask 516096   ;;  %v16515_v16 = vmov 0 }
   0xe   : > { %s17143_s11 = smov (!%p274_p3, %s10914_s11), 7  ;;  %1174 = vst.msk [vmem:[#allocation2 + $0xd8] sm:$0xf] %vm1169_vm0, %v12739_v15  ;;  %vm1185_vm2 = vsmask.f32 256  ;;  %v16518_v21 = vmov 0 }
   0xf   : > { %s11994_s18 = sshll.u32 %s17143_s11, 7  ;;  %1173 = vst.msk [vmem:[#allocation2 + $0x8] sm:$0x1] %vm1172_vm1, %v12739_v15  ;;  %vm12836_vm3 = vmand %vm1172_vm1, %vm1185_vm2  ;;  %v1190_v17 = vld [vmem:[#allocation2 + $0xc] sm:$0x1]  ;;  %v12075_v25 = vld [vmem:[%s16506_s4 + $0x38] sm:$0xff] }
  0x10   : > { %609 = vmatpush.bf16.msra.mxu0 %v12034_v1  ;;  %s12820_s23 = scalar_lea.vmem %s16502_s0, %s11994_s18  ;;  %1175 = vst.msk [vmem:[#allocation2 + $0xdc] sm:$0xf] %vm1169_vm0, %v12739_v15  ;;  %v16516_v16 = vsel %vm12836_vm3, 4294967295, %v16515_v16  ;;  %v1191_v18 = vsel %vm12836_vm3, 0, %v1190_v17  ;;  %vm1295_vm4 = vsmask.f32 7938  ;;  %3378 = vmatpush.bf16.msra.mxu1 %v12075_v25  ;;  %s15686_s28 = scalar_lea.vmem %s16509_s7, %s11994_s18 }
  0x11   : > { %v11996_v8 = vld [vmem:[%s12820_s23] sm:$0xff]  ;;  %v11997_v9 = vld [vmem:[%s12820_s23 + $0x8] sm:$0xff]  ;;  %v11998_v10 = vld [vmem:[%s12820_s23 + $0x10] sm:$0xff]  ;;  %16517 = vst [vmem:[#allocation3_spill] sm:$0xff] %v16516_v16  ;;  %12518 = vmatpush.bf16.msra.mxu3 %v12075_v25  ;;  %vm2378_vm6 = vsmask.f32 3328 }
  0x12   : > { %v11999_v11 = vld [vmem:[%s12820_s23 + $0x18] sm:$0xff]  ;;  %v12000_v12 = vld [vmem:[%s12820_s23 + $0x20] sm:$0xff]  ;;  %v12001_v13 = vld [vmem:[%s12820_s23 + $0x28] sm:$0xff]  ;;  %1176 = vst.msk [vmem:[#allocation2 + $0xe0] sm:$0x1] %vm1172_vm1, %v12739_v15  ;;  %vm3277_vm9 = vcmask 523264  }
  0x13   : > { %v12002_v14 = vld [vmem:[%s12820_s23 + $0x30] sm:$0xff]  ;;  %1178 = vst.msk [vmem:[#allocation2 + $0xcc] sm:$0xf] %vm1169_vm0, %v12739_v15  ;;  %v1187_v19 = vld [vmem:[#allocation2] sm:$0x1]  ;;  %vm12849_vm5 = vmand %vm1172_vm1, %vm1295_vm4 }
  0x14   : > { %610 = vmatpush.bf16.msra.mxu0 %v12033_v2  ;;  %1192 = vst [vmem:[#allocation2 + $0xc] sm:$0x1] %v1191_v18  ;;  %v1188_v20 = vsel %vm12836_vm3, 0, %v1187_v19  ;;  %v16519_v21 = vsel %vm12849_vm5, 4294967295, %v16518_v21  ;;  %v1300_v24 = vld [vmem:[#allocation2 + $0x14] sm:$0x1]  ;;  %vm12906_vm11 = vmand %vm1169_vm0, %vm1295_vm4 }
  0x15   : > { %1179 = vst.msk [vmem:[#allocation2 + $0xd0] sm:$0xf] %vm1169_vm0, %v12739_v15  ;;  %v12003_v26 = vld [vmem:[%s12820_s23 + $0x38] sm:$0xff]  ;;  %v1301_v27 = vsel %vm12849_vm5, 0, %v1300_v24  ;;  %v2275_v29 = vld [vmem:[#allocation2 + $0x4] sm:$0xf] }
  0x16   : > { %1189 = vst [vmem:[#allocation2] sm:$0x1] %v1188_v20  ;;  %v1297_v22 = vld [vmem:[#allocation2 + $0x8] sm:$0x1]  ;;  %v12074_v30 = vld [vmem:[%s16506_s4 + $0x30] sm:$0xff]  ;;  %v2391_v33 = vshll.u32 %v2275_v29, 16 }
  0x17   : > { %16520 = vst [vmem:[#allocation4_spill] sm:$0xff] %v16519_v21  ;;  %v1298_v23 = vsel %vm12849_vm5, 0, %v1297_v22  ;;  %v2395_v34 = vshrl.u32 %v2275_v29, 16  ;;  %3379 = vmatpush.bf16.msra.mxu1 %v12074_v30  ;;  %12519 = vmatpush.bf16.msra.mxu3 %v12074_v30  ;;  %v12073_v40 = vld [vmem:[%s16506_s4 + $0x28] sm:$0xff]  ;;  %v1193_v44 = vld [vmem:[#allocation2 + $0x18] sm:$0x1] }
  0x18   : > { %611 = vmatpush.bf16.msra.mxu0 %v12032_v3  ;;  %1180 = vst.msk [vmem:[#allocation2 + $0xd4] sm:$0x1] %vm1172_vm1, %v12739_v15  ;;  %v2393_v37 = vrot.slane %v2391_v33, 5  ;;  %v1194_v45 = vsel %vm12836_vm3, 0, %v1193_v44  ;;  %vm2379_vm7 = vsmask.f32 7440 }
  0x19   : > { %1181 = vst.msk [vmem:[#allocation2 + $0x1a4] sm:$0xf] %vm1169_vm0, %v12739_v15  ;;  %v2397_v38 = vrot.slane %v2395_v34, 4  ;;  %vm12873_vm8 = vmor %vm2378_vm6, %vm2379_vm7  ;;  %v12072_v50 = vld [vmem:[%s16506_s4 + $0x20] sm:$0xff]  ;;  %v12005_v17 = vld [vmem:[%s12820_s23 + $0x48] sm:$0xff] }
  0x1a   : > { %1182 = vst.msk [vmem:[#allocation2 + $0x1a8] sm:$0xf] %vm1169_vm0, %v12739_v15  ;;  %v12887_v55 = vld [vmem:[%s16504_s2] ss:$0 sm:$0xff]  ;;  %v1196_v2 = vld [vmem:[#allocation2 + $0x24] sm:$0x1] }
  0x1b   : > { %1299 = vst [vmem:[#allocation2 + $0x8] sm:$0x1] %v1298_v23  ;;  %v2398_v42 = vor.u32 %v2397_v38, %v2393_v37  ;;  %3380 = vmatpush.bf16.msra.mxu1 %v12073_v40  ;;  %12520 = vmatpush.bf16.msra.mxu3 %v12073_v40  ;;  %v12892_v57 = vld [vmem:[%s16505_s3] ss:$0 sm:$0xff]  ;;  %v1306_v18 = vld [vmem:[#allocation2 + $0x2c] sm:$0x1] }
  0x1c   : > { %612 = vmatpush.bf16.msra.mxu0 %v12031_v4  ;;  %1183 = vst.msk [vmem:[#allocation2 + $0x1ac] sm:$0x1] %vm1172_vm1, %v12739_v15  ;;  %v12004_v58 = vld [vmem:[%s12820_s23 + $0x40] sm:$0xff]  ;;  %v1307_v23 = vsel %vm12849_vm5, 0, %v1306_v18  ;;  %vm1405_vm13 = vsmask.f32 4368 }
  0x1d   : > { %1302 = vst [vmem:[#allocation2 + $0x14] sm:$0x1] %v1301_v27  ;;  %v2274_v28 = vld [vmem:[#allocation2] sm:$0xf]  ;;  %v2399_v48 = vrot.slane %v2398_v42, 4  ;;  %vm12918_vm14 = vmor %vm1185_vm2, %vm1405_vm13  ;;  %v12163_v29 = vld [vmem:[%s16506_s4 + $0xf8] sm:$0xff] }
  0x1e   : > { %v2382_v31 = vshrl.u32 %v2274_v28, 16  ;;  %v2385_v32 = vshll.u32 %v2274_v28, 16  ;;  %1195 = vst [vmem:[#allocation2 + $0x18] sm:$0x1] %v1194_v45  ;;  %v1303_v59 = vld [vmem:[#allocation2 + $0x20] sm:$0x1] }
  0x1f   : > { %3381 = vmatpush.bf16.msra.mxu1 %v12072_v50  ;;  %12521 = vmatpush.bf16.msra.mxu3 %v12072_v50  ;;  %v1304_v61 = vsel %vm12849_vm5, 0, %v1303_v59  ;;  %1308 = vst [vmem:[#allocation2 + $0x2c] sm:$0x1] %v1307_v23  ;;  %v12006_v59 = vld [vmem:[%s12820_s23 + $0x50] sm:$0xff] }
  0x20   : > { %613 = vmatpush.bf16.msra.mxu0 %v12030_v5  ;;  %v2384_v35 = vrot.slane %v2382_v31, 4  ;;  %v2387_v36 = vrot.slane %v2385_v32, 5  ;;  %1305 = vst [vmem:[#allocation2 + $0x20] sm:$0x1] %v1304_v61  ;;  %v1197_v5 = vsel %vm12836_vm3, 0, %v1196_v2 }
  0x21   : > { %1198 = vst [vmem:[#allocation2 + $0x24] sm:$0x1] %v1197_v5 }
  0x22   : > { %v2346_v39 = vld [vmem:[#allocation2 + $0x8] sm:$0x1]  ;;  %v2388_v41 = vor.u32 %v2387_v36, %v2384_v35  ;;  %v1199_v36 = vld [vmem:[#allocation2 + $0x30] sm:$0x1] }
  0x23   : > { %v2401_v43 = vshll.u32 %v2346_v39, 16  ;;  %v1200_v42 = vsel %vm12836_vm3, 0, %v1199_v36 }
  0x24   : > { %614 = vmatpush.bf16.msra.mxu0 %v12029_v6  ;;  %v2389_v46 = vrot.slane %v2388_v41, 4  ;;  %v2054_v30 = vld [vmem:[#allocation2 + $0x14] sm:$0x1]  ;;  %1201 = vst [vmem:[#allocation2 + $0x30] sm:$0x1] %v1200_v42 }
  0x25   : > { %v2403_v49 = vrot.slane %v2401_v43, 5 }
  0x26   : > { %v2394_v51 = vsel %vm12873_vm8, %v2389_v46, %v2393_v37 }
  0x27   : > { %v2404_v52 = vsel %vm12873_vm8, %v2399_v48, %v2403_v49  ;;  %v3157_v53 = vunpack.c.l.b16 %v2394_v51  ;;  %v2057_v51 = vld [vmem:[#allocation2 + $0x18] sm:$0xf] }
  0x28   : > { %615 = vmatpush.bf16.msra.mxu0 %v12028_v7  ;;  %v3158_v54 = vunpack.c.l.b16 %v2404_v52 }
  0x2a   : > { %v3221_v56 = vpack.c.b16 %v3158_v54, %v3157_v53 }
  0x2b   : > { %616 = vmatmul.bf16.vlgmr.msra.gmra.mxu0 %v11996_v8 }
  0x2c   : > { %11096 = vmatmul.msk.bf16.vlgmr.msra.gmra.mxu1 %vm3277_vm9, %v3221_v56 }
  0x3b   : > { %621 = vmatmul.bf16.gmra.mxu0 %v11997_v9 }
  0x4b   : > { %626 = vmatmul.bf16.gmra.mxu0 %v11998_v10 }
  0x5b   : > { %631 = vmatmul.bf16.gmra.mxu0 %v11999_v11 }
  0x6b   : > { %636 = vmatmul.bf16.gmra.mxu0 %v12000_v12  ;;  %v2050_v12 = vld [vmem:[#allocation2 + $0xc] sm:$0xf] }
  0x7b   : > { %641 = vmatmul.bf16.gmra.mxu0 %v12001_v13 }
  0x8b   : > { %646 = vmatmul.bf16.gmra.mxu0 %v12002_v14 }
  0x9b   : > { %651 = vmatmul.bf16.gmra.mxu0 %v12003_v26 }
  0xa8   : > { %v617_v60 = vpop.f32.mrf.mxu0 }
  0xa9   : > { %v781_v62 = vmul.f32 %v12887_v55, %v617_v60  ;;  %v1309_v60 = vld [vmem:[#allocation2 + $0x38] sm:$0x1] }
  0xab   : > { %v849_v63 = vadd.f32 %v12892_v57, %v781_v62  ;;  %656 = vmatmul.bf16.gmra.mxu0 %v12004_v58 }
  0xad   : > { %vm913_vm10 = vcmp.gt.f32.partialorder %v849_v63, 0.0  ;;  %v977_v0 = vmul.f32 0.1, %v849_v63 }
  0xaf   : > { %v1041_v1 = vsel %vm913_vm10, %v849_v63, %v977_v0  ;;  %vm4088_vm10 = vcmask 1042432  }
  0xb0   : > { %v1105_v3 = vpack.c.bf16 %v1041_v1, %v1041_v1  ;;  %v619_v4 = vpop.f32.mrf.mxu0  ;;  %v1310_v1 = vsel %vm12849_vm5, 0, %v1309_v60 }
  0xb1   : > { %v782_v6 = vmul.f32 %v12887_v55, %v619_v4  ;;  %1311 = vst [vmem:[#allocation2 + $0x38] sm:$0x1] %v1310_v1 }
  0xb2   : > { %v1408_v7 = vshrl.u32 %v1105_v3, 16  ;;  %v1411_v10 = vshll.u32 %v1105_v3, 16 }
  0xb3   : > { %v850_v8 = vadd.f32 %v12892_v57, %v782_v6 }
  0xb4   : > { %v1410_v9 = vrot.slane %v1408_v7, 7 }
  0xb5   : > { %vm914_vm12 = vcmp.gt.f32.partialorder %v850_v8, 0.0  ;;  %v978_v13 = vmul.f32 0.1, %v850_v8 }
  0xb6   : > { %v1413_v14 = vor.u32 %v1411_v10, %v1410_v9  ;;  %v1414_v32 = vrot.slane %v1410_v9, 4 }
  0xb7   : > { %v1042_v15 = vsel %vm914_vm12, %v850_v8, %v978_v13  ;;  %vm4089_vm12 = vcmask 1046532  }
  0xb8   : > { %v2051_v19 = vsel %vm12906_vm11, %v1413_v14, %v2050_v12  ;;  %v1106_v20 = vpack.c.bf16 %v1042_v15, %v1042_v15  ;;  %v622_v22 = vpop.f32.mrf.mxu0  ;;  %v2061_v15 = vld [vmem:[#allocation2 + $0x20] sm:$0x1] }
  0xb9   : > { %2052 = vst [vmem:[#allocation2 + $0xc] sm:$0xf] %v2051_v19  ;;  %v783_v24 = vmul.f32 %v12887_v55, %v622_v22 }
  0xba   : > { %v1416_v25 = vshrl.u32 %v1106_v20, 16  ;;  %v1419_v28 = vshll.u32 %v1106_v20, 16 }
  0xbb   : > { %v851_v26 = vadd.f32 %v12892_v57, %v783_v24  ;;  %661 = vmatmul.bf16.gmra.mxu0 %v12005_v17 }
  0xbc   : > { %v1418_v27 = vrot.slane %v1416_v25, 7 }
  0xbd   : > { %vm915_vm15 = vcmp.gt.f32.partialorder %v851_v26, 0.0  ;;  %v979_v31 = vmul.f32 0.1, %v851_v26 }
  0xbe   : > { %v1421_v33 = vor.u32 %v1419_v28, %v1418_v27  ;;  %v1423_v34 = vrot.slane %v1418_v27, 4  ;;  %v1202_v28 = vld [vmem:[#allocation2 + $0x3c] sm:$0x1] }
  0xbf   : > { %v1043_v35 = vsel %vm915_vm15, %v851_v26, %v979_v31  ;;  %vm13012_vm15 = vmor %vm4088_vm10, %vm4089_vm12 }
  0xc0   : > { %v1422_v37 = vsel %vm12918_vm14, %v1414_v32, %v1421_v33  ;;  %v2055_v38 = vsel %vm12836_vm3, %v1423_v34, %v2054_v30  ;;  %v1107_v39 = vpack.c.bf16 %v1043_v35, %v1043_v35  ;;  %v624_v40 = vpop.f32.mrf.mxu0  ;;  %v2276_v41 = vld [vmem:[#allocation2 + $0xc] sm:$0xf]  ;;  %v1203_v35 = vsel %vm12836_vm3, 0, %v1202_v28 }
  0xc1   : > { %2053 = vst.msk [vmem:[#allocation2 + $0x10] sm:$0xf] %vm1169_vm0, %v1422_v37  ;;  %v784_v43 = vmul.f32 %v12887_v55, %v624_v40  ;;  %v2406_v44 = vshrl.u32 %v2276_v41, 16  ;;  %v2409_v45 = vshll.u32 %v2276_v41, 16 }
  0xc2   : > { %2056 = vst [vmem:[#allocation2 + $0x14] sm:$0x1] %v2055_v38  ;;  %v1425_v46 = vshrl.u32 %v1107_v39, 16  ;;  %v1428_v50 = vshll.u32 %v1107_v39, 16 }
  0xc3   : > { %v852_v48 = vadd.f32 %v12892_v57, %v784_v43  ;;  %v2408_v53 = vrot.slane %v2406_v44, 4  ;;  %v2411_v54 = vrot.slane %v2409_v45, 5  ;;  %1204 = vst [vmem:[#allocation2 + $0x3c] sm:$0x1] %v1203_v35 }
  0xc4   : > { %v1427_v49 = vrot.slane %v1425_v46, 7  ;;  %v2064_v46 = vld [vmem:[#allocation2 + $0x24] sm:$0xf] }
  0xc5   : > { %vm916_vm1 = vcmp.gt.f32.partialorder %v852_v48, 0.0  ;;  %v980_v52 = vmul.f32 0.1, %v852_v48  ;;  %v2412_v4 = vor.u32 %v2411_v54, %v2408_v53  ;;  %v12007_v54 = vld [vmem:[%s12820_s23 + $0x58] sm:$0xff] }
  0xc6   : > { %v1430_v56 = vor.u32 %v1428_v50, %v1427_v49  ;;  %v1431_v20 = vrot.slane %v1427_v49, 4 }
  0xc7   : > { %v1044_v58 = vsel %vm916_vm1, %v852_v48, %v980_v52  ;;  %v2413_v18 = vrot.slane %v2412_v4, 4 }
  0xc8   : > { %v2058_v61 = vsel %vm12906_vm11, %v1430_v56, %v2057_v51  ;;  %v1108_v62 = vpack.c.bf16 %v1044_v58, %v1044_v58  ;;  %v627_v63 = vpop.f32.mrf.mxu0  ;;  %v12934_v0 = vld [vmem:[#allocation2 + $0x10] sm:$0xf]  ;;  %v1312_v56 = vld [vmem:[#allocation2 + $0x44] sm:$0x1] }
  0xc9   : > { %2059 = vst [vmem:[#allocation2 + $0x18] sm:$0xf] %v2058_v61  ;;  %v785_v2 = vmul.f32 %v12887_v55, %v627_v63  ;;  %v12939_v3 = vld [vmem:[#allocation2 + $0x14] sm:$0x1]  ;;  %v2415_v5 = vshll.u32 %v12934_v0, 16  ;;  %v2419_v6 = vshrl.u32 %v12934_v0, 16 }
  0xca   : > { %v1433_v7 = vshrl.u32 %v1108_v62, 16  ;;  %v2425_v12 = vshll.u32 %v12939_v3, 16  ;;  %v1436_v14 = vshll.u32 %v1108_v62, 16  ;;  %v1313_v62 = vsel %vm12849_vm5, 0, %v1312_v56 }
  0xcb   : > { %v853_v8 = vadd.f32 %v12892_v57, %v785_v2  ;;  %666 = vmatmul.bf16.gmra.mxu0 %v12006_v59  ;;  %v2417_v9 = vrot.slane %v2415_v5, 5  ;;  %v2421_v10 = vrot.slane %v2419_v6, 4  ;;  %1314 = vst [vmem:[#allocation2 + $0x44] sm:$0x1] %v1313_v62 }
  0xcc   : > { %v1435_v13 = vrot.slane %v1433_v7, 7  ;;  %v2427_v27 = vrot.slane %v2425_v12, 5 }
  0xcd   : > { %vm917_vm2 = vcmp.gt.f32.partialorder %v853_v8, 0.0  ;;  %v981_v17 = vmul.f32 0.1, %v853_v8  ;;  %v2422_v19 = vor.u32 %v2421_v10, %v2417_v9  ;;  %v2418_v25 = vsel %vm12873_vm8, %v2413_v18, %v2417_v9 }
  0xce   : > { %v1438_v22 = vor.u32 %v1436_v14, %v1435_v13  ;;  %v1440_v23 = vrot.slane %v1435_v13, 4  ;;  %v3159_v41 = vunpack.c.l.b16 %v2418_v25  ;;  %v2068_v14 = vld [vmem:[#allocation2 + $0x2c] sm:$0x1] }
  0xcf   : > { %v1045_v24 = vsel %vm917_vm2, %v853_v8, %v981_v17  ;;  %v2423_v26 = vrot.slane %v2422_v19, 4 }
  0xd0   : > { %v1439_v30 = vsel %vm12918_vm14, %v1431_v20, %v1438_v22  ;;  %v2062_v31 = vsel %vm12836_vm3, %v1440_v23, %v2061_v15  ;;  %v1109_v32 = vpack.c.bf16 %v1045_v24, %v1045_v24  ;;  %v629_v33 = vpop.f32.mrf.mxu0  ;;  %v2278_v34 = vld [vmem:[#allocation2 + $0x18] sm:$0xf] }
  0xd1   : > { %2060 = vst.msk [vmem:[#allocation2 + $0x1c] sm:$0xf] %vm1169_vm0, %v1439_v30  ;;  %v786_v36 = vmul.f32 %v12887_v55, %v629_v33  ;;  %v2428_v37 = vsel %vm12873_vm8, %v2423_v26, %v2427_v27  ;;  %v2430_v38 = vshrl.u32 %v2278_v34, 16  ;;  %v2433_v39 = vshll.u32 %v2278_v34, 16  ;;  %v1205_v27 = vld [vmem:[#allocation2 + $0x48] sm:$0x1] }
  0xd2   : > { %2063 = vst [vmem:[#allocation2 + $0x20] sm:$0x1] %v2062_v31  ;;  %v1442_v40 = vshrl.u32 %v1109_v32, 16  ;;  %v3160_v42 = vunpack.c.l.b16 %v2428_v37  ;;  %v1445_v45 = vshll.u32 %v1109_v32, 16  ;;  %v1206_v34 = vsel %vm12836_vm3, 0, %v1205_v27 }
  0xd3   : > { %v854_v43 = vadd.f32 %v12892_v57, %v786_v36  ;;  %v2432_v50 = vrot.slane %v2430_v38, 4  ;;  %v2435_v51 = vrot.slane %v2433_v39, 5  ;;  %1207 = vst [vmem:[#allocation2 + $0x48] sm:$0x1] %v1206_v34 }
  0xd4   : > { %v1444_v44 = vrot.slane %v1442_v40, 7  ;;  %v3222_v48 = vpack.c.b16 %v3160_v42, %v3159_v41 }
  0xd5   : > { %vm918_vm4 = vcmp.gt.f32.partialorder %v854_v43, 0.0  ;;  %v982_v49 = vmul.f32 0.1, %v854_v43  ;;  %v2436_v2 = vor.u32 %v2435_v51, %v2432_v50 }
  0xd6   : > { %v1447_v52 = vor.u32 %v1445_v45, %v1444_v44  ;;  %11097 = vmatmul.msk.bf16.gmra.mxu1 %vm3277_vm9, %v3222_v48  ;;  %v1448_v19 = vrot.slane %v1444_v44, 4  ;;  %v2071_v45 = vld [vmem:[#allocation2 + $0x30] sm:$0xf] }
  0xd7   : > { %v1046_v53 = vsel %vm918_vm4, %v854_v43, %v982_v49  ;;  %v2437_v17 = vrot.slane %v2436_v2, 4 }
  0xd8   : > { %v2065_v58 = vsel %vm12906_vm11, %v1447_v52, %v2064_v46  ;;  %v1110_v59 = vpack.c.bf16 %v1046_v53, %v1046_v53  ;;  %v632_v60 = vpop.f32.mrf.mxu0  ;;  %v12962_v61 = vld [vmem:[#allocation2 + $0x1c] sm:$0xf]  ;;  %v12008_v53 = vld [vmem:[%s12820_s23 + $0x60] sm:$0xff] }
  0xd9   : > { %2066 = vst [vmem:[#allocation2 + $0x24] sm:$0xf] %v2065_v58  ;;  %v787_v63 = vmul.f32 %v12887_v55, %v632_v60  ;;  %v12967_v1 = vld [vmem:[#allocation2 + $0x20] sm:$0x1]  ;;  %v2439_v4 = vshll.u32 %v12962_v61, 16  ;;  %v2443_v5 = vshrl.u32 %v12962_v61, 16 }
  0xda   : > { %v1450_v6 = vshrl.u32 %v1110_v59, 16  ;;  %v2449_v10 = vshll.u32 %v12967_v1, 16  ;;  %v1453_v13 = vshll.u32 %v1110_v59, 16  ;;  %v12124_v16 = vld [vmem:[#allocation2 + $0x18] sm:$0xff] }
  0xdb   : > { %v855_v7 = vadd.f32 %v12892_v57, %v787_v63  ;;  %671 = vmatmul.bf16.gmra.mxu0 %v12007_v54  ;;  %v2441_v8 = vrot.slane %v2439_v4, 5  ;;  %v2445_v9 = vrot.slane %v2443_v5, 4  ;;  %v1315_v54 = vld [vmem:[#allocation2 + $0x50] sm:$0x1]  ;;  %v3993_v63 = vld [vmem:[#allocation2 + $0xc] sm:$0xe] }
  0xdc   : > { %v1452_v12 = vrot.slane %v1450_v6, 7  ;;  %v2451_v26 = vrot.slane %v2449_v10, 5  ;;  %v1316_v62 = vsel %vm12849_vm5, 0, %v1315_v54 }
  0xdd   : > { %vm919_vm6 = vcmp.gt.f32.partialorder %v855_v7, 0.0  ;;  %v983_v15 = vmul.f32 0.1, %v855_v7  ;;  %v2446_v18 = vor.u32 %v2445_v9, %v2441_v8  ;;  %v2442_v24 = vsel %vm12873_vm8, %v2437_v17, %v2441_v8  ;;  %1317 = vst [vmem:[#allocation2 + $0x50] sm:$0x1] %v1316_v62 }
  0xde   : > { %v1455_v20 = vor.u32 %v1453_v13, %v1452_v12  ;;  %v1457_v22 = vrot.slane %v1452_v12, 4  ;;  %v3161_v40 = vunpack.c.l.b16 %v2442_v24  ;;  %v11305_v17 = vrot.slane %v3993_v63, 9 }
  0xdf   : > { %v1047_v23 = vsel %vm919_vm6, %v855_v7, %v983_v15  ;;  %v2447_v25 = vrot.slane %v2446_v18, 4  ;;  %v2075_v18 = vld [vmem:[#allocation2 + $0x38] sm:$0x1] }
  0xe0   : > { %v1456_v28 = vsel %vm12918_vm14, %v1448_v19, %v1455_v20  ;;  %v2069_v30 = vsel %vm12836_vm3, %v1457_v22, %v2068_v14  ;;  %v1111_v31 = vpack.c.bf16 %v1047_v23, %v1047_v23  ;;  %v634_v32 = vpop.f32.mrf.mxu0  ;;  %v2280_v33 = vld [vmem:[#allocation2 + $0x24] sm:$0xf] }
  0xe1   : > { %2067 = vst.msk [vmem:[#allocation2 + $0x28] sm:$0xf] %vm1169_vm0, %v1456_v28  ;;  %v788_v35 = vmul.f32 %v12887_v55, %v634_v32  ;;  %v2452_v36 = vsel %vm12873_vm8, %v2447_v25, %v2451_v26  ;;  %v2454_v37 = vshrl.u32 %v2280_v33, 16  ;;  %v2457_v38 = vshll.u32 %v2280_v33, 16  ;;  %v1208_v32 = vld [vmem:[#allocation2 + $0x54] sm:$0x1] }
  0xe2   : > { %2070 = vst [vmem:[#allocation2 + $0x2c] sm:$0x1] %v2069_v30  ;;  %v1459_v39 = vshrl.u32 %v1111_v31, 16  ;;  %v3162_v41 = vunpack.c.l.b16 %v2452_v36  ;;  %v1462_v44 = vshll.u32 %v1111_v31, 16  ;;  %v4100_v26 = vrot.slane %v12934_v0, 5 }
  0xe3   : > { %v856_v42 = vadd.f32 %v12892_v57, %v788_v35  ;;  %v2456_v49 = vrot.slane %v2454_v37, 4  ;;  %v2459_v50 = vrot.slane %v2457_v38, 5  ;;  %v1209_v38 = vsel %vm12836_vm3, 0, %v1208_v32 }
  0xe4   : > { %v1461_v43 = vrot.slane %v1459_v39, 7  ;;  %v3223_v46 = vpack.c.b16 %v3162_v41, %v3161_v40  ;;  %1210 = vst [vmem:[#allocation2 + $0x54] sm:$0x1] %v1209_v38 }
  0xe5   : > { %vm920_vm7 = vcmp.gt.f32.partialorder %v856_v42, 0.0  ;;  %v984_v48 = vmul.f32 0.1, %v856_v42  ;;  %v2460_v5 = vor.u32 %v2459_v50, %v2456_v49  ;;  %v4101_v49 = vsel %vm13012_vm15, %v11305_v17, %v4100_v26 }
  0xe6   : > { %v1464_v51 = vor.u32 %v1462_v44, %v1461_v43  ;;  %11098 = vmatmul.msk.bf16.gmra.mxu1 %vm3277_vm9, %v3223_v46  ;;  %v1465_v23 = vrot.slane %v1461_v43, 4  ;;  %v4103_v46 = vrot.slane %v12939_v3, 5  ;;  %v4102_v50 = vrot.slane %v4100_v26, 4 }
  0xe7   : > { %v1048_v52 = vsel %vm920_vm7, %v856_v42, %v984_v48  ;;  %v2461_v20 = vrot.slane %v2460_v5, 4  ;;  %v4325_v63 = vunpack.c.l.b16 %v4101_v49 }
  0xe8   : > { %v2072_v56 = vsel %vm12906_vm11, %v1464_v51, %v2071_v45  ;;  %v1112_v58 = vpack.c.bf16 %v1048_v52, %v1048_v52  ;;  %v637_v59 = vpop.f32.mrf.mxu0  ;;  %v12990_v60 = vld [vmem:[#allocation2 + $0x28] sm:$0xf]  ;;  %v4104_v62 = vsel %vm13012_vm15, %v4102_v50, %v4103_v46 }
  0xe9   : > { %2073 = vst [vmem:[#allocation2 + $0x30] sm:$0xf] %v2072_v56  ;;  %v789_v2 = vmul.f32 %v12887_v55, %v637_v59  ;;  %v12995_v4 = vld [vmem:[#allocation2 + $0x2c] sm:$0x1]  ;;  %v2463_v6 = vshll.u32 %v12990_v60, 16  ;;  %v2467_v7 = vshrl.u32 %v12990_v60, 16 }
  0xea   : > { %v1467_v8 = vshrl.u32 %v1112_v58, 16  ;;  %v2473_v13 = vshll.u32 %v12995_v4, 16  ;;  %v1470_v15 = vshll.u32 %v1112_v58, 16  ;;  %v2078_v56 = vld [vmem:[#allocation2 + $0x3c] sm:$0xf] }
  0xeb   : > { %v857_v9 = vadd.f32 %v12892_v57, %v789_v2  ;;  %676 = vmatmul.bf16.gmra.mxu0 %v12008_v53  ;;  %v2465_v10 = vrot.slane %v2463_v6, 5  ;;  %v2469_v12 = vrot.slane %v2467_v7, 4  ;;  %v4326_v2 = vunpack.c.l.b16 %v4104_v62  ;;  %v12009_v6 = vld [vmem:[%s12820_s23 + $0x68] sm:$0xff]  ;;  %v1318_v7 = vld [vmem:[#allocation2 + $0x5c] sm:$0x1] }
  0xec   : > { %v1469_v14 = vrot.slane %v1467_v8, 7  ;;  %v2475_v31 = vrot.slane %v2473_v13, 5  ;;  %v1319_v13 = vsel %vm12849_vm5, 0, %v1318_v7 }
  0xed   : > { %vm921_vm13 = vcmp.gt.f32.partialorder %v857_v9, 0.0  ;;  %v985_v19 = vmul.f32 0.1, %v857_v9  ;;  %v2470_v22 = vor.u32 %v2469_v12, %v2465_v10  ;;  %v2466_v28 = vsel %vm12873_vm8, %v2461_v20, %v2465_v10  ;;  %1320 = vst [vmem:[#allocation2 + $0x5c] sm:$0x1] %v1319_v13 }
  0xee   : > { %v1472_v24 = vor.u32 %v1470_v15, %v1469_v14  ;;  %v1474_v25 = vrot.slane %v1469_v14, 4  ;;  %v3163_v44 = vunpack.c.l.b16 %v2466_v28  ;;  %v13032_v14 = vpack.c.b16 %v4326_v2, %v4325_v63 }
  0xef   : > { %v1049_v27 = vsel %vm921_vm13, %v857_v9, %v985_v19  ;;  %v2471_v30 = vrot.slane %v2470_v22, 4 }
  0xf0   : > { %v1473_v33 = vsel %vm12918_vm14, %v1465_v23, %v1472_v24  ;;  %v2076_v34 = vsel %vm12836_vm3, %v1474_v25, %v2075_v18  ;;  %v1113_v35 = vpack.c.bf16 %v1049_v27, %v1049_v27  ;;  %v639_v36 = vpop.f32.mrf.mxu0  ;;  %v2282_v37 = vld [vmem:[#allocation2 + $0x30] sm:$0xf] }
  0xf1   : > { %2074 = vst.msk [vmem:[#allocation2 + $0x34] sm:$0xf] %vm1169_vm0, %v1473_v33  ;;  %v790_v39 = vmul.f32 %v12887_v55, %v639_v36  ;;  %v2476_v40 = vsel %vm12873_vm8, %v2471_v30, %v2475_v31  ;;  %v2478_v41 = vshrl.u32 %v2282_v37, 16  ;;  %v2481_v42 = vshll.u32 %v2282_v37, 16  ;;  %v2082_v30 = vld [vmem:[#allocation2 + $0x44] sm:$0x1] }
  0xf2   : > { %2077 = vst [vmem:[#allocation2 + $0x38] sm:$0x1] %v2076_v34  ;;  %v1476_v43 = vshrl.u32 %v1113_v35, 16  ;;  %v3164_v45 = vunpack.c.l.b16 %v2476_v40  ;;  %v1479_v52 = vshll.u32 %v1113_v35, 16 }
  0xf3   : > { %v858_v48 = vadd.f32 %v12892_v57, %v790_v39  ;;  %v2480_v54 = vrot.slane %v2478_v41, 4  ;;  %v2483_v59 = vrot.slane %v2481_v42, 5  ;;  %v1211_v41 = vld [vmem:[#allocation2 + $0x60] sm:$0x1] }
  0xf4   : > { %v1478_v51 = vrot.slane %v1476_v43, 7  ;;  %v3224_v53 = vpack.c.b16 %v3164_v45, %v3163_v44 }
  0xf5   : > { %vm922_vm1 = vcmp.gt.f32.partialorder %v858_v48, 0.0  ;;  %v986_v58 = vmul.f32 0.1, %v858_v48  ;;  %v2484_v18 = vor.u32 %v2483_v59, %v2480_v54 }
  0xf6   : > { %v1481_v3 = vor.u32 %v1479_v52, %v1478_v51  ;;  %11099 = vmatmul.msk.bf16.gmra.mxu1 %vm3277_vm9, %v3224_v53  ;;  %v1482_v34 = vrot.slane %v1478_v51, 4 }
  0xf7   : > { %v1050_v5 = vsel %vm922_vm1, %v858_v48, %v986_v58  ;;  %v2485_v32 = vrot.slane %v2484_v18, 4  ;;  %v1212_v48 = vsel %vm12836_vm3, 0, %v1211_v41 }
  0xf8   : > { %v2079_v8 = vsel %vm12906_vm11, %v1481_v3, %v2078_v56  ;;  %v1114_v9 = vpack.c.bf16 %v1050_v5, %v1050_v5  ;;  %v642_v10 = vpop.f32.mrf.mxu0  ;;  %v2283_v12 = vld [vmem:[#allocation2 + $0x34] sm:$0xf]  ;;  %1213 = vst [vmem:[#allocation2 + $0x60] sm:$0x1] %v1212_v48  ;;  %v3994_v5 = vld [vmem:[#allocation2 + $0x18] sm:$0xe] }
  0xf9   : > { %2080 = vst [vmem:[#allocation2 + $0x3c] sm:$0xf] %v2079_v8  ;;  %v791_v15 = vmul.f32 %v12887_v55, %v642_v10  ;;  %v2350_v17 = vld [vmem:[#allocation2 + $0x38] sm:$0x1]  ;;  %v2487_v19 = vshll.u32 %v2283_v12, 16  ;;  %v2491_v20 = vshrl.u32 %v2283_v12, 16 }
  0xfa   : > { %v1484_v22 = vshrl.u32 %v1114_v9, 16  ;;  %v2497_v26 = vshll.u32 %v2350_v17, 16  ;;  %v1487_v28 = vshll.u32 %v1114_v9, 16  ;;  %v4107_v9 = vrot.slane %v12962_v61, 5  ;;  %v12010_v12 = vld [vmem:[%s12820_s23 + $0x70] sm:$0xff] }
  0xfb   : > { %v859_v23 = vadd.f32 %v12892_v57, %v791_v15  ;;  %681 = vmatmul.bf16.gmra.mxu0 %v12009_v6  ;;  %v2489_v24 = vrot.slane %v2487_v19, 5  ;;  %v2493_v25 = vrot.slane %v2491_v20, 4  ;;  %v2085_v6 = vld [vmem:[#allocation2 + $0x48] sm:$0xf] }
  0xfc   : > { %v1486_v27 = vrot.slane %v1484_v22, 7  ;;  %v2499_v40 = vrot.slane %v2497_v26, 5  ;;  %v1321_v15 = vld [vmem:[#allocation2 + $0x68] sm:$0x1] }
  0xfd   : > { %vm923_vm2 = vcmp.gt.f32.partialorder %v859_v23, 0.0  ;;  %v987_v31 = vmul.f32 0.1, %v859_v23  ;;  %v2494_v33 = vor.u32 %v2493_v25, %v2489_v24  ;;  %v2490_v38 = vsel %vm12873_vm8, %v2485_v32, %v2489_v24 }
  0xfe   : > { %v1489_v35 = vor.u32 %v1487_v28, %v1486_v27  ;;  %v1491_v36 = vrot.slane %v1486_v27, 4  ;;  %v3165_v54 = vunpack.c.l.b16 %v2490_v38  ;;  %v1322_v22 = vsel %vm12849_vm5, 0, %v1321_v15  ;;  %v2092_v15 = vld [vmem:[#allocation2 + $0x54] sm:$0xf] }
  0xff   : > { %v1051_v37 = vsel %vm923_vm2, %v859_v23, %v987_v31  ;;  %v2495_v39 = vrot.slane %v2494_v33, 4  ;;  %v11306_v23 = vrot.slane %v3994_v5, 9  ;;  %v4110_v27 = vrot.slane %v12967_v1, 5  ;;  %1323 = vst [vmem:[#allocation2 + $0x68] sm:$0x1] %v1322_v22 }
 0x100   : > { %v1490_v42 = vsel %vm12918_vm14, %v1482_v34, %v1489_v35  ;;  %v2083_v43 = vsel %vm12836_vm3, %v1491_v36, %v2082_v30  ;;  %v1115_v44 = vpack.c.bf16 %v1051_v37, %v1051_v37  ;;  %v644_v45 = vpop.f32.mrf.mxu0  ;;  %v2284_v46 = vld [vmem:[#allocation2 + $0x3c] sm:$0xf]  ;;  %v4109_v35 = vrot.slane %v4107_v9, 4 }
 0x101   : > { %2081 = vst.msk [vmem:[#allocation2 + $0x40] sm:$0xf] %vm1169_vm0, %v1490_v42  ;;  %v792_v49 = vmul.f32 %v12887_v55, %v644_v45  ;;  %v2500_v50 = vsel %vm12873_vm8, %v2495_v39, %v2499_v40  ;;  %v2502_v51 = vshrl.u32 %v2284_v46, 16  ;;  %v2505_v52 = vshll.u32 %v2284_v46, 16  ;;  %v2089_v40 = vld [vmem:[#allocation2 + $0x50] sm:$0x1] }
 0x102   : > { %2084 = vst [vmem:[#allocation2 + $0x44] sm:$0x1] %v2083_v43  ;;  %v1493_v53 = vshrl.u32 %v1115_v44, 16  ;;  %v3166_v56 = vunpack.c.l.b16 %v2500_v50  ;;  %v1496_v63 = vshll.u32 %v1115_v44, 16  ;;  %v4108_v31 = vsel %vm13012_vm15, %v11306_v23, %v4107_v9 }
 0x103   : > { %v860_v58 = vadd.f32 %v12892_v57, %v792_v49  ;;  %v2504_v59 = vrot.slane %v2502_v51, 4  ;;  %v2507_v62 = vrot.slane %v2505_v52, 5  ;;  %v4111_v45 = vsel %vm13012_vm15, %v4109_v35, %v4110_v27  ;;  %v1214_v51 = vld [vmem:[#allocation2 + $0x6c] sm:$0x1] }
 0x104   : > { %v1495_v3 = vrot.slane %v1493_v53, 7  ;;  %v3225_v2 = vpack.c.b16 %v3166_v56, %v3165_v54  ;;  %v4327_v46 = vunpack.c.l.b16 %v4108_v31  ;;  %v4328_v52 = vunpack.c.l.b16 %v4111_v45 }
 0x105   : > { %vm924_vm4 = vcmp.gt.f32.partialorder %v860_v58, 0.0  ;;  %v988_v7 = vmul.f32 0.1, %v860_v58  ;;  %v2508_v13 = vor.u32 %v2507_v62, %v2504_v59  ;;  %v1215_v62 = vsel %vm12836_vm3, 0, %v1214_v51 }
 0x106   : > { %v1498_v8 = vor.u32 %v1496_v63, %v1495_v3  ;;  %11100 = vmatmul.msk.bf16.gmra.mxu1 %vm3277_vm9, %v3225_v2  ;;  %v1499_v36 = vrot.slane %v1495_v3, 4  ;;  %v13075_v9 = vpack.c.b16 %v4328_v52, %v4327_v46  ;;  %1216 = vst [vmem:[#allocation2 + $0x6c] sm:$0x1] %v1215_v62 }
 0x107   : > { %v1052_v10 = vsel %vm924_vm4, %v860_v58, %v988_v7  ;;  %v2509_v39 = vrot.slane %v2508_v13, 4 }
 0x108   : > { %v2086_v17 = vsel %vm12906_vm11, %v1498_v8, %v2085_v6  ;;  %v1116_v18 = vpack.c.bf16 %v1052_v10, %v1052_v10  ;;  %v647_v19 = vpop.f32.mrf.mxu0  ;;  %v2285_v20 = vld [vmem:[#allocation2 + $0x40] sm:$0xf] }
 0x109   : > { %2087 = vst [vmem:[#allocation2 + $0x48] sm:$0xf] %v2086_v17  ;;  %v793_v24 = vmul.f32 %v12887_v55, %v647_v19  ;;  %v2351_v25 = vld [vmem:[#allocation2 + $0x44] sm:$0x1]  ;;  %v2511_v26 = vshll.u32 %v2285_v20, 16  ;;  %v2515_v61 = vshrl.u32 %v2285_v20, 16 }
 0x10a   : > { %v1501_v28 = vshrl.u32 %v1116_v18, 16  ;;  %v2521_v30 = vshll.u32 %v2351_v25, 16  ;;  %v1504_v38 = vshll.u32 %v1116_v18, 16  ;;  %v1324_v25 = vld [vmem:[#allocation2 + $0x74] sm:$0x1] }
 0x10b   : > { %v861_v32 = vadd.f32 %v12892_v57, %v793_v24  ;;  %686 = vmatmul.bf16.gmra.mxu0 %v12010_v12  ;;  %v2513_v33 = vrot.slane %v2511_v26, 5  ;;  %v2517_v34 = vrot.slane %v2515_v61, 4  ;;  %v12011_v24 = vld [vmem:[%s12820_s23 + $0x78] sm:$0xff] }
 0x10c   : > { %v1503_v37 = vrot.slane %v1501_v28, 7  ;;  %v2523_v42 = vrot.slane %v2521_v30, 5  ;;  %v1325_v30 = vsel %vm12849_vm5, 0, %v1324_v25  ;;  %v2099_v25 = vld [vmem:[#allocation2 + $0x60] sm:$0xf] }
 0x10d   : > { %vm925_vm6 = vcmp.gt.f32.partialorder %v861_v32, 0.0  ;;  %v989_v41 = vmul.f32 0.1, %v861_v32  ;;  %v2518_v1 = vor.u32 %v2517_v34, %v2513_v33  ;;  %v2514_v49 = vsel %vm12873_vm8, %v2509_v39, %v2513_v33  ;;  %1326 = vst [vmem:[#allocation2 + $0x74] sm:$0x1] %v1325_v30 }
 0x10e   : > { %v1506_v43 = vor.u32 %v1504_v38, %v1503_v37  ;;  %v1508_v44 = vrot.slane %v1503_v37, 4  ;;  %v3167_v7 = vunpack.c.l.b16 %v2514_v49 }
 0x10f   : > { %v1053_v48 = vsel %vm925_vm6, %v861_v32, %v989_v41  ;;  %v2519_v50 = vrot.slane %v2518_v1, 4 }
 0x110   : > { %v1507_v53 = vsel %vm12918_vm14, %v1499_v36, %v1506_v43  ;;  %v2090_v54 = vsel %vm12836_vm3, %v1508_v44, %v2089_v40  ;;  %v1117_v56 = vpack.c.bf16 %v1053_v48, %v1053_v48  ;;  %v649_v58 = vpop.f32.mrf.mxu0  ;;  %v2286_v59 = vld [vmem:[#allocation2 + $0x48] sm:$0xf] }
 0x111   : > { %2088 = vst.msk [vmem:[#allocation2 + $0x4c] sm:$0xf] %vm1169_vm0, %v1507_v53  ;;  %v794_v3 = vmul.f32 %v12887_v55, %v649_v58  ;;  %v2524_v63 = vsel %vm12873_vm8, %v2519_v50, %v2523_v42  ;;  %v2526_v2 = vshrl.u32 %v2286_v59, 16  ;;  %v2529_v5 = vshll.u32 %v2286_v59, 16  ;;  %v2096_v42 = vld [vmem:[#allocation2 + $0x5c] sm:$0x1] }
 0x112   : > { %2091 = vst [vmem:[#allocation2 + $0x50] sm:$0x1] %v2090_v54  ;;  %v1510_v6 = vshrl.u32 %v1117_v56, 16  ;;  %v3168_v8 = vunpack.c.l.b16 %v2524_v63  ;;  %v1513_v13 = vshll.u32 %v1117_v56, 16  ;;  %v1217_v54 = vld [vmem:[#allocation2 + $0x78] sm:$0x1] }
 0x113   : > { %v862_v10 = vadd.f32 %v12892_v57, %v794_v3  ;;  %v2528_v19 = vrot.slane %v2526_v2, 4  ;;  %v2531_v20 = vrot.slane %v2529_v5, 5  ;;  %v1218_v63 = vsel %vm12836_vm3, 0, %v1217_v54 }
 0x114   : > { %v1512_v12 = vrot.slane %v1510_v6, 7  ;;  %v3226_v17 = vpack.c.b16 %v3168_v8, %v3167_v7  ;;  %v3995_v8 = vld [vmem:[#allocation2 + $0x24] sm:$0xe]  ;;  %1219 = vst [vmem:[#allocation2 + $0x78] sm:$0x1] %v1218_v63 }
 0x115   : > { %vm926_vm7 = vcmp.gt.f32.partialorder %v862_v10, 0.0  ;;  %v990_v18 = vmul.f32 0.1, %v862_v10  ;;  %v2532_v33 = vor.u32 %v2531_v20, %v2528_v19 }
 0x116   : > { %v1515_v22 = vor.u32 %v1513_v13, %v1512_v12  ;;  %11101 = vmatmul.msk.bf16.gmra.mxu1 %vm3277_vm9, %v3226_v17  ;;  %v1516_v46 = vrot.slane %v1512_v12, 4 }
 0x117   : > { %v1054_v23 = vsel %vm926_vm7, %v862_v10, %v990_v18  ;;  %v2533_v44 = vrot.slane %v2532_v33, 4 }
 0x118   : > { %v2093_v26 = vsel %vm12906_vm11, %v1515_v22, %v2092_v15  ;;  %v1118_v61 = vpack.c.bf16 %v1054_v23, %v1054_v23  ;;  %v652_v27 = vpop.f32.mrf.mxu0  ;;  %v2287_v28 = vld [vmem:[#allocation2 + $0x4c] sm:$0xf]  ;;  %v11307_v23 = vrot.slane %v3995_v8, 9 }
 0x119   : > { %2094 = vst [vmem:[#allocation2 + $0x54] sm:$0xf] %v2093_v26  ;;  %v795_v31 = vmul.f32 %v12887_v55, %v652_v27  ;;  %v2352_v32 = vld [vmem:[#allocation2 + $0x50] sm:$0x1]  ;;  %v2535_v34 = vshll.u32 %v2287_v28, 16  ;;  %v2539_v35 = vshrl.u32 %v2287_v28, 16 }
 0x11a   : > { %v1518_v36 = vshrl.u32 %v1118_v61, 16  ;;  %v2545_v40 = vshll.u32 %v2352_v32, 16  ;;  %v1521_v1 = vshll.u32 %v1118_v61, 16  ;;  %v4117_v61 = vrot.slane %v12995_v4, 5  ;;  %v12012_v32 = vld [vmem:[%s12820_s23 + $0x80] sm:$0xff] }
 0x11b   : > { %v863_v37 = vadd.f32 %v12892_v57, %v795_v31  ;;  %691 = vmatmul.bf16.gmra.mxu0 %v12011_v24  ;;  %v2537_v38 = vrot.slane %v2535_v34, 5  ;;  %v2541_v39 = vrot.slane %v2539_v35, 4  ;;  %v4114_v24 = vrot.slane %v12990_v60, 5  ;;  %v1327_v34 = vld [vmem:[#allocation2 + $0x80] sm:$0x1] }
 0x11c   : > { %v1520_v41 = vrot.slane %v1518_v36, 7  ;;  %v2547_v53 = vrot.slane %v2545_v40, 5  ;;  %v1328_v4 = vsel %vm12849_vm5, 0, %v1327_v34 }
 0x11d   : > { %vm927_vm10 = vcmp.gt.f32.partialorder %v863_v37, 0.0  ;;  %v991_v43 = vmul.f32 0.1, %v863_v37  ;;  %v2542_v45 = vor.u32 %v2541_v39, %v2537_v38  ;;  %v2538_v51 = vsel %vm12873_vm8, %v2533_v44, %v2537_v38  ;;  %1329 = vst [vmem:[#allocation2 + $0x80] sm:$0x1] %v1328_v4 }
 0x11e   : > { %v1523_v48 = vor.u32 %v1521_v1, %v1520_v41  ;;  %v1525_v49 = vrot.slane %v1520_v41, 4  ;;  %v3169_v12 = vunpack.c.l.b16 %v2538_v51  ;;  %v4115_v28 = vsel %vm13012_vm15, %v11307_v23, %v4114_v24 }
 0x11f   : > { %v1055_v50 = vsel %vm927_vm10, %v863_v37, %v991_v43  ;;  %v2543_v52 = vrot.slane %v2542_v45, 4  ;;  %v4116_v30 = vrot.slane %v4114_v24, 4  ;;  %v4329_v35 = vunpack.c.l.b16 %v4115_v28  ;;  %v2106_v28 = vld [vmem:[#allocation2 + $0x6c] sm:$0xf] }
 0x120   : > { %v1524_v56 = vsel %vm12918_vm14, %v1516_v46, %v1523_v48  ;;  %v2097_v58 = vsel %vm12836_vm3, %v1525_v49, %v2096_v42  ;;  %v1119_v59 = vpack.c.bf16 %v1055_v50, %v1055_v50  ;;  %v654_v62 = vpop.f32.mrf.mxu0  ;;  %v2288_v3 = vld [vmem:[#allocation2 + $0x54] sm:$0xf] }
 0x121   : > { %2095 = vst.msk [vmem:[#allocation2 + $0x58] sm:$0xf] %vm1169_vm0, %v1524_v56  ;;  %v796_v2 = vmul.f32 %v12887_v55, %v654_v62  ;;  %v2548_v5 = vsel %vm12873_vm8, %v2543_v52, %v2547_v53  ;;  %v2550_v6 = vshrl.u32 %v2288_v3, 16  ;;  %v2553_v7 = vshll.u32 %v2288_v3, 16  ;;  %v2103_v53 = vld [vmem:[#allocation2 + $0x68] sm:$0x1] }
 0x122   : > { %2098 = vst [vmem:[#allocation2 + $0x5c] sm:$0x1] %v2097_v58  ;;  %v1527_v10 = vshrl.u32 %v1119_v59, 16  ;;  %v3170_v13 = vunpack.c.l.b16 %v2548_v5  ;;  %v1530_v15 = vshll.u32 %v1119_v59, 16  ;;  %v4118_v39 = vsel %vm13012_vm15, %v4116_v30, %v4117_v61  ;;  %v1220_v5 = vld [vmem:[#allocation2 + $0x84] sm:$0x1] }
 0x123   : > { %v864_v17 = vadd.f32 %v12892_v57, %v796_v2  ;;  %v2552_v18 = vrot.slane %v2550_v6, 4  ;;  %v2555_v19 = vrot.slane %v2553_v7, 5  ;;  %v4330_v43 = vunpack.c.l.b16 %v4118_v39 }
 0x124   : > { %v1529_v20 = vrot.slane %v1527_v10, 7  ;;  %v3227_v22 = vpack.c.b16 %v3170_v13, %v3169_v12  ;;  %v1221_v13 = vsel %vm12836_vm3, 0, %v1220_v5 }
 0x125   : > { %vm928_vm12 = vcmp.gt.f32.partialorder %v864_v17, 0.0  ;;  %v992_v26 = vmul.f32 0.1, %v864_v17  ;;  %v2556_v33 = vor.u32 %v2555_v19, %v2552_v18  ;;  %v13113_v50 = vpack.c.b16 %v4330_v43, %v4329_v35  ;;  %1222 = vst [vmem:[#allocation2 + $0x84] sm:$0x1] %v1221_v13 }
 0x126   : > { %v1532_v27 = vor.u32 %v1530_v15, %v1529_v20  ;;  %11102 = vmatmul.msk.bf16.gmra.mxu1 %vm3277_vm9, %v3227_v22  ;;  %v1533_v58 = vrot.slane %v1529_v20, 4  ;;  %v13127_v15 = vld [vmem:[%s16504_s2] ss:$0 sm:$0xff] }
 0x127   : > { %v1056_v31 = vsel %vm928_vm12, %v864_v17, %v992_v26 }
 0x128   : > { %v2100_v60 = vsel %vm12906_vm11, %v1532_v27, %v2099_v25  ;;  %v1120_v36 = vpack.c.bf16 %v1056_v31, %v1056_v31  ;;  %v657_v37 = vpop.f32.mrf.mxu0  ;;  %v2289_v38 = vld [vmem:[#allocation2 + $0x58] sm:$0xf]  ;;  %v13135_v25 = vld [vmem:[%s16505_s3] ss:$0 sm:$0xff] }
 0x129   : > { %2101 = vst [vmem:[#allocation2 + $0x60] sm:$0xf] %v2100_v60  ;;  %v797_v40 = vmul.f32 %v12887_v55, %v657_v37  ;;  %v2353_v41 = vld [vmem:[#allocation2 + $0x5c] sm:$0x1]  ;;  %v2559_v1 = vshll.u32 %v2289_v38, 16  ;;  %v2563_v42 = vshrl.u32 %v2289_v38, 16 }
 0x12a   : > { %v1535_v44 = vshrl.u32 %v1120_v36, 16  ;;  %v2569_v45 = vshll.u32 %v2353_v41, 16  ;;  %v1538_v52 = vshll.u32 %v1120_v36, 16  ;;  %v2557_v55 = vrot.slane %v2556_v33, 4  ;;  %v12013_v60 = vld [vmem:[%s12820_s23 + $0x88] sm:$0xff] }
 0x12b   : > { %v865_v46 = vadd.f32 %v12892_v57, %v797_v40  ;;  %696 = vmatmul.bf16.gmra.mxu0 %v12012_v32  ;;  %v2561_v48 = vrot.slane %v2559_v1, 5  ;;  %v2565_v49 = vrot.slane %v2563_v42, 4  ;;  %v1330_v36 = vld [vmem:[#allocation2 + $0x8c] sm:$0x1] }
 0x12c   : > { %v1537_v51 = vrot.slane %v1535_v44, 7  ;;  %v2571_v2 = vrot.slane %v2569_v45, 5  ;;  %v1331_v40 = vsel %vm12849_vm5, 0, %v1330_v36 }
 0x12d   : > { %vm929_vm13 = vcmp.gt.f32.partialorder %v865_v46, 0.0  ;;  %v993_v54 = vmul.f32 0.1, %v865_v46  ;;  %v2566_v56 = vor.u32 %v2565_v49, %v2561_v48  ;;  %v2562_v57 = vsel %vm12873_vm8, %v2557_v55, %v2561_v48  ;;  %1332 = vst [vmem:[#allocation2 + $0x8c] sm:$0x1] %v1331_v40 }
 0x12e   : > { %v1540_v59 = vor.u32 %v1538_v52, %v1537_v51  ;;  %v1542_v62 = vrot.slane %v1537_v51, 4  ;;  %v3171_v23 = vunpack.c.l.b16 %v2562_v57 }
 0x12f   : > { %v1057_v3 = vsel %vm929_vm13, %v865_v46, %v993_v54  ;;  %v2567_v63 = vrot.slane %v2566_v56, 4  ;;  %v2110_v54 = vld [vmem:[#allocation2 + $0x74] sm:$0x1] }
 0x130   : > { %v1541_v6 = vsel %vm12918_vm14, %v1533_v58, %v1540_v59  ;;  %v2104_v7 = vsel %vm12836_vm3, %v1542_v62, %v2103_v53  ;;  %v1121_v8 = vpack.c.bf16 %v1057_v3, %v1057_v3  ;;  %v659_v10 = vpop.f32.mrf.mxu0  ;;  %v2290_v12 = vld [vmem:[#allocation2 + $0x60] sm:$0xf] }
 0x131   : > { %2102 = vst.msk [vmem:[#allocation2 + $0x64] sm:$0xf] %vm1169_vm0, %v1541_v6  ;;  %v798_v17 = vmul.f32 %v13127_v15, %v659_v10  ;;  %v2572_v18 = vsel %vm12873_vm8, %v2567_v63, %v2571_v2  ;;  %v2574_v19 = vshrl.u32 %v2290_v12, 16  ;;  %v2577_v20 = vshll.u32 %v2290_v12, 16  ;;  %v13146_v63 = vpop.f32.mrf.mxu1 }
 0x132   : > { %2105 = vst [vmem:[#allocation2 + $0x68] sm:$0x1] %v2104_v7  ;;  %v1544_v22 = vshrl.u32 %v1121_v8, 16  ;;  %v3172_v24 = vunpack.c.l.b16 %v2572_v18  ;;  %v1547_v27 = vshll.u32 %v1121_v8, 16  ;;  %v1223_v7 = vld [vmem:[#allocation2 + $0x90] sm:$0x1] }
 0x133   : > { %v866_v26 = vadd.f32 %v13135_v25, %v798_v17  ;;  %v2576_v32 = vrot.slane %v2574_v19, 4  ;;  %v2579_v33 = vrot.slane %v2577_v20, 5  ;;  %v1224_v18 = vsel %vm12836_vm3, 0, %v1223_v7 }
 0x134   : > { %v1546_v61 = vrot.slane %v1544_v22, 7  ;;  %v3228_v30 = vpack.c.b16 %v3172_v24, %v3171_v23  ;;  %1225 = vst [vmem:[#allocation2 + $0x90] sm:$0x1] %v1224_v18 }
 0x135   : > { %vm930_vm1 = vcmp.gt.f32.partialorder %v866_v26, 0.0  ;;  %v994_v31 = vmul.f32 0.1, %v866_v26  ;;  %v2580_v42 = vor.u32 %v2579_v33, %v2576_v32 }
 0x136   : > { %v1549_v34 = vor.u32 %v1547_v27, %v1546_v61  ;;  %11103 = vmatmul.msk.bf16.gmra.mxu1 %vm3277_vm9, %v3228_v30  ;;  %v1550_v59 = vrot.slane %v1546_v61, 4 }
 0x137   : > { %v1058_v35 = vsel %vm930_vm1, %v866_v26, %v994_v31  ;;  %v2581_v56 = vrot.slane %v2580_v42, 4  ;;  %v2113_v31 = vld [vmem:[#allocation2 + $0x78] sm:$0xf] }
 0x138   : > { %v2107_v37 = vsel %vm12906_vm11, %v1549_v34, %v2106_v28  ;;  %v1122_v38 = vpack.c.bf16 %v1058_v35, %v1058_v35  ;;  %v662_v4 = vpop.f32.mrf.mxu0  ;;  %v2291_v39 = vld [vmem:[#allocation2 + $0x64] sm:$0xf] }
 0x139   : > { %2108 = vst [vmem:[#allocation2 + $0x6c] sm:$0xf] %v2107_v37  ;;  %v799_v41 = vmul.f32 %v13127_v15, %v662_v4  ;;  %v2354_v1 = vld [vmem:[#allocation2 + $0x68] sm:$0x1]  ;;  %v2583_v43 = vshll.u32 %v2291_v39, 16  ;;  %v2587_v44 = vshrl.u32 %v2291_v39, 16 }
 0x13a   : > { %v1552_v45 = vshrl.u32 %v1122_v38, 16  ;;  %v2593_v51 = vshll.u32 %v2354_v1, 16  ;;  %v1555_v53 = vshll.u32 %v1122_v38, 16  ;;  %v12014_v37 = vld [vmem:[%s12820_s23 + $0x90] sm:$0xff]  ;;  %v1333_v38 = vld [vmem:[#allocation2 + $0x98] sm:$0x1] }
 0x13b   : > { %v867_v46 = vadd.f32 %v13135_v25, %v799_v41  ;;  %701 = vmatmul.bf16.gmra.mxu0 %v12013_v60  ;;  %v2585_v48 = vrot.slane %v2583_v43, 5  ;;  %v2589_v49 = vrot.slane %v2587_v44, 4  ;;  %v1334_v1 = vsel %vm12849_vm5, 0, %v1333_v38  ;;  %v13168_v43 = vpop.f32.mrf.mxu1 }
 0x13c   : > { %v1554_v52 = vrot.slane %v1552_v45, 7  ;;  %v2595_v6 = vrot.slane %v2593_v51, 5  ;;  %1335 = vst [vmem:[#allocation2 + $0x98] sm:$0x1] %v1334_v1 }
 0x13d   : > { %vm931_vm2 = vcmp.gt.f32.partialorder %v867_v46, 0.0  ;;  %v995_v55 = vmul.f32 0.1, %v867_v46  ;;  %v2590_v58 = vor.u32 %v2589_v49, %v2585_v48  ;;  %v2586_v2 = vsel %vm12873_vm8, %v2581_v56, %v2585_v48 }
 0x13e   : > { %v1557_v62 = vor.u32 %v1555_v53, %v1554_v52  ;;  %v1559_v3 = vrot.slane %v1554_v52, 4  ;;  %v3173_v26 = vunpack.c.l.b16 %v2586_v2 }
 0x13f   : > { %v1059_v57 = vsel %vm931_vm2, %v867_v46, %v995_v55  ;;  %v2591_v5 = vrot.slane %v2590_v58, 4  ;;  %v2117_v58 = vld [vmem:[#allocation2 + $0x80] sm:$0x1] }
 0x140   : > { %v1558_v8 = vsel %vm12918_vm14, %v1550_v59, %v1557_v62  ;;  %v2111_v10 = vsel %vm12836_vm3, %v1559_v3, %v2110_v54  ;;  %v1123_v12 = vpack.c.bf16 %v1059_v57, %v1059_v57  ;;  %v664_v13 = vpop.f32.mrf.mxu0  ;;  %v2292_v17 = vld [vmem:[#allocation2 + $0x6c] sm:$0xf] }
 0x141   : > { %2109 = vst.msk [vmem:[#allocation2 + $0x70] sm:$0xf] %vm1169_vm0, %v1558_v8  ;;  %v800_v19 = vmul.f32 %v13127_v15, %v664_v13  ;;  %v2596_v20 = vsel %vm12873_vm8, %v2591_v5, %v2595_v6  ;;  %v2598_v22 = vshrl.u32 %v2292_v17, 16  ;;  %v2601_v23 = vshll.u32 %v2292_v17, 16 }
 0x142   : > { %2112 = vst [vmem:[#allocation2 + $0x74] sm:$0x1] %v2111_v10  ;;  %v1561_v24 = vshrl.u32 %v1123_v12, 16  ;;  %v3174_v61 = vunpack.c.l.b16 %v2596_v20  ;;  %v1564_v30 = vshll.u32 %v1123_v12, 16  ;;  %v1226_v12 = vld [vmem:[#allocation2 + $0x9c] sm:$0x1] }
 0x143   : > { %v868_v27 = vadd.f32 %v13135_v25, %v800_v19  ;;  %v2600_v34 = vrot.slane %v2598_v22, 4  ;;  %v2603_v35 = vrot.slane %v2601_v23, 5  ;;  %v1227_v22 = vsel %vm12836_vm3, 0, %v1226_v12 }
 0x144   : > { %v1563_v28 = vrot.slane %v1561_v24, 7  ;;  %v3229_v32 = vpack.c.b16 %v3174_v61, %v3173_v26  ;;  %1228 = vst [vmem:[#allocation2 + $0x9c] sm:$0x1] %v1227_v22 }
 0x145   : > { %vm932_vm4 = vcmp.gt.f32.partialorder %v868_v27, 0.0  ;;  %v996_v33 = vmul.f32 0.1, %v868_v27  ;;  %v2604_v45 = vor.u32 %v2603_v35, %v2600_v34  ;;  %v2120_v35 = vld [vmem:[#allocation2 + $0x84] sm:$0xf] }
 0x146   : > { %v1566_v60 = vor.u32 %v1564_v30, %v1563_v28  ;;  %11104 = vmatmul.msk.bf16.gmra.mxu1 %vm3277_vm9, %v3229_v32  ;;  %v1567_v57 = vrot.slane %v1563_v28, 4 }
 0x147   : > { %v1060_v36 = vsel %vm932_vm4, %v868_v27, %v996_v33  ;;  %v2605_v62 = vrot.slane %v2604_v45, 4 }
 0x148   : > { %v2114_v4 = vsel %vm12906_vm11, %v1566_v60, %v2113_v31  ;;  %v1124_v39 = vpack.c.bf16 %v1060_v36, %v1060_v36  ;;  %v667_v40 = vpop.f32.mrf.mxu0  ;;  %v2293_v41 = vld [vmem:[#allocation2 + $0x70] sm:$0xf] }
 0x149   : > { %2115 = vst [vmem:[#allocation2 + $0x78] sm:$0xf] %v2114_v4  ;;  %v801_v42 = vmul.f32 %v13127_v15, %v667_v40  ;;  %v2355_v44 = vld [vmem:[#allocation2 + $0x74] sm:$0x1]  ;;  %v2607_v46 = vshll.u32 %v2293_v41, 16  ;;  %v2611_v48 = vshrl.u32 %v2293_v41, 16 }
 0x14a   : > { %v1569_v49 = vshrl.u32 %v1124_v39, 16  ;;  %v2617_v54 = vshll.u32 %v2355_v44, 16  ;;  %v1572_v56 = vshll.u32 %v1124_v39, 16  ;;  %v12015_v40 = vld [vmem:[%s12820_s23 + $0x98] sm:$0xff]  ;;  %v1336_v41 = vld [vmem:[#allocation2 + $0xa4] sm:$0x1] }
 0x14b   : > { %v869_v51 = vadd.f32 %v13135_v25, %v801_v42  ;;  %706 = vmatmul.bf16.gmra.mxu0 %v12014_v37  ;;  %v2609_v52 = vrot.slane %v2607_v46, 5  ;;  %v2613_v53 = vrot.slane %v2611_v48, 4  ;;  %v1337_v46 = vsel %vm12849_vm5, 0, %v1336_v41 }
 0x14c   : > { %v1571_v55 = vrot.slane %v1569_v49, 7  ;;  %v2619_v10 = vrot.slane %v2617_v54, 5  ;;  %1338 = vst [vmem:[#allocation2 + $0xa4] sm:$0x1] %v1337_v46  ;;  %v12016_v46 = vld [vmem:[%s12820_s23 + $0xa0] sm:$0xff] }
 0x14d   : > { %vm933_vm6 = vcmp.gt.f32.partialorder %v869_v51, 0.0  ;;  %v997_v59 = vmul.f32 0.1, %v869_v51  ;;  %v2614_v3 = vor.u32 %v2613_v53, %v2609_v52  ;;  %v2610_v7 = vsel %vm12873_vm8, %v2605_v62, %v2609_v52 }
 0x14e   : > { %v1574_v2 = vor.u32 %v1572_v56, %v1571_v55  ;;  %v1576_v5 = vrot.slane %v1571_v55, 4  ;;  %v3175_v28 = vunpack.c.l.b16 %v2610_v7 }
 0x14f   : > { %v1061_v6 = vsel %vm933_vm6, %v869_v51, %v997_v59  ;;  %v2615_v8 = vrot.slane %v2614_v3, 4 }
 0x150   : > { %v1575_v13 = vsel %vm12918_vm14, %v1567_v57, %v1574_v2  ;;  %v2118_v17 = vsel %vm12836_vm3, %v1576_v5, %v2117_v58  ;;  %v1125_v18 = vpack.c.bf16 %v1061_v6, %v1061_v6  ;;  %v669_v19 = vpop.f32.mrf.mxu0  ;;  %v2294_v20 = vld [vmem:[#allocation2 + $0x78] sm:$0xf]  ;;  %v2124_v2 = vld [vmem:[#allocation2 + $0x8c] sm:$0x1] }
 0x151   : > { %2116 = vst.msk [vmem:[#allocation2 + $0x7c] sm:$0xf] %vm1169_vm0, %v1575_v13  ;;  %v802_v23 = vmul.f32 %v13127_v15, %v669_v19  ;;  %v2620_v24 = vsel %vm12873_vm8, %v2615_v8, %v2619_v10  ;;  %v2622_v26 = vshrl.u32 %v2294_v20, 16  ;;  %v2625_v61 = vshll.u32 %v2294_v20, 16  ;;  %v1229_v20 = vld [vmem:[#allocation2 + $0xa8] sm:$0x1] }
 0x152   : > { %2119 = vst [vmem:[#allocation2 + $0x80] sm:$0x1] %v2118_v17  ;;  %v1578_v27 = vshrl.u32 %v1125_v18, 16  ;;  %v3176_v30 = vunpack.c.l.b16 %v2620_v24  ;;  %v1581_v34 = vshll.u32 %v1125_v18, 16 }
 0x153   : > { %v870_v31 = vadd.f32 %v13135_v25, %v802_v23  ;;  %v13184_v32 = vpop.f32.mrf.mxu1  ;;  %v2624_v37 = vrot.slane %v2622_v26, 4  ;;  %v2627_v38 = vrot.slane %v2625_v61, 5 }
 0x154   : > { %v1580_v33 = vrot.slane %v1578_v27, 7  ;;  %v3230_v60 = vpack.c.b16 %v3176_v30, %v3175_v28  ;;  %v1230_v27 = vsel %vm12836_vm3, 0, %v1229_v20 }
 0x155   : > { %vm934_vm7 = vcmp.gt.f32.partialorder %v870_v31, 0.0  ;;  %v998_v36 = vmul.f32 0.1, %v870_v31  ;;  %v2628_v51 = vor.u32 %v2627_v38, %v2624_v37  ;;  %1231 = vst [vmem:[#allocation2 + $0xa8] sm:$0x1] %v1230_v27 }
 0x156   : > { %v1583_v4 = vor.u32 %v1581_v34, %v1580_v33  ;;  %11105 = vmatmul.msk.bf16.gmra.mxu1 %vm3277_vm9, %v3230_v60  ;;  %v1584_v8 = vrot.slane %v1580_v33, 4 }
 0x157   : > { %v1062_v39 = vsel %vm934_vm7, %v870_v31, %v998_v36  ;;  %v2629_v6 = vrot.slane %v2628_v51, 4 }
 0x158   : > { %v2121_v1 = vsel %vm12906_vm11, %v1583_v4, %v2120_v35  ;;  %v1126_v42 = vpack.c.bf16 %v1062_v39, %v1062_v39  ;;  %v672_v44 = vpop.f32.mrf.mxu0  ;;  %v2295_v45 = vld [vmem:[#allocation2 + $0x7c] sm:$0xf]  ;;  %v2127_v39 = vld [vmem:[#allocation2 + $0x90] sm:$0xf] }
 0x159   : > { %2122 = vst [vmem:[#allocation2 + $0x84] sm:$0xf] %v2121_v1  ;;  %v803_v48 = vmul.f32 %v13127_v15, %v672_v44  ;;  %v2356_v49 = vld [vmem:[#allocation2 + $0x80] sm:$0x1]  ;;  %v2631_v52 = vshll.u32 %v2295_v45, 16  ;;  %v2635_v53 = vshrl.u32 %v2295_v45, 16 }
 0x15a   : > { %v1586_v54 = vshrl.u32 %v1126_v42, 16  ;;  %v2641_v62 = vshll.u32 %v2356_v49, 16  ;;  %v1589_v57 = vshll.u32 %v1126_v42, 16 }
 0x15b   : > { %v871_v55 = vadd.f32 %v13135_v25, %v803_v48  ;;  %711 = vmatmul.bf16.gmra.mxu0 %v12015_v40  ;;  %v13194_v56 = vpop.f32.mrf.mxu1  ;;  %v2633_v58 = vrot.slane %v2631_v52, 5  ;;  %v2637_v59 = vrot.slane %v2635_v53, 4  ;;  %v1339_v48 = vld [vmem:[#allocation2 + $0xb0] sm:$0x1] }
 0x15c   : > { %v1588_v3 = vrot.slane %v1586_v54, 7  ;;  %v2643_v19 = vrot.slane %v2641_v62, 5  ;;  %v1340_v54 = vsel %vm12849_vm5, 0, %v1339_v48  ;;  %v2134_v48 = vld [vmem:[#allocation2 + $0x9c] sm:$0xf] }
 0x15d   : > { %vm935_vm10 = vcmp.gt.f32.partialorder %v871_v55, 0.0  ;;  %v999_v5 = vmul.f32 0.1, %v871_v55  ;;  %v2638_v7 = vor.u32 %v2637_v59, %v2633_v58  ;;  %v2634_v17 = vsel %vm12873_vm8, %v2629_v6, %v2633_v58  ;;  %1341 = vst [vmem:[#allocation2 + $0xb0] sm:$0x1] %v1340_v54 }
 0x15e   : > { %v1591_v10 = vor.u32 %v1589_v57, %v1588_v3  ;;  %v1593_v12 = vrot.slane %v1588_v3, 4  ;;  %v3177_v35 = vunpack.c.l.b16 %v2634_v17 }
 0x15f   : > { %v1063_v13 = vsel %vm935_vm10, %v871_v55, %v999_v5  ;;  %v2639_v18 = vrot.slane %v2638_v7, 4 }
 0x160   : > { %v1592_v22 = vsel %vm12918_vm14, %v1584_v8, %v1591_v10  ;;  %v2125_v23 = vsel %vm12836_vm3, %v1593_v12, %v2124_v2  ;;  %v1127_v24 = vpack.c.bf16 %v1063_v13, %v1063_v13  ;;  %v674_v26 = vpop.f32.mrf.mxu0  ;;  %v2296_v61 = vld [vmem:[#allocation2 + $0x84] sm:$0xf]  ;;  %v2131_v13 = vld [vmem:[#allocation2 + $0x98] sm:$0x1] }
 0x161   : > { %2123 = vst.msk [vmem:[#allocation2 + $0x88] sm:$0xf] %vm1169_vm0, %v1592_v22  ;;  %v804_v28 = vmul.f32 %v13127_v15, %v674_v26  ;;  %v2644_v30 = vsel %vm12873_vm8, %v2639_v18, %v2643_v19  ;;  %v2646_v31 = vshrl.u32 %v2296_v61, 16  ;;  %v2649_v33 = vshll.u32 %v2296_v61, 16 }
 0x162   : > { %2126 = vst [vmem:[#allocation2 + $0x8c] sm:$0x1] %v2125_v23  ;;  %v1595_v34 = vshrl.u32 %v1127_v24, 16  ;;  %v3178_v60 = vunpack.c.l.b16 %v2644_v30  ;;  %v1598_v4 = vshll.u32 %v1127_v24, 16 }
 0x163   : > { %v872_v36 = vadd.f32 %v13135_v25, %v804_v28  ;;  %v13209_v37 = vpop.f32.mrf.mxu1  ;;  %v2648_v1 = vrot.slane %v2646_v31, 4  ;;  %v2651_v42 = vrot.slane %v2649_v33, 5  ;;  %v1232_v28 = vld [vmem:[#allocation2 + $0xb4] sm:$0x1] }
 0x164   : > { %v1597_v38 = vrot.slane %v1595_v34, 7  ;;  %v3231_v40 = vpack.c.b16 %v3178_v60, %v3177_v35  ;;  %v1233_v60 = vsel %vm12836_vm3, 0, %v1232_v28 }
 0x165   : > { %vm936_vm12 = vcmp.gt.f32.partialorder %v872_v36, 0.0  ;;  %v1000_v41 = vmul.f32 0.1, %v872_v36  ;;  %v2652_v59 = vor.u32 %v2651_v42, %v2648_v1  ;;  %1234 = vst [vmem:[#allocation2 + $0xb4] sm:$0x1] %v1233_v60  ;;  %v12070_v60 = vld [vmem:[%s16506_s4 + $0x10] sm:$0xff] }
 0x166   : > { %v1600_v44 = vor.u32 %v1598_v4, %v1597_v38  ;;  %11106 = vmatmul.msk.bf16.gmra.mxu1 %vm3277_vm9, %v3231_v40  ;;  %v1601_v20 = vrot.slane %v1597_v38, 4 }
 0x167   : > { %v1064_v45 = vsel %vm936_vm12, %v872_v36, %v1000_v41  ;;  %v2653_v18 = vrot.slane %v2652_v59, 4  ;;  %v1342_v59 = vld [vmem:[#allocation2 + $0xbc] sm:$0x1] }
 0x168   : > { %v2128_v49 = vsel %vm12906_vm11, %v1600_v44, %v2127_v39  ;;  %v1128_v51 = vpack.c.bf16 %v1064_v45, %v1064_v45  ;;  %v677_v52 = vpop.f32.mrf.mxu0  ;;  %v2297_v53 = vld [vmem:[#allocation2 + $0x88] sm:$0xf] }
 0x169   : > { %2129 = vst [vmem:[#allocation2 + $0x90] sm:$0xf] %v2128_v49  ;;  %v805_v55 = vmul.f32 %v13127_v15, %v677_v52  ;;  %v2357_v58 = vld [vmem:[#allocation2 + $0x8c] sm:$0x1]  ;;  %v2655_v62 = vshll.u32 %v2297_v53, 16  ;;  %v2659_v3 = vshrl.u32 %v2297_v53, 16 }
 0x16a   : > { %v1603_v57 = vshrl.u32 %v1128_v51, 16  ;;  %v2665_v8 = vshll.u32 %v2357_v58, 16  ;;  %v1606_v12 = vshll.u32 %v1128_v51, 16  ;;  %v12017_v58 = vld [vmem:[%s12820_s23 + $0xa8] sm:$0xff] }
 0x16b   : > { %v873_v2 = vadd.f32 %v13135_v25, %v805_v55  ;;  %716 = vmatmul.bf16.gmra.mxu0 %v12016_v46  ;;  %v13219_v5 = vpop.f32.mrf.mxu1  ;;  %v2657_v6 = vrot.slane %v2655_v62, 5  ;;  %v2661_v7 = vrot.slane %v2659_v3, 4 }
 0x16c   : > { %v1605_v10 = vrot.slane %v1603_v57, 7  ;;  %v2667_v27 = vrot.slane %v2665_v8, 5 }
 0x16d   : > { %vm937_vm13 = vcmp.gt.f32.partialorder %v873_v2, 0.0  ;;  %v1001_v17 = vmul.f32 0.1, %v873_v2  ;;  %v2662_v19 = vor.u32 %v2661_v7, %v2657_v6  ;;  %v2658_v26 = vsel %vm12873_vm8, %v2653_v18, %v2657_v6 }
 0x16e   : > { %v1608_v22 = vor.u32 %v1606_v12, %v1605_v10  ;;  %v1610_v23 = vrot.slane %v1605_v10, 4  ;;  %v3179_v41 = vunpack.c.l.b16 %v2658_v26  ;;  %v1343_v6 = vsel %vm12849_vm5, 0, %v1342_v59 }
 0x16f   : > { %v1065_v24 = vsel %vm937_vm13, %v873_v2, %v1001_v17  ;;  %v2663_v61 = vrot.slane %v2662_v19, 4  ;;  %1344 = vst [vmem:[#allocation2 + $0xbc] sm:$0x1] %v1343_v6  ;;  %v2141_v6 = vld [vmem:[#allocation2 + $0xa8] sm:$0xf] }
 0x170   : > { %v1609_v30 = vsel %vm12918_vm14, %v1601_v20, %v1608_v22  ;;  %v2132_v31 = vsel %vm12836_vm3, %v1610_v23, %v2131_v13  ;;  %v1129_v33 = vpack.c.bf16 %v1065_v24, %v1065_v24  ;;  %v679_v34 = vpop.f32.mrf.mxu0  ;;  %v2298_v35 = vld [vmem:[#allocation2 + $0x90] sm:$0xf]  ;;  %v12071_v24 = vld [vmem:[%s16506_s4 + $0x18] sm:$0xff] }
 0x171   : > { %2130 = vst.msk [vmem:[#allocation2 + $0x94] sm:$0xf] %vm1169_vm0, %v1609_v30  ;;  %v806_v36 = vmul.f32 %v13127_v15, %v679_v34  ;;  %v2668_v38 = vsel %vm12873_vm8, %v2663_v61, %v2667_v27  ;;  %v2670_v4 = vshrl.u32 %v2298_v35, 16  ;;  %v2673_v39 = vshll.u32 %v2298_v35, 16  ;;  %v2138_v27 = vld [vmem:[#allocation2 + $0xa4] sm:$0x1]  ;;  %12522 = vmatpush.bf16.msra.mxu2 %v12071_v24  ;;  %3827 = vmatpush.bf16.msrb.mxu0 %v12071_v24 }
 0x172   : > { %2133 = vst [vmem:[#allocation2 + $0x98] sm:$0x1] %v2132_v31  ;;  %v1612_v40 = vshrl.u32 %v1129_v33, 16  ;;  %v3180_v1 = vunpack.c.l.b16 %v2668_v38  ;;  %v1615_v46 = vshll.u32 %v1129_v33, 16 }
 0x173   : > { %v874_v42 = vadd.f32 %v13135_v25, %v806_v36  ;;  %v13234_v44 = vpop.f32.mrf.mxu1  ;;  %v2672_v52 = vrot.slane %v2670_v4, 4  ;;  %v2675_v53 = vrot.slane %v2673_v39, 5 }
 0x174   : > { %v1614_v45 = vrot.slane %v1612_v40, 7  ;;  %v3232_v49 = vpack.c.b16 %v3180_v1, %v3179_v41  ;;  %v1235_v40 = vld [vmem:[#allocation2 + $0xc0] sm:$0x1] }
 0x175   : > { %vm938_vm1 = vcmp.gt.f32.partialorder %v874_v42, 0.0  ;;  %v1002_v51 = vmul.f32 0.1, %v874_v42  ;;  %v2676_v10 = vor.u32 %v2675_v53, %v2672_v52  ;;  %12523 = vmatpush.bf16.msra.mxu2 %v12070_v60  ;;  %3828 = vmatpush.bf16.msrb.mxu0 %v12070_v60 }
 0x176   : > { %v1617_v54 = vor.u32 %v1615_v46, %v1614_v45  ;;  %11107 = vmatmul.msk.bf16.gmra.mxu1 %vm3277_vm9, %v3232_v49  ;;  %v1618_v33 = vrot.slane %v1614_v45, 4 }
 0x177   : > { %v1066_v55 = vsel %vm938_vm1, %v874_v42, %v1002_v51  ;;  %v2677_v30 = vrot.slane %v2676_v10, 4 }
 0x178   : > { %v2135_v62 = vsel %vm12906_vm11, %v1617_v54, %v2134_v48  ;;  %v1130_v3 = vpack.c.bf16 %v1066_v55, %v1066_v55  ;;  %v682_v57 = vpop.f32.mrf.mxu0  ;;  %v2299_v2 = vld [vmem:[#allocation2 + $0x94] sm:$0xf]  ;;  %v1236_v48 = vsel %vm12836_vm3, 0, %v1235_v40 }
 0x179   : > { %2136 = vst [vmem:[#allocation2 + $0x9c] sm:$0xf] %v2135_v62  ;;  %v807_v7 = vmul.f32 %v13127_v15, %v682_v57  ;;  %v2358_v8 = vld [vmem:[#allocation2 + $0x98] sm:$0x1]  ;;  %v2679_v12 = vshll.u32 %v2299_v2, 16  ;;  %v2683_v13 = vshrl.u32 %v2299_v2, 16 }
 0x17a   : > { %v1620_v17 = vshrl.u32 %v1130_v3, 16  ;;  %v2689_v23 = vshll.u32 %v2358_v8, 16  ;;  %v1623_v61 = vshll.u32 %v1130_v3, 16  ;;  %1237 = vst [vmem:[#allocation2 + $0xc0] sm:$0x1] %v1236_v48  ;;  %v12069_v3 = vld [vmem:[%s16506_s4 + $0x8] sm:$0xff] }
 0x17b   : > { %v875_v18 = vadd.f32 %v13135_v25, %v807_v7  ;;  %721 = vmatmul.bf16.gmra.mxu0 %v12017_v58  ;;  %v13244_v19 = vpop.f32.mrf.mxu1  ;;  %v2681_v20 = vrot.slane %v2679_v12, 5  ;;  %v2685_v22 = vrot.slane %v2683_v13, 4  ;;  %12524 = vmatpush.bf16.msra.mxu2 %v12069_v3 }
 0x17c   : > { %v1622_v26 = vrot.slane %v1620_v17, 7  ;;  %v2691_v39 = vrot.slane %v2689_v23, 5  ;;  %3829 = vmatpush.bf16.msrb.mxu0 %v12069_v3  ;;  %v12068_v17 = vld [vmem:[%s16506_s4] sm:$0xff] }
 0x17d   : > { %vm939_vm2 = vcmp.gt.f32.partialorder %v875_v18, 0.0  ;;  %v1003_v28 = vmul.f32 0.1, %v875_v18  ;;  %v2686_v31 = vor.u32 %v2685_v22, %v2681_v20  ;;  %v2682_v38 = vsel %vm12873_vm8, %v2677_v30, %v2681_v20  ;;  %v12018_v20 = vld [vmem:[%s12820_s23 + $0xb0] sm:$0xff]  ;;  %v1345_v22 = vld [vmem:[#allocation2 + $0xc8] sm:$0x1] }
 0x17e   : > { %v1625_v34 = vor.u32 %v1623_v61, %v1622_v26  ;;  %v1627_v35 = vrot.slane %v1622_v26, 4  ;;  %v3181_v55 = vunpack.c.l.b16 %v2682_v38 }
 0x17f   : > { %v1067_v36 = vsel %vm939_vm2, %v875_v18, %v1003_v28  ;;  %v2687_v4 = vrot.slane %v2686_v31, 4  ;;  %12525 = vmatpush.bf16.msra.mxu2 %v12068_v17 }
 0x180   : > { %v1626_v41 = vsel %vm12918_vm14, %v1618_v33, %v1625_v34  ;;  %v2139_v1 = vsel %vm12836_vm3, %v1627_v35, %v2138_v27  ;;  %v1131_v42 = vpack.c.bf16 %v1067_v36, %v1067_v36  ;;  %v684_v45 = vpop.f32.mrf.mxu0  ;;  %v2300_v46 = vld [vmem:[#allocation2 + $0x9c] sm:$0xf]  ;;  %v1346_v27 = vsel %vm12849_vm5, 0, %v1345_v22  ;;  %3830 = vmatpush.bf16.msrb.mxu0 %v12068_v17 }
 0x181   : > { %2137 = vst.msk [vmem:[#allocation2 + $0xa0] sm:$0xf] %vm1169_vm0, %v1626_v41  ;;  %v808_v49 = vmul.f32 %v13127_v15, %v684_v45  ;;  %v2692_v51 = vsel %vm12873_vm8, %v2687_v4, %v2691_v39  ;;  %v2694_v52 = vshrl.u32 %v2300_v46, 16  ;;  %v2697_v53 = vshll.u32 %v2300_v46, 16 }
 0x182   : > { %2140 = vst [vmem:[#allocation2 + $0xa4] sm:$0x1] %v2139_v1  ;;  %v1629_v54 = vshrl.u32 %v1131_v42, 16  ;;  %v3182_v58 = vunpack.c.l.b16 %v2692_v51  ;;  %v1632_v2 = vshll.u32 %v1131_v42, 16  ;;  %v2145_v1 = vld [vmem:[#allocation2 + $0xb0] sm:$0x1] }
 0x183   : > { %v876_v59 = vadd.f32 %v13135_v25, %v808_v49  ;;  %v13265_v62 = vpop.f32.mrf.mxu1  ;;  %v2696_v10 = vrot.slane %v2694_v52, 4  ;;  %v2699_v12 = vrot.slane %v2697_v53, 5  ;;  %1347 = vst [vmem:[#allocation2 + $0xc8] sm:$0x1] %v1346_v27 }
 0x184   : > { %v1631_v57 = vrot.slane %v1629_v54, 7  ;;  %v3233_v7 = vpack.c.b16 %v3182_v58, %v3181_v55  ;;  %v1244_v58 = vld [vmem:[#allocation2 + $0xe4] sm:$0x1] }
 0x185   : > { %vm940_vm4 = vcmp.gt.f32.partialorder %v876_v59, 0.0  ;;  %v1004_v8 = vmul.f32 0.1, %v876_v59  ;;  %v2700_v31 = vor.u32 %v2699_v12, %v2696_v10 }
 0x186   : > { %v1634_v13 = vor.u32 %v1632_v2, %v1631_v57  ;;  %11108 = vmatmul.msk.bf16.gmra.mxu1 %vm3277_vm9, %v3233_v7  ;;  %v1635_v48 = vrot.slane %v1631_v57, 4  ;;  %v1245_v57 = vsel %vm12836_vm3, 0, %v1244_v58 }
 0x187   : > { %v1068_v18 = vsel %vm940_vm4, %v876_v59, %v1004_v8  ;;  %v2701_v45 = vrot.slane %v2700_v31, 4  ;;  %v1241_v8 = vld [vmem:[#allocation2 + $0xd8] sm:$0x1]  ;;  %1246 = vst [vmem:[#allocation2 + $0xe4] sm:$0x1] %v1245_v57 }
 0x188   : > { %v2142_v23 = vsel %vm12906_vm11, %v1634_v13, %v2141_v6  ;;  %v1132_v24 = vpack.c.bf16 %v1068_v18, %v1068_v18  ;;  %v687_v26 = vpop.f32.mrf.mxu0  ;;  %v2301_v61 = vld [vmem:[#allocation2 + $0xa0] sm:$0xf]  ;;  %v1242_v27 = vsel %vm12836_vm3, 0, %v1241_v8  ;;  %v2152_v57 = vld [vmem:[#allocation2 + $0xbc] sm:$0x1] }
 0x189   : > { %2143 = vst [vmem:[#allocation2 + $0xa8] sm:$0xf] %v2142_v23  ;;  %v809_v28 = vmul.f32 %v13127_v15, %v687_v26  ;;  %v2359_v30 = vld [vmem:[#allocation2 + $0xa4] sm:$0x1]  ;;  %v2703_v33 = vshll.u32 %v2301_v61, 16  ;;  %v2707_v34 = vshrl.u32 %v2301_v61, 16 }
 0x18a   : > { %v1637_v35 = vshrl.u32 %v1132_v24, 16  ;;  %v2713_v39 = vshll.u32 %v2359_v30, 16  ;;  %v1640_v41 = vshll.u32 %v1132_v24, 16  ;;  %v2148_v24 = vld [vmem:[#allocation2 + $0xb4] sm:$0xf] }
 0x18b   : > { %v877_v60 = vadd.f32 %v13135_v25, %v809_v28  ;;  %726 = vmatmul.bf16.gmra.mxu0 %v12018_v20  ;;  %v13281_v36 = vpop.f32.mrf.mxu1  ;;  %v2705_v38 = vrot.slane %v2703_v33, 5  ;;  %v2709_v4 = vrot.slane %v2707_v34, 4  ;;  %1243 = vst [vmem:[#allocation2 + $0xd8] sm:$0x1] %v1242_v27  ;;  %v1351_v33 = vld [vmem:[#allocation2 + $0xe0] sm:$0x1] }
 0x18c   : > { %v1639_v40 = vrot.slane %v1637_v35, 7  ;;  %v2715_v55 = vrot.slane %v2713_v39, 5  ;;  %v12019_v39 = vld [vmem:[%s12820_s23 + $0xb8] sm:$0xff] }
 0x18d   : > { %vm941_vm6 = vcmp.gt.f32.partialorder %v877_v60, 0.0  ;;  %v1005_v42 = vmul.f32 0.1, %v877_v60  ;;  %v2710_v46 = vor.u32 %v2709_v4, %v2705_v38  ;;  %v2706_v53 = vsel %vm12873_vm8, %v2701_v45, %v2705_v38 }
 0x18e   : > { %v1642_v49 = vor.u32 %v1640_v41, %v1639_v40  ;;  %v1644_v51 = vrot.slane %v1639_v40, 4  ;;  %v3183_v20 = vunpack.c.l.b16 %v2706_v53  ;;  %v1354_v40 = vld [vmem:[#allocation2 + $0xec] sm:$0x1] }
 0x18f   : > { %v1069_v52 = vsel %vm941_vm6, %v877_v60, %v1005_v42  ;;  %v2711_v54 = vrot.slane %v2710_v46, 4  ;;  %v1352_v60 = vsel %vm12849_vm5, 0, %v1351_v33  ;;  %v1355_v46 = vsel %vm12849_vm5, 0, %v1354_v40 }
 0x190   : > { %v1643_v59 = vsel %vm12918_vm14, %v1635_v48, %v1642_v49  ;;  %v2146_v3 = vsel %vm12836_vm3, %v1644_v51, %v2145_v1  ;;  %v1133_v2 = vpack.c.bf16 %v1069_v52, %v1069_v52  ;;  %v689_v6 = vpop.f32.mrf.mxu0  ;;  %v2302_v7 = vld [vmem:[#allocation2 + $0xa8] sm:$0xf]  ;;  %1353 = vst [vmem:[#allocation2 + $0xe0] sm:$0x1] %v1352_v60 }
 0x191   : > { %2144 = vst.msk [vmem:[#allocation2 + $0xac] sm:$0xf] %vm1169_vm0, %v1643_v59  ;;  %v810_v10 = vmul.f32 %v13127_v15, %v689_v6  ;;  %v2716_v12 = vsel %vm12873_vm8, %v2711_v54, %v2715_v55  ;;  %v2718_v13 = vshrl.u32 %v2302_v7, 16  ;;  %v2721_v17 = vshll.u32 %v2302_v7, 16 }
 0x192   : > { %2147 = vst [vmem:[#allocation2 + $0xb0] sm:$0x1] %v2146_v3  ;;  %v1646_v18 = vshrl.u32 %v1133_v2, 16  ;;  %v3184_v22 = vunpack.c.l.b16 %v2716_v12  ;;  %v1649_v23 = vshll.u32 %v1133_v2, 16 }
 0x193   : > { %v878_v26 = vadd.f32 %v13135_v25, %v810_v10  ;;  %v13296_v61 = vpop.f32.mrf.mxu1  ;;  %v2720_v31 = vrot.slane %v2718_v13, 4  ;;  %v2723_v35 = vrot.slane %v2721_v17, 5  ;;  %1356 = vst [vmem:[#allocation2 + $0xec] sm:$0x1] %v1355_v46 }
 0x194   : > { %v1648_v28 = vrot.slane %v1646_v18, 7  ;;  %v3234_v30 = vpack.c.b16 %v3184_v22, %v3183_v20 }
 0x195   : > { %vm942_vm7 = vcmp.gt.f32.partialorder %v878_v26, 0.0  ;;  %v1006_v34 = vmul.f32 0.1, %v878_v26  ;;  %v2724_v51 = vor.u32 %v2723_v35, %v2720_v31 }
 0x196   : > { %v1651_v38 = vor.u32 %v1649_v23, %v1648_v28  ;;  %11109 = vmatmul.msk.bf16.gmra.mxu1 %vm3277_vm9, %v3234_v30  ;;  %v1652_v13 = vrot.slane %v1648_v28, 4 }
 0x197   : > { %v1070_v4 = vsel %vm942_vm7, %v878_v26, %v1006_v34  ;;  %v2725_v10 = vrot.slane %v2724_v51, 4  ;;  %v1247_v26 = vld [vmem:[#allocation2 + $0xf0] sm:$0x1] }
 0x198   : > { %v2149_v41 = vsel %vm12906_vm11, %v1651_v38, %v2148_v24  ;;  %v1134_v1 = vpack.c.bf16 %v1070_v4, %v1070_v4  ;;  %v692_v42 = vpop.f32.mrf.mxu0  ;;  %v2303_v45 = vld [vmem:[#allocation2 + $0xac] sm:$0xf]  ;;  %v1248_v28 = vsel %vm12836_vm3, 0, %v1247_v26 }
 0x199   : > { %2150 = vst [vmem:[#allocation2 + $0xb4] sm:$0xf] %v2149_v41  ;;  %v811_v48 = vmul.f32 %v13127_v15, %v692_v42  ;;  %v2360_v49 = vld [vmem:[#allocation2 + $0xb0] sm:$0x1]  ;;  %v2727_v52 = vshll.u32 %v2303_v45, 16  ;;  %v2731_v53 = vshrl.u32 %v2303_v45, 16 }
 0x19a   : > { %v1654_v54 = vshrl.u32 %v1134_v1, 16  ;;  %v2737_v2 = vshll.u32 %v2360_v49, 16  ;;  %v1657_v7 = vshll.u32 %v1134_v1, 16  ;;  %1249 = vst [vmem:[#allocation2 + $0xf0] sm:$0x1] %v1248_v28 }
 0x19b   : > { %v879_v55 = vadd.f32 %v13135_v25, %v811_v48  ;;  %731 = vmatmul.bf16.gmra.mxu0 %v12019_v39  ;;  %v13310_v58 = vpop.f32.mrf.mxu1  ;;  %v2729_v59 = vrot.slane %v2727_v52, 5  ;;  %v2733_v3 = vrot.slane %v2731_v53, 4  ;;  %v2306_v45 = vld [vmem:[#allocation2 + $0xd8] sm:$0xf]  ;;  %v2155_v49 = vld [vmem:[#allocation2 + $0xc0] sm:$0xf] }
 0x19c   : > { %v1656_v6 = vrot.slane %v1654_v54, 7  ;;  %v2739_v24 = vrot.slane %v2737_v2, 5  ;;  %v2307_v52 = vld [vmem:[#allocation2 + $0xdc] sm:$0xf]  ;;  %v2766_v2 = vshrl.u32 %v2306_v45, 16 }
 0x19d   : > { %vm943_vm10 = vcmp.gt.f32.partialorder %v879_v55, 0.0  ;;  %v1007_v8 = vmul.f32 0.1, %v879_v55  ;;  %v2734_v12 = vor.u32 %v2733_v3, %v2729_v59  ;;  %v2730_v22 = vsel %vm12873_vm8, %v2725_v10, %v2729_v59  ;;  %v12115_v3 = vld [vmem:[%s16506_s4 + $0x78] sm:$0xff] }
 0x19e   : > { %v1659_v17 = vor.u32 %v1657_v7, %v1656_v6  ;;  %v1661_v18 = vrot.slane %v1656_v6, 4  ;;  %v3185_v40 = vunpack.c.l.b16 %v2730_v22  ;;  %v12020_v7 = vld [vmem:[%s12820_s23 + $0xc0] sm:$0xff]  ;;  %5128 = vmatpush.bf16.msrb.mxu1 %v12115_v3  ;;  %v2775_v22 = vshll.u32 %v2307_v52, 16 }
 0x19f   : > { %v1071_v20 = vsel %vm943_vm10, %v879_v55, %v1007_v8  ;;  %v2735_v23 = vrot.slane %v2734_v12, 4  ;;  %v2769_v8 = vshll.u32 %v2306_v45, 16  ;;  %v2779_v28 = vshrl.u32 %v2307_v52, 16  ;;  %v12114_v45 = vld [vmem:[%s16506_s4 + $0x70] sm:$0xff] }
 0x1a0   : > { %v1660_v27 = vsel %vm12918_vm14, %v1652_v13, %v1659_v17  ;;  %v2153_v30 = vsel %vm12836_vm3, %v1661_v18, %v2152_v57  ;;  %v1135_v31 = vpack.c.bf16 %v1071_v20, %v1071_v20  ;;  %v694_v33 = vpop.f32.mrf.mxu0  ;;  %v2304_v34 = vld [vmem:[#allocation2 + $0xb4] sm:$0xf]  ;;  %v1357_v57 = vld [vmem:[#allocation2 + $0xf8] sm:$0x1] }
 0x1a1   : > { %2151 = vst.msk [vmem:[#allocation2 + $0xb8] sm:$0xf] %vm1169_vm0, %v1660_v27  ;;  %v812_v35 = vmul.f32 %v13127_v15, %v694_v33  ;;  %v2740_v60 = vsel %vm12873_vm8, %v2735_v23, %v2739_v24  ;;  %v2742_v38 = vshrl.u32 %v2304_v34, 16  ;;  %v2745_v4 = vshll.u32 %v2304_v34, 16  ;;  %v12119_v33 = vld [vmem:[%s16506_s4 + $0x98] sm:$0xff] }
 0x1a2   : > { %2154 = vst [vmem:[#allocation2 + $0xbc] sm:$0x1] %v2153_v30  ;;  %v1663_v39 = vshrl.u32 %v1135_v31, 16  ;;  %v3186_v41 = vunpack.c.l.b16 %v2740_v60  ;;  %v1666_v48 = vshll.u32 %v1135_v31, 16  ;;  %v1358_v20 = vsel %vm12849_vm5, 0, %v1357_v57  ;;  %6449 = vmatpush.bf16.msrb.mxu2 %v12119_v33  ;;  %5129 = vmatpush.bf16.msrb.mxu1 %v12114_v45  ;;  %v12052_v45 = vld [vmem:[#allocation2 + $0xd8] sm:$0xff] }
 0x1a3   : > { %v880_v1 = vadd.f32 %v13135_v25, %v812_v35  ;;  %v13325_v42 = vpop.f32.mrf.mxu1  ;;  %v2744_v54 = vrot.slane %v2742_v38, 4  ;;  %v2747_v55 = vrot.slane %v2745_v4, 5  ;;  %v13344_v34 = vrot.slane %v2766_v2, 4  ;;  %1359 = vst [vmem:[#allocation2 + $0xf8] sm:$0x1] %v1358_v20 }
 0x1a4   : > { %v13327_v46 = vrot.slane %v1663_v39, 7  ;;  %v3235_v51 = vpack.c.b16 %v3186_v41, %v3185_v40  ;;  %v2771_v41 = vrot.slane %v2769_v8, 5  ;;  %v1250_v57 = vld [vmem:[#allocation2 + $0xfc] sm:$0x1] }
 0x1a5   : > { %vm944_vm12 = vcmp.gt.f32.partialorder %v880_v1, 0.0  ;;  %v1008_v53 = vmul.f32 0.1, %v880_v1  ;;  %v2748_v26 = vor.u32 %v2747_v55, %v2744_v54  ;;  %v2781_v55 = vrot.slane %v2779_v28, 4 }
 0x1a6   : > { %v1668_v59 = vor.u32 %v1666_v48, %v13327_v46  ;;  %11110 = vmatmul.msk.bf16.gmra.mxu1 %vm3277_vm9, %v3235_v51  ;;  %v2159_v48 = vld [vmem:[#allocation2 + $0xc8] sm:$0x1]  ;;  %v1669_v52 = vrot.slane %v13327_v46, 4 }
 0x1a7   : > { %v1072_v6 = vsel %vm944_vm12, %v880_v1, %v1008_v53  ;;  %v13349_v1 = vrot.slane %v2775_v22, 5 }
 0x1a8   : > { %v2156_v10 = vsel %vm12906_vm11, %v1668_v59, %v2155_v49  ;;  %v1136_v12 = vpack.c.bf16 %v1072_v6, %v1072_v6  ;;  %v697_v13 = vpop.f32.mrf.mxu0  ;;  %v12051_v17 = vld [vmem:[#allocation2 + $0xb4] sm:$0xff]  ;;  %v2749_v49 = vrot.slane %v2748_v26, 4  ;;  %v12113_v59 = vld [vmem:[%s16506_s4 + $0x68] sm:$0xff] }
 0x1a9   : > { %v2305_v18 = vld [vmem:[#allocation2 + $0xb8] sm:$0xf]  ;;  %2157 = vst [vmem:[#allocation2 + $0xc0] sm:$0xf] %v2156_v10  ;;  %v813_v23 = vmul.f32 %v13127_v15, %v697_v13  ;;  %v2361_v24 = vld [vmem:[#allocation2 + $0xbc] sm:$0x1]  ;;  %11287 = vmatmul.msk.bf16.vlgmr.msra.gmra.mxu2 %vm3277_vm9, %v12051_v17  ;;  %5130 = vmatpush.bf16.msrb.mxu1 %v12113_v59  ;;  %v2782_v28 = vor.u32 %v2781_v55, %v13349_v1 }
 0x1aa   : > { %v2751_v27 = vshll.u32 %v2305_v18, 16  ;;  %v2755_v30 = vshrl.u32 %v2305_v18, 16  ;;  %v1671_v31 = vshrl.u32 %v1136_v12, 16  ;;  %v2761_v4 = vshll.u32 %v2361_v24, 16  ;;  %v2362_v13 = vld [vmem:[#allocation2 + $0xe0] sm:$0x1] }
 0x1ab   : > { %v881_v35 = vadd.f32 %v13135_v25, %v813_v23  ;;  %736 = vmatmul.bf16.gmra.mxu0 %v12020_v7  ;;  %v13347_v60 = vpop.f32.mrf.mxu1  ;;  %v1674_v40 = vshll.u32 %v1136_v12, 16  ;;  %v1251_v17 = vsel %vm12836_vm3, 0, %v1250_v57  ;;  %v13370_v18 = vld [vmem:[%s16504_s2] ss:$0 sm:$0xff] }
 0x1ac   : > { %v2753_v15 = vrot.slane %v2751_v27, 5  ;;  %v2757_v38 = vrot.slane %v2755_v30, 4  ;;  %v1673_v39 = vrot.slane %v1671_v31, 7  ;;  %v2763_v7 = vrot.slane %v2761_v4, 5  ;;  %v13379_v30 = vld [vmem:[%s16505_s3] ss:$0 sm:$0xff] }
 0x1ad   : > { %vm945_vm13 = vcmp.gt.f32.partialorder %v881_v35, 0.0  ;;  %v1009_v25 = vmul.f32 0.1, %v881_v35  ;;  %v2772_v27 = vor.u32 %v2771_v41, %v13344_v34  ;;  %1252 = vst [vmem:[#allocation2 + $0xfc] sm:$0x1] %v1251_v17 }
 0x1ae   : > { %v2758_v51 = vor.u32 %v2757_v38, %v2753_v15  ;;  %v1676_v53 = vor.u32 %v1674_v40, %v1673_v39  ;;  %v1678_v54 = vrot.slane %v1673_v39, 4  ;;  %v2754_v2 = vsel %vm12873_vm8, %v2749_v49, %v2753_v15  ;;  %v12112_v15 = vld [vmem:[%s16506_s4 + $0x60] sm:$0xff]  ;;  %v12021_v49 = vld [vmem:[%s12820_s23 + $0xc8] sm:$0xff] }
 0x1af   : > { %v1073_v3 = vsel %vm945_vm13, %v881_v35, %v1009_v25  ;;  %v3187_v24 = vunpack.c.l.b16 %v2754_v2  ;;  %v2785_v35 = vshll.u32 %v2362_v13, 16  ;;  %v2162_v39 = vld [vmem:[#allocation2 + $0xe4] sm:$0xf]  ;;  %5131 = vmatpush.bf16.msrb.mxu1 %v12112_v15  ;;  %v2166_v13 = vld [vmem:[#allocation2 + $0xec] sm:$0x1] }
 0x1b0   : > { %v2759_v6 = vrot.slane %v2758_v51, 4  ;;  %v1677_v8 = vsel %vm12918_vm14, %v1669_v52, %v1676_v53  ;;  %v2160_v46 = vsel %vm12836_vm3, %v1678_v54, %v2159_v48  ;;  %v1137_v10 = vpack.c.bf16 %v1073_v3, %v1073_v3  ;;  %v699_v12 = vpop.f32.mrf.mxu0  ;;  %v1360_v53 = vld [vmem:[#allocation2 + $0x104] sm:$0x1] }
 0x1b1   : > { %2158 = vst.msk [vmem:[#allocation2 + $0xc4] sm:$0xf] %vm1169_vm0, %v1677_v8  ;;  %v814_v20 = vmul.f32 %v13370_v18, %v699_v12  ;;  %v2773_v48 = vrot.slane %v2772_v27, 4  ;;  %v2783_v51 = vrot.slane %v2782_v28, 4  ;;  %v2787_v52 = vrot.slane %v2785_v35, 5 }
 0x1b2   : > { %v2764_v22 = vsel %vm12873_vm8, %v2759_v6, %v2763_v7  ;;  %2161 = vst [vmem:[#allocation2 + $0xc8] sm:$0x1] %v2160_v46  ;;  %v1680_v23 = vshrl.u32 %v1137_v10, 16  ;;  %v1683_v38 = vshll.u32 %v1137_v10, 16  ;;  %v1361_v3 = vsel %vm12849_vm5, 0, %v1360_v53 }
 0x1b3   : > { %v3188_v26 = vunpack.c.l.b16 %v2764_v22  ;;  %v882_v31 = vadd.f32 %v13379_v30, %v814_v20  ;;  %v13382_v33 = vpop.f32.mrf.mxu1  ;;  %v2778_v7 = vsel %vm12873_vm8, %v2773_v48, %v13349_v1  ;;  %1362 = vst [vmem:[#allocation2 + $0x104] sm:$0x1] %v1361_v3  ;;  %v2788_v46 = vsel %vm12873_vm8, %v2783_v51, %v2787_v52  ;;  %v1253_v27 = vld [vmem:[#allocation2 + $0x108] sm:$0x1]  ;;  %v12079_v48 = vld [vmem:[%s16506_s4 + $0x58] sm:$0xff]  ;;  %9165 = vmatpush.bf16.msra.mxu1 %v12163_v29 }
 0x1b4   : > { %v1682_v34 = vrot.slane %v1680_v23, 7  ;;  %v3189_v20 = vunpack.c.l.b16 %v2778_v7  ;;  %v2169_v53 = vld [vmem:[#allocation2 + $0xf0] sm:$0xf]  ;;  %4543 = vmatpush.bf16.msrb.mxu3 %v12079_v48 }
 0x1b5   : > { %v3236_v4 = vpack.c.b16 %v3188_v26, %v3187_v24  ;;  %vm946_vm1 = vcmp.gt.f32.partialorder %v882_v31, 0.0  ;;  %v1010_v40 = vmul.f32 0.1, %v882_v31  ;;  %v3190_v26 = vunpack.c.l.b16 %v2788_v46  ;;  %v1363_v7 = vld [vmem:[#allocation2 + $0x110] sm:$0x1] }
 0x1b6   : > { %v1685_v41 = vor.u32 %v1683_v38, %v1682_v34  ;;  %v1686_v22 = vrot.slane %v1682_v34, 4 }
 0x1b7   : > { %11111 = vmatmul.msk.bf16.gmra.mxu1 %vm3277_vm9, %v3236_v4  ;;  %v1074_v25 = vsel %vm946_vm1, %v882_v31, %v1010_v40  ;;  %v1254_v4 = vsel %vm12836_vm3, 0, %v1253_v27 }
 0x1b8   : > { %v2163_v54 = vsel %vm12906_vm11, %v1685_v41, %v2162_v39  ;;  %v1138_v55 = vpack.c.bf16 %v1074_v25, %v1074_v25  ;;  %v702_v59 = vpop.f32.mrf.mxu0  ;;  %1255 = vst [vmem:[#allocation2 + $0x108] sm:$0x1] %v1254_v4 }
 0x1b9   : > { %2164 = vst [vmem:[#allocation2 + $0xe4] sm:$0xf] %v2163_v54  ;;  %v815_v2 = vmul.f32 %v13370_v18, %v702_v59  ;;  %11288 = vmatmul.msk.bf16.gmra.mxu2 %vm3277_vm9, %v12052_v45  ;;  %v3237_v45 = vpack.c.b16 %v3190_v26, %v3189_v20 }
 0x1ba   : > { %v1688_v6 = vshrl.u32 %v1138_v55, 16  ;;  %v1691_v12 = vshll.u32 %v1138_v55, 16 }
 0x1bb   : > { %v883_v57 = vadd.f32 %v13379_v30, %v815_v2  ;;  %741 = vmatmul.bf16.gmra.mxu0 %v12021_v49  ;;  %v13400_v8 = vpop.f32.mrf.mxu1 }
 0x1bc   : > { %v1690_v10 = vrot.slane %v1688_v6, 7  ;;  %v12022_v6 = vld [vmem:[%s12820_s23 + $0xd0] sm:$0xff] }
 0x1bd   : > { %vm947_vm2 = vcmp.gt.f32.partialorder %v883_v57, 0.0  ;;  %v1011_v17 = vmul.f32 0.1, %v883_v57 }
 0x1be   : > { %v1693_v23 = vor.u32 %v1691_v12, %v1690_v10  ;;  %v1695_v24 = vrot.slane %v1690_v10, 4 }
 0x1bf   : > { %v1075_v1 = vsel %vm947_vm2, %v883_v57, %v1011_v17  ;;  %v1364_v17 = vsel %vm12849_vm5, 0, %v1363_v7 }
 0x1c0   : > { %v1694_v31 = vsel %vm12918_vm14, %v1686_v22, %v1693_v23  ;;  %v2167_v28 = vsel %vm12836_vm3, %v1695_v24, %v2166_v13  ;;  %v1139_v35 = vpack.c.bf16 %v1075_v1, %v1075_v1  ;;  %v704_v15 = vpop.f32.mrf.mxu0  ;;  %v2308_v38 = vld [vmem:[#allocation2 + $0xe4] sm:$0xf]  ;;  %1365 = vst [vmem:[#allocation2 + $0x110] sm:$0x1] %v1364_v17 }
 0x1c1   : > { %2165 = vst.msk [vmem:[#allocation2 + $0xe8] sm:$0xf] %vm1169_vm0, %v1694_v31  ;;  %v816_v34 = vmul.f32 %v13370_v18, %v704_v15  ;;  %v2790_v39 = vshrl.u32 %v2308_v38, 16  ;;  %v2793_v40 = vshll.u32 %v2308_v38, 16 }
 0x1c2   : > { %2168 = vst [vmem:[#allocation2 + $0xec] sm:$0x1] %v2167_v28  ;;  %v1697_v41 = vshrl.u32 %v1139_v35, 16  ;;  %v1700_v52 = vshll.u32 %v1139_v35, 16 }
 0x1c3   : > { %v884_v25 = vadd.f32 %v13379_v30, %v816_v34  ;;  %v13416_v49 = vpop.f32.mrf.mxu1  ;;  %v2792_v55 = vrot.slane %v2790_v39, 4  ;;  %v2795_v59 = vrot.slane %v2793_v40, 5  ;;  %v2173_v34 = vld [vmem:[#allocation2 + $0xf8] sm:$0x1] }
 0x1c4   : > { %v1699_v51 = vrot.slane %v1697_v41, 7 }
 0x1c5   : > { %vm948_vm4 = vcmp.gt.f32.partialorder %v884_v25, 0.0  ;;  %v1012_v54 = vmul.f32 0.1, %v884_v25  ;;  %v2796_v23 = vor.u32 %v2795_v59, %v2792_v55  ;;  %v1256_v59 = vld [vmem:[#allocation2 + $0x114] sm:$0x1] }
 0x1c6   : > { %v1702_v3 = vor.u32 %v1700_v52, %v1699_v51 }
 0x1c7   : > { %11112 = vmatmul.msk.bf16.gmra.mxu1 %vm3277_vm9, %v3237_v45  ;;  %v1076_v2 = vsel %vm948_vm4, %v884_v25, %v1012_v54  ;;  %v2797_v40 = vrot.slane %v2796_v23, 4  ;;  %v1703_v45 = vrot.slane %v1699_v51, 4  ;;  %v1257_v51 = vsel %vm12836_vm3, 0, %v1256_v59 }
 0x1c8   : > { %v2170_v57 = vsel %vm12906_vm11, %v1702_v3, %v2169_v53  ;;  %v1140_v46 = vpack.c.bf16 %v1076_v2, %v1076_v2  ;;  %v707_v10 = vpop.f32.mrf.mxu0  ;;  %v12053_v12 = vld [vmem:[#allocation2 + $0xe4] sm:$0xff]  ;;  %1258 = vst [vmem:[#allocation2 + $0x114] sm:$0x1] %v1257_v51 }
 0x1c9   : > { %v2309_v13 = vld [vmem:[#allocation2 + $0xe8] sm:$0xf]  ;;  %2171 = vst [vmem:[#allocation2 + $0xf0] sm:$0xf] %v2170_v57  ;;  %v817_v20 = vmul.f32 %v13370_v18, %v707_v10  ;;  %v2363_v22 = vld [vmem:[#allocation2 + $0xec] sm:$0x1]  ;;  %11289 = vmatmul.msk.bf16.gmra.mxu2 %vm3277_vm9, %v12053_v12 }
 0x1ca   : > { %v2799_v24 = vshll.u32 %v2309_v13, 16  ;;  %v2803_v26 = vshrl.u32 %v2309_v13, 16  ;;  %v1705_v1 = vshrl.u32 %v1140_v46, 16  ;;  %v2809_v15 = vshll.u32 %v2363_v22, 16 }
 0x1cb   : > { %v885_v27 = vadd.f32 %v13379_v30, %v817_v20  ;;  %746 = vmatmul.bf16.gmra.mxu0 %v12022_v6  ;;  %v13427_v31 = vpop.f32.mrf.mxu1  ;;  %v1708_v4 = vshll.u32 %v1140_v46, 16 }
 0x1cc   : > { %v2801_v28 = vrot.slane %v2799_v24, 5  ;;  %v2805_v35 = vrot.slane %v2803_v26, 4  ;;  %v1707_v38 = vrot.slane %v1705_v1, 7  ;;  %v2811_v55 = vrot.slane %v2809_v15, 5 }
 0x1cd   : > { %vm949_vm6 = vcmp.gt.f32.partialorder %v885_v27, 0.0  ;;  %v1013_v39 = vmul.f32 0.1, %v885_v27 }
 0x1ce   : > { %v2806_v41 = vor.u32 %v2805_v35, %v2801_v28  ;;  %v1710_v48 = vor.u32 %v1708_v4, %v1707_v38  ;;  %v1712_v25 = vrot.slane %v1707_v38, 4  ;;  %v2802_v53 = vsel %vm12873_vm8, %v2797_v40, %v2801_v28  ;;  %v12080_v35 = vld [vmem:[#allocation2 + $0xc] sm:$0xff]  ;;  %v12023_v40 = vld [vmem:[%s12820_s23 + $0xd8] sm:$0xff] }
 0x1cf   : > { %v1077_v52 = vsel %vm949_vm6, %v885_v27, %v1013_v39  ;;  %v3191_v20 = vunpack.c.l.b16 %v2802_v53  ;;  %v2176_v27 = vld [vmem:[#allocation2 + $0xfc] sm:$0xf] }
 0x1d0   : > { %v2807_v54 = vrot.slane %v2806_v41, 4  ;;  %v1711_v3 = vsel %vm12918_vm14, %v1703_v45, %v1710_v48  ;;  %v2174_v2 = vsel %vm12836_vm3, %v1712_v25, %v2173_v34  ;;  %v1141_v6 = vpack.c.bf16 %v1077_v52, %v1077_v52  ;;  %v709_v7 = vpop.f32.mrf.mxu0  ;;  %v2310_v57 = vld [vmem:[#allocation2 + $0xf0] sm:$0xf]  ;;  %v1366_v41 = vld [vmem:[#allocation2 + $0x11c] sm:$0x1] }
 0x1d1   : > { %2172 = vst.msk [vmem:[#allocation2 + $0xf4] sm:$0xf] %vm1169_vm0, %v1711_v3  ;;  %v818_v46 = vmul.f32 %v13370_v18, %v709_v7  ;;  %v2814_v12 = vshrl.u32 %v2310_v57, 16  ;;  %v2817_v13 = vshll.u32 %v2310_v57, 16 }
 0x1d2   : > { %v2812_v10 = vsel %vm12873_vm8, %v2807_v54, %v2811_v55  ;;  %2175 = vst [vmem:[#allocation2 + $0xf8] sm:$0x1] %v2174_v2  ;;  %v1714_v17 = vshrl.u32 %v1141_v6, 16  ;;  %v1717_v1 = vshll.u32 %v1141_v6, 16  ;;  %v1367_v54 = vsel %vm12849_vm5, 0, %v1366_v41 }
 0x1d3   : > { %v3192_v22 = vunpack.c.l.b16 %v2812_v10  ;;  %v886_v23 = vadd.f32 %v13379_v30, %v818_v46  ;;  %v13442_v24 = vpop.f32.mrf.mxu1  ;;  %v2816_v38 = vrot.slane %v2814_v12, 4  ;;  %v2819_v4 = vrot.slane %v2817_v13, 5  ;;  %1368 = vst [vmem:[#allocation2 + $0x11c] sm:$0x1] %v1367_v54 }
 0x1d4   : > { %16529 = vst [vmem:[#allocation5_spill] sm:$0xff] %v13442_v24  ;;  %v1716_v26 = vrot.slane %v1714_v17, 7 }
 0x1d5   : > { %v3238_v28 = vpack.c.b16 %v3192_v22, %v3191_v20  ;;  %vm950_vm7 = vcmp.gt.f32.partialorder %v886_v23, 0.0  ;;  %v1014_v15 = vmul.f32 0.1, %v886_v23  ;;  %v2820_v3 = vor.u32 %v2819_v4, %v2816_v38  ;;  %v2180_v20 = vld [vmem:[#allocation2 + $0x104] sm:$0x1] }
 0x1d6   : > { %v1719_v34 = vor.u32 %v1717_v1, %v1716_v26 }
 0x1d7   : > { %11113 = vmatmul.msk.bf16.vlgmr.msra.gmra.mxu3 %vm3277_vm9, %v3238_v28  ;;  %11528 = vmatmul.msk.bf16.vlgmr.msrb.gmra.mxu1 %vm3277_vm9, %v12080_v35  ;;  %v1078_v39 = vsel %vm950_vm7, %v886_v23, %v1014_v15  ;;  %v2821_v23 = vrot.slane %v2820_v3, 4 }
 0x1d8   : > { %v2177_v45 = vsel %vm12906_vm11, %v1719_v34, %v2176_v27  ;;  %v1142_v48 = vpack.c.bf16 %v1078_v39, %v1078_v39  ;;  %v712_v25 = vpop.f32.mrf.mxu0  ;;  %v12054_v52 = vld [vmem:[#allocation2 + $0xf0] sm:$0xff]  ;;  %v1720_v27 = vrot.slane %v1716_v26, 4  ;;  %v1259_v39 = vld [vmem:[#allocation2 + $0x120] sm:$0x1] }
 0x1d9   : > { %v2311_v53 = vld [vmem:[#allocation2 + $0xf4] sm:$0xf]  ;;  %2178 = vst [vmem:[#allocation2 + $0xfc] sm:$0xf] %v2177_v45  ;;  %v819_v55 = vmul.f32 %v13370_v18, %v712_v25  ;;  %v2364_v59 = vld [vmem:[#allocation2 + $0xf8] sm:$0x1]  ;;  %11290 = vmatmul.msk.bf16.gmra.mxu2 %vm3277_vm9, %v12054_v52 }
 0x1da   : > { %v2823_v2 = vshll.u32 %v2311_v53, 16  ;;  %v2827_v6 = vshrl.u32 %v2311_v53, 16  ;;  %v1722_v7 = vshrl.u32 %v1142_v48, 16  ;;  %v2833_v12 = vshll.u32 %v2364_v59, 16 }
 0x1db   : > { %v887_v57 = vadd.f32 %v13379_v30, %v819_v55  ;;  %751 = vmatmul.bf16.gmra.mxu0 %v12023_v40  ;;  %v13454_v51 = vpop.f32.mrf.mxu1  ;;  %v1725_v17 = vshll.u32 %v1142_v48, 16  ;;  %v1260_v26 = vsel %vm12836_vm3, 0, %v1259_v39 }
 0x1dc   : > { %16530 = vst [vmem:[#allocation6_spill] sm:$0xff] %v13454_v51  ;;  %v2825_v46 = vrot.slane %v2823_v2, 5  ;;  %v2829_v10 = vrot.slane %v2827_v6, 4  ;;  %v1724_v13 = vrot.slane %v1722_v7, 7  ;;  %v2835_v34 = vrot.slane %v2833_v12, 5 }
 0x1dd   : > { %vm951_vm10 = vcmp.gt.f32.partialorder %v887_v57, 0.0  ;;  %v1015_v22 = vmul.f32 0.1, %v887_v57  ;;  %1261 = vst [vmem:[#allocation2 + $0x120] sm:$0x1] %v1260_v26 }
 0x1de   : > { %v2830_v1 = vor.u32 %v2829_v10, %v2825_v46  ;;  %v1727_v28 = vor.u32 %v1725_v17, %v1724_v13  ;;  %v1729_v35 = vrot.slane %v1724_v13, 4  ;;  %v2826_v38 = vsel %vm12873_vm8, %v2821_v23, %v2825_v46  ;;  %v2183_v10 = vld [vmem:[#allocation2 + $0x108] sm:$0xf]  ;;  %v12081_v13 = vld [vmem:[#allocation2 + $0x18] sm:$0xff] }
 0x1df   : > { %v1079_v15 = vsel %vm951_vm10, %v887_v57, %v1015_v22  ;;  %v3193_v3 = vunpack.c.l.b16 %v2826_v38 }
 0x1e0   : > { %v2831_v4 = vrot.slane %v2830_v1, 4  ;;  %v1728_v40 = vsel %vm12918_vm14, %v1720_v27, %v1727_v28  ;;  %v2181_v41 = vsel %vm12836_vm3, %v1729_v35, %v2180_v20  ;;  %v1143_v45 = vpack.c.bf16 %v1079_v15, %v1079_v15  ;;  %v714_v48 = vpop.f32.mrf.mxu0  ;;  %v2312_v25 = vld [vmem:[#allocation2 + $0xfc] sm:$0xf]  ;;  %v12024_v27 = vld [vmem:[%s12820_s23 + $0xe0] sm:$0xff]  ;;  %v1369_v28 = vld [vmem:[#allocation2 + $0x128] sm:$0x1] }
 0x1e1   : > { %2179 = vst.msk [vmem:[#allocation2 + $0x100] sm:$0xf] %vm1169_vm0, %v1728_v40  ;;  %v820_v52 = vmul.f32 %v13370_v18, %v714_v48  ;;  %v2838_v54 = vshrl.u32 %v2312_v25, 16  ;;  %v2841_v55 = vshll.u32 %v2312_v25, 16  ;;  %v1370_v39 = vsel %vm12849_vm5, 0, %v1369_v28 }
 0x1e2   : > { %v2836_v53 = vsel %vm12873_vm8, %v2831_v4, %v2835_v34  ;;  %2182 = vst [vmem:[#allocation2 + $0x104] sm:$0x1] %v2181_v41  ;;  %v1731_v59 = vshrl.u32 %v1143_v45, 16  ;;  %v1734_v46 = vshll.u32 %v1143_v45, 16  ;;  %v1262_v28 = vld [vmem:[#allocation2 + $0x12c] sm:$0x1] }
 0x1e3   : > { %v3194_v2 = vunpack.c.l.b16 %v2836_v53  ;;  %v888_v6 = vadd.f32 %v13379_v30, %v820_v52  ;;  %v13469_v7 = vpop.f32.mrf.mxu1  ;;  %v2840_v20 = vrot.slane %v2838_v54, 4  ;;  %v2843_v22 = vrot.slane %v2841_v55, 5  ;;  %1371 = vst [vmem:[#allocation2 + $0x128] sm:$0x1] %v1370_v39 }
 0x1e4   : > { %16531 = vst [vmem:[#allocation7_spill] sm:$0xff] %v13469_v7  ;;  %v1733_v57 = vrot.slane %v1731_v59, 7 }
 0x1e5   : > { %v3239_v12 = vpack.c.b16 %v3194_v2, %v3193_v3  ;;  %vm952_vm12 = vcmp.gt.f32.partialorder %v888_v6, 0.0  ;;  %v1016_v17 = vmul.f32 0.1, %v888_v6  ;;  %v2844_v45 = vor.u32 %v2843_v22, %v2840_v20 }
 0x1e6   : > { %v1736_v23 = vor.u32 %v1734_v46, %v1733_v57 }
 0x1e7   : > { %11114 = vmatmul.msk.bf16.gmra.mxu3 %vm3277_vm9, %v3239_v12  ;;  %11529 = vmatmul.msk.bf16.gmra.mxu1 %vm3277_vm9, %v12081_v13  ;;  %v1080_v1 = vsel %vm952_vm12, %v888_v6, %v1016_v17  ;;  %v2187_v6 = vld [vmem:[#allocation2 + $0x110] sm:$0x1]  ;;  %v1737_v13 = vrot.slane %v1733_v57, 4  ;;  %v1263_v57 = vsel %vm12836_vm3, 0, %v1262_v28 }
 0x1e8   : > { %v2184_v35 = vsel %vm12906_vm11, %v1736_v23, %v2183_v10  ;;  %v1144_v15 = vpack.c.bf16 %v1080_v1, %v1080_v1  ;;  %v717_v38 = vpop.f32.mrf.mxu0  ;;  %v12055_v4 = vld [vmem:[#allocation2 + $0xfc] sm:$0xff]  ;;  %v2845_v10 = vrot.slane %v2844_v45, 4  ;;  %1264 = vst [vmem:[#allocation2 + $0x12c] sm:$0x1] %v1263_v57 }
 0x1e9   : > { %v2313_v34 = vld [vmem:[#allocation2 + $0x100] sm:$0xf]  ;;  %2185 = vst [vmem:[#allocation2 + $0x108] sm:$0xf] %v2184_v35  ;;  %v821_v40 = vmul.f32 %v13370_v18, %v717_v38  ;;  %v2365_v41 = vld [vmem:[#allocation2 + $0x104] sm:$0x1]  ;;  %11291 = vmatmul.msk.bf16.gmra.mxu2 %vm3277_vm9, %v12055_v4 }
 0x1ea   : > { %v2847_v48 = vshll.u32 %v2313_v34, 16  ;;  %v2851_v25 = vshrl.u32 %v2313_v34, 16  ;;  %v1739_v26 = vshrl.u32 %v1144_v15, 16  ;;  %v2857_v59 = vshll.u32 %v2365_v41, 16 }
 0x1eb   : > { %v889_v52 = vadd.f32 %v13379_v30, %v821_v40  ;;  %756 = vmatmul.bf16.gmra.mxu0 %v12024_v27  ;;  %v13481_v53 = vpop.f32.mrf.mxu1  ;;  %v1742_v2 = vshll.u32 %v1144_v15, 16 }
 0x1ec   : > { %16532 = vst [vmem:[#allocation8_spill] sm:$0xff] %v13481_v53  ;;  %v2849_v54 = vrot.slane %v2847_v48, 5  ;;  %v2853_v55 = vrot.slane %v2851_v25, 4  ;;  %v1741_v3 = vrot.slane %v1739_v26, 7  ;;  %v2859_v27 = vrot.slane %v2857_v59, 5 }
 0x1ed   : > { %vm953_vm13 = vcmp.gt.f32.partialorder %v889_v52, 0.0  ;;  %v1017_v46 = vmul.f32 0.1, %v889_v52 }
 0x1ee   : > { %v2854_v12 = vor.u32 %v2853_v55, %v2849_v54  ;;  %v1744_v17 = vor.u32 %v1742_v2, %v1741_v3  ;;  %v1746_v20 = vrot.slane %v1741_v3, 4  ;;  %v2850_v23 = vsel %vm12873_vm8, %v2845_v10, %v2849_v54  ;;  %v12118_v55 = vld [vmem:[%s16506_s4 + $0x90] sm:$0xff] }
 0x1ef   : > { %v1081_v22 = vsel %vm953_vm13, %v889_v52, %v1017_v46  ;;  %v3195_v25 = vunpack.c.l.b16 %v2850_v23  ;;  %v2190_v2 = vld [vmem:[#allocation2 + $0x114] sm:$0xf]  ;;  %v12082_v46 = vld [vmem:[#allocation2 + $0x24] sm:$0xff]  ;;  %6450 = vmatpush.bf16.msrb.mxu2 %v12118_v55 }
 0x1f0   : > { %v2855_v1 = vrot.slane %v2854_v12, 4  ;;  %v1745_v35 = vsel %vm12918_vm14, %v1737_v13, %v1744_v17  ;;  %v2188_v15 = vsel %vm12836_vm3, %v1746_v20, %v2187_v6  ;;  %v1145_v38 = vpack.c.bf16 %v1081_v22, %v1081_v22  ;;  %v719_v4 = vpop.f32.mrf.mxu0  ;;  %v2314_v34 = vld [vmem:[#allocation2 + $0x108] sm:$0xf]  ;;  %v1372_v23 = vld [vmem:[#allocation2 + $0x134] sm:$0x1] }
 0x1f1   : > { %2186 = vst.msk [vmem:[#allocation2 + $0x10c] sm:$0xf] %vm1169_vm0, %v1745_v35  ;;  %v822_v39 = vmul.f32 %v13370_v18, %v719_v4  ;;  %v2862_v41 = vshrl.u32 %v2314_v34, 16  ;;  %v2865_v45 = vshll.u32 %v2314_v34, 16  ;;  %v12025_v22 = vld [vmem:[%s12820_s23 + $0xe8] sm:$0xff] }
 0x1f2   : > { %v2860_v40 = vsel %vm12873_vm8, %v2855_v1, %v2859_v27  ;;  %2189 = vst [vmem:[#allocation2 + $0x110] sm:$0x1] %v2188_v15  ;;  %v1748_v48 = vshrl.u32 %v1145_v38, 16  ;;  %v1751_v3 = vshll.u32 %v1145_v38, 16  ;;  %v1373_v38 = vsel %vm12849_vm5, 0, %v1372_v23 }
 0x1f3   : > { %v3196_v26 = vunpack.c.l.b16 %v2860_v40  ;;  %v890_v52 = vadd.f32 %v13379_v30, %v822_v39  ;;  %v13496_v54 = vpop.f32.mrf.mxu1  ;;  %v2864_v12 = vrot.slane %v2862_v41, 4  ;;  %v2867_v13 = vrot.slane %v2865_v45, 5  ;;  %1374 = vst [vmem:[#allocation2 + $0x134] sm:$0x1] %v1373_v38 }
 0x1f4   : > { %16533 = vst [vmem:[#allocation9_spill] sm:$0xff] %v13496_v54  ;;  %v1750_v59 = vrot.slane %v1748_v48, 7  ;;  %v12050_v54 = vld [vmem:[#allocation2 + $0xa8] sm:$0xff] }
 0x1f5   : > { %v3240_v6 = vpack.c.b16 %v3196_v26, %v3195_v25  ;;  %vm954_vm1 = vcmp.gt.f32.partialorder %v890_v52, 0.0  ;;  %v1018_v10 = vmul.f32 0.1, %v890_v52  ;;  %v2868_v57 = vor.u32 %v2867_v13, %v2864_v12 }
 0x1f6   : > { %v1753_v17 = vor.u32 %v1751_v3, %v1750_v59  ;;  %v1754_v12 = vrot.slane %v1750_v59, 4 }
 0x1f7   : > { %11115 = vmatmul.msk.bf16.gmra.mxu3 %vm3277_vm9, %v3240_v6  ;;  %11530 = vmatmul.msk.bf16.gmra.mxu1 %vm3277_vm9, %v12082_v46  ;;  %v1082_v20 = vsel %vm954_vm1, %v890_v52, %v1018_v10  ;;  %v2869_v46 = vrot.slane %v2868_v57, 4 }
 0x1f8   : > { %v2191_v1 = vsel %vm12906_vm11, %v1753_v17, %v2190_v2  ;;  %v1146_v27 = vpack.c.bf16 %v1082_v20, %v1082_v20  ;;  %v722_v28 = vpop.f32.mrf.mxu0  ;;  %v12056_v35 = vld [vmem:[#allocation2 + $0x108] sm:$0xff]  ;;  %v2194_v2 = vld [vmem:[#allocation2 + $0x11c] sm:$0x1] }
 0x1f9   : > { %v2315_v15 = vld [vmem:[#allocation2 + $0x10c] sm:$0xf]  ;;  %2192 = vst [vmem:[#allocation2 + $0x114] sm:$0xf] %v2191_v1  ;;  %v823_v4 = vmul.f32 %v13370_v18, %v722_v28  ;;  %v2366_v34 = vld [vmem:[#allocation2 + $0x110] sm:$0x1]  ;;  %11292 = vmatmul.msk.bf16.gmra.mxu2 %vm3277_vm9, %v12056_v35 }
 0x1fa   : > { %v2871_v39 = vshll.u32 %v2315_v15, 16  ;;  %v2875_v40 = vshrl.u32 %v2315_v15, 16  ;;  %v1756_v41 = vshrl.u32 %v1146_v27, 16  ;;  %v2881_v52 = vshll.u32 %v2366_v34, 16  ;;  %v1265_v28 = vld [vmem:[#allocation2 + $0x138] sm:$0x1] }
 0x1fb   : > { %v891_v45 = vadd.f32 %v13379_v30, %v823_v4  ;;  %761 = vmatmul.bf16.gmra.mxu0 %v12025_v22  ;;  %v13511_v48 = vpop.f32.mrf.mxu1  ;;  %v1759_v3 = vshll.u32 %v1146_v27, 16  ;;  %v1266_v59 = vsel %vm12836_vm3, 0, %v1265_v28 }
 0x1fc   : > { %16534 = vst [vmem:[#allocation10_spill] sm:$0xff] %v13511_v48  ;;  %v2873_v25 = vrot.slane %v2871_v39, 5  ;;  %v2877_v26 = vrot.slane %v2875_v40, 4  ;;  %v1758_v55 = vrot.slane %v1756_v41, 7  ;;  %v2883_v1 = vrot.slane %v2881_v52, 5 }
 0x1fd   : > { %vm955_vm2 = vcmp.gt.f32.partialorder %v891_v45, 0.0  ;;  %v1019_v6 = vmul.f32 0.1, %v891_v45  ;;  %1267 = vst [vmem:[#allocation2 + $0x138] sm:$0x1] %v1266_v59 }
 0x1fe   : > { %v2878_v10 = vor.u32 %v2877_v26, %v2873_v25  ;;  %v1761_v13 = vor.u32 %v1759_v3, %v1758_v55  ;;  %v1763_v17 = vrot.slane %v1758_v55, 4  ;;  %v2874_v22 = vsel %vm12873_vm8, %v2869_v46, %v2873_v25  ;;  %v12078_v55 = vld [vmem:[%s16506_s4 + $0x50] sm:$0xff] }
 0x1ff   : > { %v1083_v20 = vsel %vm955_vm2, %v891_v45, %v1019_v6  ;;  %v3197_v45 = vunpack.c.l.b16 %v2874_v22  ;;  %v2197_v6 = vld [vmem:[#allocation2 + $0x120] sm:$0xf]  ;;  %4544 = vmatpush.bf16.msrb.mxu3 %v12078_v55 }
 0x200   : > { %v2879_v23 = vrot.slane %v2878_v10, 4  ;;  %v1762_v35 = vsel %vm12918_vm14, %v1754_v12, %v1761_v13  ;;  %v2195_v27 = vsel %vm12836_vm3, %v1763_v17, %v2194_v2  ;;  %v1147_v15 = vpack.c.bf16 %v1083_v20, %v1083_v20  ;;  %v724_v38 = vpop.f32.mrf.mxu0  ;;  %v2316_v4 = vld [vmem:[#allocation2 + $0x114] sm:$0xf] }
 0x201   : > { %2193 = vst.msk [vmem:[#allocation2 + $0x118] sm:$0xf] %vm1169_vm0, %v1762_v35  ;;  %v824_v34 = vmul.f32 %v13370_v18, %v724_v38  ;;  %v2886_v39 = vshrl.u32 %v2316_v4, 16  ;;  %v2889_v40 = vshll.u32 %v2316_v4, 16  ;;  %v12083_v10 = vld [vmem:[#allocation2 + $0x30] sm:$0xff] }
 0x202   : > { %v2884_v57 = vsel %vm12873_vm8, %v2879_v23, %v2883_v1  ;;  %2196 = vst [vmem:[#allocation2 + $0x11c] sm:$0x1] %v2195_v27  ;;  %v1765_v41 = vshrl.u32 %v1147_v15, 16  ;;  %v1768_v2 = vshll.u32 %v1147_v15, 16  ;;  %v12026_v23 = vld [vmem:[%s12820_s23 + $0xf0] sm:$0xff] }
 0x203   : > { %v3198_v25 = vunpack.c.l.b16 %v2884_v57  ;;  %v892_v26 = vadd.f32 %v13379_v30, %v824_v34  ;;  %v13526_v52 = vpop.f32.mrf.mxu1  ;;  %v2888_v13 = vrot.slane %v2886_v39, 4  ;;  %v2891_v17 = vrot.slane %v2889_v40, 5  ;;  %v1375_v1 = vld [vmem:[#allocation2 + $0x140] sm:$0x1] }
 0x204   : > { %16535 = vst [vmem:[#allocation11_spill] sm:$0xff] %v13526_v52  ;;  %v1767_v3 = vrot.slane %v1765_v41, 7  ;;  %v1376_v4 = vsel %vm12849_vm5, 0, %v1375_v1 }
 0x205   : > { %v3241_v46 = vpack.c.b16 %v3198_v25, %v3197_v45  ;;  %vm956_vm4 = vcmp.gt.f32.partialorder %v892_v26, 0.0  ;;  %v1020_v12 = vmul.f32 0.1, %v892_v26  ;;  %v2892_v57 = vor.u32 %v2891_v17, %v2888_v13  ;;  %1377 = vst [vmem:[#allocation2 + $0x140] sm:$0x1] %v1376_v4 }
 0x206   : > { %v1770_v20 = vor.u32 %v1768_v2, %v1767_v3 }
 0x207   : > { %11116 = vmatmul.msk.bf16.gmra.mxu3 %vm3277_vm9, %v3241_v46  ;;  %11531 = vmatmul.msk.bf16.gmra.mxu1 %vm3277_vm9, %v12083_v10  ;;  %v1084_v22 = vsel %vm956_vm4, %v892_v26, %v1020_v12  ;;  %v2201_v10 = vld [vmem:[#allocation2 + $0x128] sm:$0x1]  ;;  %v2893_v13 = vrot.slane %v2892_v57, 4 }
 0x208   : > { %v2198_v28 = vsel %vm12906_vm11, %v1770_v20, %v2197_v6  ;;  %v1148_v35 = vpack.c.bf16 %v1084_v22, %v1084_v22  ;;  %v727_v27 = vpop.f32.mrf.mxu0  ;;  %v12057_v15 = vld [vmem:[#allocation2 + $0x114] sm:$0xff]  ;;  %v1771_v20 = vrot.slane %v1767_v3, 4 }
 0x209   : > { %v2317_v38 = vld [vmem:[#allocation2 + $0x118] sm:$0xf]  ;;  %2199 = vst [vmem:[#allocation2 + $0x120] sm:$0xf] %v2198_v28  ;;  %v825_v59 = vmul.f32 %v13370_v18, %v727_v27  ;;  %v2367_v34 = vld [vmem:[#allocation2 + $0x11c] sm:$0x1]  ;;  %11293 = vmatmul.msk.bf16.gmra.mxu2 %vm3277_vm9, %v12057_v15 }
 0x20a   : > { %v2895_v39 = vshll.u32 %v2317_v38, 16  ;;  %v2899_v40 = vshrl.u32 %v2317_v38, 16  ;;  %v1773_v41 = vshrl.u32 %v1148_v35, 16  ;;  %v2905_v2 = vshll.u32 %v2367_v34, 16  ;;  %v1268_v38 = vld [vmem:[#allocation2 + $0x144] sm:$0x1] }
 0x20b   : > { %v893_v45 = vadd.f32 %v13379_v30, %v825_v59  ;;  %766 = vmatmul.bf16.gmra.mxu0 %v12026_v23  ;;  %v13541_v25 = vpop.f32.mrf.mxu1  ;;  %v1776_v46 = vshll.u32 %v1148_v35, 16  ;;  %v1269_v3 = vsel %vm12836_vm3, 0, %v1268_v38  ;;  %v1378_v38 = vld [vmem:[#allocation2 + $0x14c] sm:$0x1] }
 0x20c   : > { %16536 = vst [vmem:[#allocation12_spill] sm:$0xff] %v13541_v25  ;;  %v2897_v26 = vrot.slane %v2895_v39, 5  ;;  %v2901_v55 = vrot.slane %v2899_v40, 4  ;;  %v1775_v6 = vrot.slane %v1773_v41, 7  ;;  %v2907_v15 = vrot.slane %v2905_v2, 5 }
 0x20d   : > { %vm957_vm6 = vcmp.gt.f32.partialorder %v893_v45, 0.0  ;;  %v1021_v12 = vmul.f32 0.1, %v893_v45  ;;  %1270 = vst [vmem:[#allocation2 + $0x144] sm:$0x1] %v1269_v3  ;;  %v1379_v3 = vsel %vm12849_vm5, 0, %v1378_v38 }
 0x20e   : > { %v2902_v17 = vor.u32 %v2901_v55, %v2897_v26  ;;  %v1778_v22 = vor.u32 %v1776_v46, %v1775_v6  ;;  %v1780_v1 = vrot.slane %v1775_v6, 4  ;;  %v2898_v23 = vsel %vm12873_vm8, %v2893_v13, %v2897_v26  ;;  %v2204_v13 = vld [vmem:[#allocation2 + $0x12c] sm:$0xf]  ;;  %1380 = vst [vmem:[#allocation2 + $0x14c] sm:$0x1] %v1379_v3 }
 0x20f   : > { %v1085_v28 = vsel %vm957_vm6, %v893_v45, %v1021_v12  ;;  %v3199_v55 = vunpack.c.l.b16 %v2898_v23  ;;  %v3992_v25 = vld [vmem:[#allocation2] sm:$0xe] }
 0x210   : > { %v2903_v27 = vrot.slane %v2902_v17, 4  ;;  %v1779_v4 = vsel %vm12918_vm14, %v1771_v20, %v1778_v22  ;;  %v2202_v35 = vsel %vm12836_vm3, %v1780_v1, %v2201_v10  ;;  %v1149_v59 = vpack.c.bf16 %v1085_v28, %v1085_v28  ;;  %v729_v34 = vpop.f32.mrf.mxu0  ;;  %v2318_v57 = vld [vmem:[#allocation2 + $0x120] sm:$0xf] }
 0x211   : > { %2200 = vst.msk [vmem:[#allocation2 + $0x124] sm:$0xf] %vm1169_vm0, %v1779_v4  ;;  %v826_v39 = vmul.f32 %v13370_v18, %v729_v34  ;;  %v2910_v41 = vshrl.u32 %v2318_v57, 16  ;;  %v2913_v45 = vshll.u32 %v2318_v57, 16  ;;  %v12084_v20 = vld [vmem:[#allocation2 + $0x3c] sm:$0xff] }
 0x212   : > { %v2908_v40 = vsel %vm12873_vm8, %v2903_v27, %v2907_v15  ;;  %2203 = vst [vmem:[#allocation2 + $0x128] sm:$0x1] %v2202_v35  ;;  %v1782_v26 = vshrl.u32 %v1149_v59, 16  ;;  %v1785_v12 = vshll.u32 %v1149_v59, 16  ;;  %v12027_v15 = vld [vmem:[%s12820_s23 + $0xf8] sm:$0xff] }
 0x213   : > { %v3200_v2 = vunpack.c.l.b16 %v2908_v40  ;;  %v894_v6 = vadd.f32 %v13379_v30, %v826_v39  ;;  %v13556_v46 = vpop.f32.mrf.mxu1  ;;  %v2912_v1 = vrot.slane %v2910_v41, 4  ;;  %v2915_v28 = vrot.slane %v2913_v45, 5 }
 0x214   : > { %16537 = vst [vmem:[#allocation13_spill] sm:$0xff] %v13556_v46  ;;  %v1784_v10 = vrot.slane %v1782_v26, 7 }
 0x215   : > { %v3242_v17 = vpack.c.b16 %v3200_v2, %v3199_v55  ;;  %vm958_vm7 = vcmp.gt.f32.partialorder %v894_v6, 0.0  ;;  %v1022_v22 = vmul.f32 0.1, %v894_v6  ;;  %v2916_v41 = vor.u32 %v2915_v28, %v2912_v1 }
 0x216   : > { %v1787_v27 = vor.u32 %v1785_v12, %v1784_v10  ;;  %v1788_v38 = vrot.slane %v1784_v10, 4 }
 0x217   : > { %11117 = vmatmul.msk.bf16.gmra.mxu3 %vm3277_vm9, %v3242_v17  ;;  %11532 = vmatmul.msk.bf16.gmra.mxu1 %vm3277_vm9, %v12084_v20  ;;  %v1086_v23 = vsel %vm958_vm7, %v894_v6, %v1022_v22  ;;  %v2917_v1 = vrot.slane %v2916_v41, 4 }
 0x218   : > { %v2205_v4 = vsel %vm12906_vm11, %v1787_v27, %v2204_v13  ;;  %v1150_v35 = vpack.c.bf16 %v1086_v23, %v1086_v23  ;;  %v732_v59 = vpop.f32.mrf.mxu0  ;;  %v12058_v34 = vld [vmem:[#allocation2 + $0x120] sm:$0xff]  ;;  %v2208_v27 = vld [vmem:[#allocation2 + $0x134] sm:$0x1] }
 0x219   : > { %v2319_v57 = vld [vmem:[#allocation2 + $0x124] sm:$0xf]  ;;  %2206 = vst [vmem:[#allocation2 + $0x12c] sm:$0xf] %v2205_v4  ;;  %v827_v39 = vmul.f32 %v13370_v18, %v732_v59  ;;  %v2368_v40 = vld [vmem:[#allocation2 + $0x128] sm:$0x1]  ;;  %11294 = vmatmul.msk.bf16.gmra.mxu2 %vm3277_vm9, %v12058_v34 }
 0x21a   : > { %v2919_v45 = vshll.u32 %v2319_v57, 16  ;;  %v2923_v26 = vshrl.u32 %v2319_v57, 16  ;;  %v1790_v55 = vshrl.u32 %v1150_v35, 16  ;;  %v2929_v17 = vshll.u32 %v2368_v40, 16 }
 0x21b   : > { %v895_v2 = vadd.f32 %v13379_v30, %v827_v39  ;;  %771 = vmatmul.bf16.gmra.mxu0 %v12027_v15  ;;  %v13568_v6 = vpop.f32.mrf.mxu1  ;;  %v1793_v22 = vshll.u32 %v1150_v35, 16 }
 0x21c   : > { %16538 = vst [vmem:[#allocation14_spill] sm:$0xff] %v13568_v6  ;;  %v2921_v12 = vrot.slane %v2919_v45, 5  ;;  %v2925_v13 = vrot.slane %v2923_v26, 4  ;;  %v1792_v20 = vrot.slane %v1790_v55, 7  ;;  %v2931_v39 = vrot.slane %v2929_v17, 5 }
 0x21d   : > { %vm959_vm10 = vcmp.gt.f32.partialorder %v895_v2, 0.0  ;;  %v1023_v23 = vmul.f32 0.1, %v895_v2  ;;  %v1271_v45 = vld [vmem:[#allocation2 + $0x150] sm:$0x1] }
 0x21e   : > { %v2926_v28 = vor.u32 %v2925_v13, %v2921_v12  ;;  %v1795_v4 = vor.u32 %v1793_v22, %v1792_v20  ;;  %v1797_v59 = vrot.slane %v1792_v20, 4  ;;  %v2922_v15 = vsel %vm12873_vm8, %v2917_v1, %v2921_v12 }
 0x21f   : > { %v1087_v34 = vsel %vm959_vm10, %v895_v2, %v1023_v23  ;;  %v1272_v10 = vsel %vm12836_vm3, 0, %v1271_v45  ;;  %v3201_v20 = vunpack.c.l.b16 %v2922_v15 }
 0x220   : > { %v2927_v57 = vrot.slane %v2926_v28, 4  ;;  %v1796_v3 = vsel %vm12918_vm14, %v1788_v38, %v1795_v4  ;;  %v2209_v35 = vsel %vm12836_vm3, %v1797_v59, %v2208_v27  ;;  %v1151_v40 = vpack.c.bf16 %v1087_v34, %v1087_v34  ;;  %v734_v26 = vpop.f32.mrf.mxu0  ;;  %v2320_v41 = vld [vmem:[#allocation2 + $0x12c] sm:$0xf]  ;;  %1273 = vst [vmem:[#allocation2 + $0x150] sm:$0x1] %v1272_v10 }
 0x221   : > { %2207 = vst.msk [vmem:[#allocation2 + $0x130] sm:$0xf] %vm1169_vm0, %v1796_v3  ;;  %v828_v55 = vmul.f32 %v13370_v18, %v734_v26  ;;  %v2934_v12 = vshrl.u32 %v2320_v41, 16  ;;  %v2937_v13 = vshll.u32 %v2320_v41, 16  ;;  %v2211_v38 = vld [vmem:[#allocation2 + $0x138] sm:$0xf] }
 0x222   : > { %v2932_v2 = vsel %vm12873_vm8, %v2927_v57, %v2931_v39  ;;  %2210 = vst [vmem:[#allocation2 + $0x134] sm:$0x1] %v2209_v35  ;;  %v1799_v17 = vshrl.u32 %v1151_v40, 16  ;;  %v1802_v28 = vshll.u32 %v1151_v40, 16  ;;  %v12085_v59 = vld [vmem:[#allocation2 + $0x48] sm:$0xff]  ;;  %v12036_v3 = vld [vmem:[#allocation2] sm:$0xff] }
 0x223   : > { %v3202_v22 = vunpack.c.l.b16 %v2932_v2  ;;  %v896_v27 = vadd.f32 %v13379_v30, %v828_v55  ;;  %v13583_v23 = vpop.f32.mrf.mxu1  ;;  %v2936_v45 = vrot.slane %v2934_v12, 4  ;;  %v2939_v57 = vrot.slane %v2937_v13, 5  ;;  %v1381_v35 = vld [vmem:[#allocation2 + $0x158] sm:$0x1] }
 0x224   : > { %16539 = vst [vmem:[#allocation15_spill] sm:$0xff] %v13583_v23  ;;  %v1801_v1 = vrot.slane %v1799_v17, 7  ;;  %v1382_v2 = vsel %vm12849_vm5, 0, %v1381_v35 }
 0x225   : > { %v3243_v4 = vpack.c.b16 %v3202_v22, %v3201_v20  ;;  %vm960_vm12 = vcmp.gt.f32.partialorder %v896_v27, 0.0  ;;  %v1024_v34 = vmul.f32 0.1, %v896_v27  ;;  %v2940_v17 = vor.u32 %v2939_v57, %v2936_v45  ;;  %1383 = vst [vmem:[#allocation2 + $0x158] sm:$0x1] %v1382_v2 }
 0x226   : > { %v1804_v39 = vor.u32 %v1802_v28, %v1801_v1 }
 0x227   : > { %11118 = vmatmul.msk.bf16.gmra.mxu3 %vm3277_vm9, %v3243_v4  ;;  %11533 = vmatmul.msk.bf16.gmra.mxu1 %vm3277_vm9, %v12085_v59  ;;  %v1088_v15 = vsel %vm960_vm12, %v896_v27, %v1024_v34  ;;  %v2941_v35 = vrot.slane %v2940_v17, 4 }
 0x228   : > { %v2212_v26 = vsel %vm12906_vm11, %v1804_v39, %v2211_v38  ;;  %v1152_v41 = vpack.c.bf16 %v1088_v15, %v1088_v15  ;;  %v737_v40 = vpop.f32.mrf.mxu0  ;;  %v12059_v10 = vld [vmem:[#allocation2 + $0x12c] sm:$0xff] }
 0x229   : > { %v2321_v55 = vld [vmem:[#allocation2 + $0x130] sm:$0xf]  ;;  %2213 = vst [vmem:[#allocation2 + $0x138] sm:$0xf] %v2212_v26  ;;  %v829_v12 = vmul.f32 %v13370_v18, %v737_v40  ;;  %v2369_v13 = vld [vmem:[#allocation2 + $0x134] sm:$0x1]  ;;  %11295 = vmatmul.msk.bf16.gmra.mxu2 %vm3277_vm9, %v12059_v10 }
 0x22a   : > { %v2943_v20 = vshll.u32 %v2321_v55, 16  ;;  %v2947_v22 = vshrl.u32 %v2321_v55, 16  ;;  %v1807_v27 = vshrl.u32 %v1152_v41, 16  ;;  %v2953_v34 = vshll.u32 %v2369_v13, 16  ;;  %v2215_v18 = vld [vmem:[#allocation2 + $0x140] sm:$0x1] }
 0x22b   : > { %v897_v28 = vadd.f32 %v13379_v30, %v829_v12  ;;  %v13594_v38 = vpop.f32.mrf.mxu1  ;;  %11272 = vmatmul.msk.bf16.vlgmr.msrb.gmra.mxu0 %vm3277_vm9, %v12036_v3  ;;  %v1810_v15 = vshll.u32 %v1152_v41, 16  ;;  %v1805_v40 = vrot.slane %v1801_v1, 4 }
 0x22c   : > { %16540 = vst [vmem:[#allocation16_spill] sm:$0xff] %v13594_v38  ;;  %v2945_v4 = vrot.slane %v2943_v20, 5  ;;  %v2949_v59 = vrot.slane %v2947_v22, 4  ;;  %v1809_v39 = vrot.slane %v1807_v27, 7  ;;  %v3907_v57 = vpop.f32.mrf.mxu2  ;;  %v2955_v20 = vrot.slane %v2953_v34, 5 }
 0x22d   : > { %vm961_vm13 = vcmp.gt.f32.partialorder %v897_v28, 0.0  ;;  %v1025_v45 = vmul.f32 0.1, %v897_v28  ;;  %v1274_v22 = vld [vmem:[#allocation2 + $0x15c] sm:$0x1] }
 0x22e   : > { %v2950_v26 = vor.u32 %v2949_v59, %v2945_v4  ;;  %v1812_v10 = vor.u32 %v1810_v15, %v1809_v39  ;;  %v1814_v55 = vrot.slane %v1809_v39, 4  ;;  %v2946_v12 = vsel %vm12873_vm8, %v2941_v35, %v2945_v4  ;;  %v13617_v35 = vld [vmem:[%s16505_s3] ss:$0 sm:$0xff] }
 0x22f   : > { %v1089_v30 = vsel %vm961_vm13, %v897_v28, %v1025_v45  ;;  %v1275_v1 = vsel %vm12836_vm3, 0, %v1274_v22  ;;  %v13609_v28 = vld [vmem:[%s16504_s2] ss:$0 sm:$0xff]  ;;  %v12086_v22 = vld [vmem:[#allocation2 + $0x54] sm:$0xff] }
 0x230   : > { %v2951_v3 = vrot.slane %v2950_v26, 4  ;;  %v1813_v2 = vsel %vm12918_vm14, %v1805_v40, %v1812_v10  ;;  %v2216_v41 = vsel %vm12836_vm3, %v1814_v55, %v2215_v18  ;;  %v1153_v13 = vpack.c.bf16 %v1089_v30, %v1089_v30  ;;  %v739_v27 = vpop.f32.mrf.mxu0  ;;  %v2322_v17 = vld [vmem:[#allocation2 + $0x138] sm:$0xf]  ;;  %v12117_v10 = vld [vmem:[%s16506_s4 + $0x88] sm:$0xff]  ;;  %1276 = vst [vmem:[#allocation2 + $0x15c] sm:$0x1] %v1275_v1 }
 0x231   : > { %2214 = vst.msk [vmem:[#allocation2 + $0x13c] sm:$0xf] %vm1169_vm0, %v1813_v2  ;;  %v830_v4 = vmul.f32 %v13609_v28, %v739_v27  ;;  %v2958_v34 = vshrl.u32 %v2322_v17, 16  ;;  %v2961_v39 = vshll.u32 %v2322_v17, 16  ;;  %v3203_v18 = vunpack.c.l.b16 %v2946_v12  ;;  %6451 = vmatpush.bf16.msrb.mxu2 %v12117_v10  ;;  %v1384_v1 = vld [vmem:[#allocation2 + $0x164] sm:$0x1] }
 0x232   : > { %v2956_v59 = vsel %vm12873_vm8, %v2951_v3, %v2955_v20  ;;  %2217 = vst [vmem:[#allocation2 + $0x140] sm:$0x1] %v2216_v41  ;;  %v1816_v15 = vshrl.u32 %v1153_v13, 16  ;;  %v1819_v30 = vshll.u32 %v1153_v13, 16  ;;  %v2218_v3 = vld [vmem:[#allocation2 + $0x144] sm:$0xf] }
 0x233   : > { %v3204_v45 = vunpack.c.l.b16 %v2956_v59  ;;  %v898_v26 = vadd.f32 %v13617_v35, %v830_v4  ;;  %v2960_v27 = vrot.slane %v2958_v34, 4  ;;  %v2963_v17 = vrot.slane %v2961_v39, 5 }
 0x234   : > { %v3458_v40 = vpop.f32.mrf.mxu1  ;;  %v1818_v55 = vrot.slane %v1816_v15, 7  ;;  %v3909_v41 = vpop.f32.mrf.mxu2  ;;  %v1385_v10 = vsel %vm12849_vm5, 0, %v1384_v1  ;;  %v12077_v1 = vld [vmem:[%s16506_s4 + $0x48] sm:$0xff] }
 0x235   : > { %v13623_v20 = vadd.f32 %v3907_v57, %v3458_v40  ;;  %v3244_v12 = vpack.c.b16 %v3204_v45, %v3203_v18  ;;  %vm962_vm1 = vcmp.gt.f32.partialorder %v898_v26, 0.0  ;;  %v1026_v2 = vmul.f32 0.1, %v898_v26  ;;  %v12037_v18 = vld [vmem:[#allocation2 + $0xc] sm:$0xff]  ;;  %1386 = vst [vmem:[#allocation2 + $0x164] sm:$0x1] %v1385_v10  ;;  %4545 = vmatpush.bf16.msrb.mxu3 %v12077_v1 }
 0x236   : > { %v1821_v4 = vor.u32 %v1819_v30, %v1818_v55  ;;  %v2964_v30 = vor.u32 %v2963_v17, %v2960_v27 }
 0x237   : > { %16541 = vst [vmem:[#allocation17_spill] sm:$0xff] %v13623_v20  ;;  %11119 = vmatmul.msk.bf16.gmra.mxu3 %vm3277_vm9, %v3244_v12  ;;  %11534 = vmatmul.msk.bf16.gmra.mxu1 %vm3277_vm9, %v12086_v22  ;;  %v1090_v59 = vsel %vm962_vm1, %v898_v26, %v1026_v2 }
 0x238   : > { %v2219_v13 = vsel %vm12906_vm11, %v1821_v4, %v2218_v3  ;;  %v1154_v57 = vpack.c.bf16 %v1090_v59, %v1090_v59  ;;  %v742_v15 = vpop.f32.mrf.mxu0  ;;  %v12060_v45 = vld [vmem:[#allocation2 + $0x138] sm:$0xff] }
 0x239   : > { %v2323_v40 = vld [vmem:[#allocation2 + $0x13c] sm:$0xf]  ;;  %2220 = vst [vmem:[#allocation2 + $0x144] sm:$0xf] %v2219_v13  ;;  %v831_v34 = vmul.f32 %v13609_v28, %v742_v15  ;;  %v2370_v39 = vld [vmem:[#allocation2 + $0x140] sm:$0x1]  ;;  %11296 = vmatmul.msk.bf16.gmra.mxu2 %vm3277_vm9, %v12060_v45 }
 0x23a   : > { %v2967_v12 = vshll.u32 %v2323_v40, 16  ;;  %v2971_v22 = vshrl.u32 %v2323_v40, 16  ;;  %v1824_v26 = vshrl.u32 %v1154_v57, 16  ;;  %v2977_v20 = vshll.u32 %v2370_v39, 16  ;;  %v2222_v15 = vld [vmem:[#allocation2 + $0x14c] sm:$0x1] }
 0x23b   : > { %v899_v3 = vadd.f32 %v13617_v35, %v831_v34  ;;  %11273 = vmatmul.msk.bf16.gmra.mxu0 %vm3277_vm9, %v12037_v18  ;;  %v1827_v27 = vshll.u32 %v1154_v57, 16  ;;  %v2965_v34 = vrot.slane %v2964_v30, 4  ;;  %v1822_v18 = vrot.slane %v1818_v55, 4 }
 0x23c   : > { %v3460_v2 = vpop.f32.mrf.mxu1  ;;  %v2969_v4 = vrot.slane %v2967_v12, 5  ;;  %v2973_v59 = vrot.slane %v2971_v22, 4  ;;  %v1826_v13 = vrot.slane %v1824_v26, 7  ;;  %v3912_v40 = vpop.f32.mrf.mxu2  ;;  %v2979_v10 = vrot.slane %v2977_v20, 5  ;;  %v1277_v26 = vld [vmem:[#allocation2 + $0x168] sm:$0x1] }
 0x23d   : > { %v13638_v17 = vadd.f32 %v3909_v41, %v3460_v2  ;;  %vm963_vm2 = vcmp.gt.f32.partialorder %v899_v3, 0.0  ;;  %v1027_v45 = vmul.f32 0.1, %v899_v3  ;;  %v1278_v55 = vsel %vm12836_vm3, 0, %v1277_v26  ;;  %v12087_v26 = vld [vmem:[#allocation2 + $0x60] sm:$0xff] }
 0x23e   : > { %v2974_v38 = vor.u32 %v2973_v59, %v2969_v4  ;;  %v1829_v12 = vor.u32 %v1827_v27, %v1826_v13  ;;  %v1831_v22 = vrot.slane %v1826_v13, 4  ;;  %v2970_v23 = vsel %vm12873_vm8, %v2965_v34, %v2969_v4  ;;  %1279 = vst [vmem:[#allocation2 + $0x168] sm:$0x1] %v1278_v55 }
 0x23f   : > { %16542 = vst [vmem:[#allocation18_spill] sm:$0xff] %v13638_v17  ;;  %v1091_v39 = vsel %vm963_vm2, %v899_v3, %v1027_v45  ;;  %v3205_v13 = vunpack.c.l.b16 %v2970_v23 }
 0x240   : > { %v2975_v6 = vrot.slane %v2974_v38, 4  ;;  %v1830_v41 = vsel %vm12918_vm14, %v1822_v18, %v1829_v12  ;;  %v2223_v57 = vsel %vm12836_vm3, %v1831_v22, %v2222_v15  ;;  %v1155_v2 = vpack.c.bf16 %v1091_v39, %v1091_v39  ;;  %v744_v30 = vpop.f32.mrf.mxu0  ;;  %v2324_v59 = vld [vmem:[#allocation2 + $0x144] sm:$0xf]  ;;  %v2225_v12 = vld [vmem:[#allocation2 + $0x150] sm:$0xf] }
 0x241   : > { %2221 = vst.msk [vmem:[#allocation2 + $0x148] sm:$0xf] %vm1169_vm0, %v1830_v41  ;;  %v832_v3 = vmul.f32 %v13609_v28, %v744_v30  ;;  %v2982_v20 = vshrl.u32 %v2324_v59, 16  ;;  %v2985_v4 = vshll.u32 %v2324_v59, 16  ;;  %v1387_v59 = vld [vmem:[#allocation2 + $0x170] sm:$0x1] }
 0x242   : > { %v2980_v38 = vsel %vm12873_vm8, %v2975_v6, %v2979_v10  ;;  %2224 = vst [vmem:[#allocation2 + $0x14c] sm:$0x1] %v2223_v57  ;;  %v1833_v1 = vshrl.u32 %v1155_v2, 16  ;;  %v1836_v18 = vshll.u32 %v1155_v2, 16 }
 0x243   : > { %v3206_v27 = vunpack.c.l.b16 %v2980_v38  ;;  %v900_v15 = vadd.f32 %v13617_v35, %v832_v3  ;;  %v2984_v10 = vrot.slane %v2982_v20, 4  ;;  %v2987_v30 = vrot.slane %v2985_v4, 5  ;;  %v12038_v3 = vld [vmem:[#allocation2 + $0x18] sm:$0xff] }
 0x244   : > { %v3463_v45 = vpop.f32.mrf.mxu1  ;;  %v1835_v34 = vrot.slane %v1833_v1, 7  ;;  %v3914_v6 = vpop.f32.mrf.mxu2 }
 0x245   : > { %v13653_v22 = vadd.f32 %v3912_v40, %v3463_v45  ;;  %v3245_v39 = vpack.c.b16 %v3206_v27, %v3205_v13  ;;  %vm964_vm4 = vcmp.gt.f32.partialorder %v900_v15, 0.0  ;;  %v1028_v41 = vmul.f32 0.1, %v900_v15 }
 0x246   : > { %v1838_v57 = vor.u32 %v1836_v18, %v1835_v34  ;;  %v1388_v13 = vsel %vm12849_vm5, 0, %v1387_v59  ;;  %v2988_v27 = vor.u32 %v2987_v30, %v2984_v10 }
 0x247   : > { %16543 = vst [vmem:[#allocation19_spill] sm:$0xff] %v13653_v22  ;;  %11120 = vmatmul.msk.bf16.gmra.mxu3 %vm3277_vm9, %v3245_v39  ;;  %11535 = vmatmul.msk.bf16.gmra.mxu1 %vm3277_vm9, %v12087_v26  ;;  %v1092_v23 = vsel %vm964_vm4, %v900_v15, %v1028_v41 }
 0x248   : > { %v2226_v2 = vsel %vm12906_vm11, %v1838_v57, %v2225_v12  ;;  %v1156_v55 = vpack.c.bf16 %v1092_v23, %v1092_v23  ;;  %v747_v40 = vpop.f32.mrf.mxu0  ;;  %v12061_v38 = vld [vmem:[#allocation2 + $0x144] sm:$0xff]  ;;  %1389 = vst [vmem:[#allocation2 + $0x170] sm:$0x1] %v1388_v13 }
 0x249   : > { %v2325_v1 = vld [vmem:[#allocation2 + $0x148] sm:$0xf]  ;;  %2227 = vst [vmem:[#allocation2 + $0x150] sm:$0xf] %v2226_v2  ;;  %v833_v20 = vmul.f32 %v13609_v28, %v747_v40  ;;  %v2371_v4 = vld [vmem:[#allocation2 + $0x14c] sm:$0x1]  ;;  %11297 = vmatmul.msk.bf16.gmra.mxu2 %vm3277_vm9, %v12061_v38 }
 0x24a   : > { %v2991_v45 = vshll.u32 %v2325_v1, 16  ;;  %v2995_v18 = vshrl.u32 %v2325_v1, 16  ;;  %v1841_v15 = vshrl.u32 %v1156_v55, 16  ;;  %v3001_v57 = vshll.u32 %v2371_v4, 16  ;;  %v2229_v40 = vld [vmem:[#allocation2 + $0x158] sm:$0x1] }
 0x24b   : > { %v901_v12 = vadd.f32 %v13617_v35, %v833_v20  ;;  %11274 = vmatmul.msk.bf16.gmra.mxu0 %vm3277_vm9, %v12038_v3  ;;  %v1844_v59 = vshll.u32 %v1156_v55, 16  ;;  %v2989_v1 = vrot.slane %v2988_v27, 4  ;;  %v1839_v38 = vrot.slane %v1835_v34, 4  ;;  %v1280_v27 = vld [vmem:[#allocation2 + $0x174] sm:$0x1] }
 0x24c   : > { %v3465_v39 = vpop.f32.mrf.mxu1  ;;  %v2993_v26 = vrot.slane %v2991_v45, 5  ;;  %v2997_v41 = vrot.slane %v2995_v18, 4  ;;  %v1843_v23 = vrot.slane %v1841_v15, 7  ;;  %v3917_v30 = vpop.f32.mrf.mxu2  ;;  %v3003_v4 = vrot.slane %v3001_v57, 5 }
 0x24d   : > { %v13665_v2 = vadd.f32 %v3914_v6, %v3465_v39  ;;  %vm965_vm6 = vcmp.gt.f32.partialorder %v901_v12, 0.0  ;;  %v1029_v10 = vmul.f32 0.1, %v901_v12 }
 0x24e   : > { %v2998_v22 = vor.u32 %v2997_v41, %v2993_v26  ;;  %v1846_v17 = vor.u32 %v1844_v59, %v1843_v23  ;;  %v1848_v20 = vrot.slane %v1843_v23, 4  ;;  %v2994_v3 = vsel %vm12873_vm8, %v2989_v1, %v2993_v26  ;;  %v2232_v1 = vld [vmem:[#allocation2 + $0x15c] sm:$0xf] }
 0x24f   : > { %16544 = vst [vmem:[#allocation20_spill] sm:$0xff] %v13665_v2  ;;  %v1093_v46 = vsel %vm965_vm6, %v901_v12, %v1029_v10  ;;  %v3207_v41 = vunpack.c.l.b16 %v2994_v3  ;;  %v1281_v59 = vsel %vm12836_vm3, 0, %v1280_v27 }
 0x250   : > { %v2999_v45 = vrot.slane %v2998_v22, 4  ;;  %v1847_v55 = vsel %vm12918_vm14, %v1839_v38, %v1846_v17  ;;  %v2230_v6 = vsel %vm12836_vm3, %v1848_v20, %v2229_v40  ;;  %v1157_v13 = vpack.c.bf16 %v1093_v46, %v1093_v46  ;;  %v749_v18 = vpop.f32.mrf.mxu0  ;;  %v2326_v15 = vld [vmem:[#allocation2 + $0x150] sm:$0xf]  ;;  %1282 = vst [vmem:[#allocation2 + $0x174] sm:$0x1] %v1281_v59 }
 0x251   : > { %2228 = vst.msk [vmem:[#allocation2 + $0x154] sm:$0xf] %vm1169_vm0, %v1847_v55  ;;  %v834_v34 = vmul.f32 %v13609_v28, %v749_v18  ;;  %v3006_v39 = vshrl.u32 %v2326_v15, 16  ;;  %v3009_v22 = vshll.u32 %v2326_v15, 16  ;;  %v12088_v46 = vld [vmem:[#allocation2 + $0x6c] sm:$0xff]  ;;  %v12039_v18 = vld [vmem:[#allocation2 + $0x24] sm:$0xff] }
 0x252   : > { %v3004_v12 = vsel %vm12873_vm8, %v2999_v45, %v3003_v4  ;;  %2231 = vst [vmem:[#allocation2 + $0x158] sm:$0x1] %v2230_v6  ;;  %v1850_v26 = vshrl.u32 %v1157_v13, 16  ;;  %v1853_v10 = vshll.u32 %v1157_v13, 16 }
 0x253   : > { %v3208_v17 = vunpack.c.l.b16 %v3004_v12  ;;  %v902_v57 = vadd.f32 %v13617_v35, %v834_v34  ;;  %v3008_v4 = vrot.slane %v3006_v39, 4  ;;  %v3011_v55 = vrot.slane %v3009_v22, 5 }
 0x254   : > { %v13678_v23 = vpop.f32.mrf.mxu1  ;;  %v1852_v40 = vrot.slane %v1850_v26, 7  ;;  %v3919_v45 = vpop.f32.mrf.mxu2  ;;  %v1390_v26 = vld [vmem:[#allocation2 + $0x17c] sm:$0x1] }
 0x255   : > { %16545 = vst [vmem:[#allocation21_spill] sm:$0xff] %v13678_v23  ;;  %v3246_v38 = vpack.c.b16 %v3208_v17, %v3207_v41  ;;  %vm966_vm7 = vcmp.gt.f32.partialorder %v902_v57, 0.0  ;;  %v1030_v20 = vmul.f32 0.1, %v902_v57  ;;  %v3012_v17 = vor.u32 %v3011_v55, %v3008_v4  ;;  %v2236_v23 = vld [vmem:[#allocation2 + $0x164] sm:$0x1] }
 0x256   : > { %v1855_v3 = vor.u32 %v1853_v10, %v1852_v40  ;;  %v1391_v4 = vsel %vm12849_vm5, 0, %v1390_v26 }
 0x257   : > { %11121 = vmatmul.msk.bf16.gmra.mxu3 %vm3277_vm9, %v3246_v38  ;;  %11536 = vmatmul.msk.bf16.gmra.mxu1 %vm3277_vm9, %v12088_v46  ;;  %v1094_v6 = vsel %vm966_vm7, %v902_v57, %v1030_v20  ;;  %1392 = vst [vmem:[#allocation2 + $0x17c] sm:$0x1] %v1391_v4 }
 0x258   : > { %v2233_v15 = vsel %vm12906_vm11, %v1855_v3, %v2232_v1  ;;  %v1158_v27 = vpack.c.bf16 %v1094_v6, %v1094_v6  ;;  %v752_v13 = vpop.f32.mrf.mxu0  ;;  %v12062_v34 = vld [vmem:[#allocation2 + $0x150] sm:$0xff] }
 0x259   : > { %v2327_v12 = vld [vmem:[#allocation2 + $0x154] sm:$0xf]  ;;  %2234 = vst [vmem:[#allocation2 + $0x15c] sm:$0xf] %v2233_v15  ;;  %v835_v41 = vmul.f32 %v13609_v28, %v752_v13  ;;  %v2372_v22 = vld [vmem:[#allocation2 + $0x158] sm:$0x1]  ;;  %11298 = vmatmul.msk.bf16.gmra.mxu2 %vm3277_vm9, %v12062_v34 }
 0x25a   : > { %v3468_v39 = vpop.f32.mrf.mxu3  ;;  %v3015_v59 = vshll.u32 %v2327_v12, 16  ;;  %v3019_v10 = vshrl.u32 %v2327_v12, 16  ;;  %v1858_v38 = vshrl.u32 %v1158_v27, 16  ;;  %v3025_v6 = vshll.u32 %v2372_v22, 16 }
 0x25b   : > { %v13687_v46 = vadd.f32 %v3917_v30, %v3468_v39  ;;  %v903_v57 = vadd.f32 %v13617_v35, %v835_v41  ;;  %11275 = vmatmul.msk.bf16.gmra.mxu0 %vm3277_vm9, %v12039_v18  ;;  %v1861_v13 = vshll.u32 %v1158_v27, 16  ;;  %v3013_v12 = vrot.slane %v3012_v17, 4 }
 0x25c   : > { %v13692_v1 = vpop.f32.mrf.mxu1  ;;  %v3017_v20 = vrot.slane %v3015_v59, 5  ;;  %v3021_v3 = vrot.slane %v3019_v10, 4  ;;  %v1860_v15 = vrot.slane %v1858_v38, 7  ;;  %v3922_v55 = vpop.f32.mrf.mxu2  ;;  %v1856_v41 = vrot.slane %v1852_v40, 4 }
 0x25d   : > { %16546 = vst [vmem:[#allocation22_spill] sm:$0xff] %v13687_v46  ;;  %vm967_vm10 = vcmp.gt.f32.partialorder %v903_v57, 0.0  ;;  %v1031_v30 = vmul.f32 0.1, %v903_v57  ;;  %v3027_v10 = vrot.slane %v3025_v6, 5 }
 0x25e   : > { %16547 = vst [vmem:[#allocation23_spill] sm:$0xff] %v13692_v1  ;;  %v3022_v34 = vor.u32 %v3021_v3, %v3017_v20  ;;  %v1863_v39 = vor.u32 %v1861_v13, %v1860_v15  ;;  %v1865_v18 = vrot.slane %v1860_v15, 4  ;;  %v3018_v59 = vsel %vm12873_vm8, %v3013_v12, %v3017_v20  ;;  %v1283_v3 = vld [vmem:[#allocation2 + $0x180] sm:$0x1] }
 0x25f   : > { %v1095_v46 = vsel %vm967_vm10, %v903_v57, %v1031_v30  ;;  %v3209_v30 = vunpack.c.l.b16 %v3018_v59 }
 0x260   : > { %v3023_v22 = vrot.slane %v3022_v34, 4  ;;  %v1864_v27 = vsel %vm12918_vm14, %v1856_v41, %v1863_v39  ;;  %v2237_v26 = vsel %vm12836_vm3, %v1865_v18, %v2236_v23  ;;  %v1159_v38 = vpack.c.bf16 %v1095_v46, %v1095_v46  ;;  %v754_v1 = vpop.f32.mrf.mxu0  ;;  %v2328_v17 = vld [vmem:[#allocation2 + $0x15c] sm:$0xf]  ;;  %v2239_v18 = vld [vmem:[#allocation2 + $0x168] sm:$0xf] }
 0x261   : > { %2235 = vst.msk [vmem:[#allocation2 + $0x160] sm:$0xf] %vm1169_vm0, %v1864_v27  ;;  %v836_v40 = vmul.f32 %v13609_v28, %v754_v1  ;;  %v3030_v15 = vshrl.u32 %v2328_v17, 16  ;;  %v3033_v6 = vshll.u32 %v2328_v17, 16  ;;  %v12089_v34 = vld [vmem:[#allocation2 + $0x78] sm:$0xff]  ;;  %v1284_v1 = vsel %vm12836_vm3, 0, %v1283_v3 }
 0x262   : > { %v3470_v57 = vpop.f32.mrf.mxu3  ;;  %v3028_v20 = vsel %vm12873_vm8, %v3023_v22, %v3027_v10  ;;  %2238 = vst [vmem:[#allocation2 + $0x164] sm:$0x1] %v2237_v26  ;;  %v1867_v13 = vshrl.u32 %v1159_v38, 16  ;;  %v1870_v39 = vshll.u32 %v1159_v38, 16 }
 0x263   : > { %v13706_v4 = vadd.f32 %v3919_v45, %v3470_v57  ;;  %v3210_v23 = vunpack.c.l.b16 %v3028_v20  ;;  %v904_v46 = vadd.f32 %v13617_v35, %v836_v40  ;;  %1285 = vst [vmem:[#allocation2 + $0x180] sm:$0x1] %v1284_v1  ;;  %v3032_v45 = vrot.slane %v3030_v15, 4  ;;  %v12040_v40 = vld [vmem:[#allocation2 + $0x30] sm:$0xff] }
 0x264   : > { %v13709_v12 = vpop.f32.mrf.mxu1  ;;  %v1869_v41 = vrot.slane %v1867_v13, 7  ;;  %v3924_v27 = vpop.f32.mrf.mxu2  ;;  %v3035_v26 = vrot.slane %v3033_v6, 5 }
 0x265   : > { %16548 = vst [vmem:[#allocation24_spill] sm:$0xff] %v13706_v4  ;;  %v3247_v22 = vpack.c.b16 %v3210_v23, %v3209_v30  ;;  %vm968_vm12 = vcmp.gt.f32.partialorder %v904_v46, 0.0  ;;  %v1032_v10 = vmul.f32 0.1, %v904_v46  ;;  %v1393_v30 = vld [vmem:[#allocation2 + $0x188] sm:$0x1] }
 0x266   : > { %16549 = vst [vmem:[#allocation25_spill] sm:$0xff] %v13709_v12  ;;  %v1872_v59 = vor.u32 %v1870_v39, %v1869_v41  ;;  %v3036_v1 = vor.u32 %v3035_v26, %v3032_v45  ;;  %v2243_v4 = vld [vmem:[#allocation2 + $0x170] sm:$0x1]  ;;  %v1394_v45 = vsel %vm12849_vm5, 0, %v1393_v30 }
 0x267   : > { %11122 = vmatmul.msk.bf16.gmra.mxu3 %vm3277_vm9, %v3247_v22  ;;  %11537 = vmatmul.msk.bf16.gmra.mxu1 %vm3277_vm9, %v12089_v34  ;;  %v1096_v17 = vsel %vm968_vm12, %v904_v46, %v1032_v10  ;;  %1395 = vst [vmem:[#allocation2 + $0x188] sm:$0x1] %v1394_v45 }
 0x268   : > { %v2240_v3 = vsel %vm12906_vm11, %v1872_v59, %v2239_v18  ;;  %v1160_v57 = vpack.c.bf16 %v1096_v17, %v1096_v17  ;;  %v757_v38 = vpop.f32.mrf.mxu0  ;;  %v12063_v20 = vld [vmem:[#allocation2 + $0x15c] sm:$0xff] }
 0x269   : > { %v2329_v13 = vld [vmem:[#allocation2 + $0x160] sm:$0xf]  ;;  %2241 = vst [vmem:[#allocation2 + $0x168] sm:$0xf] %v2240_v3  ;;  %v837_v23 = vmul.f32 %v13609_v28, %v757_v38  ;;  %v2373_v6 = vld [vmem:[#allocation2 + $0x164] sm:$0x1]  ;;  %11299 = vmatmul.msk.bf16.gmra.mxu2 %vm3277_vm9, %v12063_v20 }
 0x26a   : > { %v3473_v15 = vpop.f32.mrf.mxu3  ;;  %v3039_v39 = vshll.u32 %v2329_v13, 16  ;;  %v3043_v22 = vshrl.u32 %v2329_v13, 16  ;;  %v1875_v12 = vshrl.u32 %v1160_v57, 16  ;;  %v3049_v17 = vshll.u32 %v2373_v6, 16 }
 0x26b   : > { %v13718_v34 = vadd.f32 %v3922_v55, %v3473_v15  ;;  %v905_v46 = vadd.f32 %v13617_v35, %v837_v23  ;;  %11276 = vmatmul.msk.bf16.gmra.mxu0 %vm3277_vm9, %v12040_v40  ;;  %v1878_v38 = vshll.u32 %v1160_v57, 16  ;;  %v3037_v13 = vrot.slane %v3036_v1, 4 }
 0x26c   : > { %v13723_v18 = vpop.f32.mrf.mxu1  ;;  %v3041_v10 = vrot.slane %v3039_v39, 5  ;;  %v3045_v59 = vrot.slane %v3043_v22, 4  ;;  %v1877_v3 = vrot.slane %v1875_v12, 7  ;;  %v3927_v26 = vpop.f32.mrf.mxu2  ;;  %v1873_v23 = vrot.slane %v1869_v41, 4 }
 0x26d   : > { %16550 = vst [vmem:[#allocation26_spill] sm:$0xff] %v13718_v34  ;;  %vm969_vm13 = vcmp.gt.f32.partialorder %v905_v46, 0.0  ;;  %v1033_v55 = vmul.f32 0.1, %v905_v46  ;;  %v3051_v12 = vrot.slane %v3049_v17, 5 }
 0x26e   : > { %16551 = vst [vmem:[#allocation27_spill] sm:$0xff] %v13723_v18  ;;  %v3046_v20 = vor.u32 %v3045_v59, %v3041_v10  ;;  %v1880_v15 = vor.u32 %v1878_v38, %v1877_v3  ;;  %v1882_v40 = vrot.slane %v1877_v3, 4  ;;  %v3042_v39 = vsel %vm12873_vm8, %v3037_v13, %v3041_v10  ;;  %v1286_v59 = vld [vmem:[#allocation2 + $0x18c] sm:$0x1] }
 0x26f   : > { %v1097_v34 = vsel %vm969_vm13, %v905_v46, %v1033_v55  ;;  %v3211_v55 = vunpack.c.l.b16 %v3042_v39 }
 0x270   : > { %v3047_v6 = vrot.slane %v3046_v20, 4  ;;  %v1881_v57 = vsel %vm12918_vm14, %v1873_v23, %v1880_v15  ;;  %v2244_v30 = vsel %vm12836_vm3, %v1882_v40, %v2243_v4  ;;  %v1161_v22 = vpack.c.bf16 %v1097_v34, %v1097_v34  ;;  %v759_v18 = vpop.f32.mrf.mxu0  ;;  %v2330_v1 = vld [vmem:[#allocation2 + $0x168] sm:$0xf]  ;;  %v2246_v40 = vld [vmem:[#allocation2 + $0x174] sm:$0xf] }
 0x271   : > { %2242 = vst.msk [vmem:[#allocation2 + $0x16c] sm:$0xf] %vm1169_vm0, %v1881_v57  ;;  %v838_v41 = vmul.f32 %v13609_v28, %v759_v18  ;;  %v3054_v3 = vshrl.u32 %v2330_v1, 16  ;;  %v3057_v17 = vshll.u32 %v2330_v1, 16  ;;  %v12090_v20 = vld [vmem:[#allocation2 + $0x84] sm:$0xff]  ;;  %v1287_v18 = vsel %vm12836_vm3, 0, %v1286_v59 }
 0x272   : > { %v3475_v46 = vpop.f32.mrf.mxu3  ;;  %v3052_v10 = vsel %vm12873_vm8, %v3047_v6, %v3051_v12  ;;  %2245 = vst [vmem:[#allocation2 + $0x170] sm:$0x1] %v2244_v30  ;;  %v1884_v38 = vshrl.u32 %v1161_v22, 16  ;;  %v1887_v15 = vshll.u32 %v1161_v22, 16 }
 0x273   : > { %v13737_v45 = vadd.f32 %v3924_v27, %v3475_v46  ;;  %v3212_v4 = vunpack.c.l.b16 %v3052_v10  ;;  %v906_v34 = vadd.f32 %v13617_v35, %v838_v41  ;;  %1288 = vst [vmem:[#allocation2 + $0x18c] sm:$0x1] %v1287_v18  ;;  %v3056_v27 = vrot.slane %v3054_v3, 4  ;;  %v12041_v41 = vld [vmem:[#allocation2 + $0x3c] sm:$0xff] }
 0x274   : > { %v13740_v13 = vpop.f32.mrf.mxu1  ;;  %v1886_v23 = vrot.slane %v1884_v38, 7  ;;  %v13744_v57 = vpop.f32.mrf.mxu2  ;;  %v3059_v39 = vrot.slane %v3057_v17, 5 }
 0x275   : > { %16552 = vst [vmem:[#allocation28_spill] sm:$0xff] %v13737_v45  ;;  %v3248_v6 = vpack.c.b16 %v3212_v4, %v3211_v55  ;;  %vm970_vm1 = vcmp.gt.f32.partialorder %v906_v34, 0.0  ;;  %v1034_v12 = vmul.f32 0.1, %v906_v34  ;;  %v1396_v55 = vld [vmem:[#allocation2 + $0x194] sm:$0x1] }
 0x276   : > { %16553 = vst [vmem:[#allocation29_spill] sm:$0xff] %v13740_v13  ;;  %v1889_v30 = vor.u32 %v1887_v15, %v1886_v23  ;;  %v3060_v18 = vor.u32 %v3059_v39, %v3056_v27 }
 0x277   : > { %11123 = vmatmul.msk.bf16.gmra.mxu3 %vm3277_vm9, %v3248_v6  ;;  %11538 = vmatmul.msk.bf16.gmra.mxu1 %vm3277_vm9, %v12090_v20  ;;  %v1098_v1 = vsel %vm970_vm1, %v906_v34, %v1034_v12  ;;  %v12116_v34 = vld [vmem:[%s16506_s4 + $0x80] sm:$0xff] }
 0x278   : > { %v2247_v59 = vsel %vm12906_vm11, %v1889_v30, %v2246_v40  ;;  %v1162_v22 = vpack.c.bf16 %v1098_v1, %v1098_v1  ;;  %v762_v46 = vpop.f32.mrf.mxu0  ;;  %v12064_v10 = vld [vmem:[#allocation2 + $0x168] sm:$0xff]  ;;  %v12076_v40 = vld [vmem:[%s16506_s4 + $0x40] sm:$0xff]  ;;  %6452 = vmatpush.bf16.msrb.mxu2 %v12116_v34 }
 0x279   : > { %v2331_v38 = vld [vmem:[#allocation2 + $0x16c] sm:$0xf]  ;;  %2248 = vst [vmem:[#allocation2 + $0x174] sm:$0xf] %v2247_v59  ;;  %v839_v4 = vmul.f32 %v13609_v28, %v762_v46  ;;  %v2374_v17 = vld [vmem:[#allocation2 + $0x170] sm:$0x1]  ;;  %11300 = vmatmul.msk.bf16.gmra.mxu2 %vm3277_vm9, %v12064_v10  ;;  %4546 = vmatpush.bf16.msrb.mxu3 %v12076_v40 }
 0x27a   : > { %v3478_v3 = vpop.f32.mrf.mxu3  ;;  %v3063_v15 = vshll.u32 %v2331_v38, 16  ;;  %v3067_v6 = vshrl.u32 %v2331_v38, 16  ;;  %v1892_v13 = vshrl.u32 %v1162_v22, 16  ;;  %v1895_v59 = vshll.u32 %v1162_v22, 16  ;;  %v2250_v46 = vld [vmem:[#allocation2 + $0x17c] sm:$0x1] }
 0x27b   : > { %v13751_v20 = vadd.f32 %v3927_v26, %v3478_v3  ;;  %v907_v12 = vadd.f32 %v13617_v35, %v839_v4  ;;  %11277 = vmatmul.msk.bf16.gmra.mxu0 %vm3277_vm9, %v12041_v41  ;;  %v3073_v26 = vshll.u32 %v2374_v17, 16  ;;  %v1397_v10 = vsel %vm12849_vm5, 0, %v1396_v55 }
 0x27c   : > { %v13762_v27 = vpop.f32.mrf.mxu1  ;;  %v3065_v39 = vrot.slane %v3063_v15, 5  ;;  %v3069_v30 = vrot.slane %v3067_v6, 4  ;;  %v1894_v1 = vrot.slane %v1892_v13, 7  ;;  %v3932_v3 = vpop.f32.mrf.mxu2  ;;  %1398 = vst [vmem:[#allocation2 + $0x194] sm:$0x1] %v1397_v10  ;;  %v1890_v41 = vrot.slane %v1886_v23, 4 }
 0x27d   : > { %16554 = vst [vmem:[#allocation30_spill] sm:$0xff] %v13751_v20  ;;  %vm971_vm2 = vcmp.gt.f32.partialorder %v907_v12, 0.0  ;;  %v1035_v38 = vmul.f32 0.1, %v907_v12  ;;  %v3061_v20 = vrot.slane %v3060_v18, 4  ;;  %v3075_v17 = vrot.slane %v3073_v26, 5 }
 0x27e   : > { %16555 = vst [vmem:[#allocation31_spill] sm:$0xff] %v13762_v27  ;;  %v3070_v4 = vor.u32 %v3069_v30, %v3065_v39  ;;  %v1897_v45 = vor.u32 %v1895_v59, %v1894_v1  ;;  %v1899_v27 = vrot.slane %v1894_v1, 4  ;;  %v1289_v59 = vld [vmem:[#allocation2 + $0x198] sm:$0x1] }
 0x27f   : > { %v1099_v15 = vsel %vm971_vm2, %v907_v12, %v1035_v38  ;;  %v3066_v13 = vsel %vm12873_vm8, %v3061_v20, %v3065_v39  ;;  %v12091_v38 = vld [vmem:[#allocation2 + $0x90] sm:$0xff] }
 0x280   : > { %v3071_v22 = vrot.slane %v3070_v4, 4  ;;  %v1898_v6 = vsel %vm12918_vm14, %v1890_v41, %v1897_v45  ;;  %v2251_v55 = vsel %vm12836_vm3, %v1899_v27, %v2250_v46  ;;  %v1163_v34 = vpack.c.bf16 %v1099_v15, %v1099_v15  ;;  %v764_v40 = vpop.f32.mrf.mxu0  ;;  %v2332_v18 = vld [vmem:[#allocation2 + $0x174] sm:$0xf] }
 0x281   : > { %2249 = vst.msk [vmem:[#allocation2 + $0x178] sm:$0xf] %vm1169_vm0, %v1898_v6  ;;  %v840_v23 = vmul.f32 %v13609_v28, %v764_v40  ;;  %v3078_v20 = vshrl.u32 %v2332_v18, 16  ;;  %v3081_v39 = vshll.u32 %v2332_v18, 16  ;;  %v3213_v1 = vunpack.c.l.b16 %v3066_v13 }
 0x282   : > { %v3480_v30 = vpop.f32.mrf.mxu3  ;;  %v3076_v12 = vsel %vm12873_vm8, %v3071_v22, %v3075_v17  ;;  %2252 = vst [vmem:[#allocation2 + $0x17c] sm:$0x1] %v2251_v55  ;;  %v1901_v26 = vshrl.u32 %v1163_v34, 16  ;;  %v1290_v4 = vsel %vm12836_vm3, 0, %v1289_v59  ;;  %v1904_v15 = vshll.u32 %v1163_v34, 16  ;;  %v12042_v34 = vld [vmem:[#allocation2 + $0x48] sm:$0xff] }
 0x283   : > { %v13777_v45 = vadd.f32 %v13744_v57, %v3480_v30  ;;  %v3214_v27 = vunpack.c.l.b16 %v3076_v12  ;;  %v908_v46 = vadd.f32 %v13617_v35, %v840_v23  ;;  %v2253_v22 = vld [vmem:[#allocation2 + $0x180] sm:$0xf]  ;;  %1291 = vst [vmem:[#allocation2 + $0x198] sm:$0x1] %v1290_v4  ;;  %v3080_v55 = vrot.slane %v3078_v20, 4 }
 0x284   : > { %v13780_v10 = vpop.f32.mrf.mxu1  ;;  %v1903_v41 = vrot.slane %v1901_v26, 7  ;;  %v3934_v57 = vpop.f32.mrf.mxu2  ;;  %v3083_v13 = vrot.slane %v3081_v39, 5 }
 0x285   : > { %16556 = vst [vmem:[#allocation32_spill] sm:$0xff] %v13777_v45  ;;  %v3249_v17 = vpack.c.b16 %v3214_v27, %v3213_v1  ;;  %vm972_vm4 = vcmp.gt.f32.partialorder %v908_v46, 0.0  ;;  %v1036_v6 = vmul.f32 0.1, %v908_v46 }
 0x286   : > { %16557 = vst [vmem:[#allocation33_spill] sm:$0xff] %v13780_v10  ;;  %v1906_v40 = vor.u32 %v1904_v15, %v1903_v41  ;;  %v3084_v39 = vor.u32 %v3083_v13, %v3080_v55 }
 0x287   : > { %11124 = vmatmul.msk.bf16.gmra.mxu3 %vm3277_vm9, %v3249_v17  ;;  %11539 = vmatmul.msk.bf16.gmra.mxu1 %vm3277_vm9, %v12091_v38  ;;  %v1100_v18 = vsel %vm972_vm4, %v908_v46, %v1036_v6  ;;  %v1399_v38 = vld [vmem:[#allocation2 + $0x1a0] sm:$0x1] }
 0x288   : > { %v2254_v23 = vsel %vm12906_vm11, %v1906_v40, %v2253_v22  ;;  %v1164_v30 = vpack.c.bf16 %v1100_v18, %v1100_v18  ;;  %v767_v12 = vpop.f32.mrf.mxu0  ;;  %v12065_v26 = vld [vmem:[#allocation2 + $0x174] sm:$0xff]  ;;  %v1400_v55 = vsel %vm12849_vm5, 0, %v1399_v38 }
 0x289   : > { %v2333_v1 = vld [vmem:[#allocation2 + $0x178] sm:$0xf]  ;;  %2255 = vst [vmem:[#allocation2 + $0x180] sm:$0xf] %v2254_v23  ;;  %v841_v27 = vmul.f32 %v13609_v28, %v767_v12  ;;  %v2375_v20 = vld [vmem:[#allocation2 + $0x17c] sm:$0x1]  ;;  %11301 = vmatmul.msk.bf16.gmra.mxu2 %vm3277_vm9, %v12065_v26 }
 0x28a   : > { %v3483_v59 = vpop.f32.mrf.mxu3  ;;  %v3087_v4 = vshll.u32 %v2333_v1, 16  ;;  %v3091_v15 = vshrl.u32 %v2333_v1, 16  ;;  %v1909_v17 = vshrl.u32 %v1164_v30, 16  ;;  %v3097_v46 = vshll.u32 %v2375_v20, 16  ;;  %1401 = vst [vmem:[#allocation2 + $0x1a0] sm:$0x1] %v1400_v55 }
 0x28b   : > { %v13789_v10 = vadd.f32 %v3932_v3, %v3483_v59  ;;  %v909_v22 = vadd.f32 %v13617_v35, %v841_v27  ;;  %11278 = vmatmul.msk.bf16.gmra.mxu0 %vm3277_vm9, %v12042_v34  ;;  %v1912_v23 = vshll.u32 %v1164_v30, 16  ;;  %v2257_v3 = vld [vmem:[#allocation2 + $0x188] sm:$0x1]  ;;  %v3085_v1 = vrot.slane %v3084_v39, 4 }
 0x28c   : > { %v13794_v6 = vpop.f32.mrf.mxu1  ;;  %v3089_v40 = vrot.slane %v3087_v4, 5  ;;  %v3093_v18 = vrot.slane %v3091_v15, 4  ;;  %v1911_v13 = vrot.slane %v1909_v17, 7  ;;  %v3937_v26 = vpop.f32.mrf.mxu2  ;;  %v1907_v20 = vrot.slane %v1903_v41, 4 }
 0x28d   : > { %16558 = vst [vmem:[#allocation34_spill] sm:$0xff] %v13789_v10  ;;  %vm973_vm6 = vcmp.gt.f32.partialorder %v909_v22, 0.0  ;;  %v1037_v12 = vmul.f32 0.1, %v909_v22 }
 0x28e   : > { %16559 = vst [vmem:[#allocation35_spill] sm:$0xff] %v13794_v6  ;;  %v3094_v59 = vor.u32 %v3093_v18, %v3089_v40  ;;  %v1914_v27 = vor.u32 %v1912_v23, %v1911_v13  ;;  %v1916_v10 = vrot.slane %v1911_v13, 4  ;;  %v3090_v4 = vsel %vm12873_vm8, %v3085_v1, %v3089_v40 }
 0x28f   : > { %v1101_v34 = vsel %vm973_vm6, %v909_v22, %v1037_v12  ;;  %v3099_v6 = vrot.slane %v3097_v46, 5  ;;  %v3215_v23 = vunpack.c.l.b16 %v3090_v4 }
 0x290   : > { %v3095_v15 = vrot.slane %v3094_v59, 4  ;;  %v1915_v17 = vsel %vm12918_vm14, %v1907_v20, %v1914_v27  ;;  %v2258_v30 = vsel %vm12836_vm3, %v1916_v10, %v2257_v3  ;;  %v1165_v38 = vpack.c.bf16 %v1101_v34, %v1101_v34  ;;  %v769_v55 = vpop.f32.mrf.mxu0  ;;  %v2334_v21 = vld [vmem:[#allocation2 + $0x180] sm:$0xf] }
 0x291   : > { %2256 = vst.msk [vmem:[#allocation2 + $0x184] sm:$0xf] %vm1169_vm0, %v1915_v17  ;;  %v842_v41 = vmul.f32 %v13609_v28, %v769_v55  ;;  %v3102_v40 = vshrl.u32 %v2334_v21, 16  ;;  %v3105_v18 = vshll.u32 %v2334_v21, 16  ;;  %v12092_v17 = vld [vmem:[#allocation2 + $0x9c] sm:$0xff] }
 0x292   : > { %v3485_v39 = vpop.f32.mrf.mxu3  ;;  %v3100_v22 = vsel %vm12873_vm8, %v3095_v15, %v3099_v6  ;;  %2259 = vst [vmem:[#allocation2 + $0x188] sm:$0x1] %v2258_v30  ;;  %v1918_v46 = vshrl.u32 %v1165_v38, 16  ;;  %v1921_v27 = vshll.u32 %v1165_v38, 16  ;;  %v2260_v55 = vld [vmem:[#allocation2 + $0x18c] sm:$0xf] }
 0x293   : > { %v13808_v13 = vadd.f32 %v3934_v57, %v3485_v39  ;;  %v3216_v12 = vunpack.c.l.b16 %v3100_v22  ;;  %v910_v10 = vadd.f32 %v13617_v35, %v842_v41  ;;  %v3104_v1 = vrot.slane %v3102_v40, 4  ;;  %v13817_v30 = vld [vmem:[#allocation2 + $0x4] sm:$0xf]  ;;  %v12043_v40 = vld [vmem:[#allocation2 + $0x54] sm:$0xff] }
 0x294   : > { %v13811_v3 = vpop.f32.mrf.mxu1  ;;  %v3107_v59 = vrot.slane %v3105_v18, 5  ;;  %v1920_v20 = vrot.slane %v1918_v46, 7  ;;  %v13813_v21 = vpop.f32.mrf.mxu2  ;;  %v16512_v41 = vrot.slane %v13817_v30, 5 }
 0x295   : > { %16560 = vst [vmem:[#allocation36_spill] sm:$0xff] %v13808_v13  ;;  %v3250_v34 = vpack.c.b16 %v3216_v12, %v3215_v23  ;;  %vm974_vm7 = vcmp.gt.f32.partialorder %v910_v10, 0.0  ;;  %v1038_v6 = vmul.f32 0.1, %v910_v10 }
 0x296   : > { %16561 = vst [vmem:[#allocation37_spill] sm:$0xff] %v13811_v3  ;;  %v1923_v15 = vor.u32 %v1921_v27, %v1920_v20  ;;  %v3108_v57 = vor.u32 %v3107_v59, %v3104_v1 }
 0x297   : > { %11125 = vmatmul.msk.bf16.gmra.mxu3 %vm3277_vm9, %v3250_v34  ;;  %11540 = vmatmul.msk.bf16.gmra.mxu1 %vm3277_vm9, %v12092_v17  ;;  %v1102_v4 = vsel %vm974_vm7, %v910_v10, %v1038_v6 }
 0x298   : > { %v2261_v38 = vsel %vm12906_vm11, %v1923_v15, %v2260_v55  ;;  %v1166_v39 = vpack.c.bf16 %v1102_v4, %v1102_v4  ;;  %v772_v22 = vpop.f32.mrf.mxu0  ;;  %v12066_v18 = vld [vmem:[#allocation2 + $0x180] sm:$0xff]  ;;  %v3109_v17 = vrot.slane %v3108_v57, 4 }
 0x299   : > { %v2335_v46 = vld [vmem:[#allocation2 + $0x184] sm:$0xf]  ;;  %2262 = vst [vmem:[#allocation2 + $0x18c] sm:$0xf] %v2261_v38  ;;  %v843_v23 = vmul.f32 %v13609_v28, %v772_v22  ;;  %v2376_v27 = vld [vmem:[#allocation2 + $0x188] sm:$0x1]  ;;  %11302 = vmatmul.msk.bf16.gmra.mxu2 %vm3277_vm9, %v12066_v18 }
 0x29a   : > { %v3488_v12 = vpop.f32.mrf.mxu3  ;;  %v3111_v34 = vshll.u32 %v2335_v46, 16  ;;  %v3115_v1 = vshrl.u32 %v2335_v46, 16  ;;  %v1926_v10 = vshrl.u32 %v1166_v39, 16  ;;  %v3121_v38 = vshll.u32 %v2376_v27, 16  ;;  %v13830_v28 = vld [vmem:[#allocation2 + $0x10] sm:$0xf] }
 0x29b   : > { %v13823_v59 = vadd.f32 %v3937_v26, %v3488_v12  ;;  %v911_v55 = vadd.f32 %v13617_v35, %v843_v23  ;;  %11279 = vmatmul.msk.bf16.gmra.mxu0 %vm3277_vm9, %v12043_v40  ;;  %v4095_v22 = vrot.slane %v16512_v41, 4  ;;  %v12546_v46 = vld [vmem:[#allocation2 + $0x8] sm:$0x1]  ;;  %v1929_v3 = vshll.u32 %v1166_v39, 16  ;;  %v2264_v18 = vld [vmem:[#allocation2 + $0x194] sm:$0x1] }
 0x29c   : > { %v13828_v6 = vpop.f32.mrf.mxu1  ;;  %v3113_v15 = vrot.slane %v3111_v34, 5  ;;  %v3117_v4 = vrot.slane %v3115_v1, 4  ;;  %v4096_v26 = vrot.slane %v12546_v46, 5  ;;  %v1928_v12 = vrot.slane %v1926_v10, 7  ;;  %v13834_v35 = vpop.f32.mrf.mxu2 }
 0x29d   : > { %16562 = vst [vmem:[#allocation38_spill] sm:$0xff] %v13823_v59  ;;  %vm975_vm10 = vcmp.gt.f32.partialorder %v911_v55, 0.0  ;;  %v1039_v57 = vmul.f32 0.1, %v911_v55  ;;  %v1924_v34 = vrot.slane %v1920_v20, 4  ;;  %v3123_v13 = vrot.slane %v3121_v38, 5 }
 0x29e   : > { %16563 = vst [vmem:[#allocation39_spill] sm:$0xff] %v13828_v6  ;;  %v3114_v40 = vsel %vm12873_vm8, %v3109_v17, %v3113_v15  ;;  %v3118_v23 = vor.u32 %v3117_v4, %v3113_v15  ;;  %v1931_v27 = vor.u32 %v1929_v3, %v1928_v12  ;;  %v1933_v1 = vrot.slane %v1928_v12, 4  ;;  %v5357_v20 = vld [vmem:[#allocation2 + $0xc] sm:$0xf]  ;;  %v12547_v3 = vld [vmem:[%s16504_s2] ss:$0 sm:$0xff] }
 0x29f   : > { %v5463_v6 = vshll.u32 %v13830_v28, 16  ;;  %v1103_v59 = vsel %vm975_vm10, %v911_v55, %v1039_v57  ;;  %v5467_v10 = vshrl.u32 %v13830_v28, 16  ;;  %v3217_v17 = vunpack.c.l.b16 %v3114_v40 }
 0x2a0   : > { %v3119_v41 = vrot.slane %v3118_v23, 4  ;;  %v1932_v39 = vsel %vm12918_vm14, %v1924_v34, %v1931_v27  ;;  %v2265_v46 = vsel %vm12836_vm3, %v1933_v1, %v2264_v18  ;;  %v1167_v45 = vpack.c.bf16 %v1103_v59, %v1103_v59  ;;  %v774_v2 = vpop.f32.mrf.mxu0  ;;  %v2336_v15 = vld [vmem:[#allocation2 + $0x18c] sm:$0xf]  ;;  %v12548_v34 = vld [vmem:[%s16505_s3] ss:$0 sm:$0xff] }
 0x2a1   : > { %2263 = vst.msk [vmem:[#allocation2 + $0x190] sm:$0xf] %vm1169_vm0, %v1932_v39  ;;  %v844_v55 = vmul.f32 %v12547_v3, %v774_v2  ;;  %v3126_v12 = vshrl.u32 %v2336_v15, 16  ;;  %v3129_v57 = vshll.u32 %v2336_v15, 16  ;;  %v5454_v2 = vshrl.u32 %v5357_v20, 16 }
 0x2a2   : > { %v3490_v4 = vpop.f32.mrf.mxu3  ;;  %v3124_v38 = vsel %vm12873_vm8, %v3119_v41, %v3123_v13  ;;  %2266 = vst [vmem:[#allocation2 + $0x194] sm:$0x1] %v2265_v46  ;;  %v1935_v18 = vshrl.u32 %v1167_v45, 16  ;;  %v1938_v59 = vshll.u32 %v1167_v45, 16  ;;  %v5457_v39 = vshll.u32 %v5357_v20, 16  ;;  %v12093_v45 = vld [vmem:[#allocation2 + $0xa8] sm:$0xff] }
 0x2a3   : > { %v13851_v40 = vadd.f32 %v13813_v21, %v3490_v4  ;;  %v3218_v23 = vunpack.c.l.b16 %v3124_v38  ;;  %v912_v27 = vadd.f32 %v12548_v34, %v844_v55  ;;  %v13858_v3 = vrot.slane %v5463_v6, 5  ;;  %v2267_v41 = vld [vmem:[#allocation2 + $0x198] sm:$0xf]  ;;  %v12044_v34 = vld [vmem:[#allocation2 + $0x60] sm:$0xff] }
 0x2a4   : > { %v13856_v1 = vpop.f32.mrf.mxu1  ;;  %v13860_v13 = vrot.slane %v1935_v18, 7  ;;  %v3128_v15 = vrot.slane %v3126_v12, 4  ;;  %v5469_v21 = vrot.slane %v5467_v10, 4  ;;  %v13862_v38 = vpop.f32.mrf.mxu2  ;;  %v4097_v55 = vsel %vm13012_vm15, %v4095_v22, %v4096_v26  ;;  %v12123_v10 = vld [vmem:[%s16506_s4 + $0xb8] sm:$0xff]  ;;  %v13872_v12 = vld [vmem:[#allocation2 + $0x14] sm:$0x1] }
 0x2a5   : > { %16564 = vst [vmem:[#allocation40_spill] sm:$0xff] %v13851_v40  ;;  %v3251_v46 = vpack.c.b16 %v3218_v23, %v3217_v17  ;;  %vm976_vm12 = vcmp.gt.f32.partialorder %v912_v27, 0.0  ;;  %v1040_v4 = vmul.f32 0.1, %v912_v27  ;;  %v3131_v40 = vrot.slane %v3129_v57, 5  ;;  %7258 = vmatpush.bf16.msra.mxu3 %v12123_v10 }
 0x2a6   : > { %16565 = vst [vmem:[#allocation41_spill] sm:$0xff] %v13856_v1  ;;  %v1940_v20 = vor.u32 %v1938_v59, %v13860_v13  ;;  %v11304_v6 = vrot.slane %v3992_v25, 9  ;;  %v5456_v18 = vrot.slane %v5454_v2, 4  ;;  %v5459_v57 = vrot.slane %v5457_v39, 5 }
 0x2a7   : > { %11126 = vmatmul.msk.bf16.gmra.mxu3 %vm3277_vm9, %v3251_v46  ;;  %11541 = vmatmul.msk.bf16.gmra.mxu1 %vm3277_vm9, %v12093_v45  ;;  %v1104_v17 = vsel %vm976_vm12, %v912_v27, %v1040_v4  ;;  %v4324_v23 = vunpack.c.l.b16 %v4097_v55  ;;  %v5470_v25 = vor.u32 %v5469_v21, %v13858_v3  ;;  %v16566_v1 = vrot.slane %v13817_v30, 5 }
 0x2a8   : > { %v2268_v22 = vsel %vm12906_vm11, %v1940_v20, %v2267_v41  ;;  %v1168_v26 = vpack.c.bf16 %v1104_v17, %v1104_v17  ;;  %v13876_v59 = vpop.f32.mrf.mxu0  ;;  %v12067_v46 = vld [vmem:[#allocation2 + $0x18c] sm:$0xff]  ;;  %v3132_v4 = vor.u32 %v3131_v40, %v3128_v15  ;;  %v5473_v30 = vshll.u32 %v13872_v12, 16  ;;  %v12167_v15 = vld [vmem:[%s16506_s4 + $0x118] sm:$0xff] }
 0x2a9   : > { %v2337_v45 = vld [vmem:[#allocation2 + $0x190] sm:$0xf]  ;;  %v4094_v27 = vsel %vm13012_vm15, %v11304_v6, %v16566_v1  ;;  %2269 = vst [vmem:[#allocation2 + $0x198] sm:$0xf] %v2268_v22  ;;  %v2377_v39 = vld [vmem:[#allocation2 + $0x194] sm:$0x1]  ;;  %11303 = vmatmul.msk.bf16.gmra.mxu2 %vm3277_vm9, %v12067_v46 }
 0x2aa   : > { %v3493_v2 = vpop.f32.mrf.mxu3  ;;  %v3135_v11 = vshll.u32 %v2337_v45, 16  ;;  %v3139_v41 = vshrl.u32 %v2337_v45, 16  ;;  %v4323_v55 = vunpack.c.l.b16 %v4094_v27  ;;  %v1943_v20 = vshrl.u32 %v1168_v26, 16  ;;  %9974 = vmatpush.bf16.msra.mxu2 %v12167_v15 }
 0x2ab   : > { %v1946_v17 = vshll.u32 %v1168_v26, 16  ;;  %v13884_v52 = vadd.f32 %v13834_v35, %v3493_v2  ;;  %11280 = vmatmul.msk.bf16.gmra.mxu0 %vm3277_vm9, %v12044_v34  ;;  %v3145_v10 = vshll.u32 %v2377_v39, 16  ;;  %v1941_v35 = vrot.slane %v13860_v13, 4  ;;  %v2271_v26 = vld [vmem:[#allocation2 + $0x1a0] sm:$0x1] }
 0x2ac   : > { %v13889_v1 = vpop.f32.mrf.mxu1  ;;  %v3137_v21 = vrot.slane %v3135_v11, 5  ;;  %v3141_v6 = vrot.slane %v3139_v41, 4  ;;  %v13891_v40 = vpack.c.b16 %v4324_v23, %v4323_v55  ;;  %v1945_v22 = vrot.slane %v1943_v20, 7  ;;  %v3947_v46 = vpop.f32.mrf.mxu2 }
 0x2ad   : > { %16567 = vst [vmem:[#allocation42_spill] sm:$0xff] %v13884_v52  ;;  %v3133_v45 = vrot.slane %v3132_v4, 4  ;;  %v5460_v2 = vor.u32 %v5459_v57, %v5456_v18  ;;  %v5471_v34 = vrot.slane %v5470_v25, 4  ;;  %v5361_v52 = vld [vmem:[#allocation2 + $0x1c] sm:$0xf]  ;;  %v3147_v55 = vrot.slane %v3145_v10, 5 }
 0x2ae   : > { %16568 = vst [vmem:[#allocation43_spill] sm:$0xff] %v13889_v1  ;;  %v3142_v27 = vor.u32 %v3141_v6, %v3137_v21  ;;  %v1948_v11 = vor.u32 %v1946_v17, %v1945_v22  ;;  %v1950_v41 = vrot.slane %v1945_v22, 4  ;;  %v5475_v1 = vrot.slane %v5473_v30, 5  ;;  %v5360_v18 = vld [vmem:[#allocation2 + $0x18] sm:$0xf] }
 0x2af   : > { %v3138_v23 = vsel %vm12873_vm8, %v3133_v45, %v3137_v21  ;;  %v5487_v57 = vshll.u32 %v5361_v52, 16  ;;  %v5491_v25 = vshrl.u32 %v5361_v52, 16  ;;  %v5461_v6 = vrot.slane %v5460_v2, 4 }
 0x2b0   : > { %v3143_v39 = vrot.slane %v3142_v27, 4  ;;  %v1949_v13 = vsel %vm12918_vm14, %v1941_v35, %v1948_v11  ;;  %v2272_v20 = vsel %vm12836_vm3, %v1950_v41, %v2271_v26  ;;  %v13903_v4 = vpop.f32.mrf.mxu0  ;;  %v5476_v30 = vsel %vm12873_vm8, %v5471_v34, %v5475_v1  ;;  %v12094_v27 = vld [vmem:[#allocation2 + $0xb4] sm:$0xff] }
 0x2b1   : > { %2270 = vst.msk [vmem:[#allocation2 + $0x19c] sm:$0xf] %vm1169_vm0, %v1949_v13  ;;  %v3219_v15 = vunpack.c.l.b16 %v3138_v23  ;;  %v5466_v22 = vsel %vm12873_vm8, %v5461_v6, %v13858_v3  ;;  %v5478_v26 = vshrl.u32 %v5360_v18, 16  ;;  %v5481_v45 = vshll.u32 %v5360_v18, 16  ;;  %v5362_v23 = vld [vmem:[#allocation2 + $0x20] sm:$0x1] }
 0x2b2   : > { %v3495_v17 = vpop.f32.mrf.mxu3  ;;  %v3148_v21 = vsel %vm12873_vm8, %v3143_v39, %v3147_v55  ;;  %2273 = vst [vmem:[#allocation2 + $0x1a0] sm:$0x1] %v2272_v20  ;;  %v6230_v2 = vunpack.c.l.b16 %v5476_v30  ;;  %v13921_v34 = vrot.slane %v5487_v57, 5  ;;  %v5493_v11 = vrot.slane %v5491_v25, 4  ;;  %v8074_v18 = vld [vmem:[#allocation2 + $0x1c] sm:$0xf] }
 0x2b3   : > { %v13914_v10 = vadd.f32 %v13862_v38, %v3495_v17  ;;  %v3220_v52 = vunpack.c.l.b16 %v3148_v21  ;;  %v6229_v38 = vunpack.c.l.b16 %v5466_v22  ;;  %v5480_v39 = vrot.slane %v5478_v26, 4  ;;  %v12045_v21 = vld [vmem:[#allocation2 + $0x6c] sm:$0xff]  ;;  %v9394_v57 = vld [vmem:[#allocation2 + $0x18] sm:$0xe] }
 0x2b4   : > { %v13916_v35 = vpop.f32.mrf.mxu1  ;;  %v3949_v41 = vpop.f32.mrf.mxu2  ;;  %v5483_v55 = vrot.slane %v5481_v45, 5  ;;  %v5494_v20 = vor.u32 %v5493_v11, %v13921_v34  ;;  %v5497_v25 = vshll.u32 %v5362_v23, 16  ;;  %v6808_v22 = vrot.slane %v13830_v28, 5  ;;  %v5364_v11 = vld [vmem:[#allocation2 + $0x28] sm:$0xf] }
 0x2b5   : > { %16569 = vst [vmem:[#allocation44_spill] sm:$0xff] %v13914_v10  ;;  %v3252_v1 = vpack.c.b16 %v3220_v52, %v3219_v15  ;;  %v6293_v3 = vpack.c.b16 %v6230_v2, %v6229_v38  ;;  %v8075_v15 = vld [vmem:[#allocation2 + $0x20] sm:$0x1]  ;;  %v9524_v52 = vrot.slane %v8074_v18, 5  ;;  %v11912_v45 = vrot.slane %v9394_v57, 9 }
 0x2b6   : > { %16570 = vst [vmem:[#allocation45_spill] sm:$0xff] %v13916_v35  ;;  %v5484_v29 = vor.u32 %v5483_v55, %v5480_v39  ;;  %v5495_v26 = vrot.slane %v5494_v20, 4  ;;  %v5499_v2 = vrot.slane %v5497_v25, 5  ;;  %v9527_v23 = vrot.slane %v8075_v15, 5  ;;  %v5363_v28 = vld [vmem:[#allocation2 + $0x24] sm:$0xf] }
 0x2b7   : > { %11127 = vmatmul.msk.bf16.gmra.mxu3 %vm3277_vm9, %v3252_v1  ;;  %11542 = vmatmul.msk.bf16.gmra.mxu1 %vm3277_vm9, %v12094_v27  ;;  %v6678_v27 = vld [vmem:[#allocation2 + $0xc] sm:$0xe]  ;;  %v9526_v38 = vrot.slane %v9524_v52, 4  ;;  %v6810_v18 = vrot.slane %v6808_v22, 4  ;;  %v5511_v25 = vshll.u32 %v5364_v11, 16  ;;  %v12049_v10 = vld [vmem:[#allocation2 + $0x9c] sm:$0xff] }
 0x2b8   : > { %v13925_v13 = vpop.f32.mrf.mxu0  ;;  %v5500_v39 = vsel %vm12873_vm8, %v5495_v26, %v5499_v2  ;;  %v11608_v20 = vrot.slane %v6678_v27, 9  ;;  %v5502_v2 = vshrl.u32 %v5363_v28, 16  ;;  %v9395_v35 = vld [vmem:[#allocation2 + $0x24] sm:$0xe] }
 0x2b9   : > { %11576 = vmatmul.msk.bf16.vlgmr.msrb.gmra.mxu2 %vm3277_vm9, %v6293_v3  ;;  %v6811_v3 = vrot.slane %v13872_v12, 5  ;;  %v9528_v55 = vsel %vm13012_vm15, %v9526_v38, %v9527_v23  ;;  %v5505_v23 = vshll.u32 %v5363_v28, 16 }
 0x2ba   : > { %v3498_v17 = vpop.f32.mrf.mxu3  ;;  %v6809_v12 = vsel %vm13012_vm15, %v11608_v20, %v6808_v22  ;;  %v5513_v20 = vrot.slane %v5511_v25, 5  ;;  %v12046_v25 = vld [vmem:[#allocation2 + $0x78] sm:$0xff] }
 0x2bb   : > { %v13928_v6 = vadd.f32 %v3947_v46, %v3498_v17  ;;  %11281 = vmatmul.msk.bf16.gmra.mxu0 %vm3277_vm9, %v12045_v21  ;;  %v9525_v46 = vsel %vm13012_vm15, %v11912_v45, %v9524_v52  ;;  %v5485_v17 = vrot.slane %v5484_v29, 4  ;;  %v9755_v52 = vunpack.c.l.b16 %v9528_v55 }
 0x2bc   : > { %v13932_v30 = vpop.f32.mrf.mxu1  ;;  %v3952_v1 = vpop.f32.mrf.mxu2  ;;  %v9754_v45 = vunpack.c.l.b16 %v9525_v46  ;;  %v6812_v29 = vsel %vm13012_vm15, %v6810_v18, %v6811_v3  ;;  %v6232_v46 = vunpack.c.l.b16 %v5500_v39  ;;  %v7038_v55 = vunpack.c.l.b16 %v6809_v12 }
 0x2bd   : > { %16571 = vst [vmem:[#allocation46_spill] sm:$0xff] %v13928_v6  ;;  %v5490_v27 = vsel %vm12873_vm8, %v5485_v17, %v13921_v34  ;;  %v8078_v34 = vld [vmem:[#allocation2 + $0x2c] sm:$0x1]  ;;  %v11913_v18 = vrot.slane %v9395_v35, 9  ;;  %v5504_v12 = vrot.slane %v5502_v2, 4 }
 0x2be   : > { %16572 = vst [vmem:[#allocation47_spill] sm:$0xff] %v13932_v30  ;;  %v5515_v30 = vshrl.u32 %v5364_v11, 16  ;;  %v13955_v38 = vpack.c.b16 %v9755_v52, %v9754_v45  ;;  %v12095_v11 = vld [vmem:[#allocation2 + $0xc0] sm:$0xff]  ;;  %v6231_v3 = vunpack.c.l.b16 %v5490_v27  ;;  %v5365_v52 = vld [vmem:[#allocation2 + $0x2c] sm:$0x1] }
 0x2c0   : > { %v13938_v21 = vpop.f32.mrf.mxu0  ;;  %16575 = vst [vmem:[#allocation50_spill] sm:$0xff] %v13955_v38  ;;  %v6294_v28 = vpack.c.b16 %v6232_v46, %v6231_v3  ;;  %v5521_v46 = vshll.u32 %v5365_v52, 16  ;;  %v5367_v3 = vld [vmem:[#allocation2 + $0x34] sm:$0xf] }
 0x2c2   : > { %v3500_v57 = vpop.f32.mrf.mxu3 }
 0x2c3   : > { %v13944_v15 = vadd.f32 %v3949_v41, %v3500_v57  ;;  %v8077_v41 = vld [vmem:[#allocation2 + $0x28] sm:$0xf]  ;;  %v7039_v57 = vunpack.c.l.b16 %v6812_v29  ;;  %v5507_v29 = vrot.slane %v5505_v23, 5 }
 0x2c4   : > { %v13950_v26 = vpop.f32.mrf.mxu1  ;;  %v3954_v22 = vpop.f32.mrf.mxu2  ;;  %v9531_v45 = vrot.slane %v8077_v41, 5 }
 0x2c5   : > { %16573 = vst [vmem:[#allocation48_spill] sm:$0xff] %v13944_v15  ;;  %v5517_v15 = vrot.slane %v5515_v30, 4  ;;  %v13960_v17 = vpack.c.b16 %v7039_v57, %v7038_v55  ;;  %v5508_v55 = vor.u32 %v5507_v29, %v5504_v12 }
 0x2c6   : > { %16574 = vst [vmem:[#allocation49_spill] sm:$0xff] %v13950_v26  ;;  %v9533_v38 = vrot.slane %v9531_v45, 4 }
 0x2c7   : > { %11352 = vmatmul.msk.bf16.vlgmr.msrb.gmra.mxu3 %vm3277_vm9, %v13891_v40  ;;  %11543 = vmatmul.msk.bf16.gmra.mxu1 %vm3277_vm9, %v12095_v11  ;;  %16576 = vst [vmem:[#allocation51_spill] sm:$0xff] %v13960_v17  ;;  %v5518_v30 = vor.u32 %v5517_v15, %v5513_v20  ;;  %v9532_v40 = vsel %vm13012_vm15, %v11913_v18, %v9531_v45  ;;  %v9534_v11 = vrot.slane %v8078_v34, 5  ;;  %v5366_v34 = vld [vmem:[#allocation2 + $0x30] sm:$0xf] }
 0x2c8   : > { %v13962_v39 = vpop.f32.mrf.mxu0  ;;  %v9756_v23 = vunpack.c.l.b16 %v9532_v40  ;;  %v5526_v29 = vshrl.u32 %v5366_v34, 16 }
 0x2c9   : > { %11577 = vmatmul.msk.bf16.gmra.mxu2 %vm3277_vm9, %v6294_v28  ;;  %v9535_v2 = vsel %vm13012_vm15, %v9533_v38, %v9534_v11  ;;  %v5519_v57 = vrot.slane %v5518_v30, 4  ;;  %v5509_v28 = vrot.slane %v5508_v55, 4  ;;  %v12096_v30 = vld [vmem:[#allocation2 + $0xe4] sm:$0xff] }
 0x2ca   : > { %v3503_v26 = vpop.f32.mrf.mxu3  ;;  %v9757_v41 = vunpack.c.l.b16 %v9535_v2  ;;  %v8080_v2 = vld [vmem:[#allocation2 + $0x34] sm:$0xf] }
 0x2cb   : > { %v13966_v27 = vadd.f32 %v3952_v1, %v3503_v26  ;;  %11282 = vmatmul.msk.bf16.gmra.mxu0 %vm3277_vm9, %v12046_v25  ;;  %v5523_v1 = vrot.slane %v5521_v46, 5  ;;  %v5535_v25 = vshll.u32 %v5367_v3, 16  ;;  %v5514_v12 = vsel %vm12873_vm8, %v5509_v28, %v5513_v20  ;;  %v5368_v28 = vld [vmem:[#allocation2 + $0x38] sm:$0x1] }
 0x2cc   : > { %v13970_v35 = vpop.f32.mrf.mxu1  ;;  %v3957_v15 = vpop.f32.mrf.mxu2  ;;  %v13974_v18 = vpack.c.b16 %v9757_v41, %v9756_v23  ;;  %v5529_v46 = vshll.u32 %v5366_v34, 16  ;;  %v9396_v23 = vld [vmem:[#allocation2 + $0x30] sm:$0xe] }
 0x2cd   : > { %16577 = vst [vmem:[#allocation52_spill] sm:$0xff] %v13966_v27  ;;  %v5524_v52 = vsel %vm12873_vm8, %v5519_v57, %v5523_v1  ;;  %v5537_v55 = vrot.slane %v5535_v25, 5  ;;  %v8081_v57 = vld [vmem:[#allocation2 + $0x38] sm:$0x1]  ;;  %v9538_v1 = vrot.slane %v8080_v2, 5 }
 0x2ce   : > { %16578 = vst [vmem:[#allocation53_spill] sm:$0xff] %v13970_v35  ;;  %v5539_v35 = vshrl.u32 %v5367_v3, 16  ;;  %v6234_v11 = vunpack.c.l.b16 %v5524_v52  ;;  %v11914_v3 = vrot.slane %v9396_v23, 9  ;;  %v5528_v52 = vrot.slane %v5526_v29, 4 }
 0x2cf   : > { %16579 = vst [vmem:[#allocation54_spill] sm:$0xff] %v13974_v18  ;;  %v5531_v34 = vrot.slane %v5529_v46, 5  ;;  %v9540_v25 = vrot.slane %v9538_v1, 4 }
 0x2d0   : > { %v13976_v26 = vpop.f32.mrf.mxu0  ;;  %v5541_v18 = vrot.slane %v5539_v35, 4  ;;  %v9539_v35 = vsel %vm13012_vm15, %v11914_v3, %v9538_v1 }
 0x2d1   : > { %v5532_v2 = vor.u32 %v5531_v34, %v5528_v52  ;;  %v12097_v34 = vld [vmem:[#allocation2 + $0xf0] sm:$0xff] }
 0x2d2   : > { %v3505_v45 = vpop.f32.mrf.mxu3  ;;  %v5542_v27 = vor.u32 %v5541_v18, %v5537_v55 }
 0x2d3   : > { %v13980_v38 = vadd.f32 %v3954_v22, %v3505_v45  ;;  %v6233_v22 = vunpack.c.l.b16 %v5514_v12 }
 0x2d4   : > { %v13982_v40 = vpop.f32.mrf.mxu1  ;;  %v3959_v41 = vpop.f32.mrf.mxu2  ;;  %v5543_v23 = vrot.slane %v5542_v27, 4 }
 0x2d5   : > { %16580 = vst [vmem:[#allocation55_spill] sm:$0xff] %v13980_v38  ;;  %v6295_v20 = vpack.c.b16 %v6234_v11, %v6233_v22  ;;  %v12047_v38 = vld [vmem:[#allocation2 + $0x84] sm:$0xff]  ;;  %v9758_v11 = vunpack.c.l.b16 %v9539_v35  ;;  %v5370_v22 = vld [vmem:[#allocation2 + $0x40] sm:$0xf] }
 0x2d6   : > { %16581 = vst [vmem:[#allocation56_spill] sm:$0xff] %v13982_v40 }
 0x2d7   : > { %11353 = vmatmul.msk.bf16.gmra.mxu3 %vm3277_vm9, %v13032_v14  ;;  %11544 = vmatmul.msk.bf16.gmra.mxu1 %vm3277_vm9, %v12096_v30  ;;  %v9541_v14 = vrot.slane %v8081_v57, 5  ;;  %v5545_v30 = vshll.u32 %v5368_v28, 16  ;;  %v5369_v57 = vld [vmem:[#allocation2 + $0x3c] sm:$0xf]  ;;  %v5559_v28 = vshll.u32 %v5370_v22, 16 }
 0x2d8   : > { %v13989_v45 = vpop.f32.mrf.mxu0  ;;  %v5550_v52 = vshrl.u32 %v5369_v57, 16 }
 0x2d9   : > { %11578 = vmatmul.msk.bf16.gmra.mxu2 %vm3277_vm9, %v6295_v20  ;;  %v9542_v29 = vsel %vm13012_vm15, %v9540_v25, %v9541_v14 }
 0x2da   : > { %v3508_v40 = vpop.f32.mrf.mxu3  ;;  %v9759_v46 = vunpack.c.l.b16 %v9542_v29  ;;  %v8083_v29 = vld [vmem:[#allocation2 + $0x40] sm:$0xf] }
 0x2db   : > { %v13993_v17 = vadd.f32 %v3957_v15, %v3508_v40  ;;  %11283 = vmatmul.msk.bf16.gmra.mxu0 %vm3277_vm9, %v12047_v38  ;;  %v5547_v15 = vrot.slane %v5545_v30, 5  ;;  %v5533_v38 = vrot.slane %v5532_v2, 4  ;;  %v5553_v30 = vshll.u32 %v5369_v57, 16 }
 0x2dc   : > { %v13997_v12 = vpop.f32.mrf.mxu1  ;;  %v3962_v18 = vpop.f32.mrf.mxu2  ;;  %v14001_v3 = vpack.c.b16 %v9759_v46, %v9758_v11  ;;  %v9397_v11 = vld [vmem:[#allocation2 + $0x3c] sm:$0xe]  ;;  %v5561_v2 = vrot.slane %v5559_v28, 5 }
 0x2dd   : > { %16582 = vst [vmem:[#allocation57_spill] sm:$0xff] %v13993_v17  ;;  %v5548_v20 = vsel %vm12873_vm8, %v5543_v23, %v5547_v15  ;;  %v5538_v27 = vsel %vm12873_vm8, %v5533_v38, %v5537_v55  ;;  %v8084_v23 = vld [vmem:[#allocation2 + $0x44] sm:$0x1]  ;;  %v9545_v15 = vrot.slane %v8083_v29, 5  ;;  %v5555_v57 = vrot.slane %v5553_v30, 5 }
 0x2de   : > { %16583 = vst [vmem:[#allocation58_spill] sm:$0xff] %v13997_v12  ;;  %v5563_v12 = vshrl.u32 %v5370_v22, 16  ;;  %v6236_v14 = vunpack.c.l.b16 %v5548_v20  ;;  %v11915_v22 = vrot.slane %v9397_v11, 9  ;;  %v5371_v38 = vld [vmem:[#allocation2 + $0x44] sm:$0x1]  ;;  %v5552_v20 = vrot.slane %v5550_v52, 4 }
 0x2df   : > { %16584 = vst [vmem:[#allocation59_spill] sm:$0xff] %v14001_v3  ;;  %v9547_v28 = vrot.slane %v9545_v15, 4  ;;  %v12159_v52 = vld [vmem:[%s16506_s4 + $0xd8] sm:$0xff] }
 0x2e0   : > { %v14003_v40 = vpop.f32.mrf.mxu0  ;;  %v5565_v3 = vrot.slane %v5563_v12, 4  ;;  %v9546_v12 = vsel %vm13012_vm15, %v11915_v22, %v9545_v15  ;;  %v5556_v11 = vor.u32 %v5555_v57, %v5552_v20  ;;  %7844 = vmatpush.bf16.msra.mxu0 %v12159_v52  ;;  %v5372_v22 = vld [vmem:[#allocation2 + $0x48] sm:$0xf]  ;;  %v12158_v20 = vld [vmem:[%s16506_s4 + $0xd0] sm:$0xff] }
 0x2e1   : > { %v5574_v52 = vshrl.u32 %v5372_v22, 16 }
 0x2e2   : > { %v3510_v1 = vpop.f32.mrf.mxu3  ;;  %v5566_v17 = vor.u32 %v5565_v3, %v5561_v2 }
 0x2e3   : > { %v14007_v25 = vadd.f32 %v3959_v41, %v3510_v1  ;;  %v6235_v41 = vunpack.c.l.b16 %v5538_v27 }
 0x2e4   : > { %v14009_v35 = vpop.f32.mrf.mxu1  ;;  %v3964_v46 = vpop.f32.mrf.mxu2  ;;  %7845 = vmatpush.bf16.msra.mxu0 %v12158_v20 }
 0x2e5   : > { %16585 = vst [vmem:[#allocation60_spill] sm:$0xff] %v14007_v25  ;;  %v6296_v55 = vpack.c.b16 %v6236_v14, %v6235_v41  ;;  %v12048_v25 = vld [vmem:[#allocation2 + $0x90] sm:$0xff]  ;;  %v9760_v14 = vunpack.c.l.b16 %v9546_v12 }
 0x2e6   : > { %16586 = vst [vmem:[#allocation61_spill] sm:$0xff] %v14009_v35 }
 0x2e7   : > { %11354 = vmatmul.msk.bf16.gmra.mxu3 %vm3277_vm9, %v13075_v9  ;;  %11545 = vmatmul.msk.bf16.gmra.mxu1 %vm3277_vm9, %v12097_v34  ;;  %v9548_v9 = vrot.slane %v8084_v23, 5  ;;  %v5569_v34 = vshll.u32 %v5371_v38, 16 }
 0x2e8   : > { %v14016_v1 = vpop.f32.mrf.mxu0 }
 0x2e9   : > { %11579 = vmatmul.msk.bf16.gmra.mxu2 %vm3277_vm9, %v6296_v55  ;;  %v9549_v3 = vsel %vm13012_vm15, %v9547_v28, %v9548_v9  ;;  %v5557_v55 = vrot.slane %v5556_v11, 4  ;;  %v12549_v9 = vld [vmem:[#allocation2 + $0x34] sm:$0xf]  ;;  %v5577_v11 = vshll.u32 %v5372_v22, 16 }
 0x2ea   : > { %v3513_v35 = vpop.f32.mrf.mxu3  ;;  %v9761_v30 = vunpack.c.l.b16 %v9549_v3  ;;  %v12157_v3 = vld [vmem:[%s16506_s4 + $0xc8] sm:$0xff] }
 0x2eb   : > { %v14020_v6 = vadd.f32 %v3962_v18, %v3513_v35  ;;  %11284 = vmatmul.msk.bf16.gmra.mxu0 %vm3277_vm9, %v12048_v25  ;;  %v5567_v18 = vrot.slane %v5566_v17, 4  ;;  %v5373_v35 = vld [vmem:[#allocation2 + $0x4c] sm:$0xf]  ;;  %v5571_v25 = vrot.slane %v5569_v34, 5  ;;  %v5562_v12 = vsel %vm12873_vm8, %v5557_v55, %v5561_v2  ;;  %v8087_v55 = vld [vmem:[#allocation2 + $0x50] sm:$0x1] }
 0x2ec   : > { %v14024_v27 = vpop.f32.mrf.mxu1  ;;  %v3967_v29 = vpop.f32.mrf.mxu2  ;;  %v14031_v41 = vpack.c.b16 %v9761_v30, %v9760_v14  ;;  %v5587_v28 = vshrl.u32 %v5373_v35, 16  ;;  %v4121_v34 = vrot.slane %v12549_v9, 5  ;;  %v12098_v14 = vld [vmem:[#allocation2 + $0xfc] sm:$0xff]  ;;  %v6237_v2 = vunpack.c.l.b16 %v5562_v12  ;;  %7846 = vmatpush.bf16.msra.mxu0 %v12157_v3 }
 0x2ed   : > { %16587 = vst [vmem:[#allocation62_spill] sm:$0xff] %v14020_v6  ;;  %v5572_v38 = vsel %vm12873_vm8, %v5567_v18, %v5571_v25  ;;  %v8086_v18 = vld [vmem:[#allocation2 + $0x4c] sm:$0xf]  ;;  %v5579_v6 = vrot.slane %v5577_v11, 5 }
 0x2ee   : > { %16588 = vst [vmem:[#allocation63_spill] sm:$0xff] %v14024_v27  ;;  %v5583_v27 = vshll.u32 %v5373_v35, 16  ;;  %v6238_v30 = vunpack.c.l.b16 %v5572_v38  ;;  %v9398_v35 = vld [vmem:[#allocation2 + $0x48] sm:$0xe]  ;;  %v9552_v9 = vrot.slane %v8086_v18, 5  ;;  %v4123_v22 = vrot.slane %v4121_v34, 4 }
 0x2ef   : > { %16589 = vst [vmem:[#allocation64_spill] sm:$0xff] %v14031_v41  ;;  %v11916_v20 = vrot.slane %v9398_v35, 9  ;;  %v5576_v41 = vrot.slane %v5574_v52, 4  ;;  %v12550_v52 = vld [vmem:[#allocation2 + $0x38] sm:$0x1] }
 0x2f0   : > { %v14033_v23 = vpop.f32.mrf.mxu0  ;;  %v14049_v25 = vrot.slane %v5583_v27, 5  ;;  %v6297_v38 = vpack.c.b16 %v6238_v30, %v6237_v2  ;;  %v9554_v3 = vrot.slane %v9552_v9, 4  ;;  %v3996_v30 = vld [vmem:[#allocation2 + $0x30] sm:$0xe]  ;;  %v4124_v11 = vrot.slane %v12550_v52, 5 }
 0x2f1   : > { %v9553_v12 = vsel %vm13012_vm15, %v11916_v20, %v9552_v9 }
 0x2f2   : > { %v3515_v15 = vpop.f32.mrf.mxu3  ;;  %v9762_v48 = vunpack.c.l.b16 %v9553_v12 }
 0x2f3   : > { %v14040_v17 = vadd.f32 %v3964_v46, %v3515_v15  ;;  %v5589_v15 = vrot.slane %v5587_v28, 4 }
 0x2f4   : > { %v14042_v57 = vpop.f32.mrf.mxu1  ;;  %v3969_v46 = vpop.f32.mrf.mxu2 }
 0x2f5   : > { %16590 = vst [vmem:[#allocation65_spill] sm:$0xff] %v14040_v17  ;;  %v5374_v17 = vld [vmem:[#allocation2 + $0x50] sm:$0x1]  ;;  %v5590_v28 = vor.u32 %v5589_v15, %v14049_v25 }
 0x2f6   : > { %16591 = vst [vmem:[#allocation66_spill] sm:$0xff] %v14042_v57  ;;  %v5593_v15 = vshll.u32 %v5374_v17, 16 }
 0x2f7   : > { %11355 = vmatmul.msk.bf16.gmra.mxu3 %vm3277_vm9, %v13113_v50  ;;  %11546 = vmatmul.msk.bf16.gmra.mxu1 %vm3277_vm9, %v12098_v14  ;;  %v12156_v50 = vld [vmem:[%s16506_s4 + $0xc0] sm:$0xff]  ;;  %v9555_v14 = vrot.slane %v8087_v55, 5  ;;  %v11308_v55 = vrot.slane %v3996_v30, 9 }
 0x2f8   : > { %v14054_v57 = vpop.f32.mrf.mxu0  ;;  %7847 = vmatpush.bf16.msra.mxu0 %v12156_v50  ;;  %v5595_v17 = vrot.slane %v5593_v15, 5  ;;  %v5375_v50 = vld [vmem:[#allocation2 + $0x54] sm:$0xf] }
 0x2f9   : > { %11580 = vmatmul.msk.bf16.gmra.mxu2 %vm3277_vm9, %v6297_v38  ;;  %v9556_v2 = vsel %vm13012_vm15, %v9554_v3, %v9555_v14  ;;  %v5580_v38 = vor.u32 %v5579_v6, %v5576_v41  ;;  %v5598_v15 = vshrl.u32 %v5375_v50, 16 }
 0x2fa   : > { %v3518_v27 = vpop.f32.mrf.mxu3  ;;  %v9763_v20 = vunpack.c.l.b16 %v9556_v2 }
 0x2fb   : > { %v14062_v18 = vadd.f32 %v3967_v29, %v3518_v27  ;;  %11285 = vmatmul.msk.bf16.gmra.mxu0 %vm3277_vm9, %v12049_v10  ;;  %v4125_v29 = vsel %vm13012_vm15, %v4123_v22, %v4124_v11  ;;  %v5591_v27 = vrot.slane %v5590_v28, 4  ;;  %v4122_v10 = vsel %vm13012_vm15, %v11308_v55, %v4121_v34  ;;  %v12551_v28 = vld [vmem:[#allocation2 + $0x40] sm:$0xf]  ;;  %v12099_v55 = vld [vmem:[#allocation2 + $0x108] sm:$0xff] }
 0x2fc   : > { %v14066_v35 = vpop.f32.mrf.mxu1  ;;  %v3972_v9 = vpop.f32.mrf.mxu2  ;;  %v14072_v52 = vpack.c.b16 %v9763_v20, %v9762_v48  ;;  %v4332_v3 = vunpack.c.l.b16 %v4125_v29  ;;  %v5581_v14 = vrot.slane %v5580_v38, 4  ;;  %v4331_v41 = vunpack.c.l.b16 %v4122_v10 }
 0x2fd   : > { %16592 = vst [vmem:[#allocation67_spill] sm:$0xff] %v14062_v18  ;;  %v5376_v18 = vld [vmem:[#allocation2 + $0x58] sm:$0xf]  ;;  %v5596_v30 = vsel %vm12873_vm8, %v5591_v27, %v5595_v17  ;;  %v4128_v11 = vrot.slane %v12551_v28, 5  ;;  %v5601_v38 = vshll.u32 %v5375_v50, 16  ;;  %v5600_v50 = vrot.slane %v5598_v15, 4 }
 0x2fe   : > { %16593 = vst [vmem:[#allocation68_spill] sm:$0xff] %v14066_v35  ;;  %v5607_v2 = vshll.u32 %v5376_v18, 16  ;;  %v5611_v22 = vshrl.u32 %v5376_v18, 16  ;;  %v5586_v34 = vsel %vm12873_vm8, %v5581_v14, %v14049_v25  ;;  %v4391_v20 = vpack.c.b16 %v4332_v3, %v4331_v41  ;;  %v9399_v27 = vld [vmem:[#allocation2 + $0x54] sm:$0xe] }
 0x2ff   : > { %16594 = vst [vmem:[#allocation69_spill] sm:$0xff] %v14072_v52  ;;  %v6240_v29 = vunpack.c.l.b16 %v5596_v30  ;;  %v8089_v52 = vld [vmem:[#allocation2 + $0x58] sm:$0xf]  ;;  %v6239_v10 = vunpack.c.l.b16 %v5586_v34  ;;  %v11917_v25 = vrot.slane %v9399_v27, 9  ;;  %v4130_v41 = vrot.slane %v4128_v11, 4 }
 0x300   : > { %v14076_v35 = vpop.f32.mrf.mxu0  ;;  %v14087_v18 = vrot.slane %v5607_v2, 5  ;;  %v9559_v14 = vrot.slane %v8089_v52, 5  ;;  %v5377_v30 = vld [vmem:[#allocation2 + $0x5c] sm:$0x1]  ;;  %v3997_v52 = vld [vmem:[#allocation2 + $0x3c] sm:$0xe] }
 0x301   : > { %v6298_v3 = vpack.c.b16 %v6240_v29, %v6239_v10  ;;  %v12552_v27 = vld [vmem:[#allocation2 + $0x44] sm:$0x1] }
 0x302   : > { %v3520_v12 = vpop.f32.mrf.mxu3  ;;  %v4131_v29 = vrot.slane %v12552_v27, 5 }
 0x303   : > { %v14080_v6 = vadd.f32 %v3969_v46, %v3520_v12  ;;  %v5613_v46 = vrot.slane %v5611_v22, 4  ;;  %v8090_v12 = vld [vmem:[#allocation2 + $0x5c] sm:$0x1]  ;;  %v9560_v22 = vsel %vm13012_vm15, %v11917_v25, %v9559_v14 }
 0x304   : > { %v14082_v48 = vpop.f32.mrf.mxu1  ;;  %v3974_v17 = vpop.f32.mrf.mxu2  ;;  %v9764_v10 = vunpack.c.l.b16 %v9560_v22 }
 0x305   : > { %16595 = vst [vmem:[#allocation70_spill] sm:$0xff] %v14080_v6  ;;  %v5614_v2 = vor.u32 %v5613_v46, %v14087_v18 }
 0x306   : > { %16596 = vst [vmem:[#allocation71_spill] sm:$0xff] %v14082_v48  ;;  %v5603_v48 = vrot.slane %v5601_v38, 5  ;;  %v5617_v38 = vshll.u32 %v5377_v30, 16 }
 0x307   : > { %11356 = vmatmul.msk.bf16.gmra.mxu3 %vm3277_vm9, %v4391_v20  ;;  %11547 = vmatmul.msk.bf16.gmra.mxu1 %vm3277_vm9, %v12099_v55  ;;  %v9561_v20 = vrot.slane %v9559_v14, 4  ;;  %v9562_v55 = vrot.slane %v8090_v12, 5  ;;  %v11309_v14 = vrot.slane %v3997_v52, 9  ;;  %v5615_v12 = vrot.slane %v5614_v2, 4  ;;  %v12553_v2 = vld [vmem:[#allocation2 + $0x4c] sm:$0xf] }
 0x308   : > { %v14091_v28 = vpop.f32.mrf.mxu0  ;;  %v5619_v27 = vrot.slane %v5617_v38, 5 }
 0x309   : > { %11581 = vmatmul.msk.bf16.gmra.mxu2 %vm3277_vm9, %v6298_v3  ;;  %v9563_v46 = vsel %vm13012_vm15, %v9561_v20, %v9562_v55  ;;  %v5379_v3 = vld [vmem:[#allocation2 + $0x64] sm:$0xf]  ;;  %v5378_v20 = vld [vmem:[#allocation2 + $0x60] sm:$0xf] }
 0x30a   : > { %v3523_v6 = vpop.f32.mrf.mxu3  ;;  %v9765_v53 = vunpack.c.l.b16 %v9563_v46  ;;  %v5620_v52 = vsel %vm12873_vm8, %v5615_v12, %v5619_v27  ;;  %v5631_v46 = vshll.u32 %v5379_v3, 16  ;;  %v5622_v38 = vshrl.u32 %v5378_v20, 16  ;;  %v9400_v12 = vld [vmem:[#allocation2 + $0x60] sm:$0xe] }
 0x30b   : > { %v14096_v34 = vadd.f32 %v3972_v9, %v3523_v6  ;;  %11286 = vmatmul.msk.bf16.gmra.mxu0 %vm3277_vm9, %v12050_v54  ;;  %v4132_v9 = vsel %vm13012_vm15, %v4130_v41, %v4131_v29  ;;  %v5604_v6 = vor.u32 %v5603_v48, %v5600_v50  ;;  %v4129_v54 = vsel %vm13012_vm15, %v11309_v14, %v4128_v11  ;;  %v12100_v14 = vld [vmem:[#allocation2 + $0x114] sm:$0xff] }
 0x30c   : > { %v14100_v15 = vpop.f32.mrf.mxu1  ;;  %v3977_v25 = vpop.f32.mrf.mxu2  ;;  %v5635_v41 = vshrl.u32 %v5379_v3, 16  ;;  %v4333_v50 = vunpack.c.l.b16 %v4129_v54  ;;  %v4135_v29 = vrot.slane %v12553_v2, 5  ;;  %v14121_v3 = vrot.slane %v5631_v46, 5 }
 0x30d   : > { %16597 = vst [vmem:[#allocation72_spill] sm:$0xff] %v14096_v34  ;;  %v14106_v34 = vpack.c.b16 %v9765_v53, %v9764_v10  ;;  %v5605_v55 = vrot.slane %v5604_v6, 4  ;;  %v5625_v6 = vshll.u32 %v5378_v20, 16  ;;  %v5624_v20 = vrot.slane %v5622_v38, 4 }
 0x30e   : > { %16598 = vst [vmem:[#allocation73_spill] sm:$0xff] %v14100_v15  ;;  %v4334_v15 = vunpack.c.l.b16 %v4132_v9  ;;  %v6242_v9 = vunpack.c.l.b16 %v5620_v52  ;;  %v5380_v52 = vld [vmem:[#allocation2 + $0x68] sm:$0x1] }
 0x30f   : > { %16599 = vst [vmem:[#allocation74_spill] sm:$0xff] %v14106_v34  ;;  %v5610_v11 = vsel %vm12873_vm8, %v5605_v55, %v14087_v18  ;;  %v8092_v34 = vld [vmem:[#allocation2 + $0x64] sm:$0xf]  ;;  %v11918_v18 = vrot.slane %v9400_v12, 9  ;;  %v12554_v12 = vld [vmem:[#allocation2 + $0x50] sm:$0x1] }
 0x310   : > { %v14110_v30 = vpop.f32.mrf.mxu0  ;;  %v4392_v10 = vpack.c.b16 %v4334_v15, %v4333_v50  ;;  %v6241_v54 = vunpack.c.l.b16 %v5610_v11  ;;  %v9566_v55 = vrot.slane %v8092_v34, 5  ;;  %v4137_v50 = vrot.slane %v4135_v29, 4  ;;  %v3998_v34 = vld [vmem:[#allocation2 + $0x48] sm:$0xe] }
 0x311   : > { %v5641_v38 = vshll.u32 %v5380_v52, 16 }
 0x312   : > { %v3525_v22 = vpop.f32.mrf.mxu3  ;;  %v6299_v15 = vpack.c.b16 %v6242_v9, %v6241_v54  ;;  %v4138_v9 = vrot.slane %v12554_v12, 5 }
 0x313   : > { %v14114_v48 = vadd.f32 %v3974_v17, %v3525_v22  ;;  %v5637_v17 = vrot.slane %v5635_v41, 4  ;;  %v8093_v22 = vld [vmem:[#allocation2 + $0x68] sm:$0x1]  ;;  %v9567_v41 = vsel %vm13012_vm15, %v11918_v18, %v9566_v55 }
 0x314   : > { %v14116_v53 = vpop.f32.mrf.mxu1  ;;  %v3979_v27 = vpop.f32.mrf.mxu2 }
 0x315   : > { %16600 = vst [vmem:[#allocation75_spill] sm:$0xff] %v14114_v48  ;;  %v5638_v46 = vor.u32 %v5637_v17, %v14121_v3  ;;  %v9766_v17 = vunpack.c.l.b16 %v9567_v41 }
 0x316   : > { %16601 = vst [vmem:[#allocation76_spill] sm:$0xff] %v14116_v53  ;;  %v5627_v53 = vrot.slane %v5625_v6, 5 }
 0x317   : > { %11357 = vmatmul.msk.bf16.gmra.mxu3 %vm3277_vm9, %v4392_v10  ;;  %11548 = vmatmul.msk.bf16.gmra.mxu1 %vm3277_vm9, %v12100_v14  ;;  %v9568_v10 = vrot.slane %v9566_v55, 4  ;;  %v9569_v14 = vrot.slane %v8093_v22, 5  ;;  %v11310_v55 = vrot.slane %v3998_v34, 9  ;;  %v5639_v22 = vrot.slane %v5638_v46, 4  ;;  %v12555_v46 = vld [vmem:[#allocation2 + $0x58] sm:$0xf] }
 0x318   : > { %v14125_v2 = vpop.f32.mrf.mxu0 }
 0x319   : > { %11582 = vmatmul.msk.bf16.gmra.mxu2 %vm3277_vm9, %v6299_v15  ;;  %v9570_v6 = vsel %vm13012_vm15, %v9568_v10, %v9569_v14  ;;  %v5382_v15 = vld [vmem:[#allocation2 + $0x70] sm:$0xf]  ;;  %v4136_v12 = vsel %vm13012_vm15, %v11310_v55, %v4135_v29  ;;  %v5381_v10 = vld [vmem:[#allocation2 + $0x6c] sm:$0xf]  ;;  %v12101_v55 = vld [vmem:[#allocation2 + $0x120] sm:$0xff] }
 0x31a   : > { %v3528_v48 = vpop.f32.mrf.mxu3  ;;  %v9767_v7 = vunpack.c.l.b16 %v9570_v6  ;;  %v5655_v6 = vshll.u32 %v5382_v15, 16 }
 0x31b   : > { %v14130_v11 = vadd.f32 %v3977_v25, %v3528_v48  ;;  %11832 = vmatmul.msk.bf16.vlgmr.msra.gmra.mxu0 %vm3277_vm9, %v12124_v16  ;;  %v4139_v25 = vsel %vm13012_vm15, %v4137_v50, %v4138_v9  ;;  %v5628_v48 = vor.u32 %v5627_v53, %v5624_v20  ;;  %v5643_v16 = vrot.slane %v5641_v38, 5 }
 0x31c   : > { %v14133_v54 = vpop.f32.mrf.mxu1  ;;  %v3982_v18 = vpop.f32.mrf.mxu2  ;;  %v5659_v50 = vshrl.u32 %v5382_v15, 16  ;;  %v4335_v20 = vunpack.c.l.b16 %v4136_v12  ;;  %v4142_v9 = vrot.slane %v12555_v46, 5  ;;  %v5646_v38 = vshrl.u32 %v5381_v10, 16  ;;  %v5383_v46 = vld [vmem:[#allocation2 + $0x74] sm:$0x1] }
 0x31d   : > { %16602 = vst [vmem:[#allocation77_spill] sm:$0xff] %v14130_v11  ;;  %v14140_v11 = vpack.c.b16 %v9767_v7, %v9766_v17  ;;  %v5629_v14 = vrot.slane %v5628_v48, 4  ;;  %v5644_v34 = vsel %vm12873_vm8, %v5639_v22, %v5643_v16  ;;  %v5649_v48 = vshll.u32 %v5381_v10, 16  ;;  %v9401_v22 = vld [vmem:[#allocation2 + $0x6c] sm:$0xe] }
 0x31e   : > { %16603 = vst [vmem:[#allocation78_spill] sm:$0xff] %v14133_v54  ;;  %v4336_v54 = vunpack.c.l.b16 %v4139_v25  ;;  %v6244_v25 = vunpack.c.l.b16 %v5644_v34  ;;  %v14155_v15 = vrot.slane %v5655_v6, 5  ;;  %v5648_v6 = vrot.slane %v5646_v38, 4 }
 0x31f   : > { %16604 = vst [vmem:[#allocation79_spill] sm:$0xff] %v14140_v11  ;;  %v5634_v29 = vsel %vm12873_vm8, %v5629_v14, %v14121_v3  ;;  %v8095_v11 = vld [vmem:[#allocation2 + $0x70] sm:$0xf]  ;;  %v5665_v38 = vshll.u32 %v5383_v46, 16 }
 0x320   : > { %v14144_v52 = vpop.f32.mrf.mxu0  ;;  %v4393_v17 = vpack.c.b16 %v4336_v54, %v4335_v20  ;;  %v6243_v12 = vunpack.c.l.b16 %v5634_v29  ;;  %v12122_v3 = vld [vmem:[%s16506_s4 + $0xb0] sm:$0xff]  ;;  %v11919_v54 = vrot.slane %v9401_v22, 9  ;;  %v9573_v14 = vrot.slane %v8095_v11, 5 }
 0x321   : > { %v4144_v20 = vrot.slane %v4142_v9, 4  ;;  %7259 = vmatpush.bf16.msra.mxu3 %v12122_v3  ;;  %v3999_v11 = vld [vmem:[#allocation2 + $0x54] sm:$0xe] }
 0x322   : > { %v3530_v41 = vpop.f32.mrf.mxu3  ;;  %v6300_v10 = vpack.c.b16 %v6244_v25, %v6243_v12  ;;  %v9574_v29 = vsel %vm13012_vm15, %v11919_v54, %v9573_v14  ;;  %v12556_v25 = vld [vmem:[#allocation2 + $0x5c] sm:$0x1]  ;;  %v11311_v54 = vrot.slane %v3999_v11, 9 }
 0x323   : > { %v14148_v53 = vadd.f32 %v3979_v27, %v3530_v41  ;;  %v5661_v27 = vrot.slane %v5659_v50, 4  ;;  %v8096_v41 = vld [vmem:[#allocation2 + $0x74] sm:$0x1]  ;;  %v4145_v22 = vrot.slane %v12556_v25, 5  ;;  %v9768_v3 = vunpack.c.l.b16 %v9574_v29  ;;  %v5385_v25 = vld [vmem:[#allocation2 + $0x7c] sm:$0xf] }
 0x324   : > { %v14150_v7 = vpop.f32.mrf.mxu1  ;;  %v3984_v16 = vpop.f32.mrf.mxu2  ;;  %v9576_v51 = vrot.slane %v8096_v41, 5  ;;  %v5384_v29 = vld [vmem:[#allocation2 + $0x78] sm:$0xf] }
 0x325   : > { %16605 = vst [vmem:[#allocation80_spill] sm:$0xff] %v14148_v53  ;;  %v9575_v53 = vrot.slane %v9573_v14, 4  ;;  %v4146_v14 = vsel %vm13012_vm15, %v4144_v20, %v4145_v22  ;;  %v5679_v20 = vshll.u32 %v5385_v25, 16 }
 0x326   : > { %16606 = vst [vmem:[#allocation81_spill] sm:$0xff] %v14150_v7  ;;  %v5651_v7 = vrot.slane %v5649_v48, 5 }
 0x327   : > { %11358 = vmatmul.msk.bf16.gmra.mxu3 %vm3277_vm9, %v4393_v17  ;;  %11549 = vmatmul.msk.bf16.gmra.mxu1 %vm3277_vm9, %v12101_v55  ;;  %v12125_v17 = vld [vmem:[#allocation2 + $0x24] sm:$0xff]  ;;  %v5662_v55 = vor.u32 %v5661_v27, %v14155_v15  ;;  %v9577_v48 = vsel %vm13012_vm15, %v9575_v53, %v9576_v51  ;;  %v12166_v27 = vld [vmem:[%s16506_s4 + $0x110] sm:$0xff]  ;;  %v4143_v51 = vsel %vm13012_vm15, %v11311_v54, %v4142_v9  ;;  %v5667_v53 = vrot.slane %v5665_v38, 5 }
 0x328   : > { %v14162_v34 = vpop.f32.mrf.mxu0  ;;  %9975 = vmatpush.bf16.msra.mxu2 %v12166_v27  ;;  %v4337_v22 = vunpack.c.l.b16 %v4143_v51  ;;  %v12557_v27 = vld [vmem:[#allocation2 + $0x64] sm:$0xf] }
 0x329   : > { %11583 = vmatmul.msk.bf16.gmra.mxu2 %vm3277_vm9, %v6300_v10  ;;  %v5652_v10 = vor.u32 %v5651_v7, %v5648_v6  ;;  %v5683_v7 = vshrl.u32 %v5385_v25, 16  ;;  %v12162_v6 = vld [vmem:[%s16506_s4 + $0xf0] sm:$0xff]  ;;  %v8098_v25 = vld [vmem:[#allocation2 + $0x7c] sm:$0xf] }
 0x32a   : > { %v3533_v50 = vpop.f32.mrf.mxu3  ;;  %9166 = vmatpush.bf16.msra.mxu1 %v12162_v6 }
 0x32b   : > { %v14167_v24 = vadd.f32 %v3982_v18, %v3533_v50  ;;  %11833 = vmatmul.msk.bf16.gmra.mxu0 %vm3277_vm9, %v12125_v17  ;;  %v9769_v18 = vunpack.c.l.b16 %v9577_v48  ;;  %v5663_v50 = vrot.slane %v5662_v55, 4  ;;  %v5685_v51 = vrot.slane %v5683_v7, 4 }
 0x32c   : > { %v14170_v12 = vpop.f32.mrf.mxu1  ;;  %v3987_v41 = vpop.f32.mrf.mxu2 }
 0x32d   : > { %16607 = vst [vmem:[#allocation82_spill] sm:$0xff] %v14167_v24  ;;  %v14180_v17 = vpack.c.b16 %v9769_v18, %v9768_v3  ;;  %v5653_v24 = vrot.slane %v5652_v10, 4  ;;  %v5668_v11 = vsel %vm12873_vm8, %v5663_v50, %v5667_v53  ;;  %v4149_v3 = vrot.slane %v12557_v27, 5  ;;  %v9402_v53 = vld [vmem:[#allocation2 + $0x78] sm:$0xe] }
 0x32e   : > { %16608 = vst [vmem:[#allocation83_spill] sm:$0xff] %v14170_v12  ;;  %v4338_v12 = vunpack.c.l.b16 %v4146_v14  ;;  %v5670_v18 = vshrl.u32 %v5384_v29, 16  ;;  %v12102_v14 = vld [vmem:[#allocation2 + $0x12c] sm:$0xff]  ;;  %v6246_v10 = vunpack.c.l.b16 %v5668_v11  ;;  %v5673_v50 = vshll.u32 %v5384_v29, 16  ;;  %v5386_v11 = vld [vmem:[#allocation2 + $0x80] sm:$0x1] }
 0x32f   : > { %16609 = vst [vmem:[#allocation84_spill] sm:$0xff] %v14180_v17  ;;  %v5658_v38 = vsel %vm12873_vm8, %v5653_v24, %v14155_v15  ;;  %v8099_v24 = vld [vmem:[#allocation2 + $0x80] sm:$0x1]  ;;  %v11920_v15 = vrot.slane %v9402_v53, 9  ;;  %v9580_v27 = vrot.slane %v8098_v25, 5  ;;  %v4151_v6 = vrot.slane %v4149_v3, 4 }
 0x330   : > { %v14184_v46 = vpop.f32.mrf.mxu0  ;;  %v4394_v54 = vpack.c.b16 %v4338_v12, %v4337_v22  ;;  %v5672_v29 = vrot.slane %v5670_v18, 4  ;;  %v5675_v22 = vrot.slane %v5673_v50, 5  ;;  %v4000_v25 = vld [vmem:[#allocation2 + $0x60] sm:$0xe]  ;;  %v12558_v53 = vld [vmem:[#allocation2 + $0x68] sm:$0x1] }
 0x331   : > { %16610 = vst [vmem:[#allocation85_spill] sm:$0xff] %v14184_v46  ;;  %v12126_v46 = vld [vmem:[#allocation2 + $0x30] sm:$0xff]  ;;  %v9581_v7 = vsel %vm13012_vm15, %v11920_v15, %v9580_v27  ;;  %v5689_v18 = vshll.u32 %v5386_v11, 16 }
 0x332   : > { %v3535_v48 = vpop.f32.mrf.mxu3 }
 0x333   : > { %v14191_v55 = vadd.f32 %v3984_v16, %v3535_v48  ;;  %v14198_v16 = vrot.slane %v5679_v20, 5  ;;  %v6245_v48 = vunpack.c.l.b16 %v5658_v38  ;;  %v5691_v11 = vrot.slane %v5689_v18, 5 }
 0x334   : > { %v14193_v9 = vpop.f32.mrf.mxu1  ;;  %v3989_v17 = vpop.f32.mrf.mxu2 }
 0x335   : > { %16611 = vst [vmem:[#allocation86_spill] sm:$0xff] %v14191_v55  ;;  %v6301_v12 = vpack.c.b16 %v6246_v10, %v6245_v48  ;;  %v5686_v20 = vor.u32 %v5685_v51, %v14198_v16  ;;  %v4152_v10 = vrot.slane %v12558_v53, 5  ;;  %v9770_v51 = vunpack.c.l.b16 %v9581_v7  ;;  %v5387_v7 = vld [vmem:[#allocation2 + $0x84] sm:$0xf] }
 0x336   : > { %16612 = vst [vmem:[#allocation87_spill] sm:$0xff] %v14193_v9  ;;  %v5694_v18 = vshrl.u32 %v5387_v7, 16 }
 0x337   : > { %11359 = vmatmul.msk.bf16.gmra.mxu3 %vm3277_vm9, %v4394_v54  ;;  %11550 = vmatmul.msk.bf16.gmra.mxu1 %vm3277_vm9, %v12102_v14  ;;  %v9582_v54 = vrot.slane %v9580_v27, 4  ;;  %v9583_v14 = vrot.slane %v8099_v24, 5  ;;  %v11312_v24 = vrot.slane %v4000_v25, 9  ;;  %v5687_v27 = vrot.slane %v5686_v20, 4  ;;  %v12559_v20 = vld [vmem:[#allocation2 + $0x70] sm:$0xf] }
 0x338   : > { %v14202_v9 = vpop.f32.mrf.mxu0 }
 0x339   : > { %16613 = vst [vmem:[#allocation88_spill] sm:$0xff] %v14202_v9  ;;  %11584 = vmatmul.msk.bf16.gmra.mxu2 %vm3277_vm9, %v6301_v12  ;;  %v9584_v50 = vsel %vm13012_vm15, %v9582_v54, %v9583_v14  ;;  %v5388_v12 = vld [vmem:[#allocation2 + $0x88] sm:$0xf] }
 0x33a   : > { %v3538_v55 = vpop.f32.mrf.mxu3  ;;  %v9771_v9 = vunpack.c.l.b16 %v9584_v50  ;;  %v5703_v14 = vshll.u32 %v5388_v12, 16  ;;  %v5707_v50 = vshrl.u32 %v5388_v12, 16 }
 0x33b   : > { %v14207_v38 = vadd.f32 %v3987_v41, %v3538_v55  ;;  %11834 = vmatmul.msk.bf16.gmra.mxu0 %vm3277_vm9, %v12126_v46  ;;  %v4153_v41 = vsel %vm13012_vm15, %v4151_v6, %v4152_v10  ;;  %v5676_v55 = vor.u32 %v5675_v22, %v5672_v29  ;;  %v4150_v46 = vsel %vm13012_vm15, %v11312_v24, %v4149_v3 }
 0x33c   : > { %v14210_v48 = vpop.f32.mrf.mxu1  ;;  %v14215_v15 = vpop.f32.mrf.mxu2  ;;  %v14219_v53 = vpack.c.b16 %v9771_v9, %v9770_v51  ;;  %v4340_v54 = vunpack.c.l.b16 %v4153_v41  ;;  %v5692_v6 = vsel %vm12873_vm8, %v5687_v27, %v5691_v11  ;;  %v4339_v22 = vunpack.c.l.b16 %v4150_v46  ;;  %v12103_v41 = vld [vmem:[#allocation2 + $0x138] sm:$0xff]  ;;  %v8101_v27 = vld [vmem:[#allocation2 + $0x88] sm:$0xf] }
 0x33d   : > { %16614 = vst [vmem:[#allocation89_spill] sm:$0xff] %v14207_v38  ;;  %v5677_v25 = vrot.slane %v5676_v55, 4  ;;  %v4156_v10 = vrot.slane %v12559_v20, 5  ;;  %v5697_v51 = vshll.u32 %v5387_v7, 16  ;;  %v6248_v12 = vunpack.c.l.b16 %v5692_v6 }
 0x33e   : > { %16615 = vst [vmem:[#allocation90_spill] sm:$0xff] %v14210_v48  ;;  %v4395_v24 = vpack.c.b16 %v4340_v54, %v4339_v22  ;;  %v14234_v55 = vrot.slane %v5703_v14, 5  ;;  %v5696_v20 = vrot.slane %v5694_v18, 4  ;;  %v9587_v54 = vrot.slane %v8101_v27, 5  ;;  %v4001_v18 = vld [vmem:[#allocation2 + $0x6c] sm:$0xe] }
 0x33f   : > { %16616 = vst [vmem:[#allocation91_spill] sm:$0xff] %v14215_v15  ;;  %v5682_v3 = vsel %vm12873_vm8, %v5677_v25, %v14198_v16  ;;  %v8102_v16 = vld [vmem:[#allocation2 + $0x8c] sm:$0x1]  ;;  %v4158_v11 = vrot.slane %v4156_v10, 4  ;;  %v5699_v7 = vrot.slane %v5697_v51, 5  ;;  %v3833_v14 = vadd.f32 %v13876_v59, %v13146_v63 }
 0x340   : > { %16617 = vst [vmem:[#allocation92_spill] sm:$0xff] %v14219_v53  ;;  %v14223_v48 = vpop.f32.mrf.mxu0  ;;  %v5709_v53 = vrot.slane %v5707_v50, 4  ;;  %v6247_v46 = vunpack.c.l.b16 %v5682_v3  ;;  %v5389_v25 = vld [vmem:[#allocation2 + $0x8c] sm:$0x1]  ;;  %v12560_v3 = vld [vmem:[#allocation2 + $0x74] sm:$0x1] }
 0x341   : > { %16618 = vst [vmem:[#allocation93_spill] sm:$0xff] %v14223_v48  ;;  %v4159_v38 = vrot.slane %v12560_v3, 5  ;;  %v5713_v51 = vshll.u32 %v5389_v25, 16 }
 0x342   : > { %v3540_v15 = vpop.f32.mrf.mxu3  ;;  %v6302_v50 = vpack.c.b16 %v6248_v12, %v6247_v46  ;;  %v5710_v22 = vor.u32 %v5709_v53, %v14234_v55  ;;  %v5700_v53 = vor.u32 %v5699_v7, %v5696_v20  ;;  %v11313_v46 = vrot.slane %v4001_v18, 9 }
 0x343   : > { %v14227_v29 = vadd.f32 %v3989_v17, %v3540_v15  ;;  %v9403_v15 = vld [vmem:[#allocation2 + $0x84] sm:$0xe]  ;;  %v4160_v27 = vsel %vm13012_vm15, %v4158_v11, %v4159_v38  ;;  %v5390_v11 = vld [vmem:[#allocation2 + $0x90] sm:$0xf] }
 0x344   : > { %v14229_v9 = vpop.f32.mrf.mxu1  ;;  %v14236_v17 = vpop.f32.mrf.mxu2 }
 0x345   : > { %16619 = vst [vmem:[#allocation94_spill] sm:$0xff] %v14227_v29  ;;  %v9589_v29 = vrot.slane %v9587_v54, 4 }
 0x346   : > { %16620 = vst [vmem:[#allocation95_spill] sm:$0xff] %v14229_v9  ;;  %v11921_v9 = vrot.slane %v9403_v15, 9 }
 0x347   : > { %16621 = vst [vmem:[#allocation96_spill] sm:$0xff] %v14236_v17  ;;  %11360 = vmatmul.msk.bf16.gmra.mxu3 %vm3277_vm9, %v4395_v24  ;;  %11551 = vmatmul.msk.bf16.gmra.mxu1 %vm3277_vm9, %v12103_v41  ;;  %v12127_v24 = vld [vmem:[#allocation2 + $0x3c] sm:$0xff]  ;;  %v9590_v41 = vrot.slane %v8102_v16, 5  ;;  %v5391_v16 = vld [vmem:[#allocation2 + $0x94] sm:$0xf] }
 0x348   : > { %v14242_v6 = vpop.f32.mrf.mxu0  ;;  %v9588_v63 = vsel %vm13012_vm15, %v11921_v9, %v9587_v54  ;;  %v4157_v9 = vsel %vm13012_vm15, %v11313_v46, %v4156_v10  ;;  %v4342_v54 = vunpack.c.l.b16 %v4160_v27  ;;  %v12104_v27 = vld [vmem:[#allocation2 + $0x144] sm:$0xff]  ;;  %v12561_v46 = vld [vmem:[#allocation2 + $0x7c] sm:$0xf] }
 0x349   : > { %11585 = vmatmul.msk.bf16.gmra.mxu2 %vm3277_vm9, %v6302_v50  ;;  %v9591_v12 = vsel %vm13012_vm15, %v9589_v29, %v9590_v41  ;;  %v9772_v25 = vunpack.c.l.b16 %v9588_v63  ;;  %v5715_v50 = vrot.slane %v5713_v51, 5  ;;  %v3835_v29 = vadd.f32 %v13903_v4, %v13168_v43 }
 0x34a   : > { %v4548_v17 = vpop.f32.mrf.mxu3  ;;  %v5731_v41 = vshrl.u32 %v5391_v16, 16  ;;  %v4341_v51 = vunpack.c.l.b16 %v4157_v9  ;;  %v5718_v43 = vshrl.u32 %v5390_v11, 16  ;;  %v5721_v4 = vshll.u32 %v5390_v11, 16 }
 0x34b   : > { %v14245_v48 = vadd.f32 %v4548_v17, %v3833_v14  ;;  %11835 = vmatmul.msk.bf16.gmra.mxu0 %vm3277_vm9, %v12127_v24  ;;  %v5711_v17 = vrot.slane %v5710_v22, 4  ;;  %v9773_v14 = vunpack.c.l.b16 %v9591_v12  ;;  %v5701_v24 = vrot.slane %v5700_v53, 4 }
 0x34c   : > { %v14250_v59 = vpop.f32.mrf.mxu1  ;;  %v14257_v15 = vpop.f32.mrf.mxu2  ;;  %v5727_v22 = vshll.u32 %v5391_v16, 16  ;;  %v4396_v12 = vpack.c.b16 %v4342_v54, %v4341_v51  ;;  %v5733_v16 = vrot.slane %v5731_v41, 4  ;;  %v5720_v11 = vrot.slane %v5718_v43, 4  ;;  %v4002_v43 = vld [vmem:[#allocation2 + $0x78] sm:$0xe] }
 0x34d   : > { %16622 = vst [vmem:[#allocation97_spill] sm:$0xff] %v14250_v59  ;;  %v14261_v20 = vpack.c.b16 %v9773_v14, %v9772_v25  ;;  %v5716_v38 = vsel %vm12873_vm8, %v5711_v17, %v5715_v50  ;;  %v5706_v10 = vsel %vm12873_vm8, %v5701_v24, %v14234_v55  ;;  %v4163_v17 = vrot.slane %v12561_v46, 5  ;;  %v8104_v14 = vld [vmem:[#allocation2 + $0x94] sm:$0xf]  ;;  %v8105_v55 = vld [vmem:[#allocation2 + $0x98] sm:$0x1] }
 0x34e   : > { %16623 = vst [vmem:[#allocation98_spill] sm:$0xff] %v14257_v15  ;;  %v6250_v53 = vunpack.c.l.b16 %v5716_v38  ;;  %v14276_v25 = vrot.slane %v5727_v22, 5  ;;  %v6249_v9 = vunpack.c.l.b16 %v5706_v10  ;;  %v5392_v38 = vld [vmem:[#allocation2 + $0x98] sm:$0x1]  ;;  %v5723_v54 = vrot.slane %v5721_v4, 5  ;;  %v12128_v59 = vld [vmem:[#allocation2 + $0x48] sm:$0xff] }
 0x34f   : > { %v3838_v22 = vadd.f32 %v13925_v13, %v13184_v32  ;;  %v4165_v41 = vrot.slane %v4163_v17, 4  ;;  %v5737_v4 = vshll.u32 %v5392_v38, 16 }
 0x350   : > { %v14265_v7 = vpop.f32.mrf.mxu0  ;;  %v6303_v24 = vpack.c.b16 %v6250_v53, %v6249_v9  ;;  %v5734_v46 = vor.u32 %v5733_v16, %v14276_v25  ;;  %v5724_v16 = vor.u32 %v5723_v54, %v5720_v11 }
 0x352   : > { %v4550_v3 = vpop.f32.mrf.mxu3 }
 0x353   : > { %v14269_v18 = vadd.f32 %v4550_v3, %v3835_v29  ;;  %v9404_v29 = vld [vmem:[#allocation2 + $0x90] sm:$0xe]  ;;  %v9594_v3 = vrot.slane %v8104_v14, 5 }
 0x354   : > { %v14274_v63 = vpop.f32.mrf.mxu1  ;;  %v14278_v50 = vpop.f32.mrf.mxu2  ;;  %v11922_v10 = vrot.slane %v9404_v29, 9 }
 0x355   : > { %16624 = vst [vmem:[#allocation99_spill] sm:$0xff] %v14274_v63 }
 0x356   : > { %16625 = vst [vmem:[#allocation100_spill] sm:$0xff] %v14278_v50  ;;  %v9597_v50 = vrot.slane %v8105_v55, 5  ;;  %v9595_v32 = vsel %vm13012_vm15, %v11922_v10, %v9594_v3  ;;  %v11314_v55 = vrot.slane %v4002_v43, 9 }
 0x357   : > { %11361 = vmatmul.msk.bf16.gmra.mxu3 %vm3277_vm9, %v4396_v12  ;;  %11552 = vmatmul.msk.bf16.gmra.mxu1 %vm3277_vm9, %v12104_v27  ;;  %v9596_v12 = vrot.slane %v9594_v3, 4  ;;  %v12562_v27 = vld [vmem:[#allocation2 + $0x80] sm:$0x1]  ;;  %v9774_v38 = vunpack.c.l.b16 %v9595_v32 }
 0x358   : > { %v14284_v51 = vpop.f32.mrf.mxu0  ;;  %v4166_v15 = vrot.slane %v12562_v27, 5  ;;  %v5739_v27 = vrot.slane %v5737_v4, 5  ;;  %v4164_v3 = vsel %vm13012_vm15, %v11314_v55, %v4163_v17 }
 0x359   : > { %11586 = vmatmul.msk.bf16.gmra.mxu2 %vm3277_vm9, %v6303_v24  ;;  %v9598_v14 = vsel %vm13012_vm15, %v9596_v12, %v9597_v50  ;;  %v5394_v24 = vld [vmem:[#allocation2 + $0xa0] sm:$0xf]  ;;  %v3840_v50 = vadd.f32 %v13938_v21, %v13194_v56  ;;  %v4343_v32 = vunpack.c.l.b16 %v4164_v3  ;;  %v12563_v56 = vld [vmem:[#allocation2 + $0x88] sm:$0xf] }
 0x35a   : > { %v4553_v63 = vpop.f32.mrf.mxu3  ;;  %v4167_v9 = vsel %vm13012_vm15, %v4165_v41, %v4166_v15  ;;  %v5393_v41 = vld [vmem:[#allocation2 + $0x9c] sm:$0xf]  ;;  %v5755_v12 = vshrl.u32 %v5394_v24, 16  ;;  %v4170_v21 = vrot.slane %v12563_v56, 5  ;;  %v5395_v56 = vld [vmem:[#allocation2 + $0xa4] sm:$0x1] }
 0x35b   : > { %v14287_v53 = vadd.f32 %v4553_v63, %v3838_v22  ;;  %11836 = vmatmul.msk.bf16.gmra.mxu0 %vm3277_vm9, %v12128_v59  ;;  %v5735_v63 = vrot.slane %v5734_v46, 4  ;;  %v9775_v22 = vunpack.c.l.b16 %v9598_v14  ;;  %v4344_v10 = vunpack.c.l.b16 %v4167_v9 }
 0x35c   : > { %v14292_v13 = vpop.f32.mrf.mxu1  ;;  %v14299_v29 = vpop.f32.mrf.mxu2  ;;  %v5725_v59 = vrot.slane %v5724_v16, 4  ;;  %v5751_v46 = vshll.u32 %v5394_v24, 16  ;;  %v5742_v9 = vshrl.u32 %v5393_v41, 16  ;;  %v5757_v24 = vrot.slane %v5755_v12, 4 }
 0x35d   : > { %16626 = vst [vmem:[#allocation101_spill] sm:$0xff] %v14292_v13  ;;  %v14303_v11 = vpack.c.b16 %v9775_v22, %v9774_v38  ;;  %v5740_v15 = vsel %vm12873_vm8, %v5735_v63, %v5739_v27  ;;  %v4397_v55 = vpack.c.b16 %v4344_v10, %v4343_v32  ;;  %v12105_v38 = vld [vmem:[#allocation2 + $0x150] sm:$0xff]  ;;  %v5745_v63 = vshll.u32 %v5393_v41, 16  ;;  %v8107_v27 = vld [vmem:[#allocation2 + $0xa0] sm:$0xf] }
 0x35e   : > { %16627 = vst [vmem:[#allocation102_spill] sm:$0xff] %v14299_v29  ;;  %v5730_v17 = vsel %vm12873_vm8, %v5725_v59, %v14276_v25  ;;  %v6252_v14 = vunpack.c.l.b16 %v5740_v15  ;;  %v14318_v22 = vrot.slane %v5751_v46, 5  ;;  %v8108_v25 = vld [vmem:[#allocation2 + $0xa4] sm:$0x1]  ;;  %v4172_v15 = vrot.slane %v4170_v21, 4 }
 0x35f   : > { %v6251_v3 = vunpack.c.l.b16 %v5730_v17  ;;  %v9601_v10 = vrot.slane %v8107_v27, 5  ;;  %v3843_v41 = vadd.f32 %v13962_v39, %v13209_v37  ;;  %v5747_v12 = vrot.slane %v5745_v63, 5 }
 0x360   : > { %v14307_v54 = vpop.f32.mrf.mxu0  ;;  %v5758_v32 = vor.u32 %v5757_v24, %v14318_v22  ;;  %v9604_v29 = vrot.slane %v8108_v25, 5  ;;  %v5761_v27 = vshll.u32 %v5395_v56, 16 }
 0x361   : > { %v6304_v59 = vpack.c.b16 %v6252_v14, %v6251_v3 }
 0x362   : > { %v4555_v43 = vpop.f32.mrf.mxu3 }
 0x363   : > { %v14311_v4 = vadd.f32 %v4555_v43, %v3840_v50  ;;  %v9405_v43 = vld [vmem:[#allocation2 + $0x9c] sm:$0xe] }
 0x364   : > { %v14316_v16 = vpop.f32.mrf.mxu1  ;;  %v14320_v50 = vpop.f32.mrf.mxu2  ;;  %v11923_v17 = vrot.slane %v9405_v43, 9  ;;  %v5397_v43 = vld [vmem:[#allocation2 + $0xac] sm:$0xf] }
 0x365   : > { %16628 = vst [vmem:[#allocation103_spill] sm:$0xff] %v14311_v4 }
 0x366   : > { %16629 = vst [vmem:[#allocation104_spill] sm:$0xff] %v14316_v16  ;;  %v5744_v16 = vrot.slane %v5742_v9, 4  ;;  %v4003_v9 = vld [vmem:[#allocation2 + $0x84] sm:$0xe]  ;;  %v9602_v37 = vsel %vm13012_vm15, %v11923_v17, %v9601_v10 }
 0x367   : > { %16630 = vst [vmem:[#allocation105_spill] sm:$0xff] %v14320_v50  ;;  %11362 = vmatmul.msk.bf16.gmra.mxu3 %vm3277_vm9, %v4397_v55  ;;  %11553 = vmatmul.msk.bf16.gmra.mxu1 %vm3277_vm9, %v12105_v38  ;;  %v12129_v50 = vld [vmem:[#allocation2 + $0x54] sm:$0xff]  ;;  %v9603_v55 = vrot.slane %v9601_v10, 4  ;;  %v12564_v38 = vld [vmem:[#allocation2 + $0x8c] sm:$0x1]  ;;  %v9776_v56 = vunpack.c.l.b16 %v9602_v37 }
 0x368   : > { %v14326_v46 = vpop.f32.mrf.mxu0  ;;  %v4173_v4 = vrot.slane %v12564_v38, 5  ;;  %v5748_v3 = vor.u32 %v5747_v12, %v5744_v16  ;;  %v5763_v38 = vrot.slane %v5761_v27, 5  ;;  %v5396_v12 = vld [vmem:[#allocation2 + $0xa8] sm:$0xf]  ;;  %v12565_v37 = vld [vmem:[#allocation2 + $0x94] sm:$0xf] }
 0x369   : > { %11587 = vmatmul.msk.bf16.gmra.mxu2 %vm3277_vm9, %v6304_v59  ;;  %v9605_v63 = vsel %vm13012_vm15, %v9603_v55, %v9604_v29  ;;  %v11315_v59 = vrot.slane %v4003_v9, 9  ;;  %v3845_v29 = vadd.f32 %v13976_v26, %v13219_v5  ;;  %v5766_v26 = vshrl.u32 %v5396_v12, 16 }
 0x36a   : > { %v4558_v13 = vpop.f32.mrf.mxu3  ;;  %v4174_v24 = vsel %vm13012_vm15, %v4172_v15, %v4173_v4  ;;  %v5749_v16 = vrot.slane %v5748_v3, 4  ;;  %v5769_v3 = vshll.u32 %v5396_v12, 16 }
 0x36b   : > { %v14329_v14 = vadd.f32 %v4558_v13, %v3843_v41  ;;  %11837 = vmatmul.msk.bf16.gmra.mxu0 %vm3277_vm9, %v12129_v50  ;;  %v5759_v13 = vrot.slane %v5758_v32, 4  ;;  %v9777_v41 = vunpack.c.l.b16 %v9605_v63  ;;  %v4171_v10 = vsel %vm13012_vm15, %v11315_v59, %v4170_v21 }
 0x36c   : > { %v14334_v39 = vpop.f32.mrf.mxu1  ;;  %v14341_v25 = vpop.f32.mrf.mxu2  ;;  %v4346_v17 = vunpack.c.l.b16 %v4174_v24  ;;  %v5775_v50 = vshll.u32 %v5397_v43, 16  ;;  %v5779_v32 = vshrl.u32 %v5397_v43, 16  ;;  %v4345_v27 = vunpack.c.l.b16 %v4171_v10 }
 0x36d   : > { %16631 = vst [vmem:[#allocation106_spill] sm:$0xff] %v14334_v39  ;;  %v14345_v39 = vpack.c.b16 %v9777_v41, %v9776_v56  ;;  %v5764_v15 = vsel %vm12873_vm8, %v5759_v13, %v5763_v38  ;;  %v5754_v21 = vsel %vm12873_vm8, %v5749_v16, %v14318_v22  ;;  %v4177_v63 = vrot.slane %v12565_v37, 5  ;;  %v12106_v56 = vld [vmem:[#allocation2 + $0x15c] sm:$0xff]  ;;  %v8110_v41 = vld [vmem:[#allocation2 + $0xac] sm:$0xf] }
 0x36e   : > { %16632 = vst [vmem:[#allocation107_spill] sm:$0xff] %v14341_v25  ;;  %v6254_v5 = vunpack.c.l.b16 %v5764_v15  ;;  %v14360_v59 = vrot.slane %v5775_v50, 5  ;;  %v4398_v13 = vpack.c.b16 %v4346_v17, %v4345_v27  ;;  %v5781_v43 = vrot.slane %v5779_v32, 4  ;;  %v9406_v38 = vld [vmem:[#allocation2 + $0xa8] sm:$0xe] }
 0x36f   : > { %v6253_v10 = vunpack.c.l.b16 %v5754_v21  ;;  %v8111_v22 = vld [vmem:[#allocation2 + $0xb0] sm:$0x1]  ;;  %v11924_v37 = vrot.slane %v9406_v38, 9  ;;  %v9608_v12 = vrot.slane %v8110_v41, 5  ;;  %v3848_v17 = vadd.f32 %v13989_v45, %v13234_v44  ;;  %v4004_v44 = vld [vmem:[#allocation2 + $0x90] sm:$0xe] }
 0x370   : > { %v14349_v4 = vpop.f32.mrf.mxu0  ;;  %v5398_v15 = vld [vmem:[#allocation2 + $0xb0] sm:$0x1]  ;;  %v5768_v32 = vrot.slane %v5766_v26, 4  ;;  %v5771_v27 = vrot.slane %v5769_v3, 5 }
 0x371   : > { %v6305_v16 = vpack.c.b16 %v6254_v5, %v6253_v10  ;;  %v9609_v5 = vsel %vm13012_vm15, %v11924_v37, %v9608_v12  ;;  %v9611_v10 = vrot.slane %v8111_v22, 5  ;;  %v5785_v45 = vshll.u32 %v5398_v15, 16 }
 0x372   : > { %v4560_v55 = vpop.f32.mrf.mxu3  ;;  %v9778_v22 = vunpack.c.l.b16 %v9609_v5 }
 0x373   : > { %v14353_v9 = vadd.f32 %v4560_v55, %v3845_v29  ;;  %v4179_v55 = vrot.slane %v4177_v63, 4 }
 0x374   : > { %v14358_v24 = vpop.f32.mrf.mxu1  ;;  %v14362_v29 = vpop.f32.mrf.mxu2 }
 0x375   : > { %16633 = vst [vmem:[#allocation108_spill] sm:$0xff] %v14358_v24  ;;  %v5782_v24 = vor.u32 %v5781_v43, %v14360_v59  ;;  %v5772_v43 = vor.u32 %v5771_v27, %v5768_v32  ;;  %v5399_v27 = vld [vmem:[#allocation2 + $0xb4] sm:$0xf] }
 0x376   : > { %16634 = vst [vmem:[#allocation109_spill] sm:$0xff] %v14362_v29  ;;  %v12130_v29 = vld [vmem:[#allocation2 + $0x60] sm:$0xff] }
 0x377   : > { %11363 = vmatmul.msk.bf16.gmra.mxu3 %vm3277_vm9, %v4398_v13  ;;  %11554 = vmatmul.msk.bf16.gmra.mxu1 %vm3277_vm9, %v12106_v56  ;;  %v12566_v13 = vld [vmem:[#allocation2 + $0x98] sm:$0x1]  ;;  %v9610_v56 = vrot.slane %v9608_v12, 4  ;;  %v5783_v37 = vrot.slane %v5782_v24, 4  ;;  %v5773_v24 = vrot.slane %v5772_v43, 4 }
 0x378   : > { %v14368_v50 = vpop.f32.mrf.mxu0  ;;  %v4180_v25 = vrot.slane %v12566_v13, 5  ;;  %v5400_v12 = vld [vmem:[#allocation2 + $0xb8] sm:$0xf]  ;;  %v5787_v13 = vrot.slane %v5785_v45, 5 }
 0x379   : > { %11588 = vmatmul.msk.bf16.gmra.mxu2 %vm3277_vm9, %v6305_v16  ;;  %v9612_v3 = vsel %vm13012_vm15, %v9610_v56, %v9611_v10  ;;  %v11316_v16 = vrot.slane %v4004_v44, 9  ;;  %v5803_v5 = vshrl.u32 %v5400_v12, 16 }
 0x37a   : > { %v4563_v21 = vpop.f32.mrf.mxu3  ;;  %v4181_v26 = vsel %vm13012_vm15, %v4179_v55, %v4180_v25  ;;  %v3850_v25 = vadd.f32 %v14003_v40, %v13244_v19  ;;  %v5788_v32 = vsel %vm12873_vm8, %v5783_v37, %v5787_v13  ;;  %v5790_v19 = vshrl.u32 %v5399_v27, 16 }
 0x37b   : > { %v14373_v38 = vadd.f32 %v4563_v21, %v3848_v17  ;;  %11838 = vmatmul.msk.bf16.gmra.mxu0 %vm3277_vm9, %v12130_v29  ;;  %v9779_v17 = vunpack.c.l.b16 %v9612_v3  ;;  %v4178_v29 = vsel %vm13012_vm15, %v11316_v16, %v4177_v63  ;;  %v5778_v63 = vsel %vm12873_vm8, %v5773_v24, %v14360_v59  ;;  %v8114_v59 = vld [vmem:[#allocation2 + $0xbc] sm:$0x1] }
 0x37c   : > { %v14376_v41 = vpop.f32.mrf.mxu1  ;;  %v14383_v21 = vpop.f32.mrf.mxu2  ;;  %v4347_v44 = vunpack.c.l.b16 %v4178_v29  ;;  %v5793_v40 = vshll.u32 %v5399_v27, 16  ;;  %v5805_v37 = vrot.slane %v5803_v5, 4  ;;  %v6255_v13 = vunpack.c.l.b16 %v5778_v63  ;;  %v12567_v29 = vld [vmem:[#allocation2 + $0xa0] sm:$0xf] }
 0x37d   : > { %16635 = vst [vmem:[#allocation110_spill] sm:$0xff] %v14373_v38  ;;  %v14385_v15 = vpack.c.b16 %v9779_v17, %v9778_v22  ;;  %v5799_v38 = vshll.u32 %v5400_v12, 16  ;;  %v12107_v22 = vld [vmem:[#allocation2 + $0x168] sm:$0xff]  ;;  %v8113_v17 = vld [vmem:[#allocation2 + $0xb8] sm:$0xf] }
 0x37e   : > { %16636 = vst [vmem:[#allocation111_spill] sm:$0xff] %v14376_v41  ;;  %v4348_v41 = vunpack.c.l.b16 %v4181_v26  ;;  %v6256_v26 = vunpack.c.l.b16 %v5788_v32  ;;  %v9407_v12 = vld [vmem:[#allocation2 + $0xb4] sm:$0xe]  ;;  %v5401_v32 = vld [vmem:[#allocation2 + $0xbc] sm:$0x1] }
 0x37f   : > { %16637 = vst [vmem:[#allocation112_spill] sm:$0xff] %v14383_v21  ;;  %v14402_v3 = vrot.slane %v5799_v38, 5  ;;  %v11925_v27 = vrot.slane %v9407_v12, 9  ;;  %v9615_v38 = vrot.slane %v8113_v17, 5  ;;  %v4005_v17 = vld [vmem:[#allocation2 + $0x9c] sm:$0xe] }
 0x380   : > { %v14391_v55 = vpop.f32.mrf.mxu0  ;;  %v4399_v43 = vpack.c.b16 %v4348_v41, %v4347_v44  ;;  %v6306_v24 = vpack.c.b16 %v6256_v26, %v6255_v13  ;;  %v3853_v41 = vadd.f32 %v14016_v1, %v13265_v62  ;;  %v5795_v44 = vrot.slane %v5793_v40, 5 }
 0x381   : > { %v5806_v63 = vor.u32 %v5805_v37, %v14402_v3  ;;  %v9618_v26 = vrot.slane %v8114_v59, 5  ;;  %v5809_v62 = vshll.u32 %v5401_v32, 16 }
 0x382   : > { %v4565_v56 = vpop.f32.mrf.mxu3 }
 0x383   : > { %v14395_v10 = vadd.f32 %v4565_v56, %v3850_v25  ;;  %v4184_v25 = vrot.slane %v12567_v29, 5  ;;  %v5792_v56 = vrot.slane %v5790_v19, 4  ;;  %v12131_v29 = vld [vmem:[#allocation2 + $0x6c] sm:$0xff]  ;;  %v12568_v19 = vld [vmem:[#allocation2 + $0xa4] sm:$0x1]  ;;  %v5807_v21 = vrot.slane %v5806_v63, 4 }
 0x384   : > { %v14400_v45 = vpop.f32.mrf.mxu1  ;;  %v14404_v16 = vpop.f32.mrf.mxu2  ;;  %v4187_v40 = vrot.slane %v12568_v19, 5  ;;  %v5811_v32 = vrot.slane %v5809_v62, 5 }
 0x385   : > { %16638 = vst [vmem:[#allocation113_spill] sm:$0xff] %v14395_v10  ;;  %v5796_v12 = vor.u32 %v5795_v44, %v5792_v56 }
 0x386   : > { %16639 = vst [vmem:[#allocation114_spill] sm:$0xff] %v14400_v45 }
 0x387   : > { %16640 = vst [vmem:[#allocation115_spill] sm:$0xff] %v14404_v16  ;;  %11364 = vmatmul.msk.bf16.gmra.mxu3 %vm3277_vm9, %v4399_v43  ;;  %11555 = vmatmul.msk.bf16.gmra.mxu1 %vm3277_vm9, %v12107_v22  ;;  %v4186_v16 = vrot.slane %v4184_v25, 4  ;;  %v9616_v43 = vsel %vm13012_vm15, %v11925_v27, %v9615_v38  ;;  %v9617_v22 = vrot.slane %v9615_v38, 4  ;;  %v5797_v63 = vrot.slane %v5796_v12, 4  ;;  %v12569_v12 = vld [vmem:[#allocation2 + $0xac] sm:$0xf] }
 0x388   : > { %v14410_v5 = vpop.f32.mrf.mxu0  ;;  %v9780_v27 = vunpack.c.l.b16 %v9616_v43  ;;  %v5812_v43 = vsel %vm12873_vm8, %v5807_v21, %v5811_v32  ;;  %v8116_v21 = vld [vmem:[#allocation2 + $0xc4] sm:$0xf] }
 0x389   : > { %11589 = vmatmul.msk.bf16.gmra.mxu2 %vm3277_vm9, %v6306_v24  ;;  %v9619_v37 = vsel %vm13012_vm15, %v9617_v22, %v9618_v26  ;;  %v4188_v24 = vsel %vm13012_vm15, %v4186_v16, %v4187_v40  ;;  %v3855_v22 = vadd.f32 %v14033_v23, %v13281_v36  ;;  %v6258_v36 = vunpack.c.l.b16 %v5812_v43 }
 0x38a   : > { %v4568_v45 = vpop.f32.mrf.mxu3  ;;  %v9781_v38 = vunpack.c.l.b16 %v9619_v37  ;;  %v4350_v44 = vunpack.c.l.b16 %v4188_v24  ;;  %v3858_v43 = vadd.f32 %v14054_v57, %v13296_v61 }
 0x38b   : > { %v14415_v13 = vadd.f32 %v4568_v45, %v3853_v41  ;;  %11839 = vmatmul.msk.bf16.gmra.mxu0 %vm3277_vm9, %v12131_v29  ;;  %v11317_v45 = vrot.slane %v4005_v17, 9  ;;  %v5403_v41 = vld [vmem:[#allocation2 + $0xc4] sm:$0xf]  ;;  %v5402_v17 = vld [vmem:[#allocation2 + $0xc0] sm:$0xf] }
 0x38c   : > { %v14418_v1 = vpop.f32.mrf.mxu1  ;;  %v14423_v59 = vpop.f32.mrf.mxu2  ;;  %v5823_v16 = vshll.u32 %v5403_v41, 16  ;;  %v5827_v62 = vshrl.u32 %v5403_v41, 16  ;;  %v5817_v41 = vshll.u32 %v5402_v17, 16 }
 0x38d   : > { %16641 = vst [vmem:[#allocation116_spill] sm:$0xff] %v14415_v13  ;;  %v4185_v29 = vsel %vm13012_vm15, %v11317_v45, %v4184_v25  ;;  %v5802_v25 = vsel %vm12873_vm8, %v5797_v63, %v14402_v3  ;;  %v5814_v45 = vshrl.u32 %v5402_v17, 16  ;;  %v8117_v3 = vld [vmem:[#allocation2 + $0xc8] sm:$0x1] }
 0x38e   : > { %16642 = vst [vmem:[#allocation117_spill] sm:$0xff] %v14418_v1  ;;  %v14427_v1 = vpack.c.b16 %v9781_v38, %v9780_v27  ;;  %v4349_v40 = vunpack.c.l.b16 %v4185_v29  ;;  %v12108_v27 = vld [vmem:[#allocation2 + $0x174] sm:$0xff]  ;;  %v4191_v38 = vrot.slane %v12569_v12, 5  ;;  %v6257_v32 = vunpack.c.l.b16 %v5802_v25 }
 0x38f   : > { %16643 = vst [vmem:[#allocation118_spill] sm:$0xff] %v14423_v59  ;;  %v5829_v29 = vrot.slane %v5827_v62, 4  ;;  %v5816_v25 = vrot.slane %v5814_v45, 4  ;;  %v4006_v62 = vld [vmem:[#allocation2 + $0xa8] sm:$0xe]  ;;  %v5819_v59 = vrot.slane %v5817_v41, 5 }
 0x390   : > { %16644 = vst [vmem:[#allocation119_spill] sm:$0xff] %v14427_v1  ;;  %v14433_v56 = vpop.f32.mrf.mxu0  ;;  %v4400_v23 = vpack.c.b16 %v4350_v44, %v4349_v40  ;;  %v6307_v63 = vpack.c.b16 %v6258_v36, %v6257_v32  ;;  %v9622_v44 = vrot.slane %v8116_v21, 5  ;;  %v4193_v12 = vrot.slane %v4191_v38, 4  ;;  %v12570_v36 = vld [vmem:[#allocation2 + $0xb0] sm:$0x1] }
 0x391   : > { %v4194_v61 = vrot.slane %v12570_v36, 5  ;;  %v11318_v41 = vrot.slane %v4006_v62, 9  ;;  %v5406_v36 = vld [vmem:[#allocation2 + $0xe8] sm:$0xf] }
 0x392   : > { %v4570_v26 = vpop.f32.mrf.mxu3 }
 0x393   : > { %v14437_v19 = vadd.f32 %v4570_v26, %v3855_v22  ;;  %v14446_v22 = vrot.slane %v5823_v16, 5  ;;  %v9408_v26 = vld [vmem:[#allocation2 + $0xc0] sm:$0xe] }
 0x394   : > { %v14442_v37 = vpop.f32.mrf.mxu1  ;;  %v14444_v24 = vpop.f32.mrf.mxu2  ;;  %v11926_v17 = vrot.slane %v9408_v26, 9 }
 0x395   : > { %16645 = vst [vmem:[#allocation120_spill] sm:$0xff] %v14437_v19  ;;  %v9624_v19 = vrot.slane %v9622_v44, 4 }
 0x396   : > { %16646 = vst [vmem:[#allocation121_spill] sm:$0xff] %v14442_v37  ;;  %v5404_v37 = vld [vmem:[#allocation2 + $0xc8] sm:$0x1]  ;;  %v9623_v57 = vsel %vm13012_vm15, %v11926_v17, %v9622_v44  ;;  %v4192_v44 = vsel %vm13012_vm15, %v11318_v41, %v4191_v38  ;;  %v5405_v38 = vld [vmem:[#allocation2 + $0xe4] sm:$0xf] }
 0x397   : > { %16647 = vst [vmem:[#allocation122_spill] sm:$0xff] %v14444_v24  ;;  %11365 = vmatmul.msk.bf16.gmra.mxu3 %vm3277_vm9, %v4400_v23  ;;  %11556 = vmatmul.msk.bf16.gmra.mxu1 %vm3277_vm9, %v12108_v27  ;;  %v12132_v24 = vld [vmem:[#allocation2 + $0x78] sm:$0xff]  ;;  %v5830_v23 = vor.u32 %v5829_v29, %v14446_v22  ;;  %v9625_v27 = vrot.slane %v8117_v3, 5  ;;  %v5833_v45 = vshll.u32 %v5404_v37, 16  ;;  %v4195_v29 = vsel %vm13012_vm15, %v4193_v12, %v4194_v61 }
 0x398   : > { %v14452_v40 = vpop.f32.mrf.mxu0  ;;  %v5820_v3 = vor.u32 %v5819_v59, %v5816_v25  ;;  %v4352_v62 = vunpack.c.l.b16 %v4195_v29  ;;  %v5847_v25 = vshll.u32 %v5406_v36, 16  ;;  %v12571_v29 = vld [vmem:[#allocation2 + $0xb8] sm:$0xf] }
 0x399   : > { %11590 = vmatmul.msk.bf16.gmra.mxu2 %vm3277_vm9, %v6307_v63  ;;  %v9626_v32 = vsel %vm13012_vm15, %v9624_v19, %v9625_v27  ;;  %v5831_v63 = vrot.slane %v5830_v23, 4  ;;  %v5835_v17 = vrot.slane %v5833_v45, 5  ;;  %v3860_v19 = vadd.f32 %v14076_v35, %v13310_v58 }
 0x39a   : > { %v4573_v16 = vpop.f32.mrf.mxu3  ;;  %v5821_v27 = vrot.slane %v5820_v3, 4  ;;  %v5851_v23 = vshrl.u32 %v5406_v36, 16  ;;  %v4198_v3 = vrot.slane %v12571_v29, 5  ;;  %v14488_v36 = vrot.slane %v5847_v25, 5  ;;  %v12133_v25 = vld [vmem:[#allocation2 + $0x84] sm:$0xff] }
 0x39b   : > { %v14455_v1 = vadd.f32 %v4573_v16, %v3858_v43  ;;  %11840 = vmatmul.msk.bf16.gmra.mxu0 %vm3277_vm9, %v12132_v24  ;;  %v9782_v43 = vunpack.c.l.b16 %v9623_v57  ;;  %v9783_v16 = vunpack.c.l.b16 %v9626_v32  ;;  %v5836_v59 = vsel %vm12873_vm8, %v5831_v63, %v5835_v17  ;;  %v12109_v32 = vld [vmem:[#allocation2 + $0x180] sm:$0xff] }
 0x39c   : > { %v14460_v21 = vpop.f32.mrf.mxu1  ;;  %v14467_v26 = vpop.f32.mrf.mxu2  ;;  %v4351_v57 = vunpack.c.l.b16 %v4192_v44  ;;  %v5826_v58 = vsel %vm12873_vm8, %v5821_v27, %v14446_v22  ;;  %v6260_v41 = vunpack.c.l.b16 %v5836_v59  ;;  %v5838_v63 = vshrl.u32 %v5405_v38, 16  ;;  %v12121_v22 = vld [vmem:[%s16506_s4 + $0xa8] sm:$0xff] }
 0x39d   : > { %16648 = vst [vmem:[#allocation123_spill] sm:$0xff] %v14455_v1  ;;  %v14471_v24 = vpack.c.b16 %v9783_v16, %v9782_v43  ;;  %v5841_v16 = vshll.u32 %v5405_v38, 16  ;;  %v5853_v17 = vrot.slane %v5851_v23, 4  ;;  %v6259_v44 = vunpack.c.l.b16 %v5826_v58  ;;  %v5407_v27 = vld [vmem:[#allocation2 + $0xec] sm:$0x1]  ;;  %7260 = vmatpush.bf16.msra.mxu3 %v12121_v22 }
 0x39e   : > { %16649 = vst [vmem:[#allocation124_spill] sm:$0xff] %v14460_v21  ;;  %v4401_v35 = vpack.c.b16 %v4352_v62, %v4351_v57  ;;  %v4200_v23 = vrot.slane %v4198_v3, 4  ;;  %v5840_v57 = vrot.slane %v5838_v63, 4  ;;  %v12165_v63 = vld [vmem:[%s16506_s4 + $0x108] sm:$0xff] }
 0x39f   : > { %16650 = vst [vmem:[#allocation125_spill] sm:$0xff] %v14467_v26  ;;  %v5843_v38 = vrot.slane %v5841_v16, 5  ;;  %9976 = vmatpush.bf16.msra.mxu2 %v12165_v63 }
 0x3a0   : > { %16651 = vst [vmem:[#allocation126_spill] sm:$0xff] %v14471_v24  ;;  %v14475_v37 = vpop.f32.mrf.mxu0 }
 0x3a2   : > { %v4575_v12 = vpop.f32.mrf.mxu3 }
 0x3a3   : > { %v14479_v61 = vadd.f32 %v4575_v12, %v3860_v19  ;;  %v3863_v19 = vadd.f32 %v14091_v28, %v13325_v42  ;;  %v6308_v12 = vpack.c.b16 %v6260_v41, %v6259_v44  ;;  %v12572_v42 = vld [vmem:[#allocation2 + $0xbc] sm:$0x1]  ;;  %v5857_v41 = vshll.u32 %v5407_v27, 16  ;;  %v5409_v44 = vld [vmem:[#allocation2 + $0xf4] sm:$0xf] }
 0x3a4   : > { %v14481_v45 = vpop.f32.mrf.mxu1  ;;  %v14486_v43 = vpop.f32.mrf.mxu2  ;;  %v4201_v28 = vrot.slane %v12572_v42, 5  ;;  %v5871_v42 = vshll.u32 %v5409_v44, 16  ;;  %v5875_v27 = vshrl.u32 %v5409_v44, 16 }
 0x3a5   : > { %16652 = vst [vmem:[#allocation127_spill] sm:$0xff] %v14479_v61 }
 0x3a6   : > { %16653 = vst [vmem:[#allocation128_spill] sm:$0xff] %v14481_v45  ;;  %v4202_v22 = vsel %vm13012_vm15, %v4200_v23, %v4201_v28  ;;  %v5859_v45 = vrot.slane %v5857_v41, 5 }
 0x3a7   : > { %16654 = vst [vmem:[#allocation129_spill] sm:$0xff] %v14486_v43  ;;  %11366 = vmatmul.msk.bf16.gmra.mxu3 %vm3277_vm9, %v4401_v35  ;;  %11557 = vmatmul.msk.bf16.gmra.mxu1 %vm3277_vm9, %v12109_v32  ;;  %v5854_v35 = vor.u32 %v5853_v17, %v14488_v36  ;;  %v4007_v32 = vld [vmem:[#allocation2 + $0xb4] sm:$0xe]  ;;  %v4354_v23 = vunpack.c.l.b16 %v4202_v22  ;;  %v14526_v43 = vrot.slane %v5871_v42, 5 }
 0x3a8   : > { %v14497_v62 = vpop.f32.mrf.mxu0  ;;  %v11319_v17 = vrot.slane %v4007_v32, 9  ;;  %v3865_v32 = vadd.f32 %v14110_v30, %v13347_v60  ;;  %v12573_v30 = vld [vmem:[#allocation2 + $0xdc] sm:$0xf] }
 0x3a9   : > { %11591 = vmatmul.msk.bf16.gmra.mxu2 %vm3277_vm9, %v6308_v12  ;;  %v5855_v12 = vrot.slane %v5854_v35, 4 }
 0x3aa   : > { %v4578_v59 = vpop.f32.mrf.mxu3 }
 0x3ab   : > { %v14500_v58 = vadd.f32 %v4578_v59, %v3863_v19  ;;  %11841 = vmatmul.msk.bf16.gmra.mxu0 %vm3277_vm9, %v12133_v25  ;;  %v5844_v19 = vor.u32 %v5843_v38, %v5840_v57  ;;  %v5408_v59 = vld [vmem:[#allocation2 + $0xf0] sm:$0xf]  ;;  %v12161_v25 = vld [vmem:[%s16506_s4 + $0xe8] sm:$0xff] }
 0x3ac   : > { %v14503_v29 = vpop.f32.mrf.mxu1  ;;  %v14509_v16 = vpop.f32.mrf.mxu2  ;;  %9167 = vmatpush.bf16.msra.mxu1 %v12161_v25  ;;  %v5862_v57 = vshrl.u32 %v5408_v59, 16  ;;  %v5865_v38 = vshll.u32 %v5408_v59, 16  ;;  %v12110_v59 = vld [vmem:[#allocation2 + $0x18c] sm:$0xff]  ;;  %v4008_v25 = vld [vmem:[#allocation2 + $0xd8] sm:$0xe] }
 0x3ad   : > { %16655 = vst [vmem:[#allocation130_spill] sm:$0xff] %v14500_v58  ;;  %v5845_v28 = vrot.slane %v5844_v19, 4 }
 0x3ae   : > { %16656 = vst [vmem:[#allocation131_spill] sm:$0xff] %v14503_v29  ;;  %v4199_v29 = vsel %vm13012_vm15, %v11319_v17, %v4198_v3  ;;  %v5877_v3 = vrot.slane %v5875_v27, 4  ;;  %v4205_v17 = vrot.slane %v12573_v30, 5  ;;  %v5864_v26 = vrot.slane %v5862_v57, 4 }
 0x3af   : > { %16657 = vst [vmem:[#allocation132_spill] sm:$0xff] %v14509_v16  ;;  %v5860_v16 = vsel %vm12873_vm8, %v5855_v12, %v5859_v45  ;;  %v4353_v63 = vunpack.c.l.b16 %v4199_v29  ;;  %v5850_v60 = vsel %vm12873_vm8, %v5845_v28, %v14488_v36  ;;  %v5867_v45 = vrot.slane %v5865_v38, 5  ;;  %v12160_v29 = vld [vmem:[%s16506_s4 + $0xe0] sm:$0xff]  ;;  %v5410_v36 = vld [vmem:[#allocation2 + $0xf8] sm:$0x1] }
 0x3b0   : > { %v14520_v21 = vpop.f32.mrf.mxu0  ;;  %v6262_v19 = vunpack.c.l.b16 %v5860_v16  ;;  %v6261_v42 = vunpack.c.l.b16 %v5850_v60  ;;  %v5878_v27 = vor.u32 %v5877_v3, %v14526_v43  ;;  %v12574_v16 = vld [vmem:[#allocation2 + $0xe0] sm:$0x1]  ;;  %9168 = vmatpush.bf16.msra.mxu1 %v12160_v29  ;;  %v3868_v57 = vadd.f32 %v14125_v2, %v13382_v33 }
 0x3b1   : > { %v4402_v22 = vpack.c.b16 %v4354_v23, %v4353_v63  ;;  %v4207_v23 = vrot.slane %v4205_v17, 4  ;;  %v5868_v63 = vor.u32 %v5867_v45, %v5864_v26  ;;  %v12576_v26 = vld [vmem:[#allocation2 + $0x1c] sm:$0xf] }
 0x3b2   : > { %v4580_v35 = vpop.f32.mrf.mxu3  ;;  %v6309_v28 = vpack.c.b16 %v6262_v19, %v6261_v42  ;;  %v5879_v3 = vrot.slane %v5878_v27, 4  ;;  %v8179_v19 = vshll.u32 %v12576_v26, 16  ;;  %v8183_v45 = vshrl.u32 %v12576_v26, 16  ;;  %v9410_v42 = vld [vmem:[#allocation2 + $0xf0] sm:$0xe] }
 0x3b3   : > { %v14524_v44 = vadd.f32 %v4580_v35, %v3865_v32  ;;  %v11320_v32 = vrot.slane %v4008_v25, 9  ;;  %v4208_v35 = vrot.slane %v12574_v16, 5  ;;  %v14548_v25 = vld [vmem:[#allocation2 + $0xe8] sm:$0xf]  ;;  %v8073_v16 = vld [vmem:[#allocation2 + $0x18] sm:$0xf] }
 0x3b4   : > { %v14528_v41 = vpop.f32.mrf.mxu1  ;;  %v14536_v12 = vpop.f32.mrf.mxu2  ;;  %v14569_v26 = vrot.slane %v8179_v19, 5 }
 0x3b5   : > { %16658 = vst [vmem:[#allocation133_spill] sm:$0xff] %v14524_v44  ;;  %v4206_v33 = vsel %vm13012_vm15, %v11320_v32, %v4205_v17  ;;  %v4209_v2 = vsel %vm13012_vm15, %v4207_v23, %v4208_v35  ;;  %v14563_v32 = vld [vmem:[#allocation2 + $0x100] sm:$0xf]  ;;  %v11928_v23 = vrot.slane %v9410_v42, 9 }
 0x3b6   : > { %16659 = vst [vmem:[#allocation134_spill] sm:$0xff] %v14528_v41  ;;  %v5881_v41 = vshll.u32 %v5410_v36, 16  ;;  %v5869_v36 = vrot.slane %v5868_v63, 4  ;;  %v4355_v44 = vunpack.c.l.b16 %v4206_v33  ;;  %v4356_v58 = vunpack.c.l.b16 %v4209_v2  ;;  %v4009_v2 = vld [vmem:[#allocation2 + $0xe4] sm:$0xe] }
 0x3b7   : > { %16660 = vst [vmem:[#allocation135_spill] sm:$0xff] %v14536_v12  ;;  %11367 = vmatmul.msk.bf16.gmra.mxu3 %vm3277_vm9, %v4402_v22  ;;  %11558 = vmatmul.msk.bf16.gmra.mxu1 %vm3277_vm9, %v12110_v59  ;;  %v12134_v22 = vld [vmem:[#allocation2 + $0x90] sm:$0xff]  ;;  %v16664_v63 = vrot.slane %v14548_v25, 5  ;;  %v5899_v19 = vshrl.u32 %v14563_v32, 16 }
 0x3b8   : > { %v14543_v38 = vpop.f32.mrf.mxu0  ;;  %v8122_v59 = vld [vmem:[#allocation2 + $0xf4] sm:$0xf]  ;;  %v5883_v29 = vrot.slane %v5881_v41, 5  ;;  %v5874_v17 = vsel %vm12873_vm8, %v5869_v36, %v14526_v43  ;;  %v8185_v41 = vrot.slane %v8183_v45, 4  ;;  %v4403_v61 = vpack.c.b16 %v4356_v58, %v4355_v44 }
 0x3b9   : > { %11592 = vmatmul.msk.bf16.gmra.mxu2 %vm3277_vm9, %v6309_v28  ;;  %v9636_v27 = vrot.slane %v8122_v59, 5  ;;  %v4214_v59 = vrot.slane %v16664_v63, 4  ;;  %v5895_v63 = vshll.u32 %v14563_v32, 16 }
 0x3ba   : > { %v4583_v30 = vpop.f32.mrf.mxu3  ;;  %v5884_v35 = vsel %vm12873_vm8, %v5879_v3, %v5883_v29  ;;  %v5411_v29 = vld [vmem:[#allocation2 + $0xfc] sm:$0xf]  ;;  %v8186_v13 = vor.u32 %v8185_v41, %v14569_v26 }
 0x3bb   : > { %v14545_v60 = vadd.f32 %v4583_v30, %v3868_v57  ;;  %11842 = vmatmul.msk.bf16.gmra.mxu0 %vm3277_vm9, %v12134_v22  ;;  %v12577_v57 = vld [vmem:[#allocation2 + $0xec] sm:$0x1]  ;;  %v8123_v22 = vld [vmem:[#allocation2 + $0xf8] sm:$0x1]  ;;  %v9637_v43 = vsel %vm13012_vm15, %v11928_v23, %v9636_v27  ;;  %v9638_v36 = vrot.slane %v9636_v27, 4  ;;  %v6263_v27 = vunpack.c.l.b16 %v5874_v17 }
 0x3bc   : > { %v14551_v12 = vpop.f32.mrf.mxu1  ;;  %v4215_v28 = vrot.slane %v12577_v57, 5  ;;  %v14558_v30 = vpop.f32.mrf.mxu2  ;;  %v9639_v42 = vrot.slane %v8123_v22, 5  ;;  %v11321_v22 = vrot.slane %v4009_v2, 9  ;;  %v9786_v23 = vunpack.c.l.b16 %v9637_v43  ;;  %v12578_v17 = vld [vmem:[#allocation2 + $0x20] sm:$0x1] }
 0x3bd   : > { %16661 = vst [vmem:[#allocation136_spill] sm:$0xff] %v14545_v60  ;;  %v8173_v60 = vshll.u32 %v8073_v16, 16  ;;  %v5886_v10 = vshrl.u32 %v5411_v29, 16 }
 0x3be   : > { %16662 = vst [vmem:[#allocation137_spill] sm:$0xff] %v14551_v12  ;;  %v8170_v12 = vshrl.u32 %v8073_v16, 16  ;;  %v3870_v16 = vadd.f32 %v14144_v52, %v13400_v8  ;;  %v12111_v8 = vld [vmem:[#allocation2 + $0x198] sm:$0xff]  ;;  %v6264_v52 = vunpack.c.l.b16 %v5884_v35  ;;  %v9640_v24 = vsel %vm13012_vm15, %v9638_v36, %v9639_v42 }
 0x3bf   : > { %16663 = vst [vmem:[#allocation138_spill] sm:$0xff] %v14558_v30  ;;  %v8175_v3 = vrot.slane %v8173_v60, 5  ;;  %v4216_v60 = vsel %vm13012_vm15, %v4214_v59, %v4215_v28  ;;  %v14590_v35 = vrot.slane %v5895_v63, 5  ;;  %v5901_v36 = vrot.slane %v5899_v19, 4 }
 0x3c0   : > { %v14573_v33 = vpop.f32.mrf.mxu0  ;;  %v8172_v30 = vrot.slane %v8170_v12, 4  ;;  %v9787_v12 = vunpack.c.l.b16 %v9640_v24  ;;  %v6310_v24 = vpack.c.b16 %v6264_v52, %v6263_v27  ;;  %v8189_v28 = vshll.u32 %v12578_v17, 16  ;;  %v12135_v27 = vld [vmem:[#allocation2 + $0x9c] sm:$0xff] }
 0x3c1   : > { %v16669_v59 = vrot.slane %v14548_v25, 5  ;;  %v4358_v2 = vunpack.c.l.b16 %v4216_v60  ;;  %v8187_v63 = vrot.slane %v8186_v13, 4  ;;  %v5888_v19 = vrot.slane %v5886_v10, 4  ;;  %v8125_v17 = vld [vmem:[#allocation2 + $0x100] sm:$0xf] }
 0x3c2   : > { %v4585_v57 = vpop.f32.mrf.mxu3  ;;  %v8176_v44 = vor.u32 %v8175_v3, %v8172_v30  ;;  %v14592_v42 = vpack.c.b16 %v9787_v12, %v9786_v23  ;;  %v3873_v3 = vadd.f32 %v14162_v34, %v13416_v49  ;;  %v5902_v25 = vor.u32 %v5901_v36, %v14590_v35  ;;  %v12579_v12 = vld [vmem:[#allocation2 + $0x28] sm:$0xf]  ;;  %v14610_v13 = vld [vmem:[#allocation2 + $0x30] sm:$0xf] }
 0x3c3   : > { %v14579_v45 = vadd.f32 %v4585_v57, %v3870_v16  ;;  %v5889_v16 = vshll.u32 %v5411_v29, 16  ;;  %v8076_v57 = vld [vmem:[#allocation2 + $0x24] sm:$0xf]  ;;  %v4213_v41 = vsel %vm13012_vm15, %v11321_v22, %v16669_v59  ;;  %v8203_v22 = vshll.u32 %v12579_v12, 16 }
 0x3c4   : > { %v14583_v1 = vpop.f32.mrf.mxu1  ;;  %v14588_v58 = vpop.f32.mrf.mxu2  ;;  %16668 = vst [vmem:[#allocation142_spill] sm:$0xff] %v14592_v42  ;;  %v8194_v43 = vshrl.u32 %v8076_v57, 16  ;;  %v8197_v30 = vshll.u32 %v8076_v57, 16  ;;  %v8177_v23 = vrot.slane %v8176_v44, 4  ;;  %v8207_v60 = vshrl.u32 %v12579_v12, 16  ;;  %v16674_v42 = vld [vmem:[#allocation85_spill] sm:$0xff] }
 0x3c5   : > { %16665 = vst [vmem:[#allocation139_spill] sm:$0xff] %v14579_v45  ;;  %v4357_v49 = vunpack.c.l.b16 %v4213_v41  ;;  %v8191_v34 = vrot.slane %v8189_v28, 5  ;;  %v9643_v41 = vrot.slane %v8125_v17, 5 }
 0x3c6   : > { %16666 = vst [vmem:[#allocation140_spill] sm:$0xff] %v14583_v1  ;;  %v8182_v10 = vsel %vm12873_vm8, %v8177_v23, %v14569_v26  ;;  %v14619_v44 = vrot.slane %v8194_v43, 4  ;;  %v14621_v36 = vrot.slane %v8197_v30, 5  ;;  %v8209_v1 = vrot.slane %v8207_v60, 4  ;;  %v8126_v26 = vld [vmem:[#allocation2 + $0x104] sm:$0x1] }
 0x3c7   : > { %16667 = vst [vmem:[#allocation141_spill] sm:$0xff] %v14588_v58  ;;  %11368 = vmatmul.msk.bf16.gmra.mxu3 %vm3277_vm9, %v4403_v61  ;;  %11559 = vmatmul.msk.bf16.gmra.mxu1 %vm3277_vm9, %v12111_v8  ;;  %v14604_v61 = vld [vmem:[#allocation2 + $0x104] sm:$0x1]  ;;  %v5891_v8 = vrot.slane %v5889_v16, 5  ;;  %v4404_v12 = vpack.c.b16 %v4358_v2, %v4357_v49  ;;  %v8945_v23 = vunpack.c.l.b16 %v8182_v10  ;;  %v12580_v58 = vld [vmem:[#allocation2 + $0x2c] sm:$0x1] }
 0x3c8   : > { %v14602_v29 = vpop.f32.mrf.mxu0  ;;  %v5905_v16 = vshll.u32 %v14604_v61, 16  ;;  %v8213_v43 = vshll.u32 %v12580_v58, 16  ;;  %v8218_v30 = vshrl.u32 %v14610_v13, 16  ;;  %v8200_v2 = vor.u32 %v14621_v36, %v14619_v44  ;;  %v5414_v60 = vld [vmem:[#allocation2 + $0x108] sm:$0xf] }
 0x3c9   : > { %16670 = vst [vmem:[#allocation143_spill] sm:$0xff] %v14602_v29  ;;  %11593 = vmatmul.msk.bf16.gmra.mxu2 %vm3277_vm9, %v6310_v24  ;;  %v8192_v24 = vsel %vm12873_vm8, %v8187_v63, %v8191_v34  ;;  %v5892_v28 = vor.u32 %v5891_v8, %v5888_v19  ;;  %v3875_v63 = vadd.f32 %v16674_v42, %v13427_v31  ;;  %v9645_v58 = vrot.slane %v9643_v41, 4  ;;  %v12581_v36 = vld [vmem:[#allocation2 + $0xf4] sm:$0xf] }
 0x3ca   : > { %v4588_v52 = vpop.f32.mrf.mxu3  ;;  %v8946_v19 = vunpack.c.l.b16 %v8192_v24  ;;  %v5907_v8 = vrot.slane %v5905_v16, 5  ;;  %v9646_v49 = vrot.slane %v8126_v26, 5  ;;  %v4219_v24 = vrot.slane %v12581_v36, 5 }
 0x3cb   : > { %v14607_v57 = vadd.f32 %v4588_v52, %v3873_v3  ;;  %11843 = vmatmul.msk.bf16.gmra.mxu0 %vm3277_vm9, %v12135_v27  ;;  %v9411_v3 = vld [vmem:[#allocation2 + $0xfc] sm:$0xe]  ;;  %v5903_v27 = vrot.slane %v5902_v25, 4  ;;  %v5913_v26 = vshll.u32 %v5414_v60, 16 }
 0x3cc   : > { %v14612_v59 = vpop.f32.mrf.mxu1  ;;  %v14625_v52 = vpop.f32.mrf.mxu2  ;;  %v11929_v45 = vrot.slane %v9411_v3, 9 }
 0x3cd   : > { %16671 = vst [vmem:[#allocation144_spill] sm:$0xff] %v14607_v57  ;;  %v5415_v57 = vld [vmem:[#allocation2 + $0x10c] sm:$0xf]  ;;  %v5908_v10 = vsel %vm12873_vm8, %v5903_v27, %v5907_v8 }
 0x3ce   : > { %16672 = vst [vmem:[#allocation145_spill] sm:$0xff] %v14612_v59  ;;  %v14627_v59 = vrot.slane %v8203_v22, 5  ;;  %v5893_v22 = vrot.slane %v5892_v28, 4  ;;  %v9644_v17 = vsel %vm13012_vm15, %v11929_v45, %v9643_v41  ;;  %v5919_v42 = vshll.u32 %v5415_v57, 16 }
 0x3cf   : > { %16673 = vst [vmem:[#allocation146_spill] sm:$0xff] %v14625_v52  ;;  %v5923_v16 = vshrl.u32 %v5415_v57, 16  ;;  %v9647_v45 = vsel %vm13012_vm15, %v9645_v58, %v9646_v49  ;;  %v5910_v41 = vshrl.u32 %v5414_v60, 16  ;;  %v9788_v27 = vunpack.c.l.b16 %v9644_v17 }
 0x3d0   : > { %v14634_v25 = vpop.f32.mrf.mxu0  ;;  %v8210_v31 = vor.u32 %v8209_v1, %v14627_v59  ;;  %v5898_v44 = vsel %vm12873_vm8, %v5893_v22, %v14590_v35  ;;  %v9789_v8 = vunpack.c.l.b16 %v9647_v45  ;;  %v9009_v1 = vpack.c.b16 %v8946_v19, %v8945_v23  ;;  %v12583_v19 = vld [vmem:[#allocation2 + $0xf8] sm:$0x1] }
 0x3d1   : > { %16675 = vst [vmem:[#allocation85_spill] sm:$0xff] %v14634_v25  ;;  %v6266_v52 = vunpack.c.l.b16 %v5908_v10  ;;  %v8221_v57 = vshll.u32 %v14610_v13, 16  ;;  %v14653_v35 = vrot.slane %v5919_v42, 5  ;;  %v5925_v22 = vrot.slane %v5923_v16, 4  ;;  %v4010_v13 = vld [vmem:[#allocation2 + $0xf0] sm:$0xe] }
 0x3d2   : > { %v4590_v34 = vpop.f32.mrf.mxu3  ;;  %v14655_v25 = vpack.c.b16 %v9789_v8, %v9788_v27  ;;  %v6265_v60 = vunpack.c.l.b16 %v5898_v44  ;;  %v4221_v17 = vrot.slane %v4219_v24, 4  ;;  %v8211_v23 = vrot.slane %v8210_v31, 4  ;;  %v16681_v42 = vld [vmem:[#allocation88_spill] sm:$0xff] }
 0x3d3   : > { %v14641_v3 = vadd.f32 %v4590_v34, %v3875_v63  ;;  %v12582_v63 = vld [vmem:[#allocation2 + $0x34] sm:$0xf]  ;;  %v4222_v58 = vrot.slane %v12583_v19, 5  ;;  %v8215_v49 = vrot.slane %v8213_v43, 5  ;;  %v5912_v10 = vrot.slane %v5910_v41, 4 }
 0x3d4   : > { %v14648_v28 = vpop.f32.mrf.mxu1  ;;  %v8227_v34 = vshll.u32 %v12582_v63, 16  ;;  %v8231_v36 = vshrl.u32 %v12582_v63, 16  ;;  %16679 = vst [vmem:[#allocation150_spill] sm:$0xff] %v14655_v25  ;;  %v5915_v45 = vrot.slane %v5913_v26, 5  ;;  %v6311_v16 = vpack.c.b16 %v6266_v52, %v6265_v60  ;;  %v5416_v63 = vld [vmem:[#allocation2 + $0x110] sm:$0x1] }
 0x3d5   : > { %16676 = vst [vmem:[#allocation147_spill] sm:$0xff] %v14641_v3  ;;  %v14651_v3 = vpop.f32.mrf.mxu2  ;;  %v14661_v27 = vrot.slane %v8218_v30, 4  ;;  %v14663_v8 = vrot.slane %v8221_v57, 5  ;;  %v8201_v31 = vrot.slane %v8200_v2, 4  ;;  %v5926_v19 = vor.u32 %v5925_v22, %v14653_v35  ;;  %v8128_v41 = vld [vmem:[#allocation2 + $0x10c] sm:$0xf] }
 0x3d6   : > { %16677 = vst [vmem:[#allocation148_spill] sm:$0xff] %v14648_v28  ;;  %v16680_v28 = vld [vmem:[#allocation5_spill] sm:$0xff]  ;;  %v14668_v25 = vrot.slane %v8227_v34, 5  ;;  %v14670_v43 = vrot.slane %v8231_v36, 4  ;;  %v11322_v52 = vrot.slane %v4010_v13, 9  ;;  %v4223_v30 = vsel %vm13012_vm15, %v4221_v17, %v4222_v58 }
 0x3d7   : > { %16678 = vst [vmem:[#allocation149_spill] sm:$0xff] %v14651_v3  ;;  %11369 = vmatmul.msk.bf16.gmra.mxu3 %vm3277_vm9, %v4404_v12  ;;  %11880 = vmatmul.msk.bf16.vlgmr.msra.gmra.mxu1 %vm3277_vm9, %v9009_v1  ;;  %v3878_v3 = vadd.f32 %v16681_v42, %v16680_v28  ;;  %v12136_v1 = vld [vmem:[#allocation2 + $0xa8] sm:$0xff]  ;;  %v8216_v28 = vsel %vm12873_vm8, %v8211_v23, %v8215_v49  ;;  %v14689_v17 = vld [vmem:[#allocation2 + $0x38] sm:$0x1]  ;;  %v9650_v13 = vrot.slane %v8128_v41, 5  ;;  %v4360_v42 = vunpack.c.l.b16 %v4223_v30 }
 0x3d8   : > { %v14665_v12 = vpop.f32.mrf.mxu0  ;;  %v8206_v2 = vsel %vm12873_vm8, %v8201_v31, %v14627_v59  ;;  %v5916_v34 = vor.u32 %v5915_v45, %v5912_v10  ;;  %v9412_v22 = vld [vmem:[#allocation2 + $0x108] sm:$0xe]  ;;  %v4220_v36 = vsel %vm13012_vm15, %v11322_v52, %v4219_v24  ;;  %v5418_v58 = vld [vmem:[#allocation2 + $0x118] sm:$0xf]  ;;  %v5927_v59 = vrot.slane %v5926_v19, 4 }
 0x3d9   : > { %16682 = vst [vmem:[#allocation5_spill] sm:$0xff] %v14665_v12  ;;  %11594 = vmatmul.msk.bf16.gmra.mxu2 %vm3277_vm9, %v6311_v16  ;;  %v8948_v16 = vunpack.c.l.b16 %v8216_v28  ;;  %v8129_v10 = vld [vmem:[#allocation2 + $0x110] sm:$0x1]  ;;  %v6934_v45 = vrot.slane %v14563_v32, 5  ;;  %v8234_v31 = vor.u32 %v14670_v43, %v14668_v25  ;;  %v11930_v52 = vrot.slane %v9412_v22, 9 }
 0x3da   : > { %v4593_v44 = vpop.f32.mrf.mxu3  ;;  %v4359_v60 = vunpack.c.l.b16 %v4220_v36  ;;  %v5917_v23 = vrot.slane %v5916_v34, 4  ;;  %v5417_v41 = vld [vmem:[#allocation2 + $0x114] sm:$0xf]  ;;  %v9652_v30 = vrot.slane %v9650_v13, 4  ;;  %v9653_v28 = vrot.slane %v8129_v10, 5 }
 0x3db   : > { %v14672_v26 = vadd.f32 %v4593_v44, %v3878_v3  ;;  %11844 = vmatmul.msk.bf16.gmra.mxu0 %vm3277_vm9, %v12136_v1  ;;  %v5929_v3 = vshll.u32 %v5416_v63, 16  ;;  %v16686_v63 = vld [vmem:[#allocation6_spill] sm:$0xff]  ;;  %v16687_v44 = vld [vmem:[#allocation93_spill] sm:$0xff]  ;;  %v8947_v1 = vunpack.c.l.b16 %v8206_v2  ;;  %v9651_v19 = vsel %vm13012_vm15, %v11930_v52, %v9650_v13  ;;  %v8082_v36 = vld [vmem:[#allocation2 + $0x3c] sm:$0xf] }
 0x3dc   : > { %v14679_v57 = vpop.f32.mrf.mxu1  ;;  %v3880_v24 = vadd.f32 %v16687_v44, %v16686_v63  ;;  %v4405_v12 = vpack.c.b16 %v4360_v42, %v4359_v60  ;;  %v6696_v63 = vld [vmem:[#allocation2 + $0xfc] sm:$0xe]  ;;  %v6936_v43 = vrot.slane %v6934_v45, 4  ;;  %v5922_v34 = vsel %vm12873_vm8, %v5917_v23, %v14653_v35  ;;  %v12585_v23 = vld [vmem:[#allocation2 + $0x100] sm:$0xf] }
 0x3dd   : > { %16683 = vst [vmem:[#allocation88_spill] sm:$0xff] %v14672_v26  ;;  %v14692_v49 = vpop.f32.mrf.mxu2  ;;  %v5943_v26 = vshll.u32 %v5418_v58, 16  ;;  %v9010_v29 = vpack.c.b16 %v8948_v16, %v8947_v1  ;;  %v5937_v42 = vshll.u32 %v5417_v41, 16  ;;  %v9790_v16 = vunpack.c.l.b16 %v9651_v19 }
 0x3de   : > { %16684 = vst [vmem:[#allocation151_spill] sm:$0xff] %v14679_v57  ;;  %v5931_v57 = vrot.slane %v5929_v3, 5  ;;  %v5934_v3 = vshrl.u32 %v5417_v41, 16  ;;  %v11626_v1 = vrot.slane %v6696_v63, 9  ;;  %v4226_v52 = vrot.slane %v12585_v23, 5 }
 0x3df   : > { %16685 = vst [vmem:[#allocation152_spill] sm:$0xff] %v14692_v49  ;;  %v5947_v49 = vshrl.u32 %v5418_v58, 16  ;;  %v9654_v58 = vsel %vm13012_vm15, %v9652_v30, %v9653_v28  ;;  %v14715_v44 = vrot.slane %v5943_v26, 5  ;;  %v8235_v41 = vrot.slane %v8234_v31, 4  ;;  %v5419_v26 = vld [vmem:[#allocation2 + $0x11c] sm:$0x1] }
 0x3e0   : > { %v5932_v2 = vsel %vm12873_vm8, %v5927_v59, %v5931_v57  ;;  %v14710_v13 = vpop.f32.mrf.mxu0  ;;  %v9791_v57 = vunpack.c.l.b16 %v9654_v58  ;;  %v6937_v59 = vrot.slane %v14604_v61, 5  ;;  %v6267_v61 = vunpack.c.l.b16 %v5922_v34  ;;  %v12586_v58 = vld [vmem:[#allocation2 + $0x40] sm:$0xf]  ;;  %v12137_v34 = vld [vmem:[#allocation2 + $0xb4] sm:$0xff] }
 0x3e1   : > { %v6268_v10 = vunpack.c.l.b16 %v5932_v2  ;;  %v8245_v19 = vshll.u32 %v8082_v36, 16  ;;  %v16692_v2 = vld [vmem:[#allocation7_spill] sm:$0xff]  ;;  %v4228_v31 = vrot.slane %v4226_v52, 4 }
 0x3e2   : > { %v4595_v32 = vpop.f32.mrf.mxu3  ;;  %v14719_v30 = vpack.c.b16 %v9791_v57, %v9790_v16  ;;  %v6938_v28 = vsel %vm13012_vm15, %v6936_v43, %v6937_v59  ;;  %v3883_v63 = vadd.f32 %v14242_v6, %v16692_v2  ;;  %v8251_v16 = vshll.u32 %v12586_v58, 16 }
 0x3e3   : > { %v14703_v22 = vadd.f32 %v4595_v32, %v3880_v24  ;;  %v5949_v24 = vrot.slane %v5947_v49, 4  ;;  %v8242_v32 = vshrl.u32 %v8082_v36, 16  ;;  %v6935_v49 = vsel %vm13012_vm15, %v11626_v1, %v6934_v45 }
 0x3e4   : > { %v14712_v60 = vpop.f32.mrf.mxu1  ;;  %16691 = vst [vmem:[#allocation154_spill] sm:$0xff] %v14719_v30  ;;  %v8255_v57 = vshrl.u32 %v12586_v58, 16  ;;  %v7075_v23 = vunpack.c.l.b16 %v6938_v28  ;;  %v5936_v43 = vrot.slane %v5934_v3, 4  ;;  %v5939_v59 = vrot.slane %v5937_v42, 5 }
 0x3e5   : > { %16688 = vst [vmem:[#allocation6_spill] sm:$0xff] %v14703_v22  ;;  %v14717_v35 = vpop.f32.mrf.mxu2  ;;  %v16693_v36 = vor.u32 %v14663_v8, %v14661_v27  ;;  %v5953_v45 = vshll.u32 %v5419_v26, 16  ;;  %v7074_v1 = vunpack.c.l.b16 %v6935_v49  ;;  %v12587_v22 = vld [vmem:[#allocation2 + $0x104] sm:$0x1]  ;;  %v16695_v3 = vshll.u32 %v14689_v17, 16 }
 0x3e6   : > { %16689 = vst [vmem:[#allocation93_spill] sm:$0xff] %v14712_v60  ;;  %v6312_v60 = vpack.c.b16 %v6268_v10, %v6267_v61  ;;  %v4229_v6 = vrot.slane %v12587_v22, 5  ;;  %v4011_v10 = vld [vmem:[#allocation2 + $0xfc] sm:$0xe]  ;;  %v8247_v8 = vrot.slane %v8245_v19, 5  ;;  %v14746_v22 = vrot.slane %v8251_v16, 5 }
 0x3e7   : > { %16690 = vst [vmem:[#allocation153_spill] sm:$0xff] %v14717_v35  ;;  %11370 = vmatmul.msk.bf16.gmra.mxu3 %vm3277_vm9, %v4405_v12  ;;  %11881 = vmatmul.msk.bf16.gmra.mxu1 %vm3277_vm9, %v9010_v29  ;;  %v5950_v12 = vor.u32 %v5949_v24, %v14715_v44  ;;  %v8225_v35 = vrot.slane %v16693_v36, 4  ;;  %v8239_v42 = vrot.slane %v16695_v3, 5  ;;  %v14738_v24 = vrot.slane %v8242_v32, 4  ;;  %v1238_v49 = vld [vmem:[#allocation2 + $0xcc] sm:$0x1] }
 0x3e8   : > { %v14748_v61 = vpack.c.b16 %v7075_v23, %v7074_v1  ;;  %v5940_v17 = vor.u32 %v5939_v59, %v5936_v43  ;;  %v8257_v32 = vrot.slane %v8255_v57, 4  ;;  %v14752_v58 = vpop.f32.mrf.mxu0  ;;  %v1239_v16 = vsel %vm12836_vm3, 0, %v1238_v49  ;;  %v5421_v23 = vld [vmem:[#allocation2 + $0x124] sm:$0xf]  ;;  %v16700_v36 = vld [vmem:[#allocation8_spill] sm:$0xff] }
 0x3e9   : > { %11595 = vmatmul.msk.bf16.gmra.mxu2 %vm3277_vm9, %v6312_v60  ;;  %v8230_v27 = vsel %vm12873_vm8, %v8225_v35, %v14668_v25  ;;  %v8240_v60 = vsel %vm12873_vm8, %v8235_v41, %v8239_v42  ;;  %v5951_v26 = vrot.slane %v5950_v12, 4  ;;  %v4230_v25 = vsel %vm13012_vm15, %v4228_v31, %v4229_v6  ;;  %1240 = vst [vmem:[#allocation2 + $0xcc] sm:$0x1] %v1239_v16  ;;  %v8132_v41 = vld [vmem:[#allocation2 + $0x11c] sm:$0x1] }
 0x3ea   : > { %v4598_v29 = vpop.f32.mrf.mxu3  ;;  %16697 = vst [vmem:[#allocation156_spill] sm:$0xff] %v14748_v61  ;;  %v5955_v35 = vrot.slane %v5953_v45, 5  ;;  %v8949_v43 = vunpack.c.l.b16 %v8230_v27  ;;  %v8950_v59 = vunpack.c.l.b16 %v8240_v60  ;;  %v3885_v1 = vadd.f32 %v14265_v7, %v16700_v36  ;;  %v9413_v49 = vld [vmem:[#allocation2 + $0x114] sm:$0xe]  ;;  %v5442_v61 = vld [vmem:[#allocation2 + $0x178] sm:$0xf] }
 0x3eb   : > { %v14733_v2 = vadd.f32 %v4598_v29, %v3883_v63  ;;  %11845 = vmatmul.msk.bf16.gmra.mxu0 %vm3277_vm9, %v12137_v34  ;;  %v8131_v63 = vld [vmem:[#allocation2 + $0x118] sm:$0xf]  ;;  %v11323_v34 = vrot.slane %v4011_v10, 9  ;;  %v4362_v10 = vunpack.c.l.b16 %v4230_v25  ;;  %v5941_v3 = vrot.slane %v5940_v17, 4 }
 0x3ec   : > { %v14740_v28 = vpop.f32.mrf.mxu1  ;;  %v9657_v12 = vrot.slane %v8131_v63, 5  ;;  %v5956_v31 = vsel %vm12873_vm8, %v5951_v26, %v5955_v35  ;;  %v5967_v6 = vshll.u32 %v5421_v23, 16  ;;  %v5971_v42 = vshrl.u32 %v5421_v23, 16  ;;  %v5420_v63 = vld [vmem:[#allocation2 + $0x120] sm:$0xf] }
 0x3ed   : > { %16694 = vst [vmem:[#allocation7_spill] sm:$0xff] %v14733_v2  ;;  %v14754_v29 = vpop.f32.mrf.mxu2  ;;  %v4227_v57 = vsel %vm13012_vm15, %v11323_v34, %v4226_v52  ;;  %v8248_v27 = vor.u32 %v8247_v8, %v14738_v24  ;;  %v8258_v60 = vor.u32 %v8257_v32, %v14746_v22  ;;  %v9011_v17 = vpack.c.b16 %v8950_v59, %v8949_v43  ;;  %v12588_v34 = vld [vmem:[#allocation2 + $0x44] sm:$0x1] }
 0x3ee   : > { %16696 = vst [vmem:[#allocation155_spill] sm:$0xff] %v14740_v28  ;;  %v9659_v16 = vrot.slane %v9657_v12, 4  ;;  %v9660_v28 = vrot.slane %v8132_v41, 5  ;;  %v4361_v52 = vunpack.c.l.b16 %v4227_v57  ;;  %v5946_v26 = vsel %vm12873_vm8, %v5941_v3, %v14715_v44  ;;  %v12589_v57 = vld [vmem:[#allocation2 + $0x10c] sm:$0xf] }
 0x3ef   : > { %16698 = vst [vmem:[#allocation157_spill] sm:$0xff] %v14754_v29  ;;  %v8261_v25 = vshll.u32 %v12588_v34, 16  ;;  %v6270_v41 = vunpack.c.l.b16 %v5956_v31  ;;  %v4233_v36 = vrot.slane %v12589_v57, 5  ;;  %v11931_v24 = vrot.slane %v9413_v49, 9  ;;  %v5422_v57 = vld [vmem:[#allocation2 + $0x128] sm:$0x1] }
 0x3f0   : > { %v9661_v35 = vsel %vm13012_vm15, %v9659_v16, %v9660_v28  ;;  %v4406_v23 = vpack.c.b16 %v4362_v10, %v4361_v52  ;;  %v5958_v32 = vshrl.u32 %v5420_v63, 16  ;;  %v5973_v43 = vrot.slane %v5971_v42, 4  ;;  %v12590_v10 = vld [vmem:[#allocation2 + $0x110] sm:$0x1]  ;;  %v14785_v31 = vpop.f32.mrf.mxu0  ;;  %v8085_v16 = vld [vmem:[#allocation2 + $0x48] sm:$0xf] }
 0x3f1   : > { %v6269_v44 = vunpack.c.l.b16 %v5946_v26  ;;  %v8259_v59 = vrot.slane %v8258_v60, 4  ;;  %v9658_v28 = vsel %vm13012_vm15, %v11931_v24, %v9657_v12  ;;  %v4236_v3 = vrot.slane %v12590_v10, 5  ;;  %v12138_v26 = vld [vmem:[#allocation2 + $0xc0] sm:$0xff] }
 0x3f2   : > { %v4600_v45 = vpop.f32.mrf.mxu3  ;;  %v8249_v49 = vrot.slane %v8248_v27, 4  ;;  %v9793_v52 = vunpack.c.l.b16 %v9661_v35  ;;  %v4235_v34 = vrot.slane %v4233_v36, 4  ;;  %v5960_v60 = vrot.slane %v5958_v32, 4  ;;  %v4012_v27 = vld [vmem:[#allocation2 + $0x108] sm:$0xe] }
 0x3f3   : > { %v14766_v19 = vadd.f32 %v4600_v45, %v3885_v1  ;;  %v5961_v1 = vshll.u32 %v5420_v63, 16  ;;  %v14779_v45 = vrot.slane %v5967_v6, 5  ;;  %v16704_v63 = vld [vmem:[#allocation9_spill] sm:$0xff]  ;;  %v6313_v42 = vpack.c.b16 %v6270_v41, %v6269_v44  ;;  %v12591_v32 = vld [vmem:[#allocation2 + $0x4c] sm:$0xf] }
 0x3f4   : > { %v14770_v7 = vpop.f32.mrf.mxu1  ;;  %v3888_v6 = vadd.f32 %v14284_v51, %v16704_v63  ;;  %v9792_v24 = vunpack.c.l.b16 %v9658_v28  ;;  %v8266_v51 = vshrl.u32 %v8085_v16, 16  ;;  %v8269_v41 = vshll.u32 %v8085_v16, 16 }
 0x3f5   : > { %16701 = vst [vmem:[#allocation8_spill] sm:$0xff] %v14766_v19  ;;  %v14777_v8 = vpop.f32.mrf.mxu2  ;;  %v5974_v12 = vor.u32 %v5973_v43, %v14779_v45  ;;  %v8279_v63 = vshrl.u32 %v12591_v32, 16  ;;  %v8254_v28 = vsel %vm12873_vm8, %v8249_v49, %v14746_v22  ;;  %v16709_v49 = vld [vmem:[#allocation10_spill] sm:$0xff] }
 0x3f6   : > { %16702 = vst [vmem:[#allocation158_spill] sm:$0xff] %v14770_v7  ;;  %v5963_v7 = vrot.slane %v5961_v1, 5  ;;  %v8275_v1 = vshll.u32 %v12591_v32, 16  ;;  %v14798_v43 = vpack.c.b16 %v9793_v52, %v9792_v24  ;;  %v5424_v32 = vld [vmem:[#allocation2 + $0x130] sm:$0xf] }
 0x3f7   : > { %16703 = vst [vmem:[#allocation159_spill] sm:$0xff] %v14777_v8  ;;  %11371 = vmatmul.msk.bf16.gmra.mxu3 %vm3277_vm9, %v4406_v23  ;;  %11882 = vmatmul.msk.bf16.gmra.mxu1 %vm3277_vm9, %v9011_v17  ;;  %v8263_v23 = vrot.slane %v8261_v25, 5  ;;  %v5977_v25 = vshll.u32 %v5422_v57, 16  ;;  %v8281_v22 = vrot.slane %v8279_v63, 4 }
 0x3f8   : > { %16707 = vst [vmem:[#allocation161_spill] sm:$0xff] %v14798_v43  ;;  %v5964_v16 = vor.u32 %v5963_v7, %v5960_v60  ;;  %v14811_v8 = vrot.slane %v8275_v1, 5  ;;  %v8135_v7 = vld [vmem:[#allocation2 + $0x128] sm:$0x1]  ;;  %v14816_v60 = vpop.f32.mrf.mxu0 }
 0x3f9   : > { %11596 = vmatmul.msk.bf16.gmra.mxu2 %vm3277_vm9, %v6313_v42  ;;  %v8264_v35 = vsel %vm12873_vm8, %v8259_v59, %v8263_v23  ;;  %v11324_v42 = vrot.slane %v4012_v27, 9  ;;  %v4237_v59 = vsel %vm13012_vm15, %v4235_v34, %v4236_v3  ;;  %v5975_v23 = vrot.slane %v5974_v12, 4 }
 0x3fa   : > { %v4603_v17 = vpop.f32.mrf.mxu3  ;;  %v8952_v57 = vunpack.c.l.b16 %v8264_v35  ;;  %v5979_v24 = vrot.slane %v5977_v25, 5  ;;  %v3890_v27 = vadd.f32 %v14307_v54, %v16709_v49  ;;  %v8951_v3 = vunpack.c.l.b16 %v8254_v28 }
 0x3fb   : > { %v14790_v10 = vadd.f32 %v4603_v17, %v3888_v6  ;;  %11846 = vmatmul.msk.bf16.gmra.mxu0 %vm3277_vm9, %v12138_v26  ;;  %v14807_v17 = vld [vmem:[#allocation2 + $0x124] sm:$0xf]  ;;  %v8268_v26 = vrot.slane %v8266_v51, 4  ;;  %v4234_v52 = vsel %vm13012_vm15, %v11324_v42, %v4233_v36  ;;  %v5965_v35 = vrot.slane %v5964_v16, 4  ;;  %v5423_v36 = vld [vmem:[#allocation2 + $0x12c] sm:$0xf] }
 0x3fc   : > { %v14795_v44 = vpop.f32.mrf.mxu1  ;;  %v9664_v34 = vrot.slane %v14807_v17, 5  ;;  %v5980_v51 = vsel %vm12873_vm8, %v5975_v23, %v5979_v24  ;;  %v5995_v25 = vshrl.u32 %v5424_v32, 16  ;;  %v4363_v63 = vunpack.c.l.b16 %v4234_v52  ;;  %v12592_v24 = vld [vmem:[#allocation2 + $0x118] sm:$0xf] }
 0x3fd   : > { %16705 = vst [vmem:[#allocation9_spill] sm:$0xff] %v14790_v10  ;;  %v14803_v6 = vpop.f32.mrf.mxu2  ;;  %v9012_v42 = vpack.c.b16 %v8952_v57, %v8951_v3  ;;  %v5970_v28 = vsel %vm12873_vm8, %v5965_v35, %v14779_v45  ;;  %v8282_v17 = vor.u32 %v8281_v22, %v14811_v8  ;;  %v9667_v49 = vrot.slane %v8135_v7, 5  ;;  %v12593_v45 = vld [vmem:[#allocation2 + $0x11c] sm:$0x1]  ;;  %v12594_v7 = vld [vmem:[#allocation2 + $0x50] sm:$0x1] }
 0x3fe   : > { %16706 = vst [vmem:[#allocation160_spill] sm:$0xff] %v14795_v44  ;;  %v8271_v44 = vrot.slane %v8269_v41, 5  ;;  %v5991_v41 = vshll.u32 %v5424_v32, 16  ;;  %v9666_v16 = vrot.slane %v9664_v34, 4  ;;  %v6272_v23 = vunpack.c.l.b16 %v5980_v51  ;;  %v12139_v51 = vld [vmem:[#allocation2 + $0xcc] sm:$0xff] }
 0x3ff   : > { %16708 = vst [vmem:[#allocation162_spill] sm:$0xff] %v14803_v6  ;;  %v4364_v6 = vunpack.c.l.b16 %v4237_v59  ;;  %v4240_v10 = vrot.slane %v12592_v24, 5  ;;  %v5982_v32 = vshrl.u32 %v5423_v36, 16  ;;  %v5985_v57 = vshll.u32 %v5423_v36, 16  ;;  %v12595_v24 = vld [vmem:[#allocation2 + $0x58] sm:$0xf] }
 0x400   : > { %v8272_v54 = vor.u32 %v8271_v44, %v8268_v26  ;;  %v14830_v44 = vrot.slane %v5991_v41, 5  ;;  %v5997_v26 = vrot.slane %v5995_v25, 4  ;;  %v9668_v52 = vsel %vm13012_vm15, %v9666_v16, %v9667_v49  ;;  %v16713_v25 = vld [vmem:[#allocation11_spill] sm:$0xff] }
 0x401   : > { %v4407_v29 = vpack.c.b16 %v4364_v6, %v4363_v63  ;;  %v4243_v3 = vrot.slane %v12593_v45, 5  ;;  %v6271_v6 = vunpack.c.l.b16 %v5970_v28  ;;  %v8285_v35 = vshll.u32 %v12594_v7, 16  ;;  %v8088_v63 = vld [vmem:[#allocation2 + $0x54] sm:$0xf] }
 0x402   : > { %v4605_v12 = vpop.f32.mrf.mxu3  ;;  %v8273_v22 = vrot.slane %v8272_v54, 4  ;;  %v8299_v36 = vshll.u32 %v12595_v24, 16  ;;  %v8303_v41 = vshrl.u32 %v12595_v24, 16  ;;  %v4242_v49 = vrot.slane %v4240_v10, 4 }
 0x403   : > { %v14820_v1 = vadd.f32 %v4605_v12, %v3890_v27  ;;  %v9414_v27 = vld [vmem:[#allocation2 + $0x120] sm:$0xe]  ;;  %v6314_v16 = vpack.c.b16 %v6272_v23, %v6271_v6  ;;  %v8283_v45 = vrot.slane %v8282_v17, 4  ;;  %v5984_v19 = vrot.slane %v5982_v32, 4  ;;  %v14844_v23 = vpop.f32.mrf.mxu0 }
 0x404   : > { %v14822_v59 = vpop.f32.mrf.mxu1  ;;  %v5998_v54 = vor.u32 %v5997_v26, %v14830_v44  ;;  %v8287_v24 = vrot.slane %v8285_v35, 5  ;;  %v8290_v43 = vshrl.u32 %v8088_v63, 16  ;;  %16715 = vst [vmem:[#allocation165_spill] sm:$0xff] %v14844_v23  ;;  %v8305_v26 = vrot.slane %v8303_v41, 4  ;;  %v5427_v41 = vld [vmem:[#allocation2 + $0x13c] sm:$0xf] }
 0x405   : > { %16710 = vst [vmem:[#allocation10_spill] sm:$0xff] %v14820_v1  ;;  %v14828_v12 = vpop.f32.mrf.mxu2  ;;  %v5425_v1 = vld [vmem:[#allocation2 + $0x134] sm:$0x1]  ;;  %v9795_v6 = vunpack.c.l.b16 %v9668_v52 }
 0x406   : > { %16711 = vst [vmem:[#allocation163_spill] sm:$0xff] %v14822_v59  ;;  %v11932_v59 = vrot.slane %v9414_v27, 9  ;;  %v4013_v27 = vld [vmem:[#allocation2 + $0x114] sm:$0xe]  ;;  %v6001_v32 = vshll.u32 %v5425_v1, 16  ;;  %v5999_v1 = vrot.slane %v5998_v54, 4 }
 0x407   : > { %16712 = vst [vmem:[#allocation164_spill] sm:$0xff] %v14828_v12  ;;  %11372 = vmatmul.msk.bf16.gmra.mxu3 %vm3277_vm9, %v4407_v29  ;;  %11883 = vmatmul.msk.bf16.gmra.mxu1 %vm3277_vm9, %v9012_v42  ;;  %v3893_v12 = vadd.f32 %v14326_v46, %v16713_v25  ;;  %v5987_v42 = vrot.slane %v5985_v57, 5  ;;  %v8293_v46 = vshll.u32 %v8088_v63, 16  ;;  %v14849_v57 = vrot.slane %v8299_v36, 5 }
 0x408   : > { %v9665_v28 = vsel %vm13012_vm15, %v11932_v59, %v9664_v34  ;;  %v8278_v34 = vsel %vm12873_vm8, %v8273_v22, %v14811_v8  ;;  %v8288_v59 = vsel %vm12873_vm8, %v8283_v45, %v8287_v24  ;;  %v11325_v63 = vrot.slane %v4013_v27, 9 }
 0x409   : > { %11597 = vmatmul.msk.bf16.gmra.mxu2 %vm3277_vm9, %v6314_v16  ;;  %v4244_v25 = vsel %vm13012_vm15, %v4242_v49, %v4243_v3  ;;  %v8292_v36 = vrot.slane %v8290_v43, 4  ;;  %v8295_v16 = vrot.slane %v8293_v46, 5  ;;  %v8954_v22 = vunpack.c.l.b16 %v8288_v59  ;;  %v12596_v3 = vld [vmem:[#allocation2 + $0x5c] sm:$0x1]  ;;  %v5426_v59 = vld [vmem:[#allocation2 + $0x138] sm:$0xf] }
 0x40a   : > { %v4608_v29 = vpop.f32.mrf.mxu3  ;;  %v4241_v8 = vsel %vm13012_vm15, %v11325_v63, %v4240_v10  ;;  %v8306_v45 = vor.u32 %v8305_v26, %v14849_v57  ;;  %v4366_v24 = vunpack.c.l.b16 %v4244_v25  ;;  %v6015_v54 = vshll.u32 %v5427_v41, 16 }
 0x40b   : > { %v14841_v7 = vadd.f32 %v4608_v29, %v3893_v12  ;;  %11847 = vmatmul.msk.bf16.gmra.mxu0 %vm3277_vm9, %v12139_v51  ;;  %v9794_v12 = vunpack.c.l.b16 %v9665_v28  ;;  %v5988_v51 = vor.u32 %v5987_v42, %v5984_v19  ;;  %v6003_v29 = vrot.slane %v6001_v32, 5  ;;  %v16719_v28 = vld [vmem:[#allocation12_spill] sm:$0xff] }
 0x40c   : > { %v14846_v17 = vpop.f32.mrf.mxu1  ;;  %v3895_v27 = vadd.f32 %v14349_v4, %v16719_v28  ;;  %v8309_v19 = vshll.u32 %v12596_v3, 16  ;;  %v6019_v46 = vshrl.u32 %v5427_v41, 16  ;;  %v4365_v10 = vunpack.c.l.b16 %v4241_v8 }
 0x40d   : > { %16714 = vst [vmem:[#allocation11_spill] sm:$0xff] %v14841_v7  ;;  %v14856_v35 = vpop.f32.mrf.mxu2  ;;  %v14860_v52 = vpack.c.b16 %v9795_v6, %v9794_v12  ;;  %v5989_v43 = vrot.slane %v5988_v51, 4  ;;  %v6004_v42 = vsel %vm12873_vm8, %v5999_v1, %v6003_v29  ;;  %v8296_v32 = vor.u32 %v8295_v16, %v8292_v36  ;;  %v12597_v51 = vld [vmem:[#allocation2 + $0x124] sm:$0xf]  ;;  %v14876_v29 = vpop.f32.mrf.mxu0 }
 0x40e   : > { %16716 = vst [vmem:[#allocation166_spill] sm:$0xff] %v14846_v17  ;;  %v8953_v17 = vunpack.c.l.b16 %v8278_v34  ;;  %v8307_v34 = vrot.slane %v8306_v45, 4  ;;  %v4408_v63 = vpack.c.b16 %v4366_v24, %v4365_v10  ;;  %v6274_v25 = vunpack.c.l.b16 %v6004_v42  ;;  %v12598_v45 = vld [vmem:[#allocation2 + $0x128] sm:$0x1]  ;;  %v8137_v42 = vld [vmem:[#allocation2 + $0x130] sm:$0xf] }
 0x40f   : > { %16717 = vst [vmem:[#allocation167_spill] sm:$0xff] %v14856_v35  ;;  %v5994_v4 = vsel %vm12873_vm8, %v5989_v43, %v14830_v44  ;;  %v4247_v28 = vrot.slane %v12597_v51, 5  ;;  %v8311_v1 = vrot.slane %v8309_v19, 5  ;;  %v6006_v8 = vshrl.u32 %v5426_v59, 16  ;;  %v12599_v19 = vld [vmem:[#allocation2 + $0x64] sm:$0xf] }
 0x410   : > { %16718 = vst [vmem:[#allocation168_spill] sm:$0xff] %v14860_v52  ;;  %v9013_v12 = vpack.c.b16 %v8954_v22, %v8953_v17  ;;  %v6009_v36 = vshll.u32 %v5426_v59, 16  ;;  %v14880_v16 = vrot.slane %v6015_v54, 5  ;;  %v6273_v44 = vunpack.c.l.b16 %v5994_v4  ;;  %v8091_v22 = vld [vmem:[#allocation2 + $0x60] sm:$0xf]  ;;  %v12140_v51 = vld [vmem:[#allocation2 + $0xf0] sm:$0xff] }
 0x411   : > { %16722 = vst [vmem:[#allocation170_spill] sm:$0xff] %v14876_v29  ;;  %v8297_v17 = vrot.slane %v8296_v32, 4  ;;  %v4250_v24 = vrot.slane %v12598_v45, 5  ;;  %v8312_v3 = vsel %vm12873_vm8, %v8307_v34, %v8311_v1  ;;  %v8327_v43 = vshrl.u32 %v12599_v19, 16  ;;  %v16724_v10 = vld [vmem:[#allocation13_spill] sm:$0xff] }
 0x412   : > { %v4610_v49 = vpop.f32.mrf.mxu3  ;;  %v3898_v54 = vadd.f32 %v14368_v50, %v16724_v10  ;;  %v4014_v59 = vld [vmem:[#allocation2 + $0x120] sm:$0xe]  ;;  %v6008_v45 = vrot.slane %v6006_v8, 4  ;;  %v8314_v1 = vshrl.u32 %v8091_v22, 16  ;;  %v8956_v50 = vunpack.c.l.b16 %v8312_v3 }
 0x413   : > { %v14869_v6 = vadd.f32 %v4610_v49, %v3895_v27  ;;  %v6021_v27 = vrot.slane %v6019_v46, 4  ;;  %v8323_v49 = vshll.u32 %v12599_v19, 16  ;;  %v6315_v46 = vpack.c.b16 %v6274_v25, %v6273_v44 }
 0x414   : > { %v14871_v26 = vpop.f32.mrf.mxu1  ;;  %v8302_v32 = vsel %vm12873_vm8, %v8297_v17, %v14849_v57  ;;  %v8317_v25 = vshll.u32 %v8091_v22, 16  ;;  %v9671_v44 = vrot.slane %v8137_v42, 5  ;;  %v11326_v57 = vrot.slane %v4014_v59, 9  ;;  %v5430_v59 = vld [vmem:[#allocation2 + $0x148] sm:$0xf] }
 0x415   : > { %16720 = vst [vmem:[#allocation12_spill] sm:$0xff] %v14869_v6  ;;  %v14878_v41 = vpop.f32.mrf.mxu2  ;;  %v6022_v34 = vor.u32 %v6021_v27, %v14880_v16  ;;  %v8329_v8 = vrot.slane %v8327_v43, 4  ;;  %v8955_v22 = vunpack.c.l.b16 %v8302_v32  ;;  %v14906_v35 = vpop.f32.mrf.mxu0 }
 0x416   : > { %16721 = vst [vmem:[#allocation169_spill] sm:$0xff] %v14871_v26  ;;  %v6011_v26 = vrot.slane %v6009_v36, 5  ;;  %v9415_v36 = vld [vmem:[#allocation2 + $0x12c] sm:$0xe]  ;;  %v4248_v3 = vsel %vm13012_vm15, %v11326_v57, %v4247_v28  ;;  %v6039_v57 = vshll.u32 %v5430_v59, 16 }
 0x417   : > { %16723 = vst [vmem:[#allocation171_spill] sm:$0xff] %v14878_v41  ;;  %11373 = vmatmul.msk.bf16.gmra.mxu3 %vm3277_vm9, %v4408_v63  ;;  %11884 = vmatmul.msk.bf16.gmra.mxu1 %vm3277_vm9, %v9013_v12  ;;  %v4249_v63 = vrot.slane %v4247_v28, 4  ;;  %v5428_v12 = vld [vmem:[#allocation2 + $0x140] sm:$0x1]  ;;  %v14898_v41 = vrot.slane %v8323_v49, 5  ;;  %v9673_v49 = vrot.slane %v9671_v44, 4  ;;  %v4367_v28 = vunpack.c.l.b16 %v4248_v3 }
 0x418   : > { %v6025_v17 = vshll.u32 %v5428_v12, 16  ;;  %v6012_v42 = vor.u32 %v6011_v26, %v6008_v45  ;;  %v11933_v12 = vrot.slane %v9415_v36, 9  ;;  %16728 = vst [vmem:[#allocation174_spill] sm:$0xff] %v14906_v35  ;;  %v6043_v36 = vshrl.u32 %v5430_v59, 16 }
 0x419   : > { %11598 = vmatmul.msk.bf16.gmra.mxu2 %vm3277_vm9, %v6315_v46  ;;  %v4251_v27 = vsel %vm13012_vm15, %v4249_v63, %v4250_v24  ;;  %v6023_v46 = vrot.slane %v6022_v34, 4  ;;  %v8330_v24 = vor.u32 %v8329_v8, %v14898_v41  ;;  %v16729_v63 = vld [vmem:[#allocation14_spill] sm:$0xff] }
 0x41a   : > { %v4613_v4 = vpop.f32.mrf.mxu3  ;;  %v4368_v43 = vunpack.c.l.b16 %v4251_v27  ;;  %v6027_v6 = vrot.slane %v6025_v17, 5  ;;  %v9672_v26 = vsel %vm13012_vm15, %v11933_v12, %v9671_v44  ;;  %v6013_v34 = vrot.slane %v6012_v42, 4  ;;  %v12600_v8 = vld [vmem:[#allocation2 + $0x68] sm:$0x1] }
 0x41b   : > { %v14892_v19 = vadd.f32 %v4613_v4, %v3898_v54  ;;  %11848 = vmatmul.msk.bf16.gmra.mxu0 %vm3277_vm9, %v12140_v51  ;;  %v8138_v4 = vld [vmem:[#allocation2 + $0x134] sm:$0x1]  ;;  %v8319_v51 = vrot.slane %v8317_v25, 5  ;;  %v5429_v25 = vld [vmem:[#allocation2 + $0x144] sm:$0xf]  ;;  %v8333_v27 = vshll.u32 %v12600_v8, 16  ;;  %v9796_v42 = vunpack.c.l.b16 %v9672_v26 }
 0x41c   : > { %v14895_v10 = vpop.f32.mrf.mxu1  ;;  %v9674_v32 = vrot.slane %v8138_v4, 5  ;;  %v4409_v44 = vpack.c.b16 %v4368_v43, %v4367_v28  ;;  %v12601_v4 = vld [vmem:[#allocation2 + $0x130] sm:$0xf]  ;;  %v6033_v12 = vshll.u32 %v5429_v25, 16  ;;  %v12120_v43 = vld [vmem:[%s16506_s4 + $0xa0] sm:$0xff] }
 0x41d   : > { %16725 = vst [vmem:[#allocation13_spill] sm:$0xff] %v14892_v19  ;;  %v14902_v54 = vpop.f32.mrf.mxu2  ;;  %v9014_v19 = vpack.c.b16 %v8956_v50, %v8955_v22  ;;  %v6018_v22 = vsel %vm12873_vm8, %v6013_v34, %v14880_v16  ;;  %v4254_v59 = vrot.slane %v12601_v4, 5  ;;  %v8094_v28 = vld [vmem:[#allocation2 + $0x6c] sm:$0xf]  ;;  %v12602_v26 = vld [vmem:[#allocation2 + $0x70] sm:$0xf]  ;;  %7261 = vmatpush.bf16.msra.mxu3 %v12120_v43 }
 0x41e   : > { %16726 = vst [vmem:[#allocation172_spill] sm:$0xff] %v14895_v10  ;;  %v8316_v10 = vrot.slane %v8314_v1, 4  ;;  %v6028_v1 = vsel %vm12873_vm8, %v6023_v46, %v6027_v6  ;;  %v6275_v16 = vunpack.c.l.b16 %v6018_v22  ;;  %v8351_v34 = vshrl.u32 %v12602_v26, 16 }
 0x41f   : > { %16727 = vst [vmem:[#allocation173_spill] sm:$0xff] %v14902_v54  ;;  %v3900_v54 = vadd.f32 %v14391_v55, %v16729_v63  ;;  %v9675_v55 = vsel %vm13012_vm15, %v9673_v49, %v9674_v32  ;;  %v6276_v46 = vunpack.c.l.b16 %v6028_v1  ;;  %v14926_v63 = vrot.slane %v6039_v57, 5  ;;  %v12603_v1 = vld [vmem:[#allocation2 + $0x134] sm:$0x1] }
 0x420   : > { %v8320_v17 = vor.u32 %v8319_v51, %v8316_v10  ;;  %v9797_v6 = vunpack.c.l.b16 %v9675_v55  ;;  %v8331_v51 = vrot.slane %v8330_v24, 4  ;;  %v6045_v49 = vrot.slane %v6043_v36, 4 }
 0x421   : > { %v4257_v24 = vrot.slane %v12603_v1, 5  ;;  %v8335_v8 = vrot.slane %v8333_v27, 5  ;;  %v6316_v55 = vpack.c.b16 %v6276_v46, %v6275_v16  ;;  %v6035_v22 = vrot.slane %v6033_v12, 5 }
 0x422   : > { %v4615_v45 = vpop.f32.mrf.mxu3  ;;  %v14928_v32 = vpack.c.b16 %v9797_v6, %v9796_v42  ;;  %v8321_v36 = vrot.slane %v8320_v17, 4  ;;  %v5431_v42 = vld [vmem:[#allocation2 + $0x14c] sm:$0x1]  ;;  %v14937_v6 = vpop.f32.mrf.mxu0  ;;  %v6046_v17 = vor.u32 %v6045_v49, %v14926_v63  ;;  %v8338_v27 = vshrl.u32 %v8094_v28, 16 }
 0x423   : > { %v14915_v50 = vadd.f32 %v4615_v45, %v3900_v54  ;;  %v6030_v54 = vshrl.u32 %v5429_v25, 16  ;;  %v8347_v45 = vshll.u32 %v12602_v26, 16  ;;  %v16734_v25 = vld [vmem:[#allocation15_spill] sm:$0xff]  ;;  %v8353_v16 = vrot.slane %v8351_v34, 4 }
 0x424   : > { %v14919_v3 = vpop.f32.mrf.mxu1  ;;  %16733 = vst [vmem:[#allocation177_spill] sm:$0xff] %v14928_v32  ;;  %v3903_v57 = vadd.f32 %v14410_v5, %v16734_v25  ;;  %v8326_v26 = vsel %vm12873_vm8, %v8321_v36, %v14898_v41  ;;  %v8336_v5 = vsel %vm12873_vm8, %v8331_v51, %v8335_v8  ;;  %v6049_v1 = vshll.u32 %v5431_v42, 16  ;;  %v8140_v8 = vld [vmem:[#allocation2 + $0x13c] sm:$0xf]  ;;  %v12604_v42 = vld [vmem:[#allocation2 + $0x74] sm:$0x1] }
 0x425   : > { %16730 = vst [vmem:[#allocation14_spill] sm:$0xff] %v14915_v50  ;;  %v14924_v10 = vpop.f32.mrf.mxu2  ;;  %v14948_v12 = vrot.slane %v8347_v45, 5  ;;  %v8958_v25 = vunpack.c.l.b16 %v8336_v5  ;;  %v6047_v45 = vrot.slane %v6046_v17, 4  ;;  %v8340_v34 = vrot.slane %v8338_v27, 4  ;;  %v8141_v17 = vld [vmem:[#allocation2 + $0x140] sm:$0x1] }
 0x426   : > { %16731 = vst [vmem:[#allocation175_spill] sm:$0xff] %v14919_v3  ;;  %v12141_v3 = vld [vmem:[#allocation2 + $0xfc] sm:$0xff]  ;;  %v9678_v27 = vrot.slane %v8140_v8, 5 }
 0x427   : > { %16732 = vst [vmem:[#allocation176_spill] sm:$0xff] %v14924_v10  ;;  %11374 = vmatmul.msk.bf16.gmra.mxu3 %vm3277_vm9, %v4409_v44  ;;  %11885 = vmatmul.msk.bf16.gmra.mxu1 %vm3277_vm9, %v9014_v19  ;;  %v4256_v44 = vrot.slane %v4254_v59, 4  ;;  %v6032_v19 = vrot.slane %v6030_v54, 4  ;;  %v4015_v10 = vld [vmem:[#allocation2 + $0x12c] sm:$0xe]  ;;  %v8341_v54 = vshll.u32 %v8094_v28, 16  ;;  %v8957_v28 = vunpack.c.l.b16 %v8326_v26 }
 0x428   : > { %16735 = vst [vmem:[#allocation15_spill] sm:$0xff] %v14937_v6  ;;  %v11327_v41 = vrot.slane %v4015_v10, 9  ;;  %v8354_v10 = vor.u32 %v8353_v16, %v14948_v12 }
 0x429   : > { %11599 = vmatmul.msk.bf16.gmra.mxu2 %vm3277_vm9, %v6316_v55  ;;  %v4258_v51 = vsel %vm13012_vm15, %v4256_v44, %v4257_v24  ;;  %v6036_v49 = vor.u32 %v6035_v22, %v6032_v19  ;;  %v8343_v55 = vrot.slane %v8341_v54, 5  ;;  %v8357_v24 = vshll.u32 %v12604_v42, 16  ;;  %v5433_v44 = vld [vmem:[#allocation2 + $0x154] sm:$0xf]  ;;  %v5432_v54 = vld [vmem:[#allocation2 + $0x150] sm:$0xf] }
 0x42a   : > { %v4618_v4 = vpop.f32.mrf.mxu3  ;;  %v4370_v19 = vunpack.c.l.b16 %v4258_v51  ;;  %v6051_v22 = vrot.slane %v6049_v1, 5  ;;  %v6063_v16 = vshll.u32 %v5433_v44, 16  ;;  %v9416_v42 = vld [vmem:[#allocation2 + $0x138] sm:$0xe]  ;;  %v8355_v1 = vrot.slane %v8354_v10, 4  ;;  %v14969_v32 = vpop.f32.mrf.mxu0 }
 0x42b   : > { %v14945_v46 = vadd.f32 %v4618_v4, %v3903_v57  ;;  %11849 = vmatmul.msk.bf16.gmra.mxu0 %vm3277_vm9, %v12141_v3  ;;  %v12164_v57 = vld [vmem:[%s16506_s4 + $0x100] sm:$0xff]  ;;  %v4255_v3 = vsel %vm13012_vm15, %v11327_v41, %v4254_v59  ;;  %v16739_v4 = vld [vmem:[#allocation16_spill] sm:$0xff]  ;;  %v6037_v26 = vrot.slane %v6036_v49, 4  ;;  %v6067_v41 = vshrl.u32 %v5433_v44, 16  ;;  %16741 = vst [vmem:[#allocation181_spill] sm:$0xff] %v14969_v32 }
 0x42c   : > { %v14950_v43 = vpop.f32.mrf.mxu1  ;;  %9977 = vmatpush.bf16.msra.mxu2 %v12164_v57  ;;  %v3905_v5 = vadd.f32 %v14433_v56, %v16739_v4  ;;  %v6052_v59 = vsel %vm12873_vm8, %v6047_v45, %v6051_v22  ;;  %v8344_v51 = vor.u32 %v8343_v55, %v8340_v34  ;;  %v8359_v57 = vrot.slane %v8357_v24, 5  ;;  %v12605_v34 = vld [vmem:[#allocation2 + $0x13c] sm:$0xf]  ;;  %v8097_v4 = vld [vmem:[#allocation2 + $0x78] sm:$0xf] }
 0x42d   : > { %16736 = vst [vmem:[#allocation178_spill] sm:$0xff] %v14945_v46  ;;  %v14958_v36 = vpop.f32.mrf.mxu2  ;;  %v4369_v46 = vunpack.c.l.b16 %v4255_v3  ;;  %v6042_v49 = vsel %vm12873_vm8, %v6037_v26, %v14926_v63  ;;  %v9681_v45 = vrot.slane %v8141_v17, 5  ;;  %v6278_v8 = vunpack.c.l.b16 %v6052_v59 }
 0x42e   : > { %16737 = vst [vmem:[#allocation179_spill] sm:$0xff] %v14950_v43  ;;  %v9015_v43 = vpack.c.b16 %v8958_v25, %v8957_v28  ;;  %v9680_v28 = vrot.slane %v9678_v27, 4  ;;  %v6054_v3 = vshrl.u32 %v5432_v54, 16  ;;  %v6057_v44 = vshll.u32 %v5432_v54, 16  ;;  %v5434_v54 = vld [vmem:[#allocation2 + $0x158] sm:$0x1] }
 0x42f   : > { %16738 = vst [vmem:[#allocation180_spill] sm:$0xff] %v14958_v36  ;;  %v4410_v25 = vpack.c.b16 %v4370_v19, %v4369_v46  ;;  %v11934_v22 = vrot.slane %v9416_v42, 9  ;;  %v4261_v55 = vrot.slane %v12605_v34, 5  ;;  %v14978_v10 = vrot.slane %v6063_v16, 5 }
 0x430   : > { %v6069_v24 = vrot.slane %v6067_v41, 4  ;;  %v9682_v46 = vsel %vm13012_vm15, %v9680_v28, %v9681_v45  ;;  %v6277_v63 = vunpack.c.l.b16 %v6042_v49  ;;  %v8360_v26 = vsel %vm12873_vm8, %v8355_v1, %v8359_v57  ;;  %v12142_v28 = vld [vmem:[#allocation2 + $0x108] sm:$0xff] }
 0x431   : > { %v9679_v19 = vsel %vm13012_vm15, %v11934_v22, %v9678_v27  ;;  %v9799_v17 = vunpack.c.l.b16 %v9682_v46  ;;  %v6056_v16 = vrot.slane %v6054_v3, 4  ;;  %v6059_v41 = vrot.slane %v6057_v44, 5  ;;  %v4016_v27 = vld [vmem:[#allocation2 + $0x138] sm:$0xe] }
 0x432   : > { %v4620_v36 = vpop.f32.mrf.mxu3  ;;  %v6317_v59 = vpack.c.b16 %v6278_v8, %v6277_v63  ;;  %v8362_v42 = vshrl.u32 %v8097_v4, 16  ;;  %v4263_v45 = vrot.slane %v4261_v55, 4  ;;  %v9798_v49 = vunpack.c.l.b16 %v9679_v19  ;;  %v12607_v8 = vld [vmem:[#allocation2 + $0x140] sm:$0x1]  ;;  %v15001_v19 = vpop.f32.mrf.mxu0 }
 0x433   : > { %v14967_v50 = vadd.f32 %v4620_v36, %v3905_v5  ;;  %v8345_v5 = vrot.slane %v8344_v51, 4  ;;  %v12606_v51 = vld [vmem:[#allocation2 + $0x7c] sm:$0xf]  ;;  %v4264_v3 = vrot.slane %v12607_v8, 5  ;;  %v6060_v46 = vor.u32 %v6059_v41, %v6056_v16  ;;  %16748 = vst [vmem:[#allocation186_spill] sm:$0xff] %v15001_v19 }
 0x434   : > { %v14971_v56 = vpop.f32.mrf.mxu1  ;;  %v8371_v1 = vshll.u32 %v12606_v51, 16  ;;  %v8375_v57 = vshrl.u32 %v12606_v51, 16  ;;  %v8364_v63 = vrot.slane %v8362_v42, 4 }
 0x435   : > { %16740 = vst [vmem:[#allocation16_spill] sm:$0xff] %v14967_v50  ;;  %v14976_v36 = vpop.f32.mrf.mxu2  ;;  %v8350_v22 = vsel %vm12873_vm8, %v8345_v5, %v14948_v12  ;;  %v4265_v51 = vsel %vm13012_vm15, %v4263_v45, %v4264_v3  ;;  %v5436_v5 = vld [vmem:[#allocation2 + $0x160] sm:$0xf]  ;;  %v6061_v42 = vrot.slane %v6060_v46, 4 }
 0x436   : > { %16742 = vst [vmem:[#allocation182_spill] sm:$0xff] %v14971_v56  ;;  %v16744_v56 = vld [vmem:[#allocation17_spill] sm:$0xff]  ;;  %v8377_v12 = vrot.slane %v8375_v57, 4  ;;  %v4372_v16 = vunpack.c.l.b16 %v4265_v51  ;;  %v6091_v3 = vshrl.u32 %v5436_v5, 16 }
 0x437   : > { %16743 = vst [vmem:[#allocation183_spill] sm:$0xff] %v14976_v36  ;;  %11375 = vmatmul.msk.bf16.gmra.mxu3 %vm3277_vm9, %v4410_v25  ;;  %11886 = vmatmul.msk.bf16.gmra.mxu1 %vm3277_vm9, %v9015_v43  ;;  %v6070_v25 = vor.u32 %v6069_v24, %v14978_v10  ;;  %v8365_v43 = vshll.u32 %v8097_v4, 16  ;;  %v6073_v24 = vshll.u32 %v5434_v54, 16  ;;  %v14999_v4 = vpack.c.b16 %v9799_v17, %v9798_v49  ;;  %v8143_v17 = vld [vmem:[#allocation2 + $0x148] sm:$0xf] }
 0x438   : > { %v8144_v49 = vld [vmem:[#allocation2 + $0x14c] sm:$0x1] }
 0x439   : > { %11600 = vmatmul.msk.bf16.gmra.mxu2 %vm3277_vm9, %v6317_v59  ;;  %16747 = vst [vmem:[#allocation185_spill] sm:$0xff] %v14999_v4  ;;  %v6071_v8 = vrot.slane %v6070_v25, 4  ;;  %v6075_v54 = vrot.slane %v6073_v24, 5  ;;  %v5435_v25 = vld [vmem:[#allocation2 + $0x15c] sm:$0xf]  ;;  %v9688_v51 = vrot.slane %v8144_v49, 5 }
 0x43a   : > { %v4623_v34 = vpop.f32.mrf.mxu3  ;;  %v15030_v49 = vpop.f32.mrf.mxu0 }
 0x43b   : > { %v14990_v36 = vadd.f32 %v4623_v34, %v16744_v56  ;;  %11850 = vmatmul.msk.bf16.gmra.mxu0 %vm3277_vm9, %v12142_v28  ;;  %v8960_v56 = vunpack.c.l.b16 %v8360_v26  ;;  %v11328_v34 = vrot.slane %v4016_v27, 9  ;;  %v8367_v28 = vrot.slane %v8365_v43, 5  ;;  %16754 = vst [vmem:[#allocation190_spill] sm:$0xff] %v15030_v49 }
 0x43c   : > { %v14993_v44 = vpop.f32.mrf.mxu1  ;;  %v6076_v45 = vsel %vm12873_vm8, %v6071_v8, %v6075_v54  ;;  %v6087_v43 = vshll.u32 %v5436_v5, 16 }
 0x43d   : > { %16745 = vst [vmem:[#allocation17_spill] sm:$0xff] %v14990_v36  ;;  %v15003_v59 = vpop.f32.mrf.mxu2  ;;  %v15007_v36 = vrot.slane %v8371_v1, 5  ;;  %v4262_v26 = vsel %vm13012_vm15, %v11328_v34, %v4261_v55  ;;  %v9685_v1 = vrot.slane %v8143_v17, 5  ;;  %v8368_v50 = vor.u32 %v8367_v28, %v8364_v63  ;;  %v12609_v17 = vld [vmem:[#allocation2 + $0x148] sm:$0xf] }
 0x43e   : > { %16746 = vst [vmem:[#allocation184_spill] sm:$0xff] %v14993_v44  ;;  %v8959_v44 = vunpack.c.l.b16 %v8350_v22  ;;  %v16750_v22 = vld [vmem:[#allocation18_spill] sm:$0xff]  ;;  %v6280_v5 = vunpack.c.l.b16 %v6076_v45  ;;  %v4268_v54 = vrot.slane %v12609_v17, 5  ;;  %v6081_v63 = vshll.u32 %v5435_v25, 16  ;;  %v8100_v45 = vld [vmem:[#allocation2 + $0x84] sm:$0xf] }
 0x43f   : > { %16749 = vst [vmem:[#allocation187_spill] sm:$0xff] %v15003_v59  ;;  %v4371_v59 = vunpack.c.l.b16 %v4262_v26  ;;  %v8378_v55 = vor.u32 %v8377_v12, %v15007_v36  ;;  %v9687_v34 = vrot.slane %v9685_v1, 4  ;;  %v15024_v28 = vrot.slane %v6087_v43, 5 }
 0x440   : > { %v9016_v41 = vpack.c.b16 %v8960_v56, %v8959_v44  ;;  %v6066_v44 = vsel %vm12873_vm8, %v6061_v42, %v14978_v10  ;;  %v12608_v56 = vld [vmem:[#allocation2 + $0x80] sm:$0x1]  ;;  %v6093_v12 = vrot.slane %v6091_v3, 4  ;;  %v4270_v3 = vrot.slane %v4268_v54, 4 }
 0x441   : > { %v8381_v46 = vshll.u32 %v12608_v56, 16  ;;  %v4411_v8 = vpack.c.b16 %v4372_v16, %v4371_v59  ;;  %v6279_v10 = vunpack.c.l.b16 %v6066_v44  ;;  %v8379_v59 = vrot.slane %v8378_v55, 4  ;;  %v12610_v16 = vld [vmem:[#allocation2 + $0x14c] sm:$0x1]  ;;  %v12611_v56 = vld [vmem:[#allocation2 + $0x88] sm:$0xf] }
 0x442   : > { %v4625_v27 = vpop.f32.mrf.mxu3  ;;  %v4271_v42 = vrot.slane %v12610_v16, 5  ;;  %v8395_v17 = vshll.u32 %v12611_v56, 16  ;;  %v6094_v55 = vor.u32 %v6093_v12, %v15024_v28  ;;  %v16755_v16 = vld [vmem:[#allocation19_spill] sm:$0xff] }
 0x443   : > { %v15014_v57 = vadd.f32 %v4625_v27, %v16750_v22  ;;  %v6078_v27 = vshrl.u32 %v5435_v25, 16  ;;  %v9417_v22 = vld [vmem:[#allocation2 + $0x144] sm:$0xe]  ;;  %v8399_v25 = vshrl.u32 %v12611_v56, 16  ;;  %v8383_v4 = vrot.slane %v8381_v46, 5 }
 0x444   : > { %v15017_v24 = vpop.f32.mrf.mxu1  ;;  %v11935_v43 = vrot.slane %v9417_v22, 9  ;;  %v4017_v22 = vld [vmem:[#allocation2 + $0x144] sm:$0xe]  ;;  %v8386_v46 = vshrl.u32 %v8100_v45, 16 }
 0x445   : > { %16751 = vst [vmem:[#allocation18_spill] sm:$0xff] %v15014_v57  ;;  %v15022_v26 = vpop.f32.mrf.mxu2  ;;  %v8369_v57 = vrot.slane %v8368_v50, 4  ;;  %v6080_v7 = vrot.slane %v6078_v27, 4  ;;  %v8384_v50 = vsel %vm12873_vm8, %v8379_v59, %v8383_v4  ;;  %v8401_v12 = vrot.slane %v8399_v25, 4 }
 0x446   : > { %16752 = vst [vmem:[#allocation188_spill] sm:$0xff] %v15017_v24  ;;  %v9689_v24 = vsel %vm13012_vm15, %v9687_v34, %v9688_v51  ;;  %v5437_v34 = vld [vmem:[#allocation2 + $0x164] sm:$0x1]  ;;  %v9686_v44 = vsel %vm13012_vm15, %v11935_v43, %v9685_v1  ;;  %v4272_v4 = vsel %vm13012_vm15, %v4270_v3, %v4271_v42  ;;  %v15058_v42 = vpop.f32.mrf.mxu0 }
 0x447   : > { %16753 = vst [vmem:[#allocation189_spill] sm:$0xff] %v15022_v26  ;;  %11376 = vmatmul.msk.bf16.gmra.mxu3 %vm3277_vm9, %v4411_v8  ;;  %11887 = vmatmul.msk.bf16.gmra.mxu1 %vm3277_vm9, %v9016_v41  ;;  %v6318_v26 = vpack.c.b16 %v6280_v5, %v6279_v10  ;;  %v12143_v8 = vld [vmem:[#allocation2 + $0x114] sm:$0xff]  ;;  %v6083_v41 = vrot.slane %v6081_v63, 5  ;;  %v8389_v5 = vshll.u32 %v8100_v45, 16  ;;  %v6097_v27 = vshll.u32 %v5437_v34, 16 }
 0x448   : > { %v15044_v63 = vrot.slane %v8395_v17, 5  ;;  %v9801_v1 = vunpack.c.l.b16 %v9689_v24  ;;  %v8374_v56 = vsel %vm12873_vm8, %v8369_v57, %v15007_v36  ;;  %v6095_v45 = vrot.slane %v6094_v55, 4  ;;  %v5439_v17 = vld [vmem:[#allocation2 + $0x16c] sm:$0xf]  ;;  %16760 = vst [vmem:[#allocation194_spill] sm:$0xff] %v15058_v42 }
 0x449   : > { %11601 = vmatmul.msk.bf16.gmra.mxu2 %vm3277_vm9, %v6318_v26  ;;  %v9800_v26 = vunpack.c.l.b16 %v9686_v44  ;;  %v6084_v59 = vor.u32 %v6083_v41, %v6080_v7  ;;  %v8391_v34 = vrot.slane %v8389_v5, 5  ;;  %v6099_v25 = vrot.slane %v6097_v27, 5 }
 0x44a   : > { %v4628_v51 = vpop.f32.mrf.mxu3  ;;  %v8402_v36 = vor.u32 %v8401_v12, %v15044_v63  ;;  %v4374_v57 = vunpack.c.l.b16 %v4272_v4  ;;  %v8961_v44 = vunpack.c.l.b16 %v8374_v56  ;;  %v6111_v55 = vshll.u32 %v5439_v17, 16 }
 0x44b   : > { %v15036_v52 = vadd.f32 %v4628_v51, %v16755_v16  ;;  %11851 = vmatmul.msk.bf16.gmra.mxu0 %vm3277_vm9, %v12143_v8  ;;  %v11329_v51 = vrot.slane %v4017_v22, 9  ;;  %v8962_v16 = vunpack.c.l.b16 %v8384_v50  ;;  %v8388_v8 = vrot.slane %v8386_v46, 4  ;;  %v12612_v22 = vld [vmem:[#allocation2 + $0x8c] sm:$0x1]  ;;  %v16761_v46 = vld [vmem:[#allocation20_spill] sm:$0xff] }
 0x44c   : > { %v15041_v10 = vpop.f32.mrf.mxu1  ;;  %v6085_v3 = vrot.slane %v6084_v59, 4  ;;  %v6100_v41 = vsel %vm12873_vm8, %v6095_v45, %v6099_v25  ;;  %v6115_v50 = vshrl.u32 %v5439_v17, 16  ;;  %v12613_v25 = vld [vmem:[#allocation2 + $0x154] sm:$0xf] }
 0x44d   : > { %16756 = vst [vmem:[#allocation19_spill] sm:$0xff] %v15036_v52  ;;  %v15049_v43 = vpop.f32.mrf.mxu2  ;;  %v4269_v24 = vsel %vm13012_vm15, %v11329_v51, %v4268_v54  ;;  %v8103_v52 = vld [vmem:[#allocation2 + $0x90] sm:$0xf]  ;;  %v9017_v27 = vpack.c.b16 %v8962_v16, %v8961_v44  ;;  %v8392_v12 = vor.u32 %v8391_v34, %v8388_v8  ;;  %v8403_v51 = vrot.slane %v8402_v36, 4  ;;  %v12614_v44 = vld [vmem:[#allocation2 + $0x94] sm:$0xf] }
 0x44e   : > { %16757 = vst [vmem:[#allocation191_spill] sm:$0xff] %v15041_v10  ;;  %v15053_v10 = vpack.c.b16 %v9801_v1, %v9800_v26  ;;  %v4373_v54 = vunpack.c.l.b16 %v4269_v24  ;;  %v5438_v1 = vld [vmem:[#allocation2 + $0x168] sm:$0xf]  ;;  %v6090_v26 = vsel %vm12873_vm8, %v6085_v3, %v15024_v28  ;;  %v8410_v4 = vshrl.u32 %v8103_v52, 16 }
 0x44f   : > { %16758 = vst [vmem:[#allocation192_spill] sm:$0xff] %v15049_v43  ;;  %v8405_v43 = vshll.u32 %v12612_v22, 16  ;;  %v8413_v59 = vshll.u32 %v8103_v52, 16  ;;  %v6282_v45 = vunpack.c.l.b16 %v6100_v41  ;;  %v4275_v17 = vrot.slane %v12613_v25, 5  ;;  %v8146_v25 = vld [vmem:[#allocation2 + $0x154] sm:$0xf] }
 0x450   : > { %16759 = vst [vmem:[#allocation193_spill] sm:$0xff] %v15053_v10  ;;  %v4412_v22 = vpack.c.b16 %v4374_v57, %v4373_v54  ;;  %v6102_v24 = vshrl.u32 %v5438_v1, 16  ;;  %v6105_v16 = vshll.u32 %v5438_v1, 16  ;;  %v15072_v8 = vrot.slane %v6111_v55, 5  ;;  %v12144_v1 = vld [vmem:[#allocation2 + $0x120] sm:$0xff] }
 0x451   : > { %v8407_v10 = vrot.slane %v8405_v43, 5  ;;  %v6117_v34 = vrot.slane %v6115_v50, 4  ;;  %v6281_v28 = vunpack.c.l.b16 %v6090_v26  ;;  %v8393_v36 = vrot.slane %v8392_v12, 4  ;;  %v5440_v50 = vld [vmem:[#allocation2 + $0x170] sm:$0x1] }
 0x452   : > { %v4630_v7 = vpop.f32.mrf.mxu3  ;;  %v8419_v52 = vshll.u32 %v12614_v44, 16  ;;  %v8423_v57 = vshrl.u32 %v12614_v44, 16  ;;  %v8412_v43 = vrot.slane %v8410_v4, 4  ;;  %v8415_v41 = vrot.slane %v8413_v59, 5  ;;  %v16764_v44 = vld [vmem:[#allocation22_spill] sm:$0xff] }
 0x453   : > { %v15063_v5 = vadd.f32 %v4630_v7, %v16761_v46  ;;  %v8408_v3 = vsel %vm12873_vm8, %v8403_v51, %v8407_v10  ;;  %v6319_v46 = vpack.c.b16 %v6282_v45, %v6281_v28  ;;  %v8398_v55 = vsel %vm12873_vm8, %v8393_v36, %v15044_v63  ;;  %v4018_v10 = vld [vmem:[#allocation2 + $0x150] sm:$0xe]  ;;  %v12615_v63 = vld [vmem:[#allocation2 + $0x158] sm:$0x1]  ;;  %v15088_v28 = vpop.f32.mrf.mxu0 }
 0x454   : > { %v15065_v56 = vpop.f32.mrf.mxu1  ;;  %v6107_v26 = vrot.slane %v6105_v16, 5  ;;  %v6118_v12 = vor.u32 %v6117_v34, %v15072_v8  ;;  %v8964_v51 = vunpack.c.l.b16 %v8408_v3  ;;  %v15086_v4 = vrot.slane %v8419_v52, 5  ;;  %16766 = vst [vmem:[#allocation196_spill] sm:$0xff] %v15088_v28  ;;  %v12616_v36 = vld [vmem:[#allocation2 + $0x98] sm:$0x1] }
 0x455   : > { %16762 = vst [vmem:[#allocation20_spill] sm:$0xff] %v15063_v5  ;;  %v15070_v7 = vpop.f32.mrf.mxu2  ;;  %v8425_v59 = vrot.slane %v8423_v57, 4  ;;  %v4278_v45 = vrot.slane %v12615_v63, 5  ;;  %v6121_v16 = vshll.u32 %v5440_v50, 16  ;;  %v8416_v34 = vor.u32 %v8415_v41, %v8412_v43  ;;  %v8147_v28 = vld [vmem:[#allocation2 + $0x158] sm:$0x1] }
 0x456   : > { %16763 = vst [vmem:[#allocation195_spill] sm:$0xff] %v15070_v7  ;;  %v11330_v52 = vrot.slane %v4018_v10, 9  ;;  %v6119_v63 = vrot.slane %v6118_v12, 4  ;;  %v8106_v10 = vld [vmem:[#allocation2 + $0x9c] sm:$0xf] }
 0x457   : > { %11377 = vmatmul.msk.bf16.gmra.mxu3 %vm3277_vm9, %v4412_v22  ;;  %11888 = vmatmul.msk.bf16.gmra.mxu1 %vm3277_vm9, %v9017_v27  ;;  %v4277_v22 = vrot.slane %v4275_v17, 4  ;;  %v6104_v27 = vrot.slane %v6102_v24, 4  ;;  %v6123_v41 = vrot.slane %v6121_v16, 5 }
 0x458   : > { %v4276_v43 = vsel %vm13012_vm15, %v11330_v52, %v4275_v17  ;;  %v16768_v17 = vld [vmem:[#allocation24_spill] sm:$0xff] }
 0x459   : > { %11602 = vmatmul.msk.bf16.gmra.mxu2 %vm3277_vm9, %v6319_v46  ;;  %v9692_v46 = vrot.slane %v8146_v25, 5  ;;  %v4279_v57 = vsel %vm13012_vm15, %v4277_v22, %v4278_v45  ;;  %v6108_v3 = vor.u32 %v6107_v26, %v6104_v27  ;;  %v9695_v26 = vrot.slane %v8147_v28, 5 }
 0x45a   : > { %v4633_v54 = vpop.f32.mrf.mxu3  ;;  %v6135_v45 = vshll.u32 %v5442_v61, 16 }
 0x45b   : > { %v15083_v7 = vadd.f32 %v4633_v54, %v16764_v44  ;;  %11852 = vmatmul.msk.bf16.gmra.mxu0 %vm3277_vm9, %v12144_v1  ;;  %v8429_v54 = vshll.u32 %v12616_v36, 16  ;;  %v9418_v44 = vld [vmem:[#allocation2 + $0x150] sm:$0xe]  ;;  %v8426_v1 = vor.u32 %v8425_v59, %v15086_v4  ;;  %v4376_v36 = vunpack.c.l.b16 %v4279_v57  ;;  %v5441_v59 = vld [vmem:[#allocation2 + $0x174] sm:$0xf] }
 0x45c   : > { %v15091_v24 = vpop.f32.mrf.mxu1  ;;  %v11936_v50 = vrot.slane %v9418_v44, 9  ;;  %v9694_v27 = vrot.slane %v9692_v46, 4  ;;  %v6139_v44 = vshrl.u32 %v5442_v61, 16  ;;  %v12617_v61 = vld [vmem:[#allocation2 + $0x160] sm:$0xf] }
 0x45d   : > { %16765 = vst [vmem:[#allocation22_spill] sm:$0xff] %v15083_v7  ;;  %v8963_v7 = vunpack.c.l.b16 %v8398_v55  ;;  %v15093_v5 = vpop.f32.mrf.mxu2  ;;  %v15100_v55 = vrot.slane %v8416_v34, 4  ;;  %v8431_v25 = vrot.slane %v8429_v54, 5  ;;  %v4375_v34 = vunpack.c.l.b16 %v4276_v43 }
 0x45e   : > { %16767 = vst [vmem:[#allocation197_spill] sm:$0xff] %v15093_v5  ;;  %v9693_v22 = vsel %vm13012_vm15, %v11936_v50, %v9692_v46  ;;  %v8427_v54 = vrot.slane %v8426_v1, 4  ;;  %v9696_v52 = vsel %vm13012_vm15, %v9694_v27, %v9695_v26  ;;  %v8434_v46 = vshrl.u32 %v8106_v10, 16 }
 0x45f   : > { %v9018_v42 = vpack.c.b16 %v8964_v51, %v8963_v7  ;;  %v6109_v7 = vrot.slane %v6108_v3, 4  ;;  %v6124_v51 = vsel %vm12873_vm8, %v6119_v63, %v6123_v41  ;;  %v9802_v3 = vunpack.c.l.b16 %v9693_v22  ;;  %v12618_v22 = vld [vmem:[#allocation2 + $0xa0] sm:$0xf] }
 0x460   : > { %v9803_v63 = vunpack.c.l.b16 %v9696_v52  ;;  %v4413_v50 = vpack.c.b16 %v4376_v36, %v4375_v34  ;;  %v6284_v41 = vunpack.c.l.b16 %v6124_v51  ;;  %v4282_v5 = vrot.slane %v12617_v61, 5  ;;  %v12619_v34 = vld [vmem:[#allocation2 + $0x164] sm:$0x1] }
 0x461   : > { %v6114_v28 = vsel %vm12873_vm8, %v6109_v7, %v15072_v8  ;;  %v6129_v43 = vshll.u32 %v5441_v59, 16  ;;  %v15120_v27 = vrot.slane %v6135_v45, 5  ;;  %v6141_v26 = vrot.slane %v6139_v44, 4  ;;  %v5443_v44 = vld [vmem:[#allocation2 + $0x17c] sm:$0x1] }
 0x462   : > { %v4635_v12 = vpop.f32.mrf.mxu3  ;;  %v6283_v8 = vunpack.c.l.b16 %v6114_v28  ;;  %v8437_v36 = vshll.u32 %v8106_v10, 16  ;;  %v8443_v7 = vshll.u32 %v12618_v22, 16  ;;  %v8447_v51 = vshrl.u32 %v12618_v22, 16  ;;  %v12145_v28 = vld [vmem:[#allocation2 + $0x12c] sm:$0xff] }
 0x463   : > { %v15107_v16 = vadd.f32 %v4635_v12, %v16768_v17  ;;  %v6126_v12 = vshrl.u32 %v5441_v59, 16  ;;  %v15116_v17 = vpop.f32.mrf.mxu0  ;;  %v4285_v52 = vrot.slane %v12619_v34, 5  ;;  %v8422_v59 = vsel %vm12873_vm8, %v15100_v55, %v15086_v4 }
 0x464   : > { %v15111_v57 = vpop.f32.mrf.mxu1  ;;  %16770 = vst [vmem:[#allocation198_spill] sm:$0xff] %v15116_v17  ;;  %v6320_v61 = vpack.c.b16 %v6284_v41, %v6283_v8  ;;  %v4019_v17 = vld [vmem:[#allocation2 + $0x15c] sm:$0xe]  ;;  %v8432_v45 = vsel %vm12873_vm8, %v8427_v54, %v8431_v25  ;;  %v16773_v41 = vld [vmem:[#allocation26_spill] sm:$0xff]  ;;  %v15139_v22 = vrot.slane %v8437_v36, 5  ;;  %v15141_v4 = vrot.slane %v8443_v7, 5 }
 0x465   : > { %16769 = vst [vmem:[#allocation24_spill] sm:$0xff] %v15107_v16  ;;  %v15118_v1 = vpop.f32.mrf.mxu2  ;;  %v15122_v16 = vpack.c.b16 %v9803_v63, %v9802_v3  ;;  %v6128_v10 = vrot.slane %v6126_v12, 4  ;;  %v6131_v3 = vrot.slane %v6129_v43, 5  ;;  %v6142_v63 = vor.u32 %v6141_v26, %v15120_v27  ;;  %v8149_v26 = vld [vmem:[#allocation2 + $0x160] sm:$0xf] }
 0x466   : > { %16771 = vst [vmem:[#allocation199_spill] sm:$0xff] %v15118_v1  ;;  %v4284_v1 = vrot.slane %v4282_v5, 4  ;;  %v8449_v55 = vrot.slane %v8447_v51, 4  ;;  %v11331_v54 = vrot.slane %v4019_v17, 9  ;;  %v8966_v12 = vunpack.c.l.b16 %v8432_v45  ;;  %v5445_v45 = vld [vmem:[#allocation2 + $0x184] sm:$0xf] }
 0x467   : > { %16772 = vst [vmem:[#allocation200_spill] sm:$0xff] %v15122_v16  ;;  %11378 = vmatmul.msk.bf16.gmra.mxu3 %vm3277_vm9, %v4413_v50  ;;  %11889 = vmatmul.msk.bf16.gmra.mxu1 %vm3277_vm9, %v9018_v42  ;;  %v15133_v50 = vrot.slane %v8434_v46, 4  ;;  %v6145_v43 = vshll.u32 %v5443_v44, 16  ;;  %v9419_v46 = vld [vmem:[#allocation2 + $0x15c] sm:$0xe]  ;;  %v8965_v7 = vunpack.c.l.b16 %v8422_v59  ;;  %v6143_v51 = vrot.slane %v6142_v63, 4 }
 0x468   : > { %v4286_v34 = vsel %vm13012_vm15, %v4284_v1, %v4285_v52  ;;  %v4283_v36 = vsel %vm13012_vm15, %v11331_v54, %v4282_v5  ;;  %v11937_v44 = vrot.slane %v9419_v46, 9  ;;  %v9699_v16 = vrot.slane %v8149_v26, 5  ;;  %v5444_v54 = vld [vmem:[#allocation2 + $0x180] sm:$0xf] }
 0x469   : > { %11603 = vmatmul.msk.bf16.gmra.mxu2 %vm3277_vm9, %v6320_v61  ;;  %v6132_v61 = vor.u32 %v6131_v3, %v6128_v10  ;;  %v4378_v2 = vunpack.c.l.b16 %v4286_v34  ;;  %v9019_v1 = vpack.c.b16 %v8966_v12, %v8965_v7  ;;  %v6147_v52 = vrot.slane %v6145_v43, 5  ;;  %v16777_v34 = vld [vmem:[#allocation28_spill] sm:$0xff] }
 0x46a   : > { %v4638_v42 = vpop.f32.mrf.mxu3  ;;  %v4377_v5 = vunpack.c.l.b16 %v4283_v36  ;;  %v9700_v59 = vsel %vm13012_vm15, %v11937_v44, %v9699_v16  ;;  %v9701_v10 = vrot.slane %v9699_v16, 4  ;;  %v6159_v26 = vshll.u32 %v5445_v45, 16  ;;  %v12621_v44 = vld [vmem:[#allocation2 + $0x16c] sm:$0xf] }
 0x46b   : > { %v15136_v8 = vadd.f32 %v4638_v42, %v16773_v41  ;;  %11853 = vmatmul.msk.bf16.gmra.mxu0 %vm3277_vm9, %v12145_v28  ;;  %v8150_v41 = vld [vmem:[#allocation2 + $0x164] sm:$0x1]  ;;  %v8450_v28 = vor.u32 %v8449_v55, %v15141_v4  ;;  %v15153_v49 = vpop.f32.mrf.mxu0  ;;  %v6133_v55 = vrot.slane %v6132_v61, 4  ;;  %v6163_v46 = vshrl.u32 %v5445_v45, 16 }
 0x46c   : > { %v15144_v25 = vpop.f32.mrf.mxu1  ;;  %16776 = vst [vmem:[#allocation202_spill] sm:$0xff] %v15153_v49  ;;  %v9702_v3 = vrot.slane %v8150_v41, 5  ;;  %v4414_v16 = vpack.c.b16 %v4378_v2, %v4377_v5  ;;  %v9804_v61 = vunpack.c.l.b16 %v9700_v59  ;;  %v4289_v45 = vrot.slane %v12621_v44, 5  ;;  %v9420_v2 = vld [vmem:[#allocation2 + $0x168] sm:$0xe] }
 0x46d   : > { %16774 = vst [vmem:[#allocation26_spill] sm:$0xff] %v15136_v8  ;;  %v15148_v42 = vpop.f32.mrf.mxu2  ;;  %v12620_v8 = vld [vmem:[#allocation2 + $0xa4] sm:$0x1]  ;;  %v8451_v43 = vrot.slane %v8450_v28, 4  ;;  %v6138_v36 = vsel %vm12873_vm8, %v6133_v55, %v15120_v27  ;;  %v12622_v5 = vld [vmem:[#allocation2 + $0x170] sm:$0x1] }
 0x46e   : > { %16775 = vst [vmem:[#allocation201_spill] sm:$0xff] %v15148_v42  ;;  %v8453_v17 = vshll.u32 %v12620_v8, 16  ;;  %v8440_v42 = vor.u32 %v15139_v22, %v15133_v50  ;;  %v6148_v8 = vsel %vm12873_vm8, %v6143_v51, %v6147_v52  ;;  %v9703_v50 = vsel %vm13012_vm15, %v9701_v10, %v9702_v3  ;;  %v8152_v3 = vld [vmem:[#allocation2 + $0x16c] sm:$0xf]  ;;  %v5446_v44 = vld [vmem:[#allocation2 + $0x188] sm:$0x1] }
 0x46f   : > { %v9805_v51 = vunpack.c.l.b16 %v9703_v50  ;;  %v6286_v41 = vunpack.c.l.b16 %v6148_v8  ;;  %v6150_v52 = vshrl.u32 %v5444_v54, 16  ;;  %v6165_v10 = vrot.slane %v6163_v46, 4 }
 0x470   : > { %v8455_v7 = vrot.slane %v8453_v17, 5  ;;  %v15173_v17 = vrot.slane %v6159_v26, 5  ;;  %v4292_v49 = vrot.slane %v12622_v5, 5  ;;  %v6285_v27 = vunpack.c.l.b16 %v6138_v36  ;;  %v8153_v26 = vld [vmem:[#allocation2 + $0x170] sm:$0x1] }
 0x471   : > { %v8441_v59 = vrot.slane %v8440_v42, 4  ;;  %v4291_v46 = vrot.slane %v4289_v45, 4  ;;  %v6152_v19 = vrot.slane %v6150_v52, 4  ;;  %v12623_v36 = vld [vmem:[#allocation2 + $0xac] sm:$0xf] }
 0x472   : > { %v4640_v63 = vpop.f32.mrf.mxu3  ;;  %v8456_v55 = vsel %vm12873_vm8, %v8451_v43, %v8455_v7  ;;  %v6321_v50 = vpack.c.b16 %v6286_v41, %v6285_v27  ;;  %v6166_v42 = vor.u32 %v6165_v10, %v15173_v17  ;;  %v8467_v30 = vshll.u32 %v12623_v36, 16  ;;  %v16782_v43 = vld [vmem:[#allocation30_spill] sm:$0xff] }
 0x473   : > { %v15162_v12 = vadd.f32 %v4640_v63, %v16777_v34  ;;  %v6153_v63 = vshll.u32 %v5444_v54, 16  ;;  %v8109_v34 = vld [vmem:[#allocation2 + $0xa8] sm:$0xf]  ;;  %v8446_v52 = vsel %vm12873_vm8, %v8441_v59, %v15141_v4  ;;  %v8471_v10 = vshrl.u32 %v12623_v36, 16 }
 0x474   : > { %v15166_v22 = vpop.f32.mrf.mxu1  ;;  %v8458_v8 = vshrl.u32 %v8109_v34, 16  ;;  %v8461_v54 = vshll.u32 %v8109_v34, 16 }
 0x475   : > { %16778 = vst [vmem:[#allocation28_spill] sm:$0xff] %v15162_v12  ;;  %v15171_v28 = vpop.f32.mrf.mxu2  ;;  %v15175_v12 = vpack.c.b16 %v9805_v51, %v9804_v61  ;;  %v11938_v61 = vrot.slane %v9420_v2, 9  ;;  %v9706_v51 = vrot.slane %v8152_v3, 5  ;;  %v9709_v3 = vrot.slane %v8153_v26, 5 }
 0x476   : > { %16779 = vst [vmem:[#allocation203_spill] sm:$0xff] %v15171_v28  ;;  %v15181_v28 = vpop.f32.mrf.mxu0  ;;  %v8460_v59 = vrot.slane %v8458_v8, 4 }
 0x477   : > { %16780 = vst [vmem:[#allocation204_spill] sm:$0xff] %v15175_v12  ;;  %11379 = vmatmul.msk.bf16.gmra.mxu3 %vm3277_vm9, %v4414_v16  ;;  %11890 = vmatmul.msk.bf16.gmra.mxu1 %vm3277_vm9, %v9019_v1  ;;  %v12146_v12 = vld [vmem:[#allocation2 + $0x138] sm:$0xff]  ;;  %v4020_v16 = vld [vmem:[#allocation2 + $0x168] sm:$0xe]  ;;  %v6155_v1 = vrot.slane %v6153_v63, 5  ;;  %v9707_v41 = vsel %vm13012_vm15, %v11938_v61, %v9706_v51  ;;  %v9708_v34 = vrot.slane %v9706_v51, 4 }
 0x478   : > { %16781 = vst [vmem:[#allocation205_spill] sm:$0xff] %v15181_v28  ;;  %v6169_v63 = vshll.u32 %v5446_v44, 16  ;;  %v11332_v27 = vrot.slane %v4020_v16, 9  ;;  %v8463_v44 = vrot.slane %v8461_v54, 5  ;;  %v15204_v16 = vrot.slane %v8467_v30, 5 }
 0x479   : > { %11604 = vmatmul.msk.bf16.gmra.mxu2 %vm3277_vm9, %v6321_v50  ;;  %v8968_v50 = vunpack.c.l.b16 %v8456_v55  ;;  %v9710_v61 = vsel %vm13012_vm15, %v9708_v34, %v9709_v3  ;;  %v6156_v26 = vor.u32 %v6155_v1, %v6152_v19  ;;  %v8473_v55 = vrot.slane %v8471_v10, 4  ;;  %v5447_v3 = vld [vmem:[#allocation2 + $0x18c] sm:$0xf] }
 0x47a   : > { %v4643_v5 = vpop.f32.mrf.mxu3  ;;  %v9807_v28 = vunpack.c.l.b16 %v9710_v61  ;;  %v4290_v4 = vsel %vm13012_vm15, %v11332_v27, %v4289_v45  ;;  %v8967_v34 = vunpack.c.l.b16 %v8446_v52  ;;  %v16786_v45 = vld [vmem:[#allocation32_spill] sm:$0xff]  ;;  %v8464_v54 = vor.u32 %v8463_v44, %v8460_v59  ;;  %v12625_v44 = vld [vmem:[#allocation2 + $0xb0] sm:$0x1] }
 0x47b   : > { %v15185_v7 = vadd.f32 %v4643_v5, %v16782_v43  ;;  %11854 = vmatmul.msk.bf16.gmra.mxu0 %vm3277_vm9, %v12146_v12  ;;  %v4293_v5 = vsel %vm13012_vm15, %v4291_v46, %v4292_v49  ;;  %v6167_v12 = vrot.slane %v6166_v42, 4  ;;  %v5448_v43 = vld [vmem:[#allocation2 + $0x190] sm:$0xf]  ;;  %v6171_v49 = vrot.slane %v6169_v63, 5 }
 0x47c   : > { %v15191_v2 = vpop.f32.mrf.mxu1  ;;  %v4380_v36 = vunpack.c.l.b16 %v4293_v5  ;;  %v6187_v19 = vshrl.u32 %v5448_v43, 16  ;;  %v4379_v42 = vunpack.c.l.b16 %v4290_v4  ;;  %v9020_v30 = vpack.c.b16 %v8968_v50, %v8967_v34  ;;  %v12624_v50 = vld [vmem:[#allocation2 + $0x178] sm:$0xf] }
 0x47d   : > { %16783 = vst [vmem:[#allocation30_spill] sm:$0xff] %v15185_v7  ;;  %v15200_v51 = vpop.f32.mrf.mxu2  ;;  %v9806_v7 = vunpack.c.l.b16 %v9707_v41  ;;  %v6157_v41 = vrot.slane %v6156_v26, 4  ;;  %v6172_v61 = vsel %vm12873_vm8, %v6167_v12, %v6171_v49  ;;  %v8474_v52 = vor.u32 %v8473_v55, %v15204_v16  ;;  %v8155_v34 = vld [vmem:[#allocation2 + $0x178] sm:$0xf]  ;;  %v9421_v55 = vld [vmem:[#allocation2 + $0x174] sm:$0xe] }
 0x47e   : > { %16784 = vst [vmem:[#allocation206_spill] sm:$0xff] %v15200_v51  ;;  %v6183_v51 = vshll.u32 %v5448_v43, 16  ;;  %v15213_v27 = vpop.f32.mrf.mxu0  ;;  %v6174_v10 = vshrl.u32 %v5447_v3, 16  ;;  %v6288_v5 = vunpack.c.l.b16 %v6172_v61  ;;  %v6177_v26 = vshll.u32 %v5447_v3, 16 }
 0x47f   : > { %v15206_v46 = vpack.c.b16 %v9807_v28, %v9806_v7  ;;  %16788 = vst [vmem:[#allocation208_spill] sm:$0xff] %v15213_v27  ;;  %v4415_v28 = vpack.c.b16 %v4380_v36, %v4379_v42  ;;  %v6162_v7 = vsel %vm12873_vm8, %v6157_v41, %v15173_v17  ;;  %v6189_v43 = vrot.slane %v6187_v19, 4  ;;  %v5449_v42 = vld [vmem:[#allocation2 + $0x194] sm:$0x1]  ;;  %v16790_v27 = vld [vmem:[#allocation34_spill] sm:$0xff] }
 0x480   : > { %v15221_v12 = vrot.slane %v6183_v51, 5  ;;  %v4296_v59 = vrot.slane %v12624_v50, 5  ;;  %v8477_v49 = vshll.u32 %v12625_v44, 16  ;;  %v6287_v17 = vunpack.c.l.b16 %v6162_v7  ;;  %v8156_v51 = vld [vmem:[#allocation2 + $0x17c] sm:$0x1] }
 0x481   : > { %16785 = vst [vmem:[#allocation207_spill] sm:$0xff] %v15206_v46  ;;  %v8465_v36 = vrot.slane %v8464_v54, 4  ;;  %v6176_v3 = vrot.slane %v6174_v10, 4  ;;  %v6179_v19 = vrot.slane %v6177_v26, 5  ;;  %v8112_v46 = vld [vmem:[#allocation2 + $0xb4] sm:$0xf] }
 0x482   : > { %v4645_v1 = vpop.f32.mrf.mxu3  ;;  %v6322_v41 = vpack.c.b16 %v6288_v5, %v6287_v17  ;;  %v6190_v61 = vor.u32 %v6189_v43, %v15221_v12  ;;  %v4298_v44 = vrot.slane %v4296_v59, 4  ;;  %v4021_v54 = vld [vmem:[#allocation2 + $0x174] sm:$0xe]  ;;  %v6193_v7 = vshll.u32 %v5449_v42, 16  ;;  %v12626_v26 = vld [vmem:[#allocation2 + $0x17c] sm:$0x1] }
 0x483   : > { %v15211_v8 = vadd.f32 %v4645_v1, %v16786_v45  ;;  %v8475_v1 = vrot.slane %v8474_v52, 4  ;;  %v9713_v45 = vrot.slane %v8155_v34, 5  ;;  %v9716_v10 = vrot.slane %v8156_v51, 5  ;;  %v12627_v34 = vld [vmem:[#allocation2 + $0xb8] sm:$0xf] }
 0x484   : > { %v15215_v63 = vpop.f32.mrf.mxu1  ;;  %v4299_v43 = vrot.slane %v12626_v26, 5  ;;  %v8491_v17 = vshll.u32 %v12627_v34, 16 }
 0x485   : > { %16787 = vst [vmem:[#allocation32_spill] sm:$0xff] %v15211_v8  ;;  %v15223_v4 = vpop.f32.mrf.mxu2  ;;  %v8479_v8 = vrot.slane %v8477_v49, 5  ;;  %v9715_v52 = vrot.slane %v9713_v45, 4  ;;  %v8495_v49 = vshrl.u32 %v12627_v34, 16  ;;  %v6195_v34 = vrot.slane %v6193_v7, 5 }
 0x486   : > { %16789 = vst [vmem:[#allocation209_spill] sm:$0xff] %v15223_v4  ;;  %v12147_v4 = vld [vmem:[#allocation2 + $0x144] sm:$0xff]  ;;  %v15241_v51 = vpop.f32.mrf.mxu0  ;;  %v4300_v26 = vsel %vm13012_vm15, %v4298_v44, %v4299_v43 }
 0x487   : > { %11380 = vmatmul.msk.bf16.gmra.mxu3 %vm3277_vm9, %v4415_v28  ;;  %11891 = vmatmul.msk.bf16.gmra.mxu1 %vm3277_vm9, %v9020_v30  ;;  %v11939_v28 = vrot.slane %v9421_v55, 9  ;;  %v9717_v42 = vsel %vm13012_vm15, %v9715_v52, %v9716_v10  ;;  %16792 = vst [vmem:[#allocation210_spill] sm:$0xff] %v15241_v51  ;;  %v4382_v51 = vunpack.c.l.b16 %v4300_v26 }
 0x489   : > { %11605 = vmatmul.msk.bf16.gmra.mxu2 %vm3277_vm9, %v6322_v41  ;;  %v9714_v55 = vsel %vm13012_vm15, %v11939_v28, %v9713_v45  ;;  %v6180_v41 = vor.u32 %v6179_v19, %v6176_v3  ;;  %v8470_v45 = vsel %vm12873_vm8, %v8465_v36, %v15204_v16  ;;  %v8482_v28 = vshrl.u32 %v8112_v46, 16  ;;  %v5451_v3 = vld [vmem:[#allocation2 + $0x19c] sm:$0xf] }
 0x48a   : > { %v4648_v50 = vpop.f32.mrf.mxu3  ;;  %v9808_v19 = vunpack.c.l.b16 %v9714_v55  ;;  %v6207_v32 = vshll.u32 %v5451_v3, 16  ;;  %v6211_v55 = vshrl.u32 %v5451_v3, 16 }
 0x48b   : > { %v15229_v30 = vadd.f32 %v4648_v50, %v16790_v27  ;;  %11855 = vmatmul.msk.bf16.gmra.mxu0 %vm3277_vm9, %v12147_v4  ;;  %v8480_v27 = vsel %vm12873_vm8, %v8475_v1, %v8479_v8  ;;  %v6191_v50 = vrot.slane %v6190_v61, 4  ;;  %v8485_v8 = vshll.u32 %v8112_v46, 16  ;;  %v5450_v1 = vld [vmem:[#allocation2 + $0x198] sm:$0xf] }
 0x48c   : > { %v15233_v5 = vpop.f32.mrf.mxu1  ;;  %v9809_v61 = vunpack.c.l.b16 %v9717_v42  ;;  %v8970_v10 = vunpack.c.l.b16 %v8480_v27  ;;  %v6181_v44 = vrot.slane %v6180_v41, 4  ;;  %v6198_v46 = vshrl.u32 %v5450_v1, 16  ;;  %v16795_v42 = vld [vmem:[#allocation36_spill] sm:$0xff]  ;;  %v15264_v27 = vld [vmem:[#allocation2 + $0x184] sm:$0xf] }
 0x48d   : > { %16791 = vst [vmem:[#allocation34_spill] sm:$0xff] %v15229_v30  ;;  %v15243_v4 = vpop.f32.mrf.mxu2  ;;  %v11333_v30 = vrot.slane %v4021_v54, 9  ;;  %v8497_v54 = vrot.slane %v8495_v49, 4  ;;  %v6196_v43 = vsel %vm12873_vm8, %v6191_v50, %v6195_v34  ;;  %v6201_v7 = vshll.u32 %v5450_v1, 16 }
 0x48e   : > { %16793 = vst [vmem:[#allocation211_spill] sm:$0xff] %v15243_v4  ;;  %v15252_v4 = vrot.slane %v8491_v17, 5  ;;  %v15256_v16 = vpack.c.b16 %v9809_v61, %v9808_v19  ;;  %v8484_v17 = vrot.slane %v8482_v28, 4  ;;  %v6186_v49 = vsel %vm12873_vm8, %v6181_v44, %v15221_v12  ;;  %v12629_v61 = vld [vmem:[#allocation2 + $0xbc] sm:$0x1] }
 0x48f   : > { %v4297_v52 = vsel %vm13012_vm15, %v11333_v30, %v4296_v59  ;;  %v8969_v30 = vunpack.c.l.b16 %v8470_v45  ;;  %v4303_v41 = vrot.slane %v15264_v27, 5  ;;  %v8487_v50 = vrot.slane %v8485_v8, 5  ;;  %v5452_v45 = vld [vmem:[#allocation2 + $0x1a0] sm:$0x1]  ;;  %v8158_v28 = vld [vmem:[#allocation2 + $0x184] sm:$0xf] }
 0x490   : > { %16794 = vst [vmem:[#allocation212_spill] sm:$0xff] %v15256_v16  ;;  %v4381_v59 = vunpack.c.l.b16 %v4297_v52  ;;  %v8498_v26 = vor.u32 %v8497_v54, %v15252_v4  ;;  %v6290_v19 = vunpack.c.l.b16 %v6196_v43  ;;  %v8501_v52 = vshll.u32 %v12629_v61, 16  ;;  %v9422_v27 = vld [vmem:[#allocation2 + $0x180] sm:$0xe] }
 0x491   : > { %v9021_v3 = vpack.c.b16 %v8970_v10, %v8969_v30  ;;  %v6203_v12 = vrot.slane %v6201_v7, 5  ;;  %v15272_v44 = vrot.slane %v6207_v32, 5  ;;  %v6289_v8 = vunpack.c.l.b16 %v6186_v49  ;;  %v12148_v32 = vld [vmem:[#allocation2 + $0x150] sm:$0xff]  ;;  %v4022_v16 = vld [vmem:[#allocation2 + $0x180] sm:$0xe]  ;;  %v16799_v49 = vld [vmem:[#allocation38_spill] sm:$0xff] }
 0x492   : > { %v4650_v36 = vpop.f32.mrf.mxu3  ;;  %v4416_v1 = vpack.c.b16 %v4382_v51, %v4381_v59  ;;  %v15276_v51 = vpop.f32.mrf.mxu0  ;;  %v4305_v10 = vrot.slane %v4303_v41, 4  ;;  %v8488_v54 = vor.u32 %v8487_v50, %v8484_v17  ;;  %v8499_v43 = vrot.slane %v8498_v26, 4  ;;  %v8159_v59 = vld [vmem:[#allocation2 + $0x188] sm:$0x1] }
 0x493   : > { %v15259_v6 = vadd.f32 %v4650_v36, %v16795_v42  ;;  %v6200_v42 = vrot.slane %v6198_v46, 4  ;;  %16798 = vst [vmem:[#allocation214_spill] sm:$0xff] %v15276_v51  ;;  %v6323_v30 = vpack.c.b16 %v6290_v19, %v6289_v8  ;;  %v6217_v61 = vshll.u32 %v5452_v45, 16  ;;  %v8115_v8 = vld [vmem:[#allocation2 + $0xc0] sm:$0xf] }
 0x494   : > { %v15268_v34 = vpop.f32.mrf.mxu1  ;;  %v9720_v46 = vrot.slane %v8158_v28, 5  ;;  %v8503_v29 = vrot.slane %v8501_v52, 5  ;;  %v9723_v26 = vrot.slane %v8159_v59, 5  ;;  %v8489_v19 = vrot.slane %v8488_v54, 4  ;;  %v12631_v52 = vld [vmem:[#allocation2 + $0xc4] sm:$0xf] }
 0x495   : > { %16796 = vst [vmem:[#allocation36_spill] sm:$0xff] %v15259_v6  ;;  %v15270_v36 = vpop.f32.mrf.mxu2  ;;  %v6213_v6 = vrot.slane %v6211_v55, 4  ;;  %v12630_v55 = vld [vmem:[#allocation2 + $0x188] sm:$0x1]  ;;  %v8515_v28 = vshll.u32 %v12631_v52, 16 }
 0x496   : > { %16797 = vst [vmem:[#allocation213_spill] sm:$0xff] %v15270_v36  ;;  %v11940_v36 = vrot.slane %v9422_v27, 9  ;;  %v4306_v35 = vrot.slane %v12630_v55, 5  ;;  %v9722_v50 = vrot.slane %v9720_v46, 4  ;;  %v8504_v45 = vsel %vm12873_vm8, %v8499_v43, %v8503_v29 }
 0x497   : > { %11381 = vmatmul.msk.bf16.gmra.mxu3 %vm3277_vm9, %v4416_v1  ;;  %11892 = vmatmul.msk.bf16.gmra.mxu1 %vm3277_vm9, %v9021_v3  ;;  %v6204_v1 = vor.u32 %v6203_v12, %v6200_v42  ;;  %v6214_v3 = vor.u32 %v6213_v6, %v15272_v44  ;;  %v8519_v42 = vshrl.u32 %v12631_v52, 16  ;;  %v11334_v6 = vrot.slane %v4022_v16, 9 }
 0x498   : > { %v9721_v17 = vsel %vm13012_vm15, %v11940_v36, %v9720_v46  ;;  %v4307_v12 = vsel %vm13012_vm15, %v4305_v10, %v4306_v35  ;;  %v6219_v27 = vrot.slane %v6217_v61, 5  ;;  %v9724_v36 = vsel %vm13012_vm15, %v9722_v50, %v9723_v26 }
 0x499   : > { %11606 = vmatmul.msk.bf16.gmra.mxu2 %vm3277_vm9, %v6323_v30  ;;  %v6205_v59 = vrot.slane %v6204_v1, 4  ;;  %v6215_v46 = vrot.slane %v6214_v3, 4  ;;  %v9810_v54 = vunpack.c.l.b16 %v9721_v17  ;;  %v8494_v29 = vsel %vm12873_vm8, %v8489_v19, %v15252_v4 }
 0x49a   : > { %v4653_v7 = vpop.f32.mrf.mxu3  ;;  %v4304_v35 = vsel %vm13012_vm15, %v11334_v6, %v4303_v41  ;;  %v8506_v16 = vshrl.u32 %v8115_v8, 16  ;;  %v8509_v10 = vshll.u32 %v8115_v8, 16  ;;  %v4384_v61 = vunpack.c.l.b16 %v4307_v12  ;;  %v16804_v41 = vld [vmem:[#allocation40_spill] sm:$0xff]  ;;  %v12632_v12 = vld [vmem:[#allocation2 + $0xc8] sm:$0x1] }
 0x49b   : > { %v15280_v23 = vadd.f32 %v4653_v7, %v16799_v49  ;;  %11856 = vmatmul.msk.bf16.gmra.mxu0 %vm3277_vm9, %v12148_v32  ;;  %v9811_v7 = vunpack.c.l.b16 %v9724_v36  ;;  %v8972_v55 = vunpack.c.l.b16 %v8504_v45  ;;  %v15303_v49 = vpop.f32.mrf.mxu0  ;;  %v6210_v3 = vsel %vm12873_vm8, %v6205_v59, %v15272_v44  ;;  %v12633_v59 = vld [vmem:[#allocation2 + $0x190] sm:$0xf] }
 0x49c   : > { %v15294_v32 = vpop.f32.mrf.mxu1  ;;  %16803 = vst [vmem:[#allocation217_spill] sm:$0xff] %v15303_v49  ;;  %v6220_v17 = vsel %vm12873_vm8, %v6215_v46, %v6219_v27  ;;  %v15310_v4 = vrot.slane %v8515_v28, 5  ;;  %v8521_v50 = vrot.slane %v8519_v42, 4  ;;  %v4383_v19 = vunpack.c.l.b16 %v4304_v35  ;;  %v8161_v42 = vld [vmem:[#allocation2 + $0x190] sm:$0xf] }
 0x49d   : > { %16800 = vst [vmem:[#allocation38_spill] sm:$0xff] %v15280_v23  ;;  %v15292_v30 = vpop.f32.mrf.mxu2  ;;  %v15301_v43 = vpack.c.b16 %v9811_v7, %v9810_v54  ;;  %v8971_v52 = vunpack.c.l.b16 %v8494_v29  ;;  %v8508_v6 = vrot.slane %v8506_v16, 4  ;;  %v8511_v45 = vrot.slane %v8509_v10, 5  ;;  %v9423_v46 = vld [vmem:[#allocation2 + $0x18c] sm:$0xe] }
 0x49e   : > { %16801 = vst [vmem:[#allocation215_spill] sm:$0xff] %v15292_v30  ;;  %v8525_v8 = vshll.u32 %v12632_v12, 16  ;;  %v4417_v36 = vpack.c.b16 %v4384_v61, %v4383_v19  ;;  %v6291_v7 = vunpack.c.l.b16 %v6210_v3  ;;  %v6292_v30 = vunpack.c.l.b16 %v6220_v17  ;;  %v1348_v29 = vld [vmem:[#allocation2 + $0xd4] sm:$0x1]  ;;  %v8118_v35 = vld [vmem:[#allocation2 + $0xcc] sm:$0xf] }
 0x49f   : > { %16802 = vst [vmem:[#allocation216_spill] sm:$0xff] %v15301_v43  ;;  %v9022_v54 = vpack.c.b16 %v8972_v55, %v8971_v52  ;;  %v4310_v27 = vrot.slane %v12633_v59, 5  ;;  %v8522_v28 = vor.u32 %v8521_v50, %v15310_v4  ;;  %v1349_v61 = vsel %vm12849_vm5, 0, %v1348_v29  ;;  %v8162_v55 = vld [vmem:[#allocation2 + $0x194] sm:$0x1]  ;;  %v12149_v12 = vld [vmem:[#allocation2 + $0x15c] sm:$0xff] }
 0x4a0   : > { %v8527_v16 = vrot.slane %v8525_v8, 5  ;;  %v6324_v3 = vpack.c.b16 %v6292_v30, %v6291_v7  ;;  %v8512_v17 = vor.u32 %v8511_v45, %v8508_v6  ;;  %1350 = vst [vmem:[#allocation2 + $0xd4] sm:$0x1] %v1349_v61  ;;  %v11941_v50 = vrot.slane %v9423_v46, 9  ;;  %v12634_v7 = vld [vmem:[#allocation2 + $0x194] sm:$0x1] }
 0x4a1   : > { %v9727_v19 = vrot.slane %v8161_v42, 5  ;;  %v4312_v59 = vrot.slane %v4310_v27, 4  ;;  %v9730_v6 = vrot.slane %v8162_v55, 5  ;;  %v4313_v42 = vrot.slane %v12634_v7, 5 }
 0x4a2   : > { %v4655_v1 = vpop.f32.mrf.mxu3  ;;  %v8533_v46 = vshll.u32 %v8118_v35, 16  ;;  %v8513_v23 = vrot.slane %v8512_v17, 4 }
 0x4a3   : > { %v15313_v26 = vadd.f32 %v4655_v1, %v16804_v41  ;;  %v8119_v41 = vld [vmem:[#allocation2 + $0xd0] sm:$0xf]  ;;  %v9728_v29 = vsel %vm13012_vm15, %v11941_v50, %v9727_v19  ;;  %v9729_v30 = vrot.slane %v9727_v19, 4  ;;  %v15330_v45 = vpop.f32.mrf.mxu0  ;;  %v4314_v50 = vsel %vm13012_vm15, %v4312_v59, %v4313_v42 }
 0x4a4   : > { %v15322_v1 = vpop.f32.mrf.mxu1  ;;  %16810 = vst [vmem:[#allocation219_spill] sm:$0xff] %v15330_v45  ;;  %v8539_v61 = vshll.u32 %v8119_v41, 16  ;;  %v9812_v19 = vunpack.c.l.b16 %v9728_v29  ;;  %v8518_v17 = vsel %vm12873_vm8, %v8513_v23, %v15310_v4  ;;  %v4386_v7 = vunpack.c.l.b16 %v4314_v50 }
 0x4a5   : > { %16805 = vst [vmem:[#allocation40_spill] sm:$0xff] %v15313_v26  ;;  %v15315_v44 = vpop.f32.mrf.mxu2  ;;  %v16808_v26 = vld [vmem:[#allocation42_spill] sm:$0xff] }
 0x4a6   : > { %16806 = vst [vmem:[#allocation218_spill] sm:$0xff] %v15315_v44  ;;  %v8530_v44 = vshrl.u32 %v8118_v35, 16 }
 0x4a7   : > { %11382 = vmatmul.msk.bf16.gmra.mxu3 %vm3277_vm9, %v4417_v36  ;;  %11893 = vmatmul.msk.bf16.gmra.mxu1 %vm3277_vm9, %v9022_v54  ;;  %v4023_v36 = vld [vmem:[#allocation2 + $0x18c] sm:$0xe]  ;;  %v8523_v54 = vrot.slane %v8522_v28, 4  ;;  %v8543_v28 = vshrl.u32 %v8119_v41, 16  ;;  %v8120_v42 = vld [vmem:[#allocation2 + $0xd4] sm:$0x1] }
 0x4a8   : > { %v11335_v10 = vrot.slane %v4023_v36, 9  ;;  %v8532_v41 = vrot.slane %v8530_v44, 4  ;;  %v8541_v36 = vrot.slane %v8539_v61, 5  ;;  %v8549_v23 = vshll.u32 %v8120_v42, 16 }
 0x4a9   : > { %11607 = vmatmul.msk.bf16.gmra.mxu2 %vm3277_vm9, %v6324_v3  ;;  %v8528_v55 = vsel %vm12873_vm8, %v8523_v54, %v8527_v16  ;;  %v16813_v54 = vld [vmem:[#allocation44_spill] sm:$0xff] }
 0x4aa   : > { %v4658_v52 = vpop.f32.mrf.mxu3  ;;  %v4311_v35 = vsel %vm13012_vm15, %v11335_v10, %v4310_v27  ;;  %v8974_v59 = vunpack.c.l.b16 %v8528_v55  ;;  %v8973_v10 = vunpack.c.l.b16 %v8518_v17  ;;  %v8551_v55 = vrot.slane %v8549_v23, 5  ;;  %v16819_v17 = vld [vmem:[#allocation50_spill] sm:$0xff] }
 0x4ab   : > { %v15325_v8 = vadd.f32 %v4658_v52, %v16808_v26  ;;  %11857 = vmatmul.msk.bf16.gmra.mxu0 %vm3277_vm9, %v12149_v12  ;;  %v9731_v26 = vsel %vm13012_vm15, %v9729_v30, %v9730_v6  ;;  %v8535_v12 = vrot.slane %v8533_v46, 5  ;;  %v8545_v30 = vrot.slane %v8543_v28, 4  ;;  %v15353_v46 = vpop.f32.mrf.mxu0 }
 0x4ac   : > { %v9813_v52 = vunpack.c.l.b16 %v9731_v26  ;;  %v15348_v16 = vpop.f32.mrf.mxu1  ;;  %v4385_v27 = vunpack.c.l.b16 %v4311_v35  ;;  %v9023_v44 = vpack.c.b16 %v8974_v59, %v8973_v10  ;;  %16815 = vst [vmem:[#allocation222_spill] sm:$0xff] %v15353_v46  ;;  %v8121_v10 = vld [vmem:[#allocation2 + $0xf0] sm:$0xf] }
 0x4ad   : > { %16809 = vst [vmem:[#allocation42_spill] sm:$0xff] %v15325_v8  ;;  %v15335_v3 = vpop.f32.mrf.mxu2  ;;  %v8536_v26 = vor.u32 %v8535_v12, %v8532_v41  ;;  %v8546_v8 = vor.u32 %v8545_v30, %v8541_v36 }
 0x4ae   : > { %16811 = vst [vmem:[#allocation220_spill] sm:$0xff] %v15335_v3  ;;  %v15346_v6 = vpack.c.b16 %v9813_v52, %v9812_v19  ;;  %v4418_v4 = vpack.c.b16 %v4386_v7, %v4385_v27  ;;  %v12150_v19 = vld [vmem:[#allocation2 + $0x168] sm:$0xff]  ;;  %v12635_v7 = vld [vmem:[#allocation2 + $0xf4] sm:$0xf] }
 0x4af   : > { %v8537_v28 = vrot.slane %v8536_v26, 4  ;;  %v8547_v50 = vrot.slane %v8546_v8, 4  ;;  %v16817_v52 = vld [vmem:[#allocation46_spill] sm:$0xff]  ;;  %v8563_v59 = vshll.u32 %v12635_v7, 16  ;;  %v8567_v42 = vshrl.u32 %v12635_v7, 16 }
 0x4b0   : > { %16812 = vst [vmem:[#allocation221_spill] sm:$0xff] %v15346_v6 }
 0x4b1   : > { %v8542_v41 = vsel %vm12873_vm8, %v8537_v28, %v8541_v36  ;;  %v8552_v12 = vsel %vm12873_vm8, %v8547_v50, %v8551_v55  ;;  %v8569_v36 = vrot.slane %v8567_v42, 4  ;;  %v16822_v28 = vld [vmem:[#allocation48_spill] sm:$0xff] }
 0x4b2   : > { %v4660_v3 = vpop.f32.mrf.mxu3  ;;  %v8976_v27 = vunpack.c.l.b16 %v8552_v12  ;;  %v12636_v55 = vld [vmem:[#allocation2 + $0x1c] sm:$0xf] }
 0x4b3   : > { %v15351_v29 = vadd.f32 %v4660_v3, %v16813_v54  ;;  %v8975_v54 = vunpack.c.l.b16 %v8542_v41  ;;  %v15373_v26 = vpop.f32.mrf.mxu0 }
 0x4b4   : > { %v15369_v30 = vpop.f32.mrf.mxu1  ;;  %16821 = vst [vmem:[#allocation224_spill] sm:$0xff] %v15373_v26  ;;  %v12640_v26 = vld [vmem:[#allocation2 + $0x28] sm:$0xf] }
 0x4b5   : > { %16814 = vst [vmem:[#allocation44_spill] sm:$0xff] %v15351_v29  ;;  %v15355_v61 = vpop.f32.mrf.mxu2  ;;  %v9024_v50 = vpack.c.b16 %v8976_v27, %v8975_v54  ;;  %v12151_v27 = vld [vmem:[#allocation2 + $0x174] sm:$0xff] }
 0x4b6   : > { %16816 = vst [vmem:[#allocation223_spill] sm:$0xff] %v15355_v61  ;;  %v16825_v61 = vld [vmem:[#allocation51_spill] sm:$0xff] }
 0x4b7   : > { %11383 = vmatmul.msk.bf16.gmra.mxu3 %vm3277_vm9, %v4418_v4  ;;  %11894 = vmatmul.msk.bf16.gmra.mxu1 %vm3277_vm9, %v9023_v44  ;;  %v8554_v4 = vshrl.u32 %v8121_v10, 16  ;;  %v8557_v44 = vshll.u32 %v8121_v10, 16 }
 0x4b9   : > { %11960 = vmatmul.msk.bf16.vlgmr.msra.gmra.mxu2 %vm3277_vm9, %v16819_v17  ;;  %v8559_v7 = vrot.slane %v8557_v44, 5 }
 0x4ba   : > { %v4663_v3 = vpop.f32.mrf.mxu3 }
 0x4bb   : > { %v15360_v35 = vadd.f32 %v4663_v3, %v16817_v52  ;;  %11858 = vmatmul.msk.bf16.gmra.mxu0 %vm3277_vm9, %v12150_v19  ;;  %v8565_v3 = vrot.slane %v8563_v59, 5  ;;  %v6815_v52 = vrot.slane %v12636_v55, 5  ;;  %v12637_v59 = vld [vmem:[#allocation2 + $0xf8] sm:$0x1] }
 0x4bc   : > { %v15380_v12 = vpop.f32.mrf.mxu1  ;;  %v8573_v42 = vshll.u32 %v12637_v59, 16 }
 0x4bd   : > { %16818 = vst [vmem:[#allocation46_spill] sm:$0xff] %v15360_v35  ;;  %v15371_v8 = vpop.f32.mrf.mxu2  ;;  %v8570_v41 = vor.u32 %v8569_v36, %v8565_v3  ;;  %v6817_v10 = vrot.slane %v6815_v52, 4  ;;  %v16829_v36 = vld [vmem:[#allocation54_spill] sm:$0xff] }
 0x4be   : > { %16820 = vst [vmem:[#allocation50_spill] sm:$0xff] %v15371_v8  ;;  %v8556_v8 = vrot.slane %v8554_v4, 4  ;;  %v16827_v4 = vld [vmem:[#allocation52_spill] sm:$0xff] }
 0x4c0   : > { %v8560_v55 = vor.u32 %v8559_v7, %v8556_v8  ;;  %v12639_v7 = vld [vmem:[#allocation2 + $0x100] sm:$0xf] }
 0x4c2   : > { %v4665_v23 = vpop.f32.mrf.mxu3  ;;  %v8561_v6 = vrot.slane %v8560_v55, 4 }
 0x4c3   : > { %v15376_v19 = vadd.f32 %v4665_v23, %v16822_v28  ;;  %v15385_v23 = vpop.f32.mrf.mxu0  ;;  %v6679_v28 = vld [vmem:[#allocation2 + $0x18] sm:$0xe] }
 0x4c4   : > { %16826 = vst [vmem:[#allocation51_spill] sm:$0xff] %v15385_v23  ;;  %v11609_v59 = vrot.slane %v6679_v28, 9 }
 0x4c5   : > { %16823 = vst [vmem:[#allocation48_spill] sm:$0xff] %v15376_v19  ;;  %v15378_v17 = vpop.f32.mrf.mxu2  ;;  %v12638_v19 = vld [vmem:[#allocation2 + $0x20] sm:$0x1] }
 0x4c6   : > { %16824 = vst [vmem:[#allocation225_spill] sm:$0xff] %v15378_v17  ;;  %v8571_v17 = vrot.slane %v8570_v41, 4  ;;  %v8587_v41 = vshll.u32 %v12639_v7, 16 }
 0x4c7   : > { %11656 = vmatmul.msk.bf16.vlgmr.msra.gmra.mxu3 %vm3277_vm9, %v16825_v61  ;;  %11895 = vmatmul.msk.bf16.gmra.mxu1 %vm3277_vm9, %v9024_v50  ;;  %v6818_v61 = vrot.slane %v12638_v19, 5  ;;  %v8575_v50 = vrot.slane %v8573_v42, 5  ;;  %v6816_v19 = vsel %vm13012_vm15, %v11609_v59, %v6815_v52  ;;  %v8566_v42 = vsel %vm12873_vm8, %v8561_v6, %v8565_v3 }
 0x4c8   : > { %v8977_v43 = vunpack.c.l.b16 %v8566_v42  ;;  %v6822_v6 = vrot.slane %v12640_v26, 5  ;;  %v12152_v42 = vld [vmem:[#allocation2 + $0x180] sm:$0xff] }
 0x4c9   : > { %11961 = vmatmul.msk.bf16.gmra.mxu2 %vm3277_vm9, %v16829_v36  ;;  %v6819_v35 = vsel %vm13012_vm15, %v6817_v10, %v6818_v61  ;;  %v8576_v8 = vsel %vm12873_vm8, %v8571_v17, %v8575_v50  ;;  %v16831_v17 = vld [vmem:[#allocation55_spill] sm:$0xff]  ;;  %v16835_v26 = vld [vmem:[#allocation57_spill] sm:$0xff] }
 0x4ca   : > { %v4668_v54 = vpop.f32.mrf.mxu3  ;;  %v7041_v28 = vunpack.c.l.b16 %v6819_v35  ;;  %v8978_v10 = vunpack.c.l.b16 %v8576_v8 }
 0x4cb   : > { %v15388_v44 = vadd.f32 %v4668_v54, %v16827_v4  ;;  %11859 = vmatmul.msk.bf16.gmra.mxu0 %vm3277_vm9, %v12151_v27  ;;  %v8591_v54 = vshrl.u32 %v12639_v7, 16  ;;  %v8124_v4 = vld [vmem:[#allocation2 + $0xfc] sm:$0xf]  ;;  %v15403_v27 = vpop.f32.mrf.mxu1  ;;  %v7040_v7 = vunpack.c.l.b16 %v6816_v19  ;;  %v15408_v23 = vpop.f32.mrf.mxu0 }
 0x4cc   : > { %v8578_v61 = vshrl.u32 %v8124_v4, 16  ;;  %v8581_v55 = vshll.u32 %v8124_v4, 16  ;;  %16833 = vst [vmem:[#allocation226_spill] sm:$0xff] %v15408_v23  ;;  %v9025_v59 = vpack.c.b16 %v8978_v10, %v8977_v43  ;;  %v6824_v4 = vrot.slane %v6822_v6, 4 }
 0x4cd   : > { %16828 = vst [vmem:[#allocation52_spill] sm:$0xff] %v15388_v44  ;;  %v15395_v29 = vpop.f32.mrf.mxu2  ;;  %v8593_v44 = vrot.slane %v8591_v54, 4  ;;  %v7103_v52 = vpack.c.b16 %v7041_v28, %v7040_v7 }
 0x4ce   : > { %16830 = vst [vmem:[#allocation54_spill] sm:$0xff] %v15395_v29  ;;  %v8589_v29 = vrot.slane %v8587_v41, 5  ;;  %v8580_v35 = vrot.slane %v8578_v61, 4  ;;  %v8583_v8 = vrot.slane %v8581_v55, 5  ;;  %v12641_v41 = vld [vmem:[#allocation2 + $0x104] sm:$0x1] }
 0x4cf   : > { %v8597_v54 = vshll.u32 %v12641_v41, 16  ;;  %v16837_v61 = vld [vmem:[#allocation59_spill] sm:$0xff] }
 0x4d0   : > { %v8594_v46 = vor.u32 %v8593_v44, %v8589_v29  ;;  %v12642_v44 = vld [vmem:[#allocation2 + $0x2c] sm:$0x1] }
 0x4d1   : > { %v6825_v55 = vrot.slane %v12642_v44, 5  ;;  %v8599_v7 = vrot.slane %v8597_v54, 5 }
 0x4d2   : > { %v4670_v36 = vpop.f32.mrf.mxu3  ;;  %v8595_v28 = vrot.slane %v8594_v46, 4 }
 0x4d3   : > { %v15406_v50 = vadd.f32 %v4670_v36, %v16831_v17  ;;  %v6680_v36 = vld [vmem:[#allocation2 + $0x24] sm:$0xe]  ;;  %v8584_v17 = vor.u32 %v8583_v8, %v8580_v35  ;;  %v15414_v43 = vpop.f32.mrf.mxu1  ;;  %v15424_v41 = vpop.f32.mrf.mxu0 }
 0x4d4   : > { %16838 = vst [vmem:[#allocation59_spill] sm:$0xff] %v15424_v41  ;;  %v8600_v8 = vsel %vm12873_vm8, %v8595_v28, %v8599_v7 }
 0x4d5   : > { %16832 = vst [vmem:[#allocation55_spill] sm:$0xff] %v15406_v50  ;;  %v15410_v3 = vpop.f32.mrf.mxu2  ;;  %v8585_v35 = vrot.slane %v8584_v17, 4  ;;  %v16840_v50 = vld [vmem:[#allocation60_spill] sm:$0xff] }
 0x4d6   : > { %16834 = vst [vmem:[#allocation227_spill] sm:$0xff] %v15410_v3  ;;  %v8127_v3 = vld [vmem:[#allocation2 + $0x108] sm:$0xf] }
 0x4d7   : > { %11657 = vmatmul.msk.bf16.gmra.mxu3 %vm3277_vm9, %v7103_v52  ;;  %11896 = vmatmul.msk.bf16.gmra.mxu1 %vm3277_vm9, %v9025_v59  ;;  %v11610_v52 = vrot.slane %v6680_v36, 9  ;;  %v6826_v59 = vsel %vm13012_vm15, %v6824_v4, %v6825_v55  ;;  %v8590_v54 = vsel %vm12873_vm8, %v8585_v35, %v8589_v29  ;;  %v8980_v4 = vunpack.c.l.b16 %v8600_v8 }
 0x4d8   : > { %v7043_v36 = vunpack.c.l.b16 %v6826_v59  ;;  %v8602_v55 = vshrl.u32 %v8127_v3, 16  ;;  %v8979_v7 = vunpack.c.l.b16 %v8590_v54  ;;  %v6681_v54 = vld [vmem:[#allocation2 + $0x30] sm:$0xe] }
 0x4d9   : > { %11962 = vmatmul.msk.bf16.gmra.mxu2 %vm3277_vm9, %v16837_v61 }
 0x4da   : > { %v4673_v19 = vpop.f32.mrf.mxu3  ;;  %v9026_v45 = vpack.c.b16 %v8980_v4, %v8979_v7  ;;  %v8604_v29 = vrot.slane %v8602_v55, 4  ;;  %v16846_v55 = vld [vmem:[#allocation64_spill] sm:$0xff] }
 0x4db   : > { %v15417_v10 = vadd.f32 %v4673_v19, %v16835_v26  ;;  %11860 = vmatmul.msk.bf16.gmra.mxu0 %vm3277_vm9, %v12152_v42  ;;  %v12643_v19 = vld [vmem:[#allocation2 + $0x10c] sm:$0xf]  ;;  %v6823_v42 = vsel %vm13012_vm15, %v11610_v52, %v6822_v6  ;;  %v12644_v6 = vld [vmem:[#allocation2 + $0x34] sm:$0xf] }
 0x4dc   : > { %v8611_v26 = vshll.u32 %v12643_v19, 16  ;;  %v8615_v61 = vshrl.u32 %v12643_v19, 16  ;;  %v7042_v28 = vunpack.c.l.b16 %v6823_v42  ;;  %v15437_v19 = vpop.f32.mrf.mxu1  ;;  %v6829_v52 = vrot.slane %v12644_v6, 5  ;;  %v12153_v42 = vld [vmem:[#allocation2 + $0x18c] sm:$0xff] }
 0x4dd   : > { %16836 = vst [vmem:[#allocation57_spill] sm:$0xff] %v15417_v10  ;;  %v15426_v46 = vpop.f32.mrf.mxu2  ;;  %v8605_v10 = vshll.u32 %v8127_v3, 16  ;;  %v15443_v3 = vpop.f32.mrf.mxu0 }
 0x4de   : > { %16839 = vst [vmem:[#allocation228_spill] sm:$0xff] %v15426_v46  ;;  %v8613_v46 = vrot.slane %v8611_v26, 5  ;;  %v8617_v17 = vrot.slane %v8615_v61, 4  ;;  %v7104_v23 = vpack.c.b16 %v7043_v36, %v7042_v28  ;;  %v6831_v26 = vrot.slane %v6829_v52, 4 }
 0x4df   : > { %v8607_v59 = vrot.slane %v8605_v10, 5  ;;  %16843 = vst [vmem:[#allocation230_spill] sm:$0xff] %v15443_v3  ;;  %v12646_v10 = vld [vmem:[#allocation2 + $0x38] sm:$0x1] }
 0x4e0   : > { %v8618_v35 = vor.u32 %v8617_v17, %v8613_v46  ;;  %v11611_v17 = vrot.slane %v6681_v54, 9 }
 0x4e1   : > { %v8608_v36 = vor.u32 %v8607_v59, %v8604_v29  ;;  %v12647_v59 = vld [vmem:[#allocation2 + $0x118] sm:$0xf] }
 0x4e2   : > { %v4675_v44 = vpop.f32.mrf.mxu3  ;;  %v8619_v4 = vrot.slane %v8618_v35, 4  ;;  %v8635_v35 = vshll.u32 %v12647_v59, 16 }
 0x4e3   : > { %v15435_v41 = vadd.f32 %v4675_v44, %v16840_v50  ;;  %v12645_v50 = vld [vmem:[#allocation2 + $0x110] sm:$0x1]  ;;  %v16844_v44 = vld [vmem:[#allocation62_spill] sm:$0xff] }
 0x4e4   : > { %v8621_v8 = vshll.u32 %v12645_v50, 16  ;;  %v8609_v50 = vrot.slane %v8608_v36, 4 }
 0x4e5   : > { %16841 = vst [vmem:[#allocation60_spill] sm:$0xff] %v15435_v41  ;;  %v15439_v49 = vpop.f32.mrf.mxu2 }
 0x4e6   : > { %16842 = vst [vmem:[#allocation229_spill] sm:$0xff] %v15439_v49  ;;  %v16850_v49 = vld [vmem:[#allocation65_spill] sm:$0xff] }
 0x4e7   : > { %11658 = vmatmul.msk.bf16.gmra.mxu3 %vm3277_vm9, %v7104_v23  ;;  %11897 = vmatmul.msk.bf16.gmra.mxu1 %vm3277_vm9, %v9026_v45  ;;  %v6832_v23 = vrot.slane %v12646_v10, 5  ;;  %v8623_v45 = vrot.slane %v8621_v8, 5  ;;  %v8614_v8 = vsel %vm12873_vm8, %v8609_v50, %v8613_v46  ;;  %v15463_v10 = vpop.f32.mrf.mxu0 }
 0x4e8   : > { %16849 = vst [vmem:[#allocation232_spill] sm:$0xff] %v15463_v10  ;;  %v8981_v41 = vunpack.c.l.b16 %v8614_v8 }
 0x4e9   : > { %11963 = vmatmul.msk.bf16.gmra.mxu2 %vm3277_vm9, %v16846_v55  ;;  %v6833_v7 = vsel %vm13012_vm15, %v6831_v26, %v6832_v23  ;;  %v8624_v29 = vsel %vm12873_vm8, %v8619_v4, %v8623_v45  ;;  %v8130_v55 = vld [vmem:[#allocation2 + $0x114] sm:$0xf]  ;;  %v8637_v4 = vrot.slane %v8635_v35, 5 }
 0x4ea   : > { %v4678_v61 = vpop.f32.mrf.mxu3  ;;  %v7045_v54 = vunpack.c.l.b16 %v6833_v7  ;;  %v8982_v26 = vunpack.c.l.b16 %v8624_v29  ;;  %v8626_v23 = vshrl.u32 %v8130_v55, 16  ;;  %v12649_v29 = vld [vmem:[#allocation2 + $0x11c] sm:$0x1] }
 0x4eb   : > { %v15446_v28 = vadd.f32 %v4678_v61, %v16844_v44  ;;  %11861 = vmatmul.msk.bf16.gmra.mxu0 %vm3277_vm9, %v12153_v42  ;;  %v8639_v61 = vshrl.u32 %v12647_v59, 16  ;;  %v15457_v44 = vpop.f32.mrf.mxu1  ;;  %v6830_v42 = vsel %vm13012_vm15, %v11611_v17, %v6829_v52  ;;  %v12648_v52 = vld [vmem:[#allocation2 + $0x40] sm:$0xf]  ;;  %v8645_v35 = vshll.u32 %v12649_v29, 16 }
 0x4ec   : > { %16848 = vst [vmem:[#allocation231_spill] sm:$0xff] %v15457_v44  ;;  %v9027_v51 = vpack.c.b16 %v8982_v26, %v8981_v41  ;;  %v6836_v17 = vrot.slane %v12648_v52, 5  ;;  %v8628_v46 = vrot.slane %v8626_v23, 4 }
 0x4ed   : > { %16845 = vst [vmem:[#allocation62_spill] sm:$0xff] %v15446_v28  ;;  %v15453_v6 = vpop.f32.mrf.mxu2  ;;  %v8641_v45 = vrot.slane %v8639_v61, 4  ;;  %v7044_v28 = vunpack.c.l.b16 %v6830_v42  ;;  %v12154_v42 = vld [vmem:[#allocation2 + $0x198] sm:$0xff] }
 0x4ee   : > { %16847 = vst [vmem:[#allocation64_spill] sm:$0xff] %v15453_v6  ;;  %v8629_v6 = vshll.u32 %v8130_v55, 16 }
 0x4ef   : > { %v7105_v3 = vpack.c.b16 %v7045_v54, %v7044_v28  ;;  %v8642_v50 = vor.u32 %v8641_v45, %v8637_v4  ;;  %v6682_v28 = vld [vmem:[#allocation2 + $0x3c] sm:$0xe]  ;;  %v16854_v54 = vld [vmem:[#allocation67_spill] sm:$0xff]  ;;  %v15479_v23 = vpop.f32.mrf.mxu0 }
 0x4f0   : > { %v8631_v7 = vrot.slane %v8629_v6, 5  ;;  %v12650_v6 = vld [vmem:[#allocation2 + $0x44] sm:$0x1]  ;;  %v11612_v45 = vrot.slane %v6682_v28, 9 }
 0x4f1   : > { %v8643_v8 = vrot.slane %v8642_v50, 4  ;;  %v12651_v50 = vld [vmem:[#allocation2 + $0x124] sm:$0xf] }
 0x4f2   : > { %v4680_v36 = vpop.f32.mrf.mxu3  ;;  %v8632_v41 = vor.u32 %v8631_v7, %v8628_v46 }
 0x4f3   : > { %v15466_v59 = vadd.f32 %v4680_v36, %v16850_v49  ;;  %v15472_v61 = vpop.f32.mrf.mxu1  ;;  %v6838_v49 = vrot.slane %v6836_v17, 4  ;;  %v16856_v36 = vld [vmem:[#allocation69_spill] sm:$0xff] }
 0x4f4   : > { %16853 = vst [vmem:[#allocation234_spill] sm:$0xff] %v15472_v61  ;;  %v8633_v46 = vrot.slane %v8632_v41, 4 }
 0x4f5   : > { %16851 = vst [vmem:[#allocation65_spill] sm:$0xff] %v15466_v59  ;;  %v15468_v44 = vpop.f32.mrf.mxu2 }
 0x4f6   : > { %16852 = vst [vmem:[#allocation233_spill] sm:$0xff] %v15468_v44 }
 0x4f7   : > { %11659 = vmatmul.msk.bf16.gmra.mxu3 %vm3277_vm9, %v7105_v3  ;;  %11898 = vmatmul.msk.bf16.gmra.mxu1 %vm3277_vm9, %v9027_v51  ;;  %v6839_v3 = vrot.slane %v12650_v6, 5  ;;  %16857 = vst [vmem:[#allocation69_spill] sm:$0xff] %v15479_v23  ;;  %v8647_v51 = vrot.slane %v8645_v35, 5  ;;  %v6837_v6 = vsel %vm13012_vm15, %v11612_v45, %v6836_v17  ;;  %v8638_v35 = vsel %vm12873_vm8, %v8633_v46, %v8637_v4  ;;  %v12652_v17 = vld [vmem:[#allocation2 + $0x4c] sm:$0xf] }
 0x4f8   : > { %v8983_v59 = vunpack.c.l.b16 %v8638_v35  ;;  %v6843_v45 = vrot.slane %v12652_v17, 5 }
 0x4f9   : > { %11964 = vmatmul.msk.bf16.gmra.mxu2 %vm3277_vm9, %v16856_v36  ;;  %v6840_v52 = vsel %vm13012_vm15, %v6838_v49, %v6839_v3  ;;  %v8648_v7 = vsel %vm12873_vm8, %v8643_v8, %v8647_v51  ;;  %v8133_v36 = vld [vmem:[#allocation2 + $0x120] sm:$0xf]  ;;  %v16860_v8 = vld [vmem:[#allocation70_spill] sm:$0xff] }
 0x4fa   : > { %v4683_v55 = vpop.f32.mrf.mxu3  ;;  %v8984_v28 = vunpack.c.l.b16 %v8648_v7  ;;  %v8650_v49 = vshrl.u32 %v8133_v36, 16  ;;  %v8653_v3 = vshll.u32 %v8133_v36, 16  ;;  %v12653_v7 = vld [vmem:[#allocation2 + $0x128] sm:$0x1]  ;;  %v6683_v36 = vld [vmem:[#allocation2 + $0x48] sm:$0xe] }
 0x4fb   : > { %v15475_v26 = vadd.f32 %v4683_v55, %v16854_v54  ;;  %11862 = vmatmul.msk.bf16.gmra.mxu0 %vm3277_vm9, %v12154_v42  ;;  %v8659_v55 = vshll.u32 %v12651_v50, 16  ;;  %v8663_v54 = vshrl.u32 %v12651_v50, 16  ;;  %v7047_v42 = vunpack.c.l.b16 %v6840_v52 }
 0x4fc   : > { %v7046_v50 = vunpack.c.l.b16 %v6837_v6  ;;  %v9028_v10 = vpack.c.b16 %v8984_v28, %v8983_v59  ;;  %v8652_v4 = vrot.slane %v8650_v49, 4  ;;  %v8655_v52 = vrot.slane %v8653_v3, 5  ;;  %v16865_v28 = vld [vmem:[#allocation74_spill] sm:$0xff]  ;;  %v12654_v49 = vld [vmem:[#allocation2 + $0x50] sm:$0x1] }
 0x4fd   : > { %16855 = vst [vmem:[#allocation67_spill] sm:$0xff] %v15475_v26  ;;  %v15484_v29 = vpop.f32.mrf.mxu2  ;;  %v8665_v41 = vrot.slane %v8663_v54, 4  ;;  %v15492_v26 = vpop.f32.mrf.mxu1  ;;  %v6845_v54 = vrot.slane %v6843_v45, 4  ;;  %v6846_v3 = vrot.slane %v12654_v49, 5 }
 0x4fe   : > { %16858 = vst [vmem:[#allocation235_spill] sm:$0xff] %v15484_v29  ;;  %v8661_v29 = vrot.slane %v8659_v55, 5  ;;  %v7106_v23 = vpack.c.b16 %v7047_v42, %v7046_v50  ;;  %v8669_v55 = vshll.u32 %v12653_v7, 16  ;;  %v8656_v6 = vor.u32 %v8655_v52, %v8652_v4  ;;  %v16863_v42 = vld [vmem:[#allocation72_spill] sm:$0xff]  ;;  %v12655_v52 = vld [vmem:[#allocation2 + $0x130] sm:$0xf] }
 0x4ff   : > { %16859 = vst [vmem:[#allocation236_spill] sm:$0xff] %v15492_v26  ;;  %v8687_v7 = vshrl.u32 %v12655_v52, 16 }
 0x500   : > { %v8666_v46 = vor.u32 %v8665_v41, %v8661_v29  ;;  %v8671_v41 = vrot.slane %v8669_v55, 5  ;;  %v8657_v17 = vrot.slane %v8656_v6, 4 }
 0x501   : > { %v8689_v6 = vrot.slane %v8687_v7, 4 }
 0x502   : > { %v4685_v44 = vpop.f32.mrf.mxu3  ;;  %v8667_v35 = vrot.slane %v8666_v46, 4  ;;  %v8683_v46 = vshll.u32 %v12655_v52, 16  ;;  %v8662_v55 = vsel %vm12873_vm8, %v8657_v17, %v8661_v29 }
 0x503   : > { %v15495_v51 = vadd.f32 %v4685_v44, %v16860_v8 }
 0x504   : > { %v8672_v4 = vsel %vm12873_vm8, %v8667_v35, %v8671_v41  ;;  %v8985_v41 = vunpack.c.l.b16 %v8662_v55 }
 0x505   : > { %16861 = vst [vmem:[#allocation70_spill] sm:$0xff] %v15495_v51  ;;  %v15497_v61 = vpop.f32.mrf.mxu2  ;;  %v15506_v8 = vpop.f32.mrf.mxu1 }
 0x506   : > { %16862 = vst [vmem:[#allocation237_spill] sm:$0xff] %v15497_v61  ;;  %v16868_v61 = vld [vmem:[#allocation75_spill] sm:$0xff] }
 0x507   : > { %11660 = vmatmul.msk.bf16.gmra.mxu3 %vm3277_vm9, %v7106_v23  ;;  %11899 = vmatmul.msk.bf16.gmra.mxu1 %vm3277_vm9, %v9028_v10  ;;  %16866 = vst [vmem:[#allocation74_spill] sm:$0xff] %v15506_v8  ;;  %v11613_v23 = vrot.slane %v6683_v36, 9  ;;  %v6847_v10 = vsel %vm13012_vm15, %v6845_v54, %v6846_v3  ;;  %v12656_v8 = vld [vmem:[#allocation2 + $0x58] sm:$0xf] }
 0x508   : > { %v7049_v36 = vunpack.c.l.b16 %v6847_v10  ;;  %v6850_v26 = vrot.slane %v12656_v8, 5 }
 0x509   : > { %11965 = vmatmul.msk.bf16.gmra.mxu2 %vm3277_vm9, %v16865_v28  ;;  %v8986_v28 = vunpack.c.l.b16 %v8672_v4  ;;  %v12657_v4 = vld [vmem:[#allocation2 + $0x134] sm:$0x1] }
 0x50a   : > { %v4688_v44 = vpop.f32.mrf.mxu3 }
 0x50b   : > { %v15502_v59 = vadd.f32 %v4688_v44, %v16863_v42  ;;  %v8136_v44 = vld [vmem:[#allocation2 + $0x12c] sm:$0xf]  ;;  %v6844_v42 = vsel %vm13012_vm15, %v11613_v23, %v6843_v45  ;;  %v9029_v51 = vpack.c.b16 %v8986_v28, %v8985_v41  ;;  %v16874_v28 = vld [vmem:[#allocation79_spill] sm:$0xff] }
 0x50c   : > { %v8674_v54 = vshrl.u32 %v8136_v44, 16  ;;  %v8677_v3 = vshll.u32 %v8136_v44, 16  ;;  %v7048_v35 = vunpack.c.l.b16 %v6844_v42  ;;  %v6684_v44 = vld [vmem:[#allocation2 + $0x54] sm:$0xe] }
 0x50d   : > { %16864 = vst [vmem:[#allocation72_spill] sm:$0xff] %v15502_v59  ;;  %v15510_v50 = vpop.f32.mrf.mxu2  ;;  %v15523_v17 = vpop.f32.mrf.mxu1 }
 0x50e   : > { %16867 = vst [vmem:[#allocation238_spill] sm:$0xff] %v15510_v50  ;;  %v8685_v50 = vrot.slane %v8683_v46, 5  ;;  %v7107_v52 = vpack.c.b16 %v7049_v36, %v7048_v35  ;;  %v8676_v23 = vrot.slane %v8674_v54, 4  ;;  %v8679_v29 = vrot.slane %v8677_v3, 5  ;;  %v16872_v36 = vld [vmem:[#allocation77_spill] sm:$0xff] }
 0x50f   : > { %16871 = vst [vmem:[#allocation240_spill] sm:$0xff] %v15523_v17  ;;  %v6852_v46 = vrot.slane %v6850_v26, 4 }
 0x510   : > { %v8690_v10 = vor.u32 %v8689_v6, %v8685_v50  ;;  %v8680_v42 = vor.u32 %v8679_v29, %v8676_v23  ;;  %v11614_v6 = vrot.slane %v6684_v44, 9  ;;  %v12659_v23 = vld [vmem:[#allocation2 + $0x13c] sm:$0xf] }
 0x511   : > { %v8707_v29 = vshll.u32 %v12659_v23, 16 }
 0x512   : > { %v4690_v49 = vpop.f32.mrf.mxu3  ;;  %v8691_v55 = vrot.slane %v8690_v10, 4  ;;  %v8681_v41 = vrot.slane %v8680_v42, 4  ;;  %v8711_v10 = vshrl.u32 %v12659_v23, 16 }
 0x513   : > { %v15519_v59 = vadd.f32 %v4690_v49, %v16868_v61  ;;  %v8693_v61 = vshll.u32 %v12657_v4, 16  ;;  %v12658_v49 = vld [vmem:[#allocation2 + $0x5c] sm:$0x1]  ;;  %v8139_v4 = vld [vmem:[#allocation2 + $0x138] sm:$0xf] }
 0x514   : > { %v6853_v54 = vrot.slane %v12658_v49, 5  ;;  %v8698_v49 = vshrl.u32 %v8139_v4, 16  ;;  %v8701_v42 = vshll.u32 %v8139_v4, 16 }
 0x515   : > { %16869 = vst [vmem:[#allocation75_spill] sm:$0xff] %v15519_v59  ;;  %v15521_v45 = vpop.f32.mrf.mxu2  ;;  %v8695_v3 = vrot.slane %v8693_v61, 5  ;;  %v8686_v61 = vsel %vm12873_vm8, %v8681_v41, %v8685_v50  ;;  %v15542_v44 = vpop.f32.mrf.mxu1 }
 0x516   : > { %16870 = vst [vmem:[#allocation239_spill] sm:$0xff] %v15521_v45  ;;  %v8987_v45 = vunpack.c.l.b16 %v8686_v61  ;;  %v8700_v50 = vrot.slane %v8698_v49, 4  ;;  %v8703_v41 = vrot.slane %v8701_v42, 5 }
 0x517   : > { %11661 = vmatmul.msk.bf16.gmra.mxu3 %vm3277_vm9, %v7107_v52  ;;  %11900 = vmatmul.msk.bf16.gmra.mxu1 %vm3277_vm9, %v9029_v51  ;;  %v6854_v51 = vsel %vm13012_vm15, %v6852_v46, %v6853_v54  ;;  %v8696_v52 = vsel %vm12873_vm8, %v8691_v55, %v8695_v3  ;;  %16876 = vst [vmem:[#allocation241_spill] sm:$0xff] %v15542_v44  ;;  %v8709_v54 = vrot.slane %v8707_v29, 5  ;;  %v16877_v55 = vld [vmem:[#allocation80_spill] sm:$0xff] }
 0x518   : > { %v8988_v46 = vunpack.c.l.b16 %v8696_v52  ;;  %v12661_v52 = vld [vmem:[#allocation2 + $0x140] sm:$0x1] }
 0x519   : > { %11966 = vmatmul.msk.bf16.gmra.mxu2 %vm3277_vm9, %v16874_v28  ;;  %v8717_v29 = vshll.u32 %v12661_v52, 16 }
 0x51a   : > { %v4693_v7 = vpop.f32.mrf.mxu3  ;;  %v9030_v59 = vpack.c.b16 %v8988_v46, %v8987_v45  ;;  %v16881_v45 = vld [vmem:[#allocation82_spill] sm:$0xff] }
 0x51b   : > { %v15528_v8 = vadd.f32 %v4693_v7, %v16872_v36  ;;  %v6851_v7 = vsel %vm13012_vm15, %v11614_v6, %v6850_v26  ;;  %v7051_v36 = vunpack.c.l.b16 %v6854_v51  ;;  %v12660_v26 = vld [vmem:[#allocation2 + $0x64] sm:$0xf] }
 0x51c   : > { %v7050_v23 = vunpack.c.l.b16 %v6851_v7  ;;  %v6857_v6 = vrot.slane %v12660_v26, 5  ;;  %v8704_v7 = vor.u32 %v8703_v41, %v8700_v50  ;;  %v12663_v41 = vld [vmem:[#allocation2 + $0x148] sm:$0xf] }
 0x51d   : > { %16873 = vst [vmem:[#allocation77_spill] sm:$0xff] %v15528_v8  ;;  %v15534_v35 = vpop.f32.mrf.mxu2  ;;  %v8735_v52 = vshrl.u32 %v12663_v41, 16 }
 0x51e   : > { %16875 = vst [vmem:[#allocation79_spill] sm:$0xff] %v15534_v35  ;;  %v8713_v35 = vrot.slane %v8711_v10, 4  ;;  %v7108_v8 = vpack.c.b16 %v7051_v36, %v7050_v23  ;;  %v6859_v10 = vrot.slane %v6857_v6, 4  ;;  %v15551_v36 = vpop.f32.mrf.mxu1  ;;  %v8705_v26 = vrot.slane %v8704_v7, 4 }
 0x51f   : > { %16880 = vst [vmem:[#allocation243_spill] sm:$0xff] %v15551_v36  ;;  %v8737_v7 = vrot.slane %v8735_v52, 4 }
 0x520   : > { %v8714_v51 = vor.u32 %v8713_v35, %v8709_v54  ;;  %v12662_v35 = vld [vmem:[#allocation2 + $0x68] sm:$0x1] }
 0x521   : > { %v6860_v49 = vrot.slane %v12662_v35, 5 }
 0x522   : > { %v4695_v28 = vpop.f32.mrf.mxu3  ;;  %v8715_v61 = vrot.slane %v8714_v51, 4  ;;  %v8731_v51 = vshll.u32 %v12663_v41, 16 }
 0x523   : > { %v15545_v3 = vadd.f32 %v4695_v28, %v16877_v55  ;;  %v6685_v28 = vld [vmem:[#allocation2 + $0x60] sm:$0xe]  ;;  %v16883_v55 = vld [vmem:[#allocation84_spill] sm:$0xff] }
 0x524   : > { %v11615_v42 = vrot.slane %v6685_v28, 9 }
 0x525   : > { %16878 = vst [vmem:[#allocation80_spill] sm:$0xff] %v15545_v3  ;;  %v15547_v17 = vpop.f32.mrf.mxu2 }
 0x526   : > { %16879 = vst [vmem:[#allocation242_spill] sm:$0xff] %v15547_v17  ;;  %v16885_v17 = vld [vmem:[#allocation86_spill] sm:$0xff]  ;;  %v15571_v41 = vpop.f32.mrf.mxu1 }
 0x527   : > { %11662 = vmatmul.msk.bf16.gmra.mxu3 %vm3277_vm9, %v7108_v8  ;;  %11901 = vmatmul.msk.bf16.gmra.mxu1 %vm3277_vm9, %v9030_v59  ;;  %v8719_v8 = vrot.slane %v8717_v29, 5  ;;  %v6861_v59 = vsel %vm13012_vm15, %v6859_v10, %v6860_v49  ;;  %v8710_v29 = vsel %vm12873_vm8, %v8705_v26, %v8709_v54  ;;  %16887 = vst [vmem:[#allocation244_spill] sm:$0xff] %v15571_v41 }
 0x528   : > { %v7053_v28 = vunpack.c.l.b16 %v6861_v59 }
 0x529   : > { %11967 = vmatmul.msk.bf16.gmra.mxu2 %vm3277_vm9, %v16883_v55  ;;  %v8720_v50 = vsel %vm12873_vm8, %v8715_v61, %v8719_v8  ;;  %v8989_v8 = vunpack.c.l.b16 %v8710_v29 }
 0x52a   : > { %v4698_v4 = vpop.f32.mrf.mxu3  ;;  %v8990_v55 = vunpack.c.l.b16 %v8720_v50 }
 0x52b   : > { %v15554_v46 = vadd.f32 %v4698_v4, %v16881_v45  ;;  %v8142_v4 = vld [vmem:[#allocation2 + $0x144] sm:$0xf]  ;;  %v6858_v45 = vsel %vm13012_vm15, %v11615_v42, %v6857_v6  ;;  %v12664_v42 = vld [vmem:[#allocation2 + $0x70] sm:$0xf] }
 0x52c   : > { %v8722_v10 = vshrl.u32 %v8142_v4, 16  ;;  %v8725_v49 = vshll.u32 %v8142_v4, 16  ;;  %v7052_v61 = vunpack.c.l.b16 %v6858_v45  ;;  %v9031_v36 = vpack.c.b16 %v8990_v55, %v8989_v8  ;;  %v16891_v55 = vld [vmem:[#allocation92_spill] sm:$0xff]  ;;  %v12667_v8 = vld [vmem:[#allocation2 + $0x154] sm:$0xf] }
 0x52d   : > { %16882 = vst [vmem:[#allocation82_spill] sm:$0xff] %v15554_v46  ;;  %v15560_v23 = vpop.f32.mrf.mxu2  ;;  %v6864_v54 = vrot.slane %v12664_v42, 5  ;;  %v8759_v42 = vshrl.u32 %v12667_v8, 16 }
 0x52e   : > { %16884 = vst [vmem:[#allocation84_spill] sm:$0xff] %v15560_v23  ;;  %v8733_v23 = vrot.slane %v8731_v51, 5  ;;  %v7109_v3 = vpack.c.b16 %v7053_v28, %v7052_v61  ;;  %v8724_v59 = vrot.slane %v8722_v10, 4  ;;  %v8727_v26 = vrot.slane %v8725_v49, 5  ;;  %v12665_v51 = vld [vmem:[#allocation2 + $0x14c] sm:$0x1] }
 0x52f   : > { %v6866_v4 = vrot.slane %v6864_v54, 4  ;;  %v6686_v61 = vld [vmem:[#allocation2 + $0x6c] sm:$0xe]  ;;  %v12666_v10 = vld [vmem:[#allocation2 + $0x74] sm:$0x1] }
 0x530   : > { %v8738_v50 = vor.u32 %v8737_v7, %v8733_v23  ;;  %v8728_v45 = vor.u32 %v8727_v26, %v8724_v59  ;;  %v6867_v49 = vrot.slane %v12666_v10, 5 }
 0x532   : > { %v4700_v35 = vpop.f32.mrf.mxu3  ;;  %v8739_v29 = vrot.slane %v8738_v50, 4  ;;  %v6868_v59 = vsel %vm13012_vm15, %v6866_v4, %v6867_v49  ;;  %v8729_v26 = vrot.slane %v8728_v45, 4  ;;  %v16893_v49 = vld [vmem:[#allocation94_spill] sm:$0xff] }
 0x533   : > { %v15569_v46 = vadd.f32 %v4700_v35, %v16885_v17  ;;  %v8741_v17 = vshll.u32 %v12665_v51, 16  ;;  %v16889_v35 = vld [vmem:[#allocation89_spill] sm:$0xff]  ;;  %v11616_v51 = vrot.slane %v6686_v61, 9  ;;  %v7055_v10 = vunpack.c.l.b16 %v6868_v59 }
 0x534   : > { %v8761_v61 = vrot.slane %v8759_v42, 4 }
 0x535   : > { %16886 = vst [vmem:[#allocation86_spill] sm:$0xff] %v15569_v46  ;;  %v15573_v6 = vpop.f32.mrf.mxu2  ;;  %v8743_v7 = vrot.slane %v8741_v17, 5  ;;  %v8734_v17 = vsel %vm12873_vm8, %v8729_v26, %v8733_v23 }
 0x536   : > { %16888 = vst [vmem:[#allocation245_spill] sm:$0xff] %v15573_v6 }
 0x537   : > { %11663 = vmatmul.msk.bf16.gmra.mxu3 %vm3277_vm9, %v7109_v3  ;;  %11902 = vmatmul.msk.bf16.gmra.mxu1 %vm3277_vm9, %v9031_v36  ;;  %v8755_v3 = vshll.u32 %v12667_v8, 16  ;;  %v8744_v50 = vsel %vm12873_vm8, %v8739_v29, %v8743_v7  ;;  %v8991_v7 = vunpack.c.l.b16 %v8734_v17 }
 0x538   : > { %v8992_v8 = vunpack.c.l.b16 %v8744_v50 }
 0x539   : > { %11968 = vmatmul.msk.bf16.gmra.mxu2 %vm3277_vm9, %v16891_v55  ;;  %v6865_v55 = vsel %vm13012_vm15, %v11616_v51, %v6864_v54  ;;  %v15594_v6 = vrot.slane %v8755_v3, 5  ;;  %v16895_v54 = vld [vmem:[#allocation21_spill] sm:$0xff] }
 0x53a   : > { %v4703_v52 = vpop.f32.mrf.mxu3  ;;  %v7054_v29 = vunpack.c.l.b16 %v6865_v55  ;;  %v5293_v51 = vadd.f32 %v16895_v54, %v14245_v48  ;;  %v9032_v23 = vpack.c.b16 %v8992_v8, %v8991_v7  ;;  %v6687_v48 = vld [vmem:[#allocation2 + $0x78] sm:$0xe] }
 0x53b   : > { %v15578_v28 = vadd.f32 %v4703_v52, %v16889_v35  ;;  %v15588_v52 = vpop.f32.mrf.mxu1  ;;  %v8145_v35 = vld [vmem:[#allocation2 + $0x150] sm:$0xf]  ;;  %v8762_v59 = vor.u32 %v8761_v61, %v15594_v6  ;;  %v11617_v54 = vrot.slane %v6687_v48, 9 }
 0x53c   : > { %16892 = vst [vmem:[#allocation92_spill] sm:$0xff] %v15588_v52  ;;  %v8746_v4 = vshrl.u32 %v8145_v35, 16  ;;  %v8749_v45 = vshll.u32 %v8145_v35, 16  ;;  %v12668_v52 = vld [vmem:[#allocation2 + $0x7c] sm:$0xf]  ;;  %v7110_v44 = vpack.c.b16 %v7055_v10, %v7054_v29 }
 0x53d   : > { %16890 = vst [vmem:[#allocation89_spill] sm:$0xff] %v15578_v28  ;;  %v15582_v36 = vpop.f32.mrf.mxu2  ;;  %v6871_v41 = vrot.slane %v12668_v52, 5  ;;  %v16896_v52 = vld [vmem:[#allocation91_spill] sm:$0xff]  ;;  %v8763_v10 = vrot.slane %v8762_v59, 4 }
 0x53e   : > { %v8748_v42 = vrot.slane %v8746_v4, 4  ;;  %v8751_v26 = vrot.slane %v8749_v45, 5  ;;  %v6614_v17 = vadd.f32 %v16896_v52, %v5293_v51  ;;  %v16897_v4 = vld [vmem:[#allocation23_spill] sm:$0xff]  ;;  %v12671_v52 = vld [vmem:[#allocation2 + $0x160] sm:$0xf] }
 0x53f   : > { %v6873_v35 = vrot.slane %v6871_v41, 4  ;;  %v5294_v45 = vadd.f32 %v16897_v4, %v14269_v18  ;;  %v15624_v18 = vld [vmem:[%s16507_s5] ss:$0 sm:$0xff] }
 0x540   : > { %v8752_v29 = vor.u32 %v8751_v26, %v8748_v42  ;;  %v8779_v42 = vshll.u32 %v12671_v52, 16  ;;  %v8783_v26 = vshrl.u32 %v12671_v52, 16  ;;  %v12672_v52 = vld [vmem:[#allocation2 + $0x88] sm:$0xf] }
 0x542   : > { %v4705_v28 = vpop.f32.mrf.mxu3 }
 0x543   : > { %v15597_v46 = vadd.f32 %v4705_v28, %v16893_v49  ;;  %v12669_v28 = vld [vmem:[#allocation2 + $0x158] sm:$0x1]  ;;  %v15606_v55 = vpop.f32.mrf.mxu1  ;;  %v12670_v49 = vld [vmem:[#allocation2 + $0x80] sm:$0x1] }
 0x544   : > { %v8765_v50 = vshll.u32 %v12669_v28, 16  ;;  %v6874_v61 = vrot.slane %v12670_v49, 5  ;;  %v8148_v28 = vld [vmem:[#allocation2 + $0x15c] sm:$0xf] }
 0x545   : > { %16894 = vst [vmem:[#allocation94_spill] sm:$0xff] %v15597_v46  ;;  %v15602_v3 = vpop.f32.mrf.mxu2  ;;  %v8773_v49 = vshll.u32 %v8148_v28, 16  ;;  %v6878_v46 = vrot.slane %v12672_v52, 5 }
 0x547   : > { %11664 = vmatmul.msk.bf16.gmra.mxu3 %vm3277_vm9, %v7110_v44  ;;  %11903 = vmatmul.msk.bf16.gmra.mxu1 %vm3277_vm9, %v9032_v23  ;;  %v8767_v44 = vrot.slane %v8765_v50, 5  ;;  %v6875_v23 = vsel %vm13012_vm15, %v6873_v35, %v6874_v61  ;;  %v6880_v52 = vrot.slane %v6878_v46, 4 }
 0x548   : > { %v7057_v35 = vunpack.c.l.b16 %v6875_v23 }
 0x549   : > { %11969 = vmatmul.msk.bf16.gmra.mxu2 %vm3277_vm9, %v14261_v20  ;;  %v8768_v59 = vsel %vm12873_vm8, %v8763_v10, %v8767_v44  ;;  %v8753_v20 = vrot.slane %v8752_v29, 4  ;;  %v16898_v29 = vld [vmem:[#allocation96_spill] sm:$0xff]  ;;  %v8785_v44 = vrot.slane %v8783_v26, 4 }
 0x54a   : > { %v7263_v8 = vpop.f32.mrf.mxu3  ;;  %v8994_v10 = vunpack.c.l.b16 %v8768_v59 }
 0x54b   : > { %v7423_v7 = vadd.f32 %v7263_v8, %v6614_v17  ;;  %v8758_v48 = vsel %vm12873_vm8, %v8753_v20, %v15594_v6  ;;  %v8770_v8 = vshrl.u32 %v8148_v28, 16  ;;  %v15641_v6 = vld [vmem:[%s16508_s6] ss:$0 sm:$0xff]  ;;  %v8775_v28 = vrot.slane %v8773_v49, 5 }
 0x54d   : > { %v8009_v51 = vadd.f32 %v14452_v40, %v7423_v7  ;;  %v15618_v17 = vpop.f32.mrf.mxu2  ;;  %v6872_v40 = vsel %vm13012_vm15, %v11617_v54, %v6871_v41  ;;  %v15633_v7 = vrot.slane %v8779_v42, 5  ;;  %v15635_v41 = vpop.f32.mrf.mxu1  ;;  %v16900_v42 = vld [vmem:[#allocation25_spill] sm:$0xff] }
 0x54e   : > { %16899 = vst [vmem:[#allocation21_spill] sm:$0xff] %v15635_v41  ;;  %v5295_v26 = vadd.f32 %v16900_v42, %v14287_v53 }
 0x54f   : > { %v9330_v50 = vadd.f32 %v15065_v56, %v8009_v51  ;;  %v6615_v56 = vadd.f32 %v16898_v29, %v5294_v45  ;;  %v7056_v51 = vunpack.c.l.b16 %v6872_v40  ;;  %v8772_v45 = vrot.slane %v8770_v8, 4  ;;  %v6688_v40 = vld [vmem:[#allocation2 + $0x84] sm:$0xe] }
 0x550   : > { %v8786_v29 = vor.u32 %v8785_v44, %v15633_v7  ;;  %v11618_v8 = vrot.slane %v6688_v40, 9  ;;  %v16901_v44 = vld [vmem:[#allocation98_spill] sm:$0xff] }
 0x551   : > { %v10139_v61 = vadd.f32 %v15582_v36, %v9330_v50  ;;  %v8993_v36 = vunpack.c.l.b16 %v8758_v48  ;;  %v7111_v59 = vpack.c.b16 %v7057_v35, %v7056_v51  ;;  %v12673_v35 = vld [vmem:[#allocation2 + $0x164] sm:$0x1]  ;;  %v8776_v49 = vor.u32 %v8775_v28, %v8772_v45  ;;  %v16903_v28 = vld [vmem:[#allocation27_spill] sm:$0xff]  ;;  %v12675_v40 = vld [vmem:[#allocation2 + $0x16c] sm:$0xf] }
 0x552   : > { %v7265_v4 = vpop.f32.mrf.mxu3  ;;  %v8789_v53 = vshll.u32 %v12673_v35, 16  ;;  %v8787_v51 = vrot.slane %v8786_v29, 4  ;;  %v8803_v29 = vshll.u32 %v12675_v40, 16 }
 0x553   : > { %v10335_v54 = vmul.f32 %v15624_v18, %v10139_v61  ;;  %v7424_v23 = vadd.f32 %v7265_v4, %v6615_v56  ;;  %v9033_v50 = vpack.c.b16 %v8994_v10, %v8993_v36  ;;  %v6616_v4 = vadd.f32 %v16901_v44, %v5295_v26  ;;  %v12169_v36 = vld [vmem:[%s12820_s23] sm:$0xff]  }
 0x554   : > { %v8791_v45 = vrot.slane %v8789_v53, 5  ;;  %v12171_v53 = vunpack.c.h.bf16 %v12169_v36 }
 0x555   : > { %v8010_v20 = vadd.f32 %v14475_v37, %v7424_v23  ;;  %v15647_v61 = vpop.f32.mrf.mxu2  ;;  %v10403_v41 = vadd.f32 %v15641_v6, %v10335_v54  ;;  %v12674_v37 = vld [vmem:[#allocation2 + $0x8c] sm:$0x1]  ;;  %v6879_v54 = vsel %vm13012_vm15, %v11618_v8, %v6878_v46  ;;  %v15665_v46 = vpop.f32.mrf.mxu1  ;;  %v8151_v8 = vld [vmem:[#allocation2 + $0x168] sm:$0xf] }
 0x556   : > { %v6881_v10 = vrot.slane %v12674_v37, 5  ;;  %16904 = vst [vmem:[#allocation91_spill] sm:$0xff] %v15665_v46  ;;  %v8792_v35 = vsel %vm12873_vm8, %v8787_v51, %v8791_v45  ;;  %v8807_v37 = vshrl.u32 %v12675_v40, 16  ;;  %v8797_v51 = vshll.u32 %v8151_v8, 16 }
 0x557   : > { %v9331_v48 = vadd.f32 %v15091_v24, %v8010_v20  ;;  %11665 = vmatmul.msk.bf16.gmra.mxu3 %vm3277_vm9, %v7111_v59  ;;  %11904 = vmatmul.msk.bf16.gmra.mxu1 %vm3277_vm9, %v9033_v50  ;;  %v10531_v59 = vmul.f32 0.1, %v10403_v41  ;;  %vm10467_vm0 = vcmp.gt.f32.partialorder %v10403_v41, 0.0  ;;  %v8777_v50 = vrot.slane %v8776_v49, 4 }
 0x558   : > { %v6882_v24 = vsel %vm13012_vm15, %v6880_v52, %v6881_v10 }
 0x559   : > { %v10140_v56 = vadd.f32 %v15602_v3, %v9331_v48  ;;  %11970 = vmatmul.msk.bf16.gmra.mxu2 %vm3277_vm9, %v14303_v11  ;;  %v16902_v3 = vld [vmem:[#allocation103_spill] sm:$0xff]  ;;  %v12170_v11 = vunpack.c.l.bf16 %v12169_v36  ;;  %v8782_v49 = vsel %vm12873_vm8, %v8777_v50, %v15633_v7  ;;  %v10595_v44 = vsel %vm10467_vm0, %v10403_v41, %v10531_v59 }
 0x55a   : > { %v7268_v23 = vpop.f32.mrf.mxu3  ;;  %v5296_v26 = vadd.f32 %v16903_v28, %v16902_v3  ;;  %v16905_v3 = vld [vmem:[#allocation100_spill] sm:$0xff]  ;;  %v8809_v28 = vrot.slane %v8807_v37, 4  ;;  %v7058_v41 = vunpack.c.l.b16 %v6879_v54  ;;  %v12676_v59 = vld [vmem:[#allocation2 + $0x94] sm:$0xf] }
 0x55b   : > { %v10336_v42 = vmul.f32 %v15624_v18, %v10140_v56  ;;  %v7425_v20 = vadd.f32 %v7268_v23, %v6616_v4  ;;  %v7059_v56 = vunpack.c.l.b16 %v6882_v24  ;;  %v8996_v23 = vunpack.c.l.b16 %v8792_v35 }
 0x55c   : > { %v6617_v24 = vadd.f32 %v16905_v3, %v5296_v26  ;;  %v10659_v40 = vadd.f32 %v12170_v11, %v10595_v44  ;;  %v6885_v50 = vrot.slane %v12676_v59, 5  ;;  %v8799_v35 = vrot.slane %v8797_v51, 5  ;;  %v16907_v3 = vld [vmem:[#allocation102_spill] sm:$0xff] }
 0x55d   : > { %v10404_v52 = vadd.f32 %v15641_v6, %v10336_v42  ;;  %v8011_v48 = vadd.f32 %v14497_v62, %v7425_v20  ;;  %v15671_v10 = vpop.f32.mrf.mxu2  ;;  %v8794_v42 = vshrl.u32 %v8151_v8, 16  ;;  %v15677_v20 = vrot.slane %v8803_v29, 5  ;;  %v16906_v8 = vld [vmem:[#allocation29_spill] sm:$0xff] }
 0x55e   : > { %v7112_v26 = vpack.c.b16 %v7059_v56, %v7058_v41  ;;  %v5297_v54 = vadd.f32 %v16906_v8, %v14329_v14  ;;  %v12677_v14 = vld [vmem:[#allocation2 + $0x170] sm:$0x1]  ;;  %v12456_v41 = vld [vmem:[%s12820_s23 + $0x8] sm:$0xff]  }
 0x55f   : > { %vm10468_vm11 = vcmp.gt.f32.partialorder %v10404_v52, 0.0  ;;  %v10532_v4 = vmul.f32 0.1, %v10404_v52  ;;  %v9332_v62 = vadd.f32 %v15111_v57, %v8011_v48  ;;  %v8796_v48 = vrot.slane %v8794_v42, 4 }
 0x560   : > { %v8810_v44 = vor.u32 %v8809_v28, %v15677_v20 }
 0x561   : > { %v10596_v45 = vsel %vm10468_vm11, %v10404_v52, %v10532_v4  ;;  %v10141_v36 = vadd.f32 %v15618_v17, %v9332_v62  ;;  %v8995_v17 = vunpack.c.l.b16 %v8782_v49  ;;  %v6887_v62 = vrot.slane %v6885_v50, 4 }
 0x562   : > { %v10660_v46 = vadd.f32 %v12171_v53, %v10596_v45  ;;  %v7270_v7 = vpop.f32.mrf.mxu3  ;;  %v6689_v53 = vld [vmem:[#allocation2 + $0x90] sm:$0xe]  ;;  %v15696_v45 = vpop.f32.mrf.mxu1  ;;  %v8800_v51 = vor.u32 %v8799_v35, %v8796_v48  ;;  %v8811_v28 = vrot.slane %v8810_v44, 4  ;;  %v12679_v48 = vld [vmem:[#allocation2 + $0x178] sm:$0xf]  ;;  %v12175_v44 = vunpack.c.h.bf16 %v12456_v41 }
 0x563   : > { %v10337_v57 = vmul.f32 %v15624_v18, %v10141_v36  ;;  %v7426_v29 = vadd.f32 %v7270_v7, %v6617_v24  ;;  %v9034_v11 = vpack.c.b16 %v8996_v23, %v8995_v17  ;;  %v11619_v49 = vrot.slane %v6689_v53, 9  ;;  %v12678_v23 = vld [vmem:[#allocation2 + $0x98] sm:$0x1] }
 0x564   : > { %v12299_v52 = vpack.c.bf16 %v10660_v46, %v10659_v40  ;;  %v6888_v42 = vrot.slane %v12678_v23, 5  ;;  %v6618_v24 = vadd.f32 %v16907_v3, %v5297_v54  ;;  %v8827_v35 = vshll.u32 %v12679_v48, 16 }
 0x565   : > { %v8012_v37 = vadd.f32 %v14520_v21, %v7426_v29  ;;  %v15694_v4 = vpop.f32.mrf.mxu2  ;;  %v10405_v46 = vadd.f32 %v15641_v6, %v10337_v57  ;;  %v8813_v21 = vshll.u32 %v12677_v14, 16  ;;  %v6886_v7 = vsel %vm13012_vm15, %v11619_v49, %v6885_v50 }
 0x566   : > { %12300 = vst [vmem:[%s15686_s28] sm:$0xff] %v12299_v52   ;;  %v12174_v53 = vunpack.c.l.bf16 %v12456_v41  ;;  %v7060_v41 = vunpack.c.l.b16 %v6886_v7 }
 0x567   : > { %v9333_v56 = vadd.f32 %v15144_v25, %v8012_v37  ;;  %11666 = vmatmul.msk.bf16.gmra.mxu3 %vm3277_vm9, %v7112_v26  ;;  %11905 = vmatmul.msk.bf16.gmra.mxu1 %vm3277_vm9, %v9034_v11  ;;  %v6889_v25 = vsel %vm13012_vm15, %v6887_v62, %v6888_v42  ;;  %v10533_v59 = vmul.f32 0.1, %v10405_v46  ;;  %v8815_v17 = vrot.slane %v8813_v21, 5  ;;  %v8154_v37 = vld [vmem:[#allocation2 + $0x174] sm:$0xf] }
 0x568   : > { %vm10469_vm14 = vcmp.gt.f32.partialorder %v10405_v46, 0.0  ;;  %v8801_v26 = vrot.slane %v8800_v51, 4  ;;  %v8831_v11 = vshrl.u32 %v12679_v48, 16  ;;  %v7061_v62 = vunpack.c.l.b16 %v6889_v25 }
 0x569   : > { %v10142_v36 = vadd.f32 %v15647_v61, %v9333_v56  ;;  %11971 = vmatmul.msk.bf16.gmra.mxu2 %vm3277_vm9, %v14345_v39  ;;  %v16908_v61 = vld [vmem:[#allocation31_spill] sm:$0xff]  ;;  %v8816_v54 = vsel %vm12873_vm8, %v8811_v28, %v8815_v17  ;;  %v10597_v56 = vsel %vm10469_vm14, %v10405_v46, %v10533_v59  ;;  %v8818_v49 = vshrl.u32 %v8154_v37, 16  ;;  %v12680_v59 = vld [vmem:[#allocation2 + $0xa0] sm:$0xf] }
 0x56a   : > { %v7273_v40 = vpop.f32.mrf.mxu3  ;;  %v5298_v52 = vadd.f32 %v16908_v61, %v14353_v9  ;;  %v8806_v9 = vsel %vm12873_vm8, %v8801_v26, %v15677_v20  ;;  %v8821_v23 = vshll.u32 %v8154_v37, 16  ;;  %v15724_v42 = vrot.slane %v8827_v35, 5  ;;  %v15726_v51 = vpop.f32.mrf.mxu1  ;;  %v6690_v37 = vld [vmem:[#allocation2 + $0x9c] sm:$0xe] }
 0x56b   : > { %v10338_v57 = vmul.f32 %v15624_v18, %v10142_v36  ;;  %v7427_v29 = vadd.f32 %v7273_v40, %v6618_v24  ;;  %v16909_v24 = vld [vmem:[#allocation105_spill] sm:$0xff]  ;;  %v8833_v40 = vrot.slane %v8831_v11, 4  ;;  %v10661_v25 = vadd.f32 %v12174_v53, %v10597_v56 }
 0x56c   : > { %v6619_v28 = vadd.f32 %v16909_v24, %v5298_v52  ;;  %v8997_v17 = vunpack.c.l.b16 %v8806_v9  ;;  %v7113_v26 = vpack.c.b16 %v7061_v62, %v7060_v41  ;;  %v8820_v48 = vrot.slane %v8818_v49, 4  ;;  %v12681_v62 = vld [vmem:[#allocation2 + $0x17c] sm:$0x1] }
 0x56d   : > { %v10406_v50 = vadd.f32 %v15641_v6, %v10338_v57  ;;  %v8013_v8 = vadd.f32 %v14543_v38, %v7427_v29  ;;  %v15718_v39 = vpop.f32.mrf.mxu2  ;;  %v8998_v38 = vunpack.c.l.b16 %v8816_v54  ;;  %v8823_v35 = vrot.slane %v8821_v23, 5  ;;  %v16912_v23 = vld [vmem:[#allocation107_spill] sm:$0xff] }
 0x56e   : > { %v8834_v11 = vor.u32 %v8833_v40, %v15724_v42  ;;  %v8837_v56 = vshll.u32 %v12681_v62, 16 }
 0x56f   : > { %vm10470_vm13 = vcmp.gt.f32.partialorder %v10406_v50, 0.0  ;;  %v10534_v14 = vmul.f32 0.1, %v10406_v50  ;;  %v9334_v21 = vadd.f32 %v15166_v22, %v8013_v8  ;;  %v6892_v22 = vrot.slane %v12680_v59, 5  ;;  %v16913_v59 = vld [vmem:[#allocation113_spill] sm:$0xff] }
 0x570   : > { %v9035_v54 = vpack.c.b16 %v8998_v38, %v8997_v17  ;;  %v8824_v38 = vor.u32 %v8823_v35, %v8820_v48  ;;  %v16915_v48 = vld [vmem:[#allocation143_spill] sm:$0xff] }
 0x571   : > { %v10598_v36 = vsel %vm10470_vm13, %v10406_v50, %v10534_v14  ;;  %v10143_v3 = vadd.f32 %v15671_v10, %v9334_v21  ;;  %v16910_v50 = vld [vmem:[#allocation110_spill] sm:$0xff]  ;;  %v16911_v10 = vld [vmem:[#allocation33_spill] sm:$0xff]  ;;  %v6894_v53 = vrot.slane %v6892_v22, 4 }
 0x572   : > { %v10662_v20 = vadd.f32 %v12175_v44, %v10598_v36  ;;  %v7275_v46 = vpop.f32.mrf.mxu3  ;;  %v5299_v8 = vadd.f32 %v16911_v10, %v16910_v50  ;;  %v12682_v14 = vld [vmem:[#allocation2 + $0xa4] sm:$0x1]  ;;  %v15748_v40 = vpop.f32.mrf.mxu1  ;;  %v8825_v17 = vrot.slane %v8824_v38, 4  ;;  %v8157_v10 = vld [vmem:[#allocation2 + $0x180] sm:$0xf] }
 0x573   : > { %v10339_v57 = vmul.f32 %v15624_v18, %v10143_v3  ;;  %v7428_v29 = vadd.f32 %v7275_v46, %v6619_v28  ;;  %v6895_v21 = vrot.slane %v12682_v14, 5  ;;  %v8835_v3 = vrot.slane %v8834_v11, 4 }
 0x574   : > { %v12304_v61 = vpack.c.bf16 %v10662_v20, %v10661_v25  ;;  %v6620_v36 = vadd.f32 %v16912_v23, %v5299_v8  ;;  %v12457_v25 = vld [vmem:[%s12820_s23 + $0x10] sm:$0xff]   ;;  %v8830_v11 = vsel %vm12873_vm8, %v8825_v17, %v15724_v42  ;;  %v8842_v14 = vshrl.u32 %v8157_v10, 16 }
 0x575   : > { %v8014_v52 = vadd.f32 %v14573_v33, %v7428_v29  ;;  %v15736_v7 = vpop.f32.mrf.mxu2  ;;  %v10407_v44 = vadd.f32 %v15641_v6, %v10339_v57  ;;  %v11620_v33 = vrot.slane %v6690_v37, 9  ;;  %v6896_v28 = vsel %vm13012_vm15, %v6894_v53, %v6895_v21  ;;  %v16914_v57 = vld [vmem:[#allocation35_spill] sm:$0xff] }
 0x576   : > { %12487 = vst [vmem:[%s15686_s28 + $0x8] sm:$0xff] %v12304_v61   ;;  %v5300_v29 = vadd.f32 %v16914_v57, %v16913_v59  ;;  %v7063_v37 = vunpack.c.l.b16 %v6896_v28  ;;  %v8845_v21 = vshll.u32 %v8157_v10, 16 }
 0x577   : > { %v9335_v9 = vadd.f32 %v15191_v2, %v8014_v52  ;;  %11667 = vmatmul.msk.bf16.gmra.mxu3 %vm3277_vm9, %v7113_v26  ;;  %11906 = vmatmul.msk.bf16.gmra.mxu1 %vm3277_vm9, %v9035_v54  ;;  %v6893_v2 = vsel %vm13012_vm15, %v11620_v33, %v6892_v22  ;;  %v10535_v20 = vmul.f32 0.1, %v10407_v44  ;;  %vm10471_vm1 = vcmp.gt.f32.partialorder %v10407_v44, 0.0  ;;  %v12683_v22 = vld [vmem:[#allocation2 + $0x184] sm:$0xf] }
 0x578   : > { %v8851_v61 = vshll.u32 %v12683_v22, 16  ;;  %v8855_v8 = vshrl.u32 %v12683_v22, 16  ;;  %v12178_v52 = vunpack.c.l.bf16 %v12457_v25  ;;  %v12179_v54 = vunpack.c.h.bf16 %v12457_v25  ;;  %v6691_v33 = vld [vmem:[#allocation2 + $0xa8] sm:$0xe] }
 0x579   : > { %v10144_v49 = vadd.f32 %v15694_v4, %v9335_v9  ;;  %11972 = vmatmul.msk.bf16.gmra.mxu2 %vm3277_vm9, %v14385_v15  ;;  %v8839_v4 = vrot.slane %v8837_v56, 5  ;;  %v10599_v53 = vsel %vm10471_vm1, %v10407_v44, %v10535_v20  ;;  %v7062_v44 = vunpack.c.l.b16 %v6893_v2  ;;  %v12684_v20 = vld [vmem:[#allocation2 + $0xac] sm:$0xf] }
 0x57a   : > { %v7278_v24 = vpop.f32.mrf.mxu3  ;;  %v15766_v38 = vrot.slane %v8851_v61, 5  ;;  %v10663_v28 = vadd.f32 %v12178_v52, %v10599_v53  ;;  %v11621_v59 = vrot.slane %v6691_v33, 9  ;;  %v8844_v22 = vrot.slane %v8842_v14, 4  ;;  %v12685_v53 = vld [vmem:[#allocation2 + $0x188] sm:$0x1] }
 0x57b   : > { %v10340_v46 = vmul.f32 %v15624_v18, %v10144_v49  ;;  %v7429_v41 = vadd.f32 %v7278_v24, %v6620_v36  ;;  %v8840_v50 = vsel %vm12873_vm8, %v8835_v3, %v8839_v4  ;;  %v16916_v36 = vld [vmem:[#allocation109_spill] sm:$0xff]  ;;  %v8857_v24 = vrot.slane %v8855_v8, 4 }
 0x57c   : > { %v9000_v56 = vunpack.c.l.b16 %v8840_v50  ;;  %v6621_v3 = vadd.f32 %v16916_v36, %v5300_v29  ;;  %v8999_v4 = vunpack.c.l.b16 %v8830_v11  ;;  %v7114_v17 = vpack.c.b16 %v7063_v37, %v7062_v44  ;;  %v8160_v36 = vld [vmem:[#allocation2 + $0x18c] sm:$0xf] }
 0x57d   : > { %v10408_v26 = vadd.f32 %v15641_v6, %v10340_v46  ;;  %v8015_v35 = vadd.f32 %v16915_v48, %v7429_v41  ;;  %v15760_v15 = vpop.f32.mrf.mxu2  ;;  %v6899_v46 = vrot.slane %v12684_v20, 5  ;;  %v8847_v61 = vrot.slane %v8845_v21, 5  ;;  %v15773_v48 = vpop.f32.mrf.mxu1  ;;  %v16920_v21 = vld [vmem:[#allocation112_spill] sm:$0xff]  ;;  %v16921_v20 = vld [vmem:[#allocation119_spill] sm:$0xff] }
 0x57e   : > { %v9036_v2 = vpack.c.b16 %v9000_v56, %v8999_v4  ;;  %v8858_v10 = vor.u32 %v8857_v24, %v15766_v38 }
 0x57f   : > { %vm10472_vm2 = vcmp.gt.f32.partialorder %v10408_v26, 0.0  ;;  %v10536_v9 = vmul.f32 0.1, %v10408_v26  ;;  %v9336_v62 = vadd.f32 %v15215_v63, %v8015_v35  ;;  %v16919_v35 = vld [vmem:[#allocation85_spill] sm:$0xff]  ;;  %v6901_v52 = vrot.slane %v6899_v46, 4 }
 0x580   : > { %v6900_v11 = vsel %vm13012_vm15, %v11621_v59, %v6899_v46  ;;  %v8848_v33 = vor.u32 %v8847_v61, %v8844_v22  ;;  %v8866_v59 = vshrl.u32 %v8160_v36, 16 }
 0x581   : > { %v10600_v49 = vsel %vm10472_vm2, %v10408_v26, %v10536_v9  ;;  %v10145_v23 = vadd.f32 %v15718_v39, %v9336_v62  ;;  %v16917_v39 = vld [vmem:[#allocation116_spill] sm:$0xff]  ;;  %v16918_v26 = vld [vmem:[#allocation37_spill] sm:$0xff]  ;;  %v8861_v9 = vshll.u32 %v12685_v53, 16  ;;  %v12686_v62 = vld [vmem:[#allocation2 + $0xb0] sm:$0x1]  ;;  %v7064_v24 = vunpack.c.l.b16 %v6900_v11 }
 0x582   : > { %v10664_v25 = vadd.f32 %v12179_v54, %v10600_v49  ;;  %v7280_v42 = vpop.f32.mrf.mxu3  ;;  %v5301_v29 = vadd.f32 %v16918_v26, %v16917_v39  ;;  %v6902_v56 = vrot.slane %v12686_v62, 5  ;;  %v8849_v4 = vrot.slane %v8848_v33, 4 }
 0x583   : > { %v10341_v63 = vmul.f32 %v15624_v18, %v10145_v23  ;;  %v7430_v41 = vadd.f32 %v7280_v42, %v6621_v3  ;;  %v8859_v23 = vrot.slane %v8858_v10, 4  ;;  %v8863_v46 = vrot.slane %v8861_v9, 5 }
 0x584   : > { %v12309_v57 = vpack.c.bf16 %v10664_v25, %v10663_v28  ;;  %v6622_v49 = vadd.f32 %v16920_v21, %v5301_v29  ;;  %v6903_v3 = vsel %vm13012_vm15, %v6901_v52, %v6902_v56  ;;  %v12458_v28 = vld [vmem:[%s12820_s23 + $0x18] sm:$0xff]   ;;  %v8869_v39 = vshll.u32 %v8160_v36, 16 }
 0x585   : > { %v8016_v50 = vadd.f32 %v16919_v35, %v7430_v41  ;;  %v15778_v8 = vpop.f32.mrf.mxu2  ;;  %v10409_v54 = vadd.f32 %v15641_v6, %v10341_v63  ;;  %v16922_v63 = vld [vmem:[#allocation120_spill] sm:$0xff]  ;;  %v8864_v61 = vsel %vm12873_vm8, %v8859_v23, %v8863_v46  ;;  %v12182_v26 = vunpack.c.l.bf16 %v12458_v28  ;;  %v15802_v52 = vpop.f32.mrf.mxu1  ;;  %v16926_v46 = vld [vmem:[#allocation123_spill] sm:$0xff] }
 0x586   : > { %12488 = vst [vmem:[%s15686_s28 + $0x10] sm:$0xff] %v12309_v57   ;;  %v12183_v29 = vunpack.c.h.bf16 %v12458_v28  ;;  %v7065_v9 = vunpack.c.l.b16 %v6903_v3  ;;  %v8854_v62 = vsel %vm12873_vm8, %v8849_v4, %v15766_v38  ;;  %v9002_v56 = vunpack.c.l.b16 %v8864_v61  ;;  %v6692_v4 = vld [vmem:[#allocation2 + $0xb4] sm:$0xe] }
 0x587   : > { %v9337_v37 = vadd.f32 %v15233_v5, %v8016_v50  ;;  %11668 = vmatmul.msk.bf16.gmra.mxu3 %vm3277_vm9, %v7114_v17  ;;  %11907 = vmatmul.msk.bf16.gmra.mxu1 %vm3277_vm9, %v9036_v2  ;;  %v10537_v25 = vmul.f32 0.1, %v10409_v54  ;;  %vm10473_vm4 = vcmp.gt.f32.partialorder %v10409_v54, 0.0  ;;  %v16924_v17 = vld [vmem:[#allocation5_spill] sm:$0xff]  ;;  %v12687_v50 = vld [vmem:[#allocation2 + $0x190] sm:$0xf] }
 0x588   : > { %v8875_v2 = vshll.u32 %v12687_v50, 16  ;;  %v8879_v10 = vshrl.u32 %v12687_v50, 16  ;;  %v8868_v33 = vrot.slane %v8866_v59, 4  ;;  %v8871_v36 = vrot.slane %v8869_v39, 5  ;;  %v12688_v59 = vld [vmem:[#allocation2 + $0xb8] sm:$0xf] }
 0x589   : > { %v10146_v14 = vadd.f32 %v15736_v7, %v9337_v37  ;;  %11973 = vmatmul.msk.bf16.gmra.mxu2 %vm3277_vm9, %v16921_v20  ;;  %v16923_v7 = vld [vmem:[#allocation39_spill] sm:$0xff]  ;;  %v10601_v37 = vsel %vm10473_vm4, %v10409_v54, %v10537_v25  ;;  %v7115_v20 = vpack.c.b16 %v7065_v9, %v7064_v24 }
 0x58a   : > { %v7283_v5 = vpop.f32.mrf.mxu3  ;;  %v5302_v41 = vadd.f32 %v16923_v7, %v16922_v63  ;;  %v15810_v25 = vrot.slane %v8875_v2, 5  ;;  %v16927_v63 = vld [vmem:[#allocation41_spill] sm:$0xff]  ;;  %v12689_v24 = vld [vmem:[#allocation2 + $0x194] sm:$0x1] }
 0x58b   : > { %v10342_v42 = vmul.f32 %v15624_v18, %v10146_v14  ;;  %v7431_v44 = vadd.f32 %v7283_v5, %v6622_v49  ;;  %v16925_v49 = vld [vmem:[#allocation115_spill] sm:$0xff]  ;;  %v10665_v5 = vadd.f32 %v12182_v26, %v10601_v37  ;;  %v5303_v7 = vadd.f32 %v16927_v63, %v16926_v46 }
 0x58c   : > { %v6623_v23 = vadd.f32 %v16925_v49, %v5302_v41 }
 0x58d   : > { %v10410_v57 = vadd.f32 %v15641_v6, %v10342_v42  ;;  %v8017_v22 = vadd.f32 %v16924_v17, %v7431_v44  ;;  %v15800_v35 = vpop.f32.mrf.mxu2  ;;  %v9001_v44 = vunpack.c.l.b16 %v8854_v62  ;;  %v15824_v50 = vpop.f32.mrf.mxu1 }
 0x58f   : > { %vm10474_vm6 = vcmp.gt.f32.partialorder %v10410_v57, 0.0  ;;  %v10538_v11 = vmul.f32 0.1, %v10410_v57  ;;  %v9338_v53 = vadd.f32 %v15268_v34, %v8017_v22  ;;  %v8881_v34 = vrot.slane %v8879_v10, 4  ;;  %v16928_v10 = vld [vmem:[#allocation118_spill] sm:$0xff] }
 0x590   : > { %v9037_v41 = vpack.c.b16 %v9002_v56, %v9001_v44  ;;  %v8872_v22 = vor.u32 %v8871_v36, %v8868_v33  ;;  %v6624_v37 = vadd.f32 %v16928_v10, %v5303_v7 }
 0x591   : > { %v10602_v14 = vsel %vm10474_vm6, %v10410_v57, %v10538_v11  ;;  %v10147_v21 = vadd.f32 %v15760_v15, %v9338_v53  ;;  %v6906_v57 = vrot.slane %v12688_v59, 5  ;;  %v8882_v61 = vor.u32 %v8881_v34, %v15810_v25  ;;  %v12690_v53 = vld [vmem:[#allocation2 + $0xbc] sm:$0x1] }
 0x592   : > { %v10666_v54 = vadd.f32 %v12183_v29, %v10602_v14  ;;  %v7285_v28 = vpop.f32.mrf.mxu3  ;;  %v11622_v29 = vrot.slane %v6692_v4, 9  ;;  %v6909_v9 = vrot.slane %v12690_v53, 5  ;;  %v8873_v56 = vrot.slane %v8872_v22, 4  ;;  %v9409_v14 = vld [vmem:[#allocation2 + $0xcc] sm:$0xe] }
 0x593   : > { %v10343_v3 = vmul.f32 %v15624_v18, %v10147_v21  ;;  %v7432_v42 = vadd.f32 %v7285_v28, %v6623_v23  ;;  %v6908_v11 = vrot.slane %v6906_v57, 4  ;;  %v8883_v33 = vrot.slane %v8882_v61, 4  ;;  %v12691_v21 = vld [vmem:[#allocation2 + $0xd0] sm:$0xf]  ;;  %v12459_v23 = vld [vmem:[%s12820_s23 + $0x20] sm:$0xff]  }
 0x594   : > { %v12314_v38 = vpack.c.bf16 %v10666_v54, %v10665_v5  ;;  %v9629_v49 = vrot.slane %v12691_v21, 5  ;;  %v11927_v34 = vrot.slane %v9409_v14, 9  ;;  %v12187_v4 = vunpack.c.h.bf16 %v12459_v23 }
 0x595   : > { %v8018_v15 = vadd.f32 %v14710_v13, %v7432_v42  ;;  %v15817_v17 = vpop.f32.mrf.mxu2  ;;  %v10411_v39 = vadd.f32 %v15641_v6, %v10343_v3  ;;  %v8885_v13 = vshll.u32 %v12689_v24, 16  ;;  %v12692_v42 = vld [vmem:[#allocation2 + $0xd4] sm:$0x1] }
 0x596   : > { %12489 = vst [vmem:[%s15686_s28 + $0x18] sm:$0xff] %v12314_v38   ;;  %v9631_v3 = vrot.slane %v9629_v49, 4  ;;  %v9632_v44 = vrot.slane %v12692_v42, 5  ;;  %v16930_v38 = vld [vmem:[#allocation127_spill] sm:$0xff] }
 0x597   : > { %v9339_v26 = vadd.f32 %v15294_v32, %v8018_v15  ;;  %11669 = vmatmul.msk.bf16.gmra.mxu3 %vm3277_vm9, %v7115_v20  ;;  %11908 = vmatmul.msk.bf16.gmra.mxu1 %vm3277_vm9, %v9037_v41  ;;  %v6907_v32 = vsel %vm13012_vm15, %v11622_v29, %v6906_v57  ;;  %v10539_v36 = vmul.f32 0.1, %v10411_v39  ;;  %v8887_v28 = vrot.slane %v8885_v13, 5  ;;  %v16931_v20 = vld [vmem:[#allocation43_spill] sm:$0xff] }
 0x598   : > { %vm10475_vm7 = vcmp.gt.f32.partialorder %v10411_v39, 0.0  ;;  %v5304_v46 = vadd.f32 %v16931_v20, %v16930_v38  ;;  %v6910_v15 = vsel %vm13012_vm15, %v6908_v11, %v6909_v9  ;;  %v12186_v41 = vunpack.c.l.bf16 %v12459_v23  ;;  %v6693_v23 = vld [vmem:[#allocation2 + $0xc0] sm:$0xe]  ;;  %v8163_v38 = vld [vmem:[#allocation2 + $0x198] sm:$0xf] }
 0x599   : > { %v10148_v2 = vadd.f32 %v15778_v8, %v9339_v26  ;;  %v16929_v8 = vld [vmem:[#allocation126_spill] sm:$0xff]  ;;  %v8878_v57 = vsel %vm12873_vm8, %v8873_v56, %v15810_v25  ;;  %v8888_v22 = vsel %vm12873_vm8, %v8883_v33, %v8887_v28  ;;  %v10603_v61 = vsel %vm10475_vm7, %v10411_v39, %v10539_v36  ;;  %v8164_v20 = vld [vmem:[#allocation2 + $0x19c] sm:$0xf] }
 0x59a   : > { %v7288_v62 = vpop.f32.mrf.mxu3  ;;  %11974 = vmatmul.msk.bf16.gmra.mxu2 %vm3277_vm9, %v16929_v8  ;;  %v9630_v13 = vsel %vm13012_vm15, %v11927_v34, %v9629_v49  ;;  %v9633_v29 = vsel %vm13012_vm15, %v9631_v3, %v9632_v44  ;;  %v9004_v11 = vunpack.c.l.b16 %v8888_v22  ;;  %v10667_v53 = vadd.f32 %v12186_v41, %v10603_v61  ;;  %v12693_v3 = vld [vmem:[#allocation2 + $0xc4] sm:$0xf] }
 0x59b   : > { %v10344_v5 = vmul.f32 %v15624_v18, %v10148_v2  ;;  %v7433_v54 = vadd.f32 %v7288_v62, %v6624_v37  ;;  %v16932_v37 = vld [vmem:[#allocation122_spill] sm:$0xff]  ;;  %v7066_v62 = vunpack.c.l.b16 %v6907_v32  ;;  %v9003_v56 = vunpack.c.l.b16 %v8878_v57 }
 0x59c   : > { %v6625_v25 = vadd.f32 %v16932_v37, %v5304_v46  ;;  %v9784_v21 = vunpack.c.l.b16 %v9630_v13  ;;  %v9785_v49 = vunpack.c.l.b16 %v9633_v29  ;;  %v6913_v42 = vrot.slane %v12693_v3, 5 }
 0x59d   : > { %v10412_v63 = vadd.f32 %v15641_v6, %v10344_v5  ;;  %v8019_v7 = vadd.f32 %v14752_v58, %v7433_v54  ;;  %v15840_v59 = vpop.f32.mrf.mxu2  ;;  %v7067_v58 = vunpack.c.l.b16 %v6910_v15  ;;  %v16934_v54 = vld [vmem:[#allocation45_spill] sm:$0xff]  ;;  %v9038_v34 = vpack.c.b16 %v9004_v11, %v9003_v56 }
 0x59e   : > { %v11623_v44 = vrot.slane %v6693_v23, 9  ;;  %v8165_v15 = vld [vmem:[#allocation2 + $0x1a0] sm:$0x1]  ;;  %v8893_v41 = vshll.u32 %v8163_v38, 16  ;;  %v8903_v57 = vshrl.u32 %v8164_v20, 16 }
 0x59f   : > { %vm10476_vm10 = vcmp.gt.f32.partialorder %v10412_v63, 0.0  ;;  %v10540_v26 = vmul.f32 0.1, %v10412_v63  ;;  %v9340_v24 = vadd.f32 %v15322_v1, %v8019_v7  ;;  %v15854_v1 = vpop.f32.mrf.mxu1  ;;  %v7116_v5 = vpack.c.b16 %v7067_v58, %v7066_v62  ;;  %v16936_v11 = vld [vmem:[#allocation133_spill] sm:$0xff] }
 0x5a0   : > { %v9833_v7 = vpack.c.b16 %v9785_v49, %v9784_v21  ;;  %v8909_v22 = vshll.u32 %v8165_v15, 16  ;;  %v6915_v58 = vrot.slane %v6913_v42, 4 }
 0x5a1   : > { %v10604_v2 = vsel %vm10476_vm10, %v10412_v63, %v10540_v26  ;;  %v10149_v10 = vadd.f32 %v15800_v35, %v9340_v24  ;;  %v16933_v35 = vld [vmem:[#allocation130_spill] sm:$0xff]  ;;  %v16935_v26 = vld [vmem:[#allocation125_spill] sm:$0xff] }
 0x5a2   : > { %v10668_v9 = vadd.f32 %v12187_v4, %v10604_v2  ;;  %v7290_v39 = vpop.f32.mrf.mxu3  ;;  %v5305_v8 = vadd.f32 %v16934_v54, %v16933_v35  ;;  %v8899_v4 = vshll.u32 %v8164_v20, 16  ;;  %v8911_v21 = vrot.slane %v8909_v22, 5 }
 0x5a3   : > { %v10345_v33 = vmul.f32 %v15624_v18, %v10149_v10  ;;  %v7434_v14 = vadd.f32 %v7290_v39, %v6625_v25  ;;  %v8895_v10 = vrot.slane %v8893_v41, 5  ;;  %v8905_v25 = vrot.slane %v8903_v57, 4  ;;  %v12460_v39 = vld [vmem:[%s12820_s23 + $0x28] sm:$0xff]  }
 0x5a4   : > { %v12319_v36 = vpack.c.bf16 %v10668_v9, %v10667_v53  ;;  %v6626_v24 = vadd.f32 %v16935_v26, %v5305_v8  ;;  %v8901_v37 = vrot.slane %v8899_v4, 5  ;;  %v16937_v53 = vld [vmem:[#allocation47_spill] sm:$0xff]  ;;  %v12190_v54 = vunpack.c.l.bf16 %v12460_v39 }
 0x5a5   : > { %v8020_v28 = vadd.f32 %v14785_v31, %v7434_v14  ;;  %v15861_v32 = vpop.f32.mrf.mxu2  ;;  %v10413_v46 = vadd.f32 %v15641_v6, %v10345_v33  ;;  %v8890_v31 = vshrl.u32 %v8163_v38, 16  ;;  %v5306_v9 = vadd.f32 %v16937_v53, %v16936_v11  ;;  %v12695_v11 = vld [vmem:[#allocation2 + $0xe8] sm:$0xf] }
 0x5a6   : > { %12490 = vst [vmem:[%s15686_s28 + $0x20] sm:$0xff] %v12319_v36   ;;  %v8906_v14 = vor.u32 %v8905_v25, %v8901_v37  ;;  %v12191_v8 = vunpack.c.h.bf16 %v12460_v39  ;;  %v6920_v53 = vrot.slane %v12695_v11, 5 }
 0x5a7   : > { %v9341_v63 = vadd.f32 %v15348_v16, %v8020_v28  ;;  %11670 = vmatmul.msk.bf16.gmra.mxu3 %vm3277_vm9, %v7116_v5  ;;  %11909 = vmatmul.msk.bf16.gmra.mxu1 %vm3277_vm9, %v9038_v34  ;;  %v8892_v13 = vrot.slane %v8890_v31, 4  ;;  %v12694_v16 = vld [vmem:[#allocation2 + $0xc8] sm:$0x1]  ;;  %v10541_v62 = vmul.f32 0.1, %v10413_v46  ;;  %vm10477_vm12 = vcmp.gt.f32.partialorder %v10413_v46, 0.0  ;;  %v15874_v49 = vpop.f32.mrf.mxu1 }
 0x5a8   : > { %v6916_v2 = vrot.slane %v12694_v16, 5  ;;  %v6914_v5 = vsel %vm13012_vm15, %v11623_v44, %v6913_v42  ;;  %v8907_v3 = vrot.slane %v8906_v14, 4 }
 0x5a9   : > { %v10150_v61 = vadd.f32 %v15817_v17, %v9341_v63  ;;  %v8896_v17 = vor.u32 %v8895_v10, %v8892_v13  ;;  %v10605_v38 = vsel %vm10477_vm12, %v10413_v46, %v10541_v62  ;;  %v16939_v13 = vld [vmem:[#allocation136_spill] sm:$0xff] }
 0x5aa   : > { %v7293_v29 = vpop.f32.mrf.mxu3  ;;  %11975 = vmatmul.msk.bf16.gmra.mxu2 %vm3277_vm9, %v9833_v7  ;;  %v6917_v35 = vsel %vm13012_vm15, %v6915_v58, %v6916_v2  ;;  %v16938_v7 = vld [vmem:[#allocation129_spill] sm:$0xff]  ;;  %v8912_v44 = vsel %vm12873_vm8, %v8907_v3, %v8911_v21  ;;  %v10669_v46 = vadd.f32 %v12190_v54, %v10605_v38  ;;  %v6922_v21 = vrot.slane %v6920_v53, 4  ;;  %v16943_v54 = vld [vmem:[#allocation142_spill] sm:$0xff]  ;;  %v16944_v3 = vld [vmem:[#allocation139_spill] sm:$0xff] }
 0x5ab   : > { %v10346_v56 = vmul.f32 %v15624_v18, %v10150_v61  ;;  %v7435_v33 = vadd.f32 %v7293_v29, %v6626_v24  ;;  %v8897_v34 = vrot.slane %v8896_v17, 4  ;;  %v6627_v15 = vadd.f32 %v16938_v7, %v5306_v9  ;;  %v16940_v29 = vld [vmem:[#allocation49_spill] sm:$0xff] }
 0x5ac   : > { %v9006_v57 = vunpack.c.l.b16 %v8912_v44  ;;  %v7068_v24 = vunpack.c.l.b16 %v6914_v5  ;;  %v5307_v16 = vadd.f32 %v16940_v29, %v16939_v13  ;;  %v16941_v2 = vld [vmem:[#allocation165_spill] sm:$0xff] }
 0x5ad   : > { %v10414_v23 = vadd.f32 %v15641_v6, %v10346_v56  ;;  %v8021_v36 = vadd.f32 %v14816_v60, %v7435_v33  ;;  %v15882_v28 = vpop.f32.mrf.mxu2  ;;  %v7069_v60 = vunpack.c.l.b16 %v6917_v35  ;;  %v8902_v42 = vsel %vm12873_vm8, %v8897_v34, %v8901_v37  ;;  %v16942_v33 = vld [vmem:[#allocation132_spill] sm:$0xff]  ;;  %v16945_v38 = vld [vmem:[#allocation53_spill] sm:$0xff] }
 0x5ae   : > { %v9005_v4 = vunpack.c.l.b16 %v8902_v42  ;;  %v6628_v17 = vadd.f32 %v16942_v33, %v5307_v16 }
 0x5af   : > { %vm10478_vm0 = vcmp.gt.f32.partialorder %v10414_v23, 0.0  ;;  %v10542_v20 = vmul.f32 0.1, %v10414_v23  ;;  %v9342_v63 = vadd.f32 %v15369_v30, %v8021_v36  ;;  %v7117_v37 = vpack.c.b16 %v7069_v60, %v7068_v24  ;;  %v15896_v9 = vpop.f32.mrf.mxu1 }
 0x5b0   : > { %v9039_v25 = vpack.c.b16 %v9006_v57, %v9005_v4 }
 0x5b1   : > { %v10606_v31 = vsel %vm10478_vm0, %v10414_v23, %v10542_v20  ;;  %v10151_v41 = vadd.f32 %v15840_v59, %v9342_v63  ;;  %v12461_v23 = vld [vmem:[%s12820_s23 + $0x30] sm:$0xff]   ;;  %v5308_v20 = vadd.f32 %v16945_v38, %v16944_v3  ;;  %v16946_v63 = vld [vmem:[#allocation170_spill] sm:$0xff] }
 0x5b2   : > { %v10670_v22 = vadd.f32 %v12191_v8, %v10606_v31  ;;  %v7295_v61 = vpop.f32.mrf.mxu3  ;;  %v6694_v8 = vld [vmem:[#allocation2 + $0xe4] sm:$0xe]  ;;  %v12195_v60 = vunpack.c.h.bf16 %v12461_v23  ;;  %v16952_v3 = vld [vmem:[#allocation150_spill] sm:$0xff]  ;;  %v6695_v38 = vld [vmem:[#allocation2 + $0xf0] sm:$0xe] }
 0x5b3   : > { %v10347_v30 = vmul.f32 %v15624_v18, %v10151_v41  ;;  %v7436_v26 = vadd.f32 %v7295_v61, %v6627_v15  ;;  %v12194_v15 = vunpack.c.l.bf16 %v12461_v23  ;;  %v11624_v44 = vrot.slane %v6694_v8, 9  ;;  %v16951_v23 = vld [vmem:[#allocation138_spill] sm:$0xff] }
 0x5b4   : > { %v12324_v58 = vpack.c.bf16 %v10670_v22, %v10669_v46 }
 0x5b5   : > { %v8022_v10 = vadd.f32 %v16941_v2, %v7436_v26  ;;  %v10016_v59 = vpop.f32.mrf.mxu2  ;;  %v10415_v39 = vadd.f32 %v15641_v6, %v10347_v30  ;;  %v6921_v46 = vsel %vm13012_vm15, %v11624_v44, %v6920_v53  ;;  %v16947_v30 = vld [vmem:[#allocation135_spill] sm:$0xff] }
 0x5b6   : > { %12491 = vst [vmem:[%s15686_s28 + $0x28] sm:$0xff] %v12324_v58   ;;  %v6629_v26 = vadd.f32 %v16947_v30, %v5308_v20  ;;  %v12698_v20 = vld [vmem:[#allocation2 + $0xf8] sm:$0x1] }
 0x5b7   : > { %v9343_v62 = vadd.f32 %v15380_v12, %v8022_v10  ;;  %11671 = vmatmul.msk.bf16.gmra.mxu3 %vm3277_vm9, %v7117_v37  ;;  %11910 = vmatmul.msk.bf16.gmra.mxu1 %vm3277_vm9, %v9039_v25  ;;  %v10543_v36 = vmul.f32 0.1, %v10415_v39  ;;  %vm10479_vm11 = vcmp.gt.f32.partialorder %v10415_v39, 0.0  ;;  %v12696_v12 = vld [vmem:[#allocation2 + $0xec] sm:$0x1]  ;;  %v7070_v10 = vunpack.c.l.b16 %v6921_v46  ;;  %v16949_v25 = vld [vmem:[#allocation56_spill] sm:$0xff] }
 0x5b8   : > { %v6923_v34 = vrot.slane %v12696_v12, 5 }
 0x5b9   : > { %v10152_v56 = vadd.f32 %v15861_v32, %v9343_v62  ;;  %v10607_v41 = vsel %vm10479_vm11, %v10415_v39, %v10543_v36  ;;  %v16950_v39 = vld [vmem:[#allocation174_spill] sm:$0xff] }
 0x5ba   : > { %v7298_v14 = vpop.f32.mrf.mxu3  ;;  %11976 = vmatmul.msk.bf16.gmra.mxu2 %vm3277_vm9, %v16943_v54  ;;  %v6924_v31 = vsel %vm13012_vm15, %v6922_v21, %v6923_v34  ;;  %v10671_v58 = vadd.f32 %v12194_v15, %v10607_v41  ;;  %v12462_v54 = vld [vmem:[%s12820_s23 + $0x38] sm:$0xff]   ;;  %v16955_v15 = vld [vmem:[#allocation15_spill] sm:$0xff] }
 0x5bb   : > { %v10348_v5 = vmul.f32 %v15624_v18, %v10152_v56  ;;  %v7437_v35 = vadd.f32 %v7298_v14, %v6628_v17  ;;  %v7071_v24 = vunpack.c.l.b16 %v6924_v31  ;;  %v12697_v56 = vld [vmem:[#allocation2 + $0xf4] sm:$0xf]  ;;  %v12198_v44 = vunpack.c.l.bf16 %v12462_v54 }
 0x5bc   : > { %v6927_v33 = vrot.slane %v12697_v56, 5  ;;  %v12199_v31 = vunpack.c.h.bf16 %v12462_v54  ;;  %v12463_v54 = vld [vmem:[%s12820_s23 + $0x40] sm:$0xff]  }
 0x5bd   : > { %v10416_v32 = vadd.f32 %v15641_v6, %v10348_v5  ;;  %v8023_v7 = vadd.f32 %v16946_v63, %v7437_v35  ;;  %v10019_v42 = vpop.f32.mrf.mxu2  ;;  %v7118_v62 = vpack.c.b16 %v7071_v24, %v7070_v10  ;;  %v16954_v63 = vld [vmem:[#allocation58_spill] sm:$0xff]  ;;  %v16956_v24 = vld [vmem:[#allocation141_spill] sm:$0xff] }
 0x5be   : > { %v6929_v35 = vrot.slane %v6927_v33, 4  ;;  %v15945_v10 = vld [vmem:[%s16507_s5] ss:$0 sm:$0xff] }
 0x5bf   : > { %vm10480_vm14 = vcmp.gt.f32.partialorder %v10416_v32, 0.0  ;;  %v10544_v4 = vmul.f32 0.1, %v10416_v32  ;;  %v9344_v57 = vadd.f32 %v15403_v27, %v8023_v7  ;;  %v16948_v27 = vld [vmem:[#allocation144_spill] sm:$0xff] }
 0x5c0   : > { %v5309_v11 = vadd.f32 %v16949_v25, %v16948_v27 }
 0x5c1   : > { %v10608_v22 = vsel %vm10480_vm14, %v10416_v32, %v10544_v4  ;;  %v10153_v61 = vadd.f32 %v15882_v28, %v9344_v57  ;;  %v6930_v32 = vrot.slane %v12698_v20, 5  ;;  %v11625_v4 = vrot.slane %v6695_v38, 9  ;;  %v16963_v38 = vld [vmem:[#allocation6_spill] sm:$0xff]  ;;  %v16964_v20 = vld [vmem:[#allocation63_spill] sm:$0xff] }
 0x5c2   : > { %v10672_v13 = vadd.f32 %v12195_v60, %v10608_v22  ;;  %v7300_v29 = vpop.f32.mrf.mxu3  ;;  %v6630_v36 = vadd.f32 %v16951_v23, %v5309_v11  ;;  %v16957_v11 = vld [vmem:[#allocation88_spill] sm:$0xff] }
 0x5c3   : > { %v10349_v16 = vmul.f32 %v15624_v18, %v10153_v61  ;;  %v7438_v2 = vadd.f32 %v7300_v29, %v6629_v26  ;;  %v6928_v61 = vsel %vm13012_vm15, %v11625_v4, %v6927_v33 }
 0x5c4   : > { %v12329_v37 = vpack.c.bf16 %v10672_v13, %v10671_v58  ;;  %v7072_v27 = vunpack.c.l.b16 %v6928_v61 }
 0x5c5   : > { %v8024_v53 = vadd.f32 %v16950_v39, %v7438_v2  ;;  %v10021_v28 = vpop.f32.mrf.mxu2  ;;  %v10417_v17 = vadd.f32 %v15641_v6, %v10349_v16  ;;  %v16958_v39 = vld [vmem:[#allocation61_spill] sm:$0xff] }
 0x5c6   : > { %12492 = vst [vmem:[%s15686_s28 + $0x30] sm:$0xff] %v12329_v37  }
 0x5c7   : > { %v9345_v14 = vadd.f32 %v15414_v43, %v8024_v53  ;;  %11672 = vmatmul.msk.bf16.gmra.mxu3 %vm3277_vm9, %v7118_v62  ;;  %v10545_v8 = vmul.f32 0.1, %v10417_v17  ;;  %vm10481_vm13 = vcmp.gt.f32.partialorder %v10417_v17, 0.0  ;;  %v16953_v43 = vld [vmem:[#allocation147_spill] sm:$0xff]  ;;  %v16959_v53 = vld [vmem:[#allocation181_spill] sm:$0xff] }
 0x5c8   : > { %v5310_v7 = vadd.f32 %v16954_v63, %v16953_v43  ;;  %v16965_v43 = vld [vmem:[#allocation186_spill] sm:$0xff] }
 0x5c9   : > { %v10154_v21 = vadd.f32 %v10016_v59, %v9345_v14  ;;  %v10609_v57 = vsel %vm10481_vm13, %v10417_v17, %v10545_v8  ;;  %v16960_v14 = vld [vmem:[#allocation231_spill] sm:$0xff] }
 0x5ca   : > { %v7303_v5 = vpop.f32.mrf.mxu3  ;;  %11977 = vmatmul.msk.bf16.gmra.mxu2 %vm3277_vm9, %v16952_v3  ;;  %v6631_v58 = vadd.f32 %v16956_v24, %v5310_v7  ;;  %v10673_v29 = vadd.f32 %v12198_v44, %v10609_v57  ;;  %v16962_v3 = vld [vmem:[#allocation154_spill] sm:$0xff]  ;;  %v12202_v7 = vunpack.c.l.bf16 %v12463_v54 }
 0x5cb   : > { %v10350_v12 = vmul.f32 %v15624_v18, %v10154_v21  ;;  %v7439_v34 = vadd.f32 %v7303_v5, %v6630_v36  ;;  %v6931_v18 = vsel %vm13012_vm15, %v6929_v35, %v6930_v32  ;;  %v16961_v36 = vld [vmem:[#allocation146_spill] sm:$0xff]  ;;  %v15965_v32 = vld [vmem:[%s16508_s6] ss:$0 sm:$0xff] }
 0x5cc   : > { %v7073_v13 = vunpack.c.l.b16 %v6931_v18 }
 0x5cd   : > { %v10418_v59 = vadd.f32 %v15641_v6, %v10350_v12  ;;  %v8025_v60 = vadd.f32 %v16955_v15, %v7439_v34  ;;  %v10024_v41 = vpop.f32.mrf.mxu2 }
 0x5ce   : > { %v7119_v56 = vpack.c.b16 %v7073_v13, %v7072_v27 }
 0x5cf   : > { %vm10482_vm1 = vcmp.gt.f32.partialorder %v10418_v59, 0.0  ;;  %v10546_v46 = vmul.f32 0.1, %v10418_v59  ;;  %v9346_v22 = vadd.f32 %v15437_v19, %v8025_v60 }
 0x5d1   : > { %v10610_v30 = vsel %vm10482_vm1, %v10418_v59, %v10546_v46  ;;  %v10155_v26 = vadd.f32 %v10019_v42, %v9346_v22  ;;  %v5311_v42 = vadd.f32 %v16958_v39, %v16957_v11  ;;  %v12203_v59 = vunpack.c.h.bf16 %v12463_v54  ;;  %v16967_v46 = vld [vmem:[#allocation149_spill] sm:$0xff]  ;;  %v16971_v39 = vld [vmem:[#allocation236_spill] sm:$0xff] }
 0x5d2   : > { %v10674_v16 = vadd.f32 %v12199_v31, %v10610_v30  ;;  %v7305_v2 = vpop.f32.mrf.mxu3  ;;  %v16966_v31 = vld [vmem:[#allocation234_spill] sm:$0xff]  ;;  %v16974_v54 = vld [vmem:[#allocation161_spill] sm:$0xff] }
 0x5d3   : > { %v10351_v19 = vmul.f32 %v15945_v10, %v10155_v26  ;;  %v7440_v37 = vadd.f32 %v7305_v2, %v6631_v58  ;;  %v6632_v5 = vadd.f32 %v16961_v36, %v5311_v42 }
 0x5d4   : > { %v12334_v25 = vpack.c.bf16 %v10674_v16, %v10673_v29  ;;  %v16968_v29 = vld [vmem:[#allocation7_spill] sm:$0xff]  ;;  %v16969_v16 = vld [vmem:[#allocation66_spill] sm:$0xff] }
 0x5d5   : > { %v8026_v62 = vadd.f32 %v16959_v53, %v7440_v37  ;;  %v10026_v33 = vpop.f32.mrf.mxu2  ;;  %v10419_v17 = vadd.f32 %v15641_v6, %v10351_v19  ;;  %v5312_v6 = vadd.f32 %v16964_v20, %v16963_v38  ;;  %v5313_v2 = vadd.f32 %v16969_v16, %v16968_v29  ;;  %v16970_v19 = vld [vmem:[#allocation190_spill] sm:$0xff]  ;;  %v16972_v53 = vld [vmem:[#allocation156_spill] sm:$0xff] }
 0x5d6   : > { %12493 = vst [vmem:[%s15686_s28 + $0x38] sm:$0xff] %v12334_v25   ;;  %v12701_v25 = vld [vmem:[#allocation2 + $0x10c] sm:$0xf]  ;;  %v16976_v38 = vld [vmem:[#allocation68_spill] sm:$0xff] }
 0x5d7   : > { %v9347_v21 = vadd.f32 %v16960_v14, %v8026_v62  ;;  %11673 = vmatmul.msk.bf16.gmra.mxu3 %vm3277_vm9, %v7119_v56  ;;  %v10547_v8 = vmul.f32 0.1, %v10419_v17  ;;  %vm10483_vm2 = vcmp.gt.f32.partialorder %v10419_v17, 0.0  ;;  %v6633_v22 = vadd.f32 %v16967_v46, %v5312_v6  ;;  %v16973_v56 = vld [vmem:[#allocation152_spill] sm:$0xff]  ;;  %v16977_v6 = vld [vmem:[#allocation194_spill] sm:$0xff] }
 0x5d8   : > { %v6941_v11 = vrot.slane %v12701_v25, 5  ;;  %v16981_v25 = vld [vmem:[#allocation71_spill] sm:$0xff] }
 0x5d9   : > { %v10156_v23 = vadd.f32 %v10021_v28, %v9347_v21  ;;  %v10611_v60 = vsel %vm10483_vm2, %v10419_v17, %v10547_v8  ;;  %v6634_v17 = vadd.f32 %v16973_v56, %v5313_v2  ;;  %v6697_v8 = vld [vmem:[#allocation2 + $0x108] sm:$0xe] }
 0x5da   : > { %v7308_v35 = vpop.f32.mrf.mxu3  ;;  %11978 = vmatmul.msk.bf16.gmra.mxu2 %vm3277_vm9, %v16962_v3  ;;  %v10675_v61 = vadd.f32 %v12202_v7, %v10611_v60  ;;  %v6943_v21 = vrot.slane %v6941_v11, 4  ;;  %v16975_v3 = vld [vmem:[#allocation8_spill] sm:$0xff] }
 0x5db   : > { %v10352_v12 = vmul.f32 %v15945_v10, %v10156_v23  ;;  %v7441_v34 = vadd.f32 %v7308_v35, %v6632_v5  ;;  %v12464_v23 = vld [vmem:[%s12820_s23 + $0x48] sm:$0xff]   ;;  %v5314_v20 = vadd.f32 %v16976_v38, %v16975_v3  ;;  %v16985_v3 = vld [vmem:[#allocation168_spill] sm:$0xff]  ;;  %v6698_v38 = vld [vmem:[#allocation2 + $0x114] sm:$0xe] }
 0x5dd   : > { %v10420_v28 = vadd.f32 %v15965_v32, %v10352_v12  ;;  %v8027_v63 = vadd.f32 %v16965_v43, %v7441_v34  ;;  %v10029_v15 = vpop.f32.mrf.mxu2  ;;  %v12702_v12 = vld [vmem:[#allocation2 + $0x110] sm:$0x1]  ;;  %v12206_v43 = vunpack.c.l.bf16 %v12464_v23 }
 0x5de   : > { %v6944_v34 = vrot.slane %v12702_v12, 5 }
 0x5df   : > { %vm10484_vm4 = vcmp.gt.f32.partialorder %v10420_v28, 0.0  ;;  %v10548_v44 = vmul.f32 0.1, %v10420_v28  ;;  %v9348_v4 = vadd.f32 %v16966_v31, %v8027_v63  ;;  %v12207_v63 = vunpack.c.h.bf16 %v12464_v23  ;;  %v16984_v23 = vld [vmem:[#allocation157_spill] sm:$0xff] }
 0x5e0   : > { %v6945_v60 = vsel %vm13012_vm15, %v6943_v21, %v6944_v34 }
 0x5e1   : > { %v10612_v18 = vsel %vm10484_vm4, %v10420_v28, %v10548_v44  ;;  %v10157_v57 = vadd.f32 %v10024_v41, %v9348_v4  ;;  %v16978_v4 = vld [vmem:[#allocation74_spill] sm:$0xff] }
 0x5e2   : > { %v10676_v30 = vadd.f32 %v12203_v59, %v10612_v18  ;;  %v7310_v26 = vpop.f32.mrf.mxu3  ;;  %v11627_v59 = vrot.slane %v6697_v8, 9 }
 0x5e3   : > { %v10353_v24 = vmul.f32 %v15945_v10, %v10157_v57  ;;  %v7442_v58 = vadd.f32 %v7310_v26, %v6633_v22  ;;  %v7077_v26 = vunpack.c.l.b16 %v6945_v60 }
 0x5e4   : > { %v12339_v13 = vpack.c.bf16 %v10676_v30, %v10675_v61  ;;  %v6942_v57 = vsel %vm13012_vm15, %v11627_v59, %v6941_v11  ;;  %v16979_v61 = vld [vmem:[#allocation153_spill] sm:$0xff] }
 0x5e5   : > { %v8028_v37 = vadd.f32 %v16970_v19, %v7442_v58  ;;  %v10031_v27 = vpop.f32.mrf.mxu2  ;;  %v10421_v41 = vadd.f32 %v15965_v32, %v10353_v24  ;;  %v6635_v30 = vadd.f32 %v16979_v61, %v5314_v20  ;;  %v7076_v2 = vunpack.c.l.b16 %v6942_v57  ;;  %v12704_v20 = vld [vmem:[#allocation2 + $0x11c] sm:$0x1] }
 0x5e6   : > { %12494 = vst [vmem:[%s15686_s28 + $0x40] sm:$0xff] %v12339_v13  }
 0x5e7   : > { %v9349_v42 = vadd.f32 %v16971_v39, %v8028_v37  ;;  %11674 = vmatmul.msk.bf16.gmra.mxu3 %vm3277_vm9, %v16972_v53  ;;  %v10549_v36 = vmul.f32 0.1, %v10421_v41  ;;  %vm10485_vm6 = vcmp.gt.f32.partialorder %v10421_v41, 0.0  ;;  %v16980_v37 = vld [vmem:[#allocation9_spill] sm:$0xff]  ;;  %v16982_v39 = vld [vmem:[#allocation196_spill] sm:$0xff]  ;;  %v7121_v11 = vpack.c.b16 %v7077_v26, %v7076_v2 }
 0x5e8   : > { %v12703_v53 = vld [vmem:[#allocation2 + $0x118] sm:$0xf] }
 0x5e9   : > { %v10158_v62 = vadd.f32 %v10026_v33, %v9349_v42  ;;  %v10613_v44 = vsel %vm10485_vm6, %v10421_v41, %v10549_v36  ;;  %v5315_v41 = vadd.f32 %v16981_v25, %v16980_v37 }
 0x5ea   : > { %v7313_v14 = vpop.f32.mrf.mxu3  ;;  %11979 = vmatmul.msk.bf16.gmra.mxu2 %vm3277_vm9, %v16974_v54  ;;  %v10677_v24 = vadd.f32 %v12206_v43, %v10613_v44  ;;  %v12465_v54 = vld [vmem:[%s12820_s23 + $0x50] sm:$0xff]  }
 0x5eb   : > { %v10354_v5 = vmul.f32 %v15945_v10, %v10158_v62  ;;  %v7443_v35 = vadd.f32 %v7313_v14, %v6634_v17  ;;  %v6948_v62 = vrot.slane %v12703_v53, 5  ;;  %v16983_v17 = vld [vmem:[#allocation240_spill] sm:$0xff]  ;;  %v6636_v36 = vadd.f32 %v16984_v23, %v5315_v41 }
 0x5ec   : > { %v12210_v60 = vunpack.c.l.bf16 %v12465_v54  ;;  %v12211_v44 = vunpack.c.h.bf16 %v12465_v54  ;;  %v16995_v54 = vld [vmem:[#allocation162_spill] sm:$0xff] }
 0x5ed   : > { %v10422_v33 = vadd.f32 %v15965_v32, %v10354_v5  ;;  %v8029_v28 = vadd.f32 %v16977_v6, %v7443_v35  ;;  %v10034_v7 = vpop.f32.mrf.mxu2  ;;  %v6950_v35 = vrot.slane %v6948_v62, 4  ;;  %v16986_v6 = vld [vmem:[#allocation10_spill] sm:$0xff] }
 0x5ef   : > { %vm10486_vm7 = vcmp.gt.f32.partialorder %v10422_v33, 0.0  ;;  %v10550_v31 = vmul.f32 0.1, %v10422_v33  ;;  %v9350_v18 = vadd.f32 %v16978_v4, %v8029_v28  ;;  %v16987_v28 = vld [vmem:[#allocation73_spill] sm:$0xff]  ;;  %v11628_v4 = vrot.slane %v6698_v38, 9 }
 0x5f0   : > { %v5316_v43 = vadd.f32 %v16987_v28, %v16986_v6  ;;  %v16996_v6 = vld [vmem:[#allocation177_spill] sm:$0xff] }
 0x5f1   : > { %v10614_v46 = vsel %vm10486_vm7, %v10422_v33, %v10550_v31  ;;  %v10159_v22 = vadd.f32 %v10029_v15, %v9350_v18  ;;  %v6951_v33 = vrot.slane %v12704_v20, 5  ;;  %v6699_v28 = vld [vmem:[#allocation2 + $0x120] sm:$0xe] }
 0x5f2   : > { %v10678_v58 = vadd.f32 %v12207_v63, %v10614_v46  ;;  %v7315_v13 = vpop.f32.mrf.mxu3  ;;  %v16988_v63 = vld [vmem:[#allocation198_spill] sm:$0xff] }
 0x5f3   : > { %v10355_v29 = vmul.f32 %v15945_v10, %v10159_v22  ;;  %v7444_v16 = vadd.f32 %v7315_v13, %v6635_v30  ;;  %v6952_v18 = vsel %vm13012_vm15, %v6950_v35, %v6951_v33  ;;  %v16989_v22 = vld [vmem:[#allocation241_spill] sm:$0xff]  ;;  %v6949_v30 = vsel %vm13012_vm15, %v11628_v4, %v6948_v62 }
 0x5f4   : > { %v12344_v19 = vpack.c.bf16 %v10678_v58, %v10677_v24  ;;  %v16990_v58 = vld [vmem:[#allocation159_spill] sm:$0xff]  ;;  %v7078_v41 = vunpack.c.l.b16 %v6949_v30 }
 0x5f5   : > { %v8030_v42 = vadd.f32 %v16982_v39, %v7444_v16  ;;  %v10036_v15 = vpop.f32.mrf.mxu2  ;;  %v10423_v56 = vadd.f32 %v15965_v32, %v10355_v29  ;;  %v6637_v13 = vadd.f32 %v16990_v58, %v5316_v43  ;;  %v7079_v29 = vunpack.c.l.b16 %v6952_v18  ;;  %v12706_v43 = vld [vmem:[#allocation2 + $0x128] sm:$0x1] }
 0x5f6   : > { %12495 = vst [vmem:[%s15686_s28 + $0x48] sm:$0xff] %v12344_v19  }
 0x5f7   : > { %v9351_v14 = vadd.f32 %v16983_v17, %v8030_v42  ;;  %11675 = vmatmul.msk.bf16.gmra.mxu3 %vm3277_vm9, %v7121_v11  ;;  %v10551_v8 = vmul.f32 0.1, %v10423_v56  ;;  %vm10487_vm10 = vcmp.gt.f32.partialorder %v10423_v56, 0.0  ;;  %v16991_v42 = vld [vmem:[#allocation11_spill] sm:$0xff]  ;;  %v16992_v11 = vld [vmem:[#allocation76_spill] sm:$0xff]  ;;  %v7122_v62 = vpack.c.b16 %v7079_v29, %v7078_v41 }
 0x5f8   : > { %v5317_v53 = vadd.f32 %v16992_v11, %v16991_v42 }
 0x5f9   : > { %v10160_v21 = vadd.f32 %v10031_v27, %v9351_v14  ;;  %v10615_v57 = vsel %vm10487_vm10, %v10423_v56, %v10551_v8  ;;  %v16993_v56 = vld [vmem:[#allocation202_spill] sm:$0xff]  ;;  %v12705_v14 = vld [vmem:[#allocation2 + $0x124] sm:$0xf] }
 0x5fa   : > { %v7318_v5 = vpop.f32.mrf.mxu3  ;;  %11980 = vmatmul.msk.bf16.gmra.mxu2 %vm3277_vm9, %v16985_v3  ;;  %v10679_v16 = vadd.f32 %v12210_v60, %v10615_v57  ;;  %v6638_v8 = vadd.f32 %v16995_v54, %v5317_v53  ;;  %v12466_v3 = vld [vmem:[%s12820_s23 + $0x58] sm:$0xff]  }
 0x5fb   : > { %v10356_v12 = vmul.f32 %v15945_v10, %v10160_v21  ;;  %v7445_v34 = vadd.f32 %v7318_v5, %v6636_v36  ;;  %v6955_v21 = vrot.slane %v12705_v14, 5  ;;  %v16994_v36 = vld [vmem:[#allocation243_spill] sm:$0xff]  ;;  %v12214_v18 = vunpack.c.l.bf16 %v12466_v3 }
 0x5fc   : > { %v12215_v57 = vunpack.c.h.bf16 %v12466_v3  ;;  %v17006_v3 = vld [vmem:[#allocation167_spill] sm:$0xff] }
 0x5fd   : > { %v10424_v27 = vadd.f32 %v15965_v32, %v10356_v12  ;;  %v8031_v59 = vadd.f32 %v16988_v63, %v7445_v34  ;;  %v10039_v31 = vpop.f32.mrf.mxu2  ;;  %v6957_v34 = vrot.slane %v6955_v21, 4  ;;  %v16997_v63 = vld [vmem:[#allocation12_spill] sm:$0xff] }
 0x5ff   : > { %vm10488_vm12 = vcmp.gt.f32.partialorder %v10424_v27, 0.0  ;;  %v10552_v46 = vmul.f32 0.1, %v10424_v27  ;;  %v9352_v61 = vadd.f32 %v16989_v22, %v8031_v59  ;;  %v16998_v59 = vld [vmem:[#allocation78_spill] sm:$0xff]  ;;  %v11629_v22 = vrot.slane %v6699_v28, 9 }
 0x600   : > { %v5318_v60 = vadd.f32 %v16998_v59, %v16997_v63  ;;  %v17007_v63 = vld [vmem:[#allocation185_spill] sm:$0xff]  ;;  %v6700_v59 = vld [vmem:[#allocation2 + $0x12c] sm:$0xe] }
 0x601   : > { %v10616_v26 = vsel %vm10488_vm12, %v10424_v27, %v10552_v46  ;;  %v10161_v24 = vadd.f32 %v10034_v7, %v9352_v61  ;;  %v6958_v27 = vrot.slane %v12706_v43, 5 }
 0x602   : > { %v10680_v2 = vadd.f32 %v12211_v44, %v10616_v26  ;;  %v7320_v19 = vpop.f32.mrf.mxu3  ;;  %v16999_v44 = vld [vmem:[#allocation205_spill] sm:$0xff] }
 0x603   : > { %v10357_v37 = vmul.f32 %v15945_v10, %v10161_v24  ;;  %v7446_v25 = vadd.f32 %v7320_v19, %v6637_v13  ;;  %v6959_v61 = vsel %vm13012_vm15, %v6957_v34, %v6958_v27  ;;  %v17000_v24 = vld [vmem:[#allocation244_spill] sm:$0xff]  ;;  %v6956_v13 = vsel %vm13012_vm15, %v11629_v22, %v6955_v21 }
 0x604   : > { %v12349_v39 = vpack.c.bf16 %v10680_v2, %v10679_v16  ;;  %v17001_v2 = vld [vmem:[#allocation164_spill] sm:$0xff]  ;;  %v7080_v53 = vunpack.c.l.b16 %v6956_v13 }
 0x605   : > { %v8032_v17 = vadd.f32 %v16993_v56, %v7446_v25  ;;  %v10041_v7 = vpop.f32.mrf.mxu2  ;;  %v10425_v23 = vadd.f32 %v15965_v32, %v10357_v37  ;;  %v6639_v19 = vadd.f32 %v17001_v2, %v5318_v60  ;;  %v7081_v37 = vunpack.c.l.b16 %v6959_v61  ;;  %v12708_v60 = vld [vmem:[#allocation2 + $0x134] sm:$0x1] }
 0x606   : > { %12496 = vst [vmem:[%s15686_s28 + $0x50] sm:$0xff] %v12349_v39  }
 0x607   : > { %v9353_v5 = vadd.f32 %v16994_v36, %v8032_v17  ;;  %11676 = vmatmul.msk.bf16.gmra.mxu3 %vm3277_vm9, %v7122_v62  ;;  %v10553_v38 = vmul.f32 0.1, %v10425_v23  ;;  %vm10489_vm0 = vcmp.gt.f32.partialorder %v10425_v23, 0.0  ;;  %v17002_v17 = vld [vmem:[#allocation13_spill] sm:$0xff]  ;;  %v7123_v21 = vpack.c.b16 %v7081_v37, %v7080_v53 }
 0x608   : > { %v17003_v62 = vld [vmem:[#allocation81_spill] sm:$0xff] }
 0x609   : > { %v10162_v35 = vadd.f32 %v10036_v15, %v9353_v5  ;;  %v10617_v30 = vsel %vm10489_vm0, %v10425_v23, %v10553_v38  ;;  %v5319_v14 = vadd.f32 %v17003_v62, %v17002_v17  ;;  %v17004_v23 = vld [vmem:[#allocation208_spill] sm:$0xff]  ;;  %v12707_v5 = vld [vmem:[#allocation2 + $0x130] sm:$0xf] }
 0x60a   : > { %v7323_v12 = vpop.f32.mrf.mxu3  ;;  %11981 = vmatmul.msk.bf16.gmra.mxu2 %vm3277_vm9, %v16996_v6  ;;  %v10681_v25 = vadd.f32 %v12214_v18, %v10617_v30  ;;  %v12467_v6 = vld [vmem:[%s12820_s23 + $0x60] sm:$0xff]  }
 0x60b   : > { %v10358_v20 = vmul.f32 %v15945_v10, %v10162_v35  ;;  %v7447_v33 = vadd.f32 %v7323_v12, %v6638_v8  ;;  %v6962_v35 = vrot.slane %v12707_v5, 5  ;;  %v17005_v8 = vld [vmem:[#allocation92_spill] sm:$0xff]  ;;  %v6640_v38 = vadd.f32 %v17006_v3, %v5319_v14 }
 0x60c   : > { %v12218_v61 = vunpack.c.l.bf16 %v12467_v6  ;;  %v12219_v30 = vunpack.c.h.bf16 %v12467_v6 }
 0x60d   : > { %v10426_v15 = vadd.f32 %v15965_v32, %v10358_v20  ;;  %v8033_v4 = vadd.f32 %v16999_v44, %v7447_v33  ;;  %v10044_v46 = vpop.f32.mrf.mxu2  ;;  %v6964_v33 = vrot.slane %v6962_v35, 4  ;;  %v17008_v44 = vld [vmem:[#allocation14_spill] sm:$0xff] }
 0x60f   : > { %vm10490_vm11 = vcmp.gt.f32.partialorder %v10426_v15, 0.0  ;;  %v10554_v26 = vmul.f32 0.1, %v10426_v15  ;;  %v9354_v58 = vadd.f32 %v17000_v24, %v8033_v4  ;;  %v17009_v4 = vld [vmem:[#allocation83_spill] sm:$0xff]  ;;  %v11630_v24 = vrot.slane %v6700_v59, 9 }
 0x610   : > { %v5320_v18 = vadd.f32 %v17009_v4, %v17008_v44  ;;  %v12710_v44 = vld [vmem:[#allocation2 + $0x140] sm:$0x1] }
 0x611   : > { %v10618_v29 = vsel %vm10490_vm11, %v10426_v15, %v10554_v26  ;;  %v10163_v16 = vadd.f32 %v10039_v31, %v9354_v58  ;;  %v6965_v15 = vrot.slane %v12708_v60, 5  ;;  %v6963_v2 = vsel %vm13012_vm15, %v11630_v24, %v6962_v35  ;;  %v17017_v60 = vld [vmem:[#allocation193_spill] sm:$0xff] }
 0x612   : > { %v10682_v41 = vadd.f32 %v12215_v57, %v10618_v29  ;;  %v7325_v39 = vpop.f32.mrf.mxu3  ;;  %v17010_v57 = vld [vmem:[#allocation210_spill] sm:$0xff]  ;;  %v7082_v62 = vunpack.c.l.b16 %v6963_v2  ;;  %v6972_v4 = vrot.slane %v12710_v44, 5  ;;  %v17027_v44 = vld [vmem:[#allocation200_spill] sm:$0xff] }
 0x613   : > { %v10359_v42 = vmul.f32 %v15945_v10, %v10163_v16  ;;  %v7448_v11 = vadd.f32 %v7325_v39, %v6639_v19  ;;  %v6966_v58 = vsel %vm13012_vm15, %v6964_v33, %v6965_v15  ;;  %v6701_v15 = vld [vmem:[#allocation2 + $0x138] sm:$0xe] }
 0x614   : > { %v12354_v56 = vpack.c.bf16 %v10682_v41, %v10681_v25  ;;  %v17011_v25 = vld [vmem:[#allocation171_spill] sm:$0xff]  ;;  %v7083_v39 = vunpack.c.l.b16 %v6966_v58 }
 0x615   : > { %v8034_v36 = vadd.f32 %v17004_v23, %v7448_v11  ;;  %v10046_v31 = vpop.f32.mrf.mxu2  ;;  %v10427_v54 = vadd.f32 %v15965_v32, %v10359_v42  ;;  %v6641_v41 = vadd.f32 %v17011_v25, %v5320_v18  ;;  %v17012_v23 = vld [vmem:[#allocation178_spill] sm:$0xff]  ;;  %v17018_v18 = vld [vmem:[#allocation16_spill] sm:$0xff] }
 0x616   : > { %12497 = vst [vmem:[%s15686_s28 + $0x58] sm:$0xff] %v12354_v56   ;;  %v7124_v35 = vpack.c.b16 %v7083_v39, %v7082_v62 }
 0x617   : > { %v9355_v12 = vadd.f32 %v17005_v8, %v8034_v36  ;;  %11677 = vmatmul.msk.bf16.gmra.mxu3 %vm3277_vm9, %v7123_v21  ;;  %v10555_v28 = vmul.f32 0.1, %v10427_v54  ;;  %vm10491_vm14 = vcmp.gt.f32.partialorder %v10427_v54, 0.0  ;;  %v17014_v21 = vld [vmem:[#allocation214_spill] sm:$0xff] }
 0x619   : > { %v10164_v34 = vadd.f32 %v10041_v7, %v9355_v12  ;;  %v10619_v13 = vsel %vm10491_vm14, %v10427_v54, %v10555_v28  ;;  %v12709_v54 = vld [vmem:[#allocation2 + $0x13c] sm:$0xf] }
 0x61a   : > { %v7328_v20 = vpop.f32.mrf.mxu3  ;;  %11982 = vmatmul.msk.bf16.gmra.mxu2 %vm3277_vm9, %v17007_v63  ;;  %v10683_v42 = vadd.f32 %v12218_v61, %v10619_v13  ;;  %v6969_v8 = vrot.slane %v12709_v54, 5  ;;  %v11631_v13 = vrot.slane %v6701_v15, 9  ;;  %v17025_v54 = vld [vmem:[#allocation219_spill] sm:$0xff] }
 0x61b   : > { %v10360_v43 = vmul.f32 %v15945_v10, %v10164_v34  ;;  %v7449_v27 = vadd.f32 %v7328_v20, %v6640_v38  ;;  %v17015_v34 = vld [vmem:[#allocation21_spill] sm:$0xff] }
 0x61c   : > { %v17016_v20 = vld [vmem:[#allocation173_spill] sm:$0xff]  ;;  %v6971_v28 = vrot.slane %v6969_v8, 4  ;;  %v6970_v25 = vsel %vm13012_vm15, %v11631_v13, %v6969_v8 }
 0x61d   : > { %v10428_v7 = vadd.f32 %v15965_v32, %v10360_v43  ;;  %v8035_v22 = vadd.f32 %v17010_v57, %v7449_v27  ;;  %v10049_v26 = vpop.f32.mrf.mxu2  ;;  %v12468_v43 = vld [vmem:[%s12820_s23 + $0x68] sm:$0xff]  }
 0x61e   : > { %v12223_v24 = vunpack.c.h.bf16 %v12468_v43 }
 0x61f   : > { %vm10492_vm13 = vcmp.gt.f32.partialorder %v10428_v7, 0.0  ;;  %v10556_v29 = vmul.f32 0.1, %v10428_v7  ;;  %v9356_v16 = vadd.f32 %v15606_v55, %v8035_v22  ;;  %v17013_v55 = vld [vmem:[#allocation87_spill] sm:$0xff]  ;;  %v17020_v22 = vld [vmem:[#allocation217_spill] sm:$0xff] }
 0x620   : > { %v5321_v36 = vadd.f32 %v17013_v55, %v17012_v23  ;;  %v7084_v55 = vunpack.c.l.b16 %v6970_v25 }
 0x621   : > { %v10620_v19 = vsel %vm10492_vm13, %v10428_v7, %v10556_v29  ;;  %v10165_v37 = vadd.f32 %v10044_v46, %v9356_v16  ;;  %v17019_v7 = vld [vmem:[#allocation90_spill] sm:$0xff]  ;;  %v6973_v29 = vsel %vm13012_vm15, %v6971_v28, %v6972_v4  ;;  %v6702_v4 = vld [vmem:[#allocation2 + $0x144] sm:$0xe] }
 0x622   : > { %v10684_v11 = vadd.f32 %v12219_v30, %v10620_v19  ;;  %v7330_v53 = vpop.f32.mrf.mxu3  ;;  %v6642_v33 = vadd.f32 %v17016_v20, %v5321_v36  ;;  %v5322_v57 = vadd.f32 %v17019_v7, %v17018_v18  ;;  %v12222_v30 = vunpack.c.l.bf16 %v12468_v43  ;;  %v17021_v19 = vld [vmem:[#allocation91_spill] sm:$0xff]  ;;  %v12712_v18 = vld [vmem:[#allocation2 + $0x14c] sm:$0x1] }
 0x623   : > { %v10361_v56 = vmul.f32 %v15945_v10, %v10165_v37  ;;  %v7450_v17 = vadd.f32 %v7330_v53, %v6641_v41  ;;  %v7085_v53 = vunpack.c.l.b16 %v6973_v29  ;;  %v6979_v7 = vrot.slane %v12712_v18, 5 }
 0x624   : > { %v12359_v14 = vpack.c.bf16 %v10684_v11, %v10683_v42  ;;  %v17022_v42 = vld [vmem:[#allocation176_spill] sm:$0xff]  ;;  %v11632_v29 = vrot.slane %v6702_v4, 9  ;;  %v16123_v4 = vpop.f32.mrf.mxu0 }
 0x625   : > { %v8036_v5 = vadd.f32 %v17014_v21, %v7450_v17  ;;  %v10051_v46 = vpop.f32.mrf.mxu2  ;;  %v10429_v12 = vadd.f32 %v15965_v32, %v10361_v56  ;;  %v6643_v11 = vadd.f32 %v17022_v42, %v5322_v57  ;;  %v17023_v21 = vld [vmem:[#allocation17_spill] sm:$0xff]  ;;  %v7125_v8 = vpack.c.b16 %v7085_v53, %v7084_v55  ;;  %v17031_v42 = vld [vmem:[#allocation183_spill] sm:$0xff] }
 0x626   : > { %12498 = vst [vmem:[%s15686_s28 + $0x60] sm:$0xff] %v12359_v14   ;;  %v17029_v57 = vld [vmem:[#allocation97_spill] sm:$0xff] }
 0x627   : > { %v9357_v3 = vadd.f32 %v17015_v34, %v8036_v5  ;;  %11678 = vmatmul.msk.bf16.gmra.mxu3 %vm3277_vm9, %v7124_v35  ;;  %v10557_v27 = vmul.f32 0.1, %v10429_v12  ;;  %vm10493_vm1 = vcmp.gt.f32.partialorder %v10429_v12, 0.0  ;;  %v17024_v5 = vld [vmem:[#allocation95_spill] sm:$0xff]  ;;  %v12711_v34 = vld [vmem:[#allocation2 + $0x148] sm:$0xf] }
 0x628   : > { %v5323_v35 = vadd.f32 %v17024_v5, %v17023_v21  ;;  %v17032_v21 = vld [vmem:[#allocation19_spill] sm:$0xff] }
 0x629   : > { %v10166_v38 = vadd.f32 %v10046_v31, %v9357_v3  ;;  %v10621_v16 = vsel %vm10493_vm1, %v10429_v12, %v10557_v27  ;;  %v6976_v3 = vrot.slane %v12711_v34, 5 }
 0x62a   : > { %v7333_v6 = vpop.f32.mrf.mxu3  ;;  %11983 = vmatmul.msk.bf16.gmra.mxu2 %vm3277_vm9, %v17017_v60  ;;  %v10685_v56 = vadd.f32 %v12222_v30, %v10621_v16 }
 0x62b   : > { %v10362_v63 = vmul.f32 %v15945_v10, %v10166_v38  ;;  %v7451_v59 = vadd.f32 %v7333_v6, %v6642_v33  ;;  %v17026_v6 = vld [vmem:[#allocation180_spill] sm:$0xff]  ;;  %v6978_v27 = vrot.slane %v6976_v3, 4  ;;  %v6977_v25 = vsel %vm13012_vm15, %v11632_v29, %v6976_v3 }
 0x62c   : > { %v6644_v28 = vadd.f32 %v17026_v6, %v5323_v35  ;;  %v7086_v55 = vunpack.c.l.b16 %v6977_v25  ;;  %v17034_v35 = vld [vmem:[#allocation224_spill] sm:$0xff] }
 0x62d   : > { %v10430_v31 = vadd.f32 %v15965_v32, %v10362_v63  ;;  %v8037_v61 = vadd.f32 %v17020_v22, %v7451_v59  ;;  %v10054_v58 = vpop.f32.mrf.mxu2  ;;  %v12469_v63 = vld [vmem:[%s12820_s23 + $0x70] sm:$0xff]   ;;  %v17030_v22 = vld [vmem:[#allocation222_spill] sm:$0xff]  ;;  %v6980_v16 = vsel %vm13012_vm15, %v6978_v27, %v6979_v7  ;;  %v12470_v27 = vld [vmem:[%s12820_s23 + $0x78] sm:$0xff]  }
 0x62e   : > { %v12226_v30 = vunpack.c.l.bf16 %v12469_v63  ;;  %v7087_v53 = vunpack.c.l.b16 %v6980_v16  ;;  %v17037_v7 = vld [vmem:[#allocation20_spill] sm:$0xff] }
 0x62f   : > { %vm10494_vm2 = vcmp.gt.f32.partialorder %v10430_v31, 0.0  ;;  %v10558_v2 = vmul.f32 0.1, %v10430_v31  ;;  %v9358_v37 = vadd.f32 %v17021_v19, %v8037_v61 }
 0x631   : > { %v10622_v41 = vsel %vm10494_vm2, %v10430_v31, %v10558_v2  ;;  %v10167_v39 = vadd.f32 %v10049_v26, %v9358_v37 }
 0x632   : > { %v10686_v17 = vadd.f32 %v12223_v24, %v10622_v41  ;;  %v7335_v62 = vpop.f32.mrf.mxu3  ;;  %v12227_v24 = vunpack.c.h.bf16 %v12469_v63 }
 0x633   : > { %v10363_v14 = vmul.f32 %v15945_v10, %v10167_v39  ;;  %v7452_v23 = vadd.f32 %v7335_v62, %v6643_v11 }
 0x634   : > { %v12364_v36 = vpack.c.bf16 %v10686_v17, %v10685_v56 }
 0x635   : > { %v8038_v12 = vadd.f32 %v17025_v54, %v7452_v23  ;;  %v10056_v26 = vpop.f32.mrf.mxu2  ;;  %v10431_v38 = vadd.f32 %v15965_v32, %v10363_v14 }
 0x636   : > { %12499 = vst [vmem:[%s15686_s28 + $0x68] sm:$0xff] %v12364_v36  }
 0x637   : > { %v9359_v20 = vadd.f32 %v15696_v45, %v8038_v12  ;;  %11679 = vmatmul.msk.bf16.gmra.mxu3 %vm3277_vm9, %v7125_v8  ;;  %v10559_v59 = vmul.f32 0.1, %v10431_v38  ;;  %vm10495_vm4 = vcmp.gt.f32.partialorder %v10431_v38, 0.0  ;;  %v17028_v45 = vld [vmem:[#allocation18_spill] sm:$0xff]  ;;  %v7126_v12 = vpack.c.b16 %v7087_v53, %v7086_v55  ;;  %v12713_v8 = vld [vmem:[#allocation2 + $0x154] sm:$0xf] }
 0x638   : > { %v5324_v31 = vadd.f32 %v17029_v57, %v17028_v45  ;;  %v6983_v34 = vrot.slane %v12713_v8, 5  ;;  %v12715_v8 = vld [vmem:[#allocation2 + $0x160] sm:$0xf] }
 0x639   : > { %v10168_v33 = vadd.f32 %v10051_v46, %v9359_v20  ;;  %v10623_v2 = vsel %vm10495_vm4, %v10431_v38, %v10559_v59 }
 0x63a   : > { %v7338_v43 = vpop.f32.mrf.mxu3  ;;  %11984 = vmatmul.msk.bf16.gmra.mxu2 %vm3277_vm9, %v17027_v44  ;;  %v6645_v11 = vadd.f32 %v17031_v42, %v5324_v31  ;;  %v10687_v56 = vadd.f32 %v12226_v30, %v10623_v2  ;;  %v6703_v44 = vld [vmem:[#allocation2 + $0x150] sm:$0xe]  ;;  %v12231_v30 = vunpack.c.h.bf16 %v12470_v27  ;;  %v17040_v42 = vld [vmem:[#allocation189_spill] sm:$0xff] }
 0x63b   : > { %v10364_v60 = vmul.f32 %v15945_v10, %v10168_v33  ;;  %v7453_v15 = vadd.f32 %v7338_v43, %v6644_v28  ;;  %v17035_v33 = vld [vmem:[#allocation187_spill] sm:$0xff]  ;;  %v6985_v43 = vrot.slane %v6983_v34, 4  ;;  %v11633_v29 = vrot.slane %v6703_v44, 9 }
 0x63c   : > { %v17039_v31 = vld [vmem:[#allocation51_spill] sm:$0xff] }
 0x63d   : > { %v10432_v46 = vadd.f32 %v15965_v32, %v10364_v60  ;;  %v8039_v61 = vadd.f32 %v17030_v22, %v7453_v15  ;;  %v10059_v13 = vpop.f32.mrf.mxu2  ;;  %v17036_v15 = vld [vmem:[#allocation204_spill] sm:$0xff]  ;;  %v16129_v22 = vpop.f32.mrf.mxu1  ;;  %v6984_v25 = vsel %vm13012_vm15, %v11633_v29, %v6983_v34  ;;  %v6990_v34 = vrot.slane %v12715_v8, 5  ;;  %v17045_v44 = vld [vmem:[#allocation207_spill] sm:$0xff] }
 0x63e   : > { %v7088_v55 = vunpack.c.l.b16 %v6984_v25 }
 0x63f   : > { %vm10496_vm6 = vcmp.gt.f32.partialorder %v10432_v46, 0.0  ;;  %v10560_v19 = vmul.f32 0.1, %v10432_v46  ;;  %v9360_v37 = vadd.f32 %v15726_v51, %v8039_v61  ;;  %v17033_v51 = vld [vmem:[#allocation99_spill] sm:$0xff]  ;;  %v12230_v61 = vunpack.c.l.bf16 %v12470_v27 }
 0x640   : > { %v5325_v5 = vadd.f32 %v17033_v51, %v17032_v21  ;;  %v17041_v21 = vld [vmem:[#allocation22_spill] sm:$0xff]  ;;  %v17042_v51 = vld [vmem:[#allocation104_spill] sm:$0xff]  ;;  %v6992_v27 = vrot.slane %v6990_v34, 4 }
 0x641   : > { %v10624_v41 = vsel %vm10496_vm6, %v10432_v46, %v10560_v19  ;;  %v10169_v39 = vadd.f32 %v10054_v58, %v9360_v37 }
 0x642   : > { %v10688_v17 = vadd.f32 %v12227_v24, %v10624_v41  ;;  %v7340_v62 = vpop.f32.mrf.mxu3  ;;  %v6646_v6 = vadd.f32 %v17035_v33, %v5325_v5  ;;  %v17043_v5 = vld [vmem:[#allocation226_spill] sm:$0xff] }
 0x643   : > { %v10365_v14 = vmul.f32 %v15945_v10, %v10169_v39  ;;  %v7454_v23 = vadd.f32 %v7340_v62, %v6645_v11 }
 0x644   : > { %v12369_v36 = vpack.c.bf16 %v10688_v17, %v10687_v56 }
 0x645   : > { %v8040_v54 = vadd.f32 %v17034_v35, %v7454_v23  ;;  %v10061_v58 = vpop.f32.mrf.mxu2  ;;  %v10433_v3 = vadd.f32 %v15965_v32, %v10365_v14 }
 0x646   : > { %12500 = vst [vmem:[%s15686_s28 + $0x70] sm:$0xff] %v12369_v36  }
 0x647   : > { %v9361_v38 = vadd.f32 %v15748_v40, %v8040_v54  ;;  %11680 = vmatmul.msk.bf16.gmra.mxu3 %vm3277_vm9, %v7126_v12  ;;  %v10561_v63 = vmul.f32 0.1, %v10433_v3  ;;  %vm10497_vm7 = vcmp.gt.f32.partialorder %v10433_v3, 0.0  ;;  %v12714_v40 = vld [vmem:[#allocation2 + $0x158] sm:$0x1]  ;;  %v16141_v12 = vpop.f32.mrf.mxu0 }
 0x648   : > { %v6986_v18 = vrot.slane %v12714_v40, 5  ;;  %v6704_v40 = vld [vmem:[#allocation2 + $0x15c] sm:$0xe] }
 0x649   : > { %v10170_v20 = vadd.f32 %v10056_v26, %v9361_v38  ;;  %v17038_v26 = vld [vmem:[#allocation101_spill] sm:$0xff]  ;;  %v10625_v2 = vsel %vm10497_vm7, %v10433_v3, %v10561_v63  ;;  %v11634_v29 = vrot.slane %v6704_v40, 9 }
 0x64a   : > { %v7343_v28 = vpop.f32.mrf.mxu3  ;;  %11985 = vmatmul.msk.bf16.gmra.mxu2 %vm3277_vm9, %v17036_v15  ;;  %v5326_v45 = vadd.f32 %v17038_v26, %v17037_v7  ;;  %v6987_v16 = vsel %vm13012_vm15, %v6985_v43, %v6986_v18  ;;  %v10689_v56 = vadd.f32 %v12230_v61, %v10625_v2  ;;  %v12471_v63 = vld [vmem:[%s12820_s23 + $0x80] sm:$0xff]   ;;  %v17046_v7 = vld [vmem:[#allocation24_spill] sm:$0xff]  ;;  %v17047_v26 = vld [vmem:[#allocation106_spill] sm:$0xff] }
 0x64b   : > { %v10366_v59 = vmul.f32 %v15945_v10, %v10170_v20  ;;  %v7455_v60 = vadd.f32 %v7343_v28, %v6646_v6  ;;  %v7089_v53 = vunpack.c.l.b16 %v6987_v16  ;;  %v16147_v20 = vpop.f32.mrf.mxu1  ;;  %v17044_v6 = vld [vmem:[#allocation192_spill] sm:$0xff]  ;;  %v12235_v61 = vunpack.c.h.bf16 %v12471_v63 }
 0x64c   : > { %v6647_v11 = vadd.f32 %v17040_v42, %v5326_v45  ;;  %v5328_v45 = vadd.f32 %v17047_v26, %v17046_v7  ;;  %v17055_v26 = vld [vmem:[#allocation28_spill] sm:$0xff] }
 0x64d   : > { %v10434_v57 = vadd.f32 %v15965_v32, %v10366_v59  ;;  %v8041_v46 = vadd.f32 %v17039_v31, %v7455_v60  ;;  %v10064_v24 = vpop.f32.mrf.mxu2  ;;  %v7127_v54 = vpack.c.b16 %v7089_v53, %v7088_v55 }
 0x64f   : > { %vm10498_vm10 = vcmp.gt.f32.partialorder %v10434_v57, 0.0  ;;  %v10562_v19 = vmul.f32 0.1, %v10434_v57  ;;  %v9362_v37 = vadd.f32 %v15773_v48, %v8041_v46  ;;  %v5327_v48 = vadd.f32 %v17042_v51, %v17041_v21  ;;  %v16161_v25 = vpop.f32.mrf.mxu0  ;;  %v17050_v51 = vld [vmem:[#allocation26_spill] sm:$0xff] }
 0x650   : > { %v12234_v46 = vunpack.c.l.bf16 %v12471_v63 }
 0x651   : > { %v10626_v41 = vsel %vm10498_vm10, %v10434_v57, %v10562_v19  ;;  %v10171_v39 = vadd.f32 %v10059_v13, %v9362_v37  ;;  %v6648_v28 = vadd.f32 %v17044_v6, %v5327_v48  ;;  %v17048_v57 = vld [vmem:[#allocation59_spill] sm:$0xff]  ;;  %v17051_v48 = vld [vmem:[#allocation108_spill] sm:$0xff] }
 0x652   : > { %v10690_v17 = vadd.f32 %v12231_v30, %v10626_v41  ;;  %v7345_v62 = vpop.f32.mrf.mxu3  ;;  %v6991_v41 = vsel %vm13012_vm15, %v11634_v29, %v6990_v34  ;;  %v12717_v34 = vld [vmem:[#allocation2 + $0x16c] sm:$0xf] }
 0x653   : > { %v10367_v14 = vmul.f32 %v15945_v10, %v10171_v39  ;;  %v7456_v23 = vadd.f32 %v7345_v62, %v6647_v11  ;;  %v17049_v11 = vld [vmem:[#allocation195_spill] sm:$0xff] }
 0x654   : > { %v12374_v36 = vpack.c.bf16 %v10690_v17, %v10689_v56  ;;  %v6649_v53 = vadd.f32 %v17049_v11, %v5328_v45  ;;  %v16166_v17 = vpop.f32.mrf.mxu1  ;;  %v17056_v45 = vld [vmem:[#allocation111_spill] sm:$0xff] }
 0x655   : > { %v8042_v35 = vadd.f32 %v17043_v5, %v7456_v23  ;;  %v10066_v13 = vpop.f32.mrf.mxu2  ;;  %v10435_v3 = vadd.f32 %v15965_v32, %v10367_v14  ;;  %v5329_v5 = vadd.f32 %v17051_v48, %v17050_v51 }
 0x656   : > { %12501 = vst [vmem:[%s15686_s28 + $0x78] sm:$0xff] %v12374_v36  }
 0x657   : > { %v9363_v38 = vadd.f32 %v15802_v52, %v8042_v35  ;;  %11681 = vmatmul.msk.bf16.gmra.mxu3 %vm3277_vm9, %v7127_v54  ;;  %v10563_v59 = vmul.f32 0.1, %v10435_v3  ;;  %vm10499_vm12 = vcmp.gt.f32.partialorder %v10435_v3, 0.0  ;;  %v12716_v52 = vld [vmem:[#allocation2 + $0x164] sm:$0x1]  ;;  %v17052_v35 = vld [vmem:[#allocation230_spill] sm:$0xff] }
 0x658   : > { %v6993_v18 = vrot.slane %v12716_v52, 5  ;;  %v17054_v52 = vld [vmem:[#allocation212_spill] sm:$0xff] }
 0x659   : > { %v10172_v33 = vadd.f32 %v10061_v58, %v9363_v38  ;;  %v10627_v2 = vsel %vm10499_vm12, %v10435_v3, %v10563_v59  ;;  %v6997_v3 = vrot.slane %v12717_v34, 5 }
 0x65a   : > { %v7348_v43 = vpop.f32.mrf.mxu3  ;;  %11986 = vmatmul.msk.bf16.gmra.mxu2 %vm3277_vm9, %v17045_v44  ;;  %v6994_v16 = vsel %vm13012_vm15, %v6992_v27, %v6993_v18  ;;  %v10691_v62 = vadd.f32 %v12234_v46, %v10627_v2  ;;  %v16177_v27 = vpop.f32.mrf.mxu0  ;;  %v6705_v18 = vld [vmem:[#allocation2 + $0x168] sm:$0xe] }
 0x65b   : > { %v10368_v60 = vmul.f32 %v15945_v10, %v10172_v33  ;;  %v7457_v15 = vadd.f32 %v7348_v43, %v6648_v28  ;;  %v7091_v56 = vunpack.c.l.b16 %v6994_v16  ;;  %v17053_v28 = vld [vmem:[#allocation197_spill] sm:$0xff]  ;;  %v6999_v59 = vrot.slane %v6997_v3, 4 }
 0x65c   : > { %v6650_v43 = vadd.f32 %v17053_v28, %v5329_v5  ;;  %v16183_v7 = vpop.f32.mrf.mxu1  ;;  %v11635_v2 = vrot.slane %v6705_v18, 9 }
 0x65d   : > { %v10436_v58 = vadd.f32 %v15965_v32, %v10368_v60  ;;  %v8043_v31 = vadd.f32 %v17048_v57, %v7457_v15  ;;  %v10069_v30 = vpop.f32.mrf.mxu2  ;;  %v12472_v60 = vld [vmem:[%s12820_s23 + $0x88] sm:$0xff]  }
 0x65e   : > { %v12239_v29 = vunpack.c.h.bf16 %v12472_v60 }
 0x65f   : > { %vm10500_vm0 = vcmp.gt.f32.partialorder %v10436_v58, 0.0  ;;  %v10564_v19 = vmul.f32 0.1, %v10436_v58  ;;  %v9364_v37 = vadd.f32 %v15824_v50, %v8043_v31  ;;  %v7090_v50 = vunpack.c.l.b16 %v6991_v41  ;;  %v17057_v31 = vld [vmem:[#allocation232_spill] sm:$0xff] }
 0x661   : > { %v10628_v39 = vsel %vm10500_vm0, %v10436_v58, %v10564_v19  ;;  %v10173_v42 = vadd.f32 %v10064_v24, %v9364_v37  ;;  %v7128_v24 = vpack.c.b16 %v7091_v56, %v7090_v50  ;;  %v5330_v58 = vadd.f32 %v17056_v45, %v17055_v26  ;;  %v17058_v56 = vld [vmem:[#allocation199_spill] sm:$0xff]  ;;  %v12720_v45 = vld [vmem:[#allocation2 + $0x17c] sm:$0x1] }
 0x662   : > { %v10692_v14 = vadd.f32 %v12235_v61, %v10628_v39  ;;  %v7350_v23 = vpop.f32.mrf.mxu3  ;;  %v12238_v61 = vunpack.c.l.bf16 %v12472_v60  ;;  %v16196_v48 = vpop.f32.mrf.mxu0  ;;  %v6706_v26 = vld [vmem:[#allocation2 + $0x174] sm:$0xe] }
 0x663   : > { %v10369_v55 = vmul.f32 %v15945_v10, %v10173_v42  ;;  %v7458_v36 = vadd.f32 %v7350_v23, %v6649_v53  ;;  %v6998_v42 = vsel %vm13012_vm15, %v11635_v2, %v6997_v3 }
 0x664   : > { %v12379_v21 = vpack.c.bf16 %v10692_v14, %v10691_v62  ;;  %v6651_v62 = vadd.f32 %v17058_v56, %v5330_v58  ;;  %v7092_v51 = vunpack.c.l.b16 %v6998_v42  ;;  %v16201_v3 = vpop.f32.mrf.mxu1  ;;  %v7007_v58 = vrot.slane %v12720_v45, 5 }
 0x665   : > { %v8044_v54 = vadd.f32 %v17052_v35, %v7458_v36  ;;  %v10071_v8 = vpop.f32.mrf.mxu2  ;;  %v10437_v38 = vadd.f32 %v15965_v32, %v10369_v55  ;;  %v17060_v35 = vld [vmem:[#allocation114_spill] sm:$0xff] }
 0x666   : > { %12502 = vst [vmem:[%s15686_s28 + $0x80] sm:$0xff] %v12379_v21  }
 0x667   : > { %v9365_v33 = vadd.f32 %v15854_v1, %v8044_v54  ;;  %11682 = vmatmul.msk.bf16.gmra.mxu3 %vm3277_vm9, %v7128_v24  ;;  %v10565_v15 = vmul.f32 0.1, %v10437_v38  ;;  %vm10501_vm11 = vcmp.gt.f32.partialorder %v10437_v38, 0.0  ;;  %v12718_v1 = vld [vmem:[#allocation2 + $0x170] sm:$0x1]  ;;  %v17061_v24 = vld [vmem:[#allocation69_spill] sm:$0xff] }
 0x669   : > { %v10174_v6 = vadd.f32 %v10066_v13, %v9365_v33  ;;  %v7000_v13 = vrot.slane %v12718_v1, 5  ;;  %v10629_v37 = vsel %vm10501_vm11, %v10437_v38, %v10565_v15  ;;  %v12719_v33 = vld [vmem:[#allocation2 + $0x178] sm:$0xf] }
 0x66a   : > { %v7353_v63 = vpop.f32.mrf.mxu3  ;;  %11987 = vmatmul.msk.bf16.gmra.mxu2 %vm3277_vm9, %v17054_v52  ;;  %v10693_v23 = vadd.f32 %v12238_v61, %v10629_v37  ;;  %v16216_v61 = vpop.f32.mrf.mxu0  ;;  %v11636_v37 = vrot.slane %v6706_v26, 9 }
 0x66b   : > { %v10370_v44 = vmul.f32 %v15945_v10, %v10174_v6  ;;  %v7459_v40 = vadd.f32 %v7353_v63, %v6650_v43  ;;  %v7001_v19 = vsel %vm13012_vm15, %v6999_v59, %v7000_v13  ;;  %v7004_v6 = vrot.slane %v12719_v33, 5  ;;  %v17062_v59 = vld [vmem:[#allocation201_spill] sm:$0xff]  ;;  %v17063_v13 = vld [vmem:[#allocation216_spill] sm:$0xff] }
 0x66c   : > { %v7093_v14 = vunpack.c.l.b16 %v7001_v19  ;;  %v12721_v33 = vld [vmem:[#allocation2 + $0x184] sm:$0xf] }
 0x66d   : > { %v10438_v57 = vadd.f32 %v15965_v32, %v10370_v44  ;;  %v8045_v46 = vadd.f32 %v17057_v31, %v7459_v40  ;;  %v10074_v16 = vpop.f32.mrf.mxu2  ;;  %v7006_v44 = vrot.slane %v7004_v6, 4  ;;  %v12473_v40 = vld [vmem:[%s12820_s23 + $0x90] sm:$0xff]  }
 0x66e   : > { %v12243_v2 = vunpack.c.h.bf16 %v12473_v40 }
 0x66f   : > { %vm10502_vm14 = vcmp.gt.f32.partialorder %v10438_v57, 0.0  ;;  %v10566_v41 = vmul.f32 0.1, %v10438_v57  ;;  %v9366_v39 = vadd.f32 %v15874_v49, %v8045_v46  ;;  %v17059_v49 = vld [vmem:[#allocation30_spill] sm:$0xff] }
 0x670   : > { %v5331_v54 = vadd.f32 %v17060_v35, %v17059_v49 }
 0x671   : > { %v10630_v11 = vsel %vm10502_vm14, %v10438_v57, %v10566_v41  ;;  %v10175_v53 = vadd.f32 %v10069_v30, %v9366_v39  ;;  %v7129_v30 = vpack.c.b16 %v7093_v14, %v7092_v51  ;;  %v17065_v57 = vld [vmem:[#allocation117_spill] sm:$0xff]  ;;  %v7008_v41 = vsel %vm13012_vm15, %v7006_v44, %v7007_v58  ;;  %v17066_v14 = vld [vmem:[#allocation203_spill] sm:$0xff] }
 0x672   : > { %v10694_v55 = vadd.f32 %v12239_v29, %v10630_v11  ;;  %v7355_v36 = vpop.f32.mrf.mxu3  ;;  %v6652_v60 = vadd.f32 %v17062_v59, %v5331_v54  ;;  %v12242_v29 = vunpack.c.l.bf16 %v12473_v40  ;;  %v17068_v54 = vld [vmem:[#allocation121_spill] sm:$0xff]  ;;  %v17069_v59 = vld [vmem:[#allocation206_spill] sm:$0xff] }
 0x673   : > { %v10371_v50 = vmul.f32 %v15945_v10, %v10175_v53  ;;  %v7460_v21 = vadd.f32 %v7355_v36, %v6651_v62  ;;  %v16223_v53 = vpop.f32.mrf.mxu1  ;;  %v17070_v58 = vld [vmem:[#allocation221_spill] sm:$0xff] }
 0x674   : > { %v12384_v5 = vpack.c.bf16 %v10694_v55, %v10693_v23  ;;  %v7095_v55 = vunpack.c.l.b16 %v7008_v41 }
 0x675   : > { %v8046_v34 = vadd.f32 %v17061_v24, %v7460_v21  ;;  %v10076_v38 = vpop.f32.mrf.mxu2  ;;  %v10439_v28 = vadd.f32 %v15965_v32, %v10371_v50 }
 0x676   : > { %12503 = vst [vmem:[%s15686_s28 + $0x88] sm:$0xff] %v12384_v5  }
 0x677   : > { %v9367_v43 = vadd.f32 %v15896_v9, %v8046_v34  ;;  %11683 = vmatmul.msk.bf16.gmra.mxu3 %vm3277_vm9, %v7129_v30  ;;  %v10567_v52 = vmul.f32 0.1, %v10439_v28  ;;  %vm10503_vm13 = vcmp.gt.f32.partialorder %v10439_v28, 0.0  ;;  %v17064_v9 = vld [vmem:[#allocation32_spill] sm:$0xff] }
 0x678   : > { %v5332_v31 = vadd.f32 %v17065_v57, %v17064_v9  ;;  %v12724_v9 = vld [vmem:[#allocation2 + $0x188] sm:$0x1] }
 0x679   : > { %v10176_v63 = vadd.f32 %v10071_v8, %v9367_v43  ;;  %v10631_v39 = vsel %vm10503_vm13, %v10439_v28, %v10567_v52  ;;  %v9424_v52 = vld [vmem:[#allocation2 + $0x198] sm:$0xe]  ;;  %v7014_v57 = vrot.slane %v12724_v9, 5 }
 0x67a   : > { %v7358_v15 = vpop.f32.mrf.mxu3  ;;  %11988 = vmatmul.msk.bf16.gmra.mxu2 %vm3277_vm9, %v17063_v13  ;;  %v6653_v23 = vadd.f32 %v17066_v14, %v5332_v31  ;;  %v10695_v36 = vadd.f32 %v12242_v29, %v10631_v39  ;;  %v12474_v13 = vld [vmem:[%s12820_s23 + $0x98] sm:$0xff]   ;;  %v11942_v39 = vrot.slane %v9424_v52, 9  ;;  %v12726_v52 = vld [vmem:[#allocation2 + $0x190] sm:$0xf] }
 0x67b   : > { %v10372_v18 = vmul.f32 %v15945_v10, %v10176_v63  ;;  %v7461_v1 = vadd.f32 %v7358_v15, %v6652_v60  ;;  %v6707_v15 = vld [vmem:[#allocation2 + $0x180] sm:$0xe]  ;;  %v16241_v44 = vpop.f32.mrf.mxu1  ;;  %v17071_v31 = vld [vmem:[#allocation36_spill] sm:$0xff] }
 0x67c   : > { %v11637_v29 = vrot.slane %v6707_v15, 9 }
 0x67d   : > { %v10440_v8 = vadd.f32 %v15965_v32, %v10372_v18  ;;  %v8047_v46 = vadd.f32 %v16123_v4, %v7461_v1  ;;  %v16218_v19 = vpop.f32.mrf.mxu2  ;;  %v7005_v4 = vsel %vm13012_vm15, %v11636_v37, %v7004_v6  ;;  %v7011_v6 = vrot.slane %v12721_v33, 5  ;;  %v12722_v18 = vld [vmem:[#allocation2 + $0x19c] sm:$0xf] }
 0x67e   : > { %v7094_v49 = vunpack.c.l.b16 %v7005_v4  ;;  %v9734_v1 = vrot.slane %v12722_v18, 5  ;;  %v7018_v18 = vrot.slane %v12726_v52, 5 }
 0x67f   : > { %vm10504_vm1 = vcmp.gt.f32.partialorder %v10440_v8, 0.0  ;;  %v10568_v42 = vmul.f32 0.1, %v10440_v8  ;;  %v9368_v11 = vadd.f32 %v16129_v22, %v8047_v46  ;;  %v17067_v22 = vld [vmem:[#allocation34_spill] sm:$0xff] }
 0x680   : > { %v5333_v24 = vadd.f32 %v17068_v54, %v17067_v22  ;;  %v7130_v30 = vpack.c.b16 %v7095_v55, %v7094_v49 }
 0x681   : > { %v10632_v56 = vsel %vm10504_vm1, %v10440_v8, %v10568_v42  ;;  %v10177_v62 = vadd.f32 %v10074_v16, %v9368_v11  ;;  %v17072_v8 = vld [vmem:[#allocation124_spill] sm:$0xff]  ;;  %v12246_v42 = vunpack.c.l.bf16 %v12474_v13  ;;  %v12247_v11 = vunpack.c.h.bf16 %v12474_v13 }
 0x682   : > { %v10696_v50 = vadd.f32 %v12243_v2, %v10632_v56  ;;  %v7360_v21 = vpop.f32.mrf.mxu3  ;;  %v6654_v60 = vadd.f32 %v17069_v59, %v5333_v24  ;;  %v5334_v46 = vadd.f32 %v17072_v8, %v17071_v31  ;;  %v9736_v56 = vrot.slane %v9734_v1, 4  ;;  %v12475_v31 = vld [vmem:[%s12820_s23 + $0xa0] sm:$0xff]  }
 0x683   : > { %v10373_v51 = vmul.f32 %v15945_v10, %v10177_v62  ;;  %v7462_v5 = vadd.f32 %v7360_v21, %v6653_v23  ;;  %v16238_v10 = vpop.f32.mrf.mxu0  ;;  %v12725_v62 = vld [vmem:[#allocation2 + $0x1a0] sm:$0x1]  ;;  %v9735_v24 = vsel %vm13012_vm15, %v11942_v39, %v9734_v1  ;;  %v17077_v39 = vld [vmem:[#allocation40_spill] sm:$0xff] }
 0x684   : > { %v12389_v35 = vpack.c.bf16 %v10696_v50, %v10695_v36  ;;  %v9737_v14 = vrot.slane %v12725_v62, 5  ;;  %v17073_v21 = vld [vmem:[#allocation209_spill] sm:$0xff]  ;;  %v9814_v15 = vunpack.c.l.b16 %v9735_v24  ;;  %v6709_v24 = vld [vmem:[#allocation2 + $0x198] sm:$0xe] }
 0x685   : > { %v8048_v34 = vadd.f32 %v16141_v12, %v7462_v5  ;;  %v16233_v16 = vpop.f32.mrf.mxu2  ;;  %v10441_v28 = vadd.f32 %v15965_v32, %v10373_v51  ;;  %v7013_v12 = vrot.slane %v7011_v6, 4  ;;  %v6655_v51 = vadd.f32 %v17073_v21, %v5334_v46  ;;  %v16283_v1 = vld [vmem:[%s16508_s6] ss:$0 sm:$0xff] }
 0x686   : > { %12504 = vst [vmem:[%s15686_s28 + $0x90] sm:$0xff] %v12389_v35  }
 0x687   : > { %v9369_v43 = vadd.f32 %v16147_v20, %v8048_v34  ;;  %11684 = vmatmul.msk.bf16.gmra.mxu3 %vm3277_vm9, %v7130_v30  ;;  %v10569_v26 = vmul.f32 0.1, %v10441_v28  ;;  %v16247_v20 = vld [vmem:[%s16507_s5] ss:$0 sm:$0xff]  ;;  %vm10505_vm2 = vcmp.gt.f32.partialorder %v10441_v28, 0.0  ;;  %v7015_v41 = vsel %vm13012_vm15, %v7013_v12, %v7014_v57 }
 0x688   : > { %v7097_v5 = vunpack.c.l.b16 %v7015_v41  ;;  %v7020_v57 = vrot.slane %v7018_v18, 4 }
 0x689   : > { %v10178_v63 = vadd.f32 %v10076_v38, %v9369_v43  ;;  %v10633_v23 = vsel %vm10505_vm2, %v10441_v28, %v10569_v26  ;;  %v16274_v43 = vpop.f32.mrf.mxu1 }
 0x68a   : > { %v7363_v40 = vpop.f32.mrf.mxu3  ;;  %11989 = vmatmul.msk.bf16.gmra.mxu2 %vm3277_vm9, %v17070_v58  ;;  %v10697_v35 = vadd.f32 %v12246_v42, %v10633_v23  ;;  %v12251_v23 = vunpack.c.h.bf16 %v12475_v31 }
 0x68b   : > { %v10374_v45 = vmul.f32 %v16247_v20, %v10178_v63  ;;  %v7463_v38 = vadd.f32 %v7363_v40, %v6654_v60  ;;  %v16265_v49 = vpop.f32.mrf.mxu0 }
 0x68d   : > { %v10442_v2 = vadd.f32 %v15965_v32, %v10374_v45  ;;  %v8049_v37 = vadd.f32 %v16161_v25, %v7463_v38  ;;  %v16258_v4 = vpop.f32.mrf.mxu2  ;;  %v7012_v32 = vsel %vm13012_vm15, %v11637_v29, %v7011_v6  ;;  %v17075_v6 = vld [vmem:[#allocation128_spill] sm:$0xff]  ;;  %v17076_v45 = vld [vmem:[#allocation211_spill] sm:$0xff] }
 0x68e   : > { %v7096_v33 = vunpack.c.l.b16 %v7012_v32 }
 0x68f   : > { %vm10506_vm4 = vcmp.gt.f32.partialorder %v10442_v2, 0.0  ;;  %v10570_v55 = vmul.f32 0.1, %v10442_v2  ;;  %v9370_v36 = vadd.f32 %v16166_v17, %v8049_v37  ;;  %v9738_v17 = vsel %vm13012_vm15, %v9736_v56, %v9737_v14 }
 0x690   : > { %v7131_v60 = vpack.c.b16 %v7097_v5, %v7096_v33  ;;  %v9815_v12 = vunpack.c.l.b16 %v9738_v17  ;;  %v12250_v14 = vunpack.c.l.bf16 %v12475_v31 }
 0x691   : > { %v10634_v25 = vsel %vm10506_vm4, %v10442_v2, %v10570_v55  ;;  %v10179_v50 = vadd.f32 %v16218_v19, %v9370_v36  ;;  %v17074_v19 = vld [vmem:[#allocation38_spill] sm:$0xff]  ;;  %v16299_v62 = vpop.f32.mrf.mxu1 }
 0x692   : > { %v10698_v22 = vadd.f32 %v12247_v11, %v10634_v25  ;;  %v7365_v54 = vpop.f32.mrf.mxu3  ;;  %v5335_v28 = vadd.f32 %v17075_v6, %v17074_v19  ;;  %v9848_v58 = vpack.c.b16 %v9815_v12, %v9814_v15  ;;  %v6708_v2 = vld [vmem:[#allocation2 + $0x18c] sm:$0xe]  ;;  %v12729_v15 = vld [vmem:[#allocation2 + $0x19c] sm:$0xf] }
 0x693   : > { %v10375_v34 = vmul.f32 %v16247_v20, %v10179_v50  ;;  %v7464_v30 = vadd.f32 %v7365_v54, %v6655_v51  ;;  %v16293_v37 = vpop.f32.mrf.mxu0  ;;  %v11638_v36 = vrot.slane %v6708_v2, 9  ;;  %v7025_v12 = vrot.slane %v12729_v15, 5  ;;  %v12730_v2 = vld [vmem:[#allocation2 + $0x1a0] sm:$0x1] }
 0x694   : > { %v12394_v63 = vpack.c.bf16 %v10698_v22, %v10697_v35  ;;  %v6656_v38 = vadd.f32 %v17076_v45, %v5335_v28  ;;  %v17079_v35 = vld [vmem:[#allocation213_spill] sm:$0xff]  ;;  %v17080_v28 = vld [vmem:[#allocation42_spill] sm:$0xff] }
 0x695   : > { %v8050_v59 = vadd.f32 %v16177_v27, %v7464_v30  ;;  %v16278_v40 = vpop.f32.mrf.mxu2  ;;  %v10443_v13 = vadd.f32 %v16283_v1, %v10375_v34  ;;  %v7019_v51 = vsel %vm13012_vm15, %v11638_v36, %v7018_v18  ;;  %v8167_v45 = vld [vmem:[#allocation2 + $0x1a8] sm:$0xf] }
 0x696   : > { %12505 = vst [vmem:[%s15686_s28 + $0x98] sm:$0xff] %v12394_v63   ;;  %v7098_v6 = vunpack.c.l.b16 %v7019_v51  ;;  %v9741_v36 = vrot.slane %v8167_v45, 5  ;;  %v17085_v51 = vld [vmem:[#allocation44_spill] sm:$0xff] }
 0x697   : > { %v9371_v26 = vadd.f32 %v16183_v7, %v8050_v59  ;;  %11685 = vmatmul.msk.bf16.gmra.mxu3 %vm3277_vm9, %v7131_v60  ;;  %v10571_v8 = vmul.f32 0.1, %v10443_v13  ;;  %vm10507_vm6 = vcmp.gt.f32.partialorder %v10443_v13, 0.0  ;;  %v12728_v7 = vld [vmem:[#allocation2 + $0x194] sm:$0x1]  ;;  %v11639_v60 = vrot.slane %v6709_v24, 9 }
 0x698   : > { %v7021_v41 = vrot.slane %v12728_v7, 5  ;;  %v7028_v7 = vrot.slane %v12730_v2, 5 }
 0x699   : > { %v10180_v27 = vadd.f32 %v16233_v16, %v9371_v26  ;;  %v17078_v16 = vld [vmem:[#allocation131_spill] sm:$0xff]  ;;  %v10635_v25 = vsel %vm10507_vm6, %v10443_v13, %v10571_v8  ;;  %v16324_v31 = vpop.f32.mrf.mxu1 }
 0x69a   : > { %v7368_v9 = vpop.f32.mrf.mxu3  ;;  %11990 = vmatmul.msk.bf16.gmra.mxu2 %vm3277_vm9, %v9848_v58  ;;  %v5336_v42 = vadd.f32 %v17078_v16, %v17077_v39  ;;  %v7022_v32 = vsel %vm13012_vm15, %v7020_v57, %v7021_v41  ;;  %v10699_v17 = vadd.f32 %v12250_v14, %v10635_v25  ;;  %v9425_v57 = vld [vmem:[#allocation2 + $0x1a4] sm:$0xe]  ;;  %v1292_v41 = vld [vmem:[#allocation2 + $0x1a4] sm:$0x1] }
 0x69b   : > { %v10376_v46 = vmul.f32 %v16247_v20, %v10180_v27  ;;  %v7465_v29 = vadd.f32 %v7368_v9, %v6656_v38  ;;  %v7099_v54 = vunpack.c.l.b16 %v7022_v32  ;;  %v16315_v13 = vpop.f32.mrf.mxu0  ;;  %v1402_v27 = vld [vmem:[#allocation2 + $0x1ac] sm:$0x1]  ;;  %v8927_v32 = vshrl.u32 %v8167_v45, 16 }
 0x69c   : > { %v6657_v22 = vadd.f32 %v17079_v35, %v5336_v42  ;;  %v1403_v9 = vsel %vm12849_vm5, 0, %v1402_v27 }
 0x69d   : > { %v10444_v11 = vadd.f32 %v16283_v1, %v10376_v46  ;;  %v8051_v56 = vadd.f32 %v16196_v48, %v7465_v29  ;;  %v16301_v55 = vpop.f32.mrf.mxu2  ;;  %v7132_v18 = vpack.c.b16 %v7099_v54, %v7098_v6  ;;  %1404 = vst [vmem:[#allocation2 + $0x1ac] sm:$0x1] %v1403_v9  ;;  %v16329_v46 = vsel %vm13012_vm15, %v11639_v60, %v7025_v12 }
 0x69e   : > { %v7027_v29 = vrot.slane %v7025_v12, 4  ;;  %v9743_v6 = vrot.slane %v9741_v36, 4  ;;  %v17087_v12 = vld [vmem:[#allocation218_spill] sm:$0xff] }
 0x69f   : > { %vm10508_vm7 = vcmp.gt.f32.partialorder %v10444_v11, 0.0  ;;  %v10572_v50 = vmul.f32 0.1, %v10444_v11  ;;  %v9372_v21 = vadd.f32 %v16201_v3, %v8051_v56  ;;  %v17081_v3 = vld [vmem:[#allocation134_spill] sm:$0xff]  ;;  %v8923_v56 = vshll.u32 %v8167_v45, 16 }
 0x6a0   : > { %v5337_v63 = vadd.f32 %v17081_v3, %v17080_v28 }
 0x6a1   : > { %v10636_v5 = vsel %vm10508_vm7, %v10444_v11, %v10572_v50  ;;  %v10181_v48 = vadd.f32 %v16258_v4, %v9372_v21  ;;  %v1293_v11 = vsel %vm12836_vm3, 0, %v1292_v41  ;;  %v16336_v21 = vrot.slane %v8923_v56, 5  ;;  %v17089_v56 = vld [vmem:[#allocation140_spill] sm:$0xff] }
 0x6a2   : > { %v10700_v34 = vadd.f32 %v12251_v23, %v10636_v5  ;;  %v7370_v30 = vpop.f32.mrf.mxu3  ;;  %v11943_v23 = vrot.slane %v9425_v57, 9  ;;  %1294 = vst [vmem:[#allocation2 + $0x1a4] sm:$0x1] %v1293_v11  ;;  %v17086_v5 = vld [vmem:[#allocation137_spill] sm:$0xff]  ;;  %v17088_v11 = vld [vmem:[#allocation46_spill] sm:$0xff] }
 0x6a3   : > { %v10377_v33 = vmul.f32 %v16247_v20, %v10181_v48  ;;  %v7466_v19 = vadd.f32 %v7370_v30, %v6657_v22  ;;  %v5338_v48 = vadd.f32 %v17086_v5, %v17085_v51  ;;  %v8929_v22 = vrot.slane %v8927_v32, 4  ;;  %v16351_v15 = vpop.f32.mrf.mxu0 }
 0x6a4   : > { %v12399_v59 = vpack.c.bf16 %v10700_v34, %v10699_v17  ;;  %v7100_v34 = vunpack.c.l.b16 %v16329_v46 }
 0x6a5   : > { %v10445_v4 = vadd.f32 %v16283_v1, %v10377_v33  ;;  %v8052_v52 = vadd.f32 %v16216_v61, %v7466_v19  ;;  %v16318_v26 = vpop.f32.mrf.mxu2  ;;  %v17083_v61 = vld [vmem:[#allocation215_spill] sm:$0xff]  ;;  %v9742_v19 = vsel %vm13012_vm15, %v11943_v23, %v9741_v36  ;;  %v8930_v28 = vor.u32 %v8929_v22, %v16336_v21 }
 0x6a6   : > { %12506 = vst [vmem:[%s15686_s28 + $0xa0] sm:$0xff] %v12399_v59   ;;  %v6658_v8 = vadd.f32 %v17083_v61, %v5337_v63  ;;  %v8168_v59 = vld [vmem:[#allocation2 + $0x1ac] sm:$0x1]  ;;  %v16355_v61 = vpop.f32.mrf.mxu1 }
 0x6a7   : > { %v9373_v38 = vadd.f32 %v16223_v53, %v8052_v52  ;;  %11686 = vmatmul.msk.bf16.gmra.mxu3 %vm3277_vm9, %v7132_v18  ;;  %v12476_v53 = vld [vmem:[%s12820_s23 + $0xa8] sm:$0xff]   ;;  %v10573_v39 = vmul.f32 0.1, %v10445_v4  ;;  %vm10509_vm5 = vcmp.gt.f32.partialorder %v10445_v4, 0.0  ;;  %v9744_v52 = vrot.slane %v8168_v59, 5 }
 0x6a8   : > { %v12254_v35 = vunpack.c.l.bf16 %v12476_v53  ;;  %v12255_v30 = vunpack.c.h.bf16 %v12476_v53  ;;  %v8933_v18 = vshll.u32 %v8168_v59, 16  ;;  %v8931_v57 = vrot.slane %v8930_v28, 4 }
 0x6a9   : > { %v10182_v16 = vadd.f32 %v16278_v40, %v9373_v38  ;;  %v7029_v40 = vsel %vm13012_vm15, %v7027_v29, %v7028_v7  ;;  %v10637_v54 = vsel %vm10509_vm5, %v10445_v4, %v10573_v39  ;;  %v6659_v4 = vadd.f32 %v17087_v12, %v5338_v48  ;;  %v12155_v58 = vld [vmem:[#allocation2 + $0x1a4] sm:$0xff] }
 0x6aa   : > { %v7373_v14 = vpop.f32.mrf.mxu3  ;;  %v7101_v60 = vunpack.c.l.b16 %v7029_v40  ;;  %v9816_v38 = vunpack.c.l.b16 %v9742_v19  ;;  %v8166_v9 = vld [vmem:[#allocation2 + $0x1a4] sm:$0xf]  ;;  %v9745_v46 = vsel %vm13012_vm15, %v9743_v6, %v9744_v52  ;;  %11863 = vmatmul.msk.bf16.gmra.mxu0 %vm3277_vm9, %v12155_v58  ;;  %v17090_v40 = vld [vmem:[#allocation220_spill] sm:$0xff] }
 0x6ab   : > { %v10378_v25 = vmul.f32 %v16247_v20, %v10182_v16  ;;  %v7467_v50 = vadd.f32 %v7373_v14, %v6658_v8  ;;  %v8914_v29 = vshrl.u32 %v8166_v9, 16  ;;  %v8917_v2 = vshll.u32 %v8166_v9, 16 }
 0x6ac   : > { %v9817_v53 = vunpack.c.l.b16 %v9745_v46  ;;  %v5339_v14 = vadd.f32 %v17089_v56, %v17088_v11  ;;  %v7133_v36 = vpack.c.b16 %v7101_v60, %v7100_v34  ;;  %v12477_v34 = vld [vmem:[%s12820_s23 + $0xb0] sm:$0xff]  }
 0x6ad   : > { %v10446_v24 = vadd.f32 %v16283_v1, %v10378_v25  ;;  %v8053_v17 = vadd.f32 %v16238_v10, %v7467_v50  ;;  %v16345_v33 = vpop.f32.mrf.mxu2  ;;  %v10701_v10 = vadd.f32 %v12254_v35, %v10637_v54  ;;  %v8916_v16 = vrot.slane %v8914_v29, 4  ;;  %v16373_v54 = vpop.f32.mrf.mxu0 }
 0x6ae   : > { %v8919_v42 = vrot.slane %v8917_v2, 5  ;;  %v9849_v0 = vpack.c.b16 %v9817_v53, %v9816_v38  ;;  %v6660_v22 = vadd.f32 %v17090_v40, %v5339_v14  ;;  %v16380_v28 = vpop.f32.mrf.mxu1  ;;  %v12258_v47 = vunpack.c.l.bf16 %v12477_v34  ;;  %v17093_v38 = vld [vmem:[#allocation223_spill] sm:$0xff]  ;;  %v17094_v2 = vld [vmem:[#allocation52_spill] sm:$0xff] }
 0x6af   : > { %vm10510_vm3 = vcmp.gt.f32.partialorder %v10446_v24, 0.0  ;;  %v10574_v3 = vmul.f32 0.1, %v10446_v24  ;;  %v9374_v63 = vadd.f32 %v16241_v44, %v8053_v17  ;;  %v12478_v14 = vld [vmem:[%s12820_s23 + $0xb8] sm:$0xff]  }
 0x6b0   : > { %v8920_v25 = vor.u32 %v8919_v42, %v8916_v16  ;;  %11991 = vmatmul.msk.bf16.gmra.mxu2 %vm3277_vm9, %v9849_v0  ;;  %v17096_v42 = vld [vmem:[#allocation50_spill] sm:$0xff] }
 0x6b1   : > { %v10638_v27 = vsel %vm10510_vm3, %v10446_v24, %v10574_v3  ;;  %v10183_v45 = vadd.f32 %v16301_v55, %v9374_v63  ;;  %v8935_v55 = vrot.slane %v8933_v18, 5  ;;  %v17092_v3 = vld [vmem:[#allocation145_spill] sm:$0xff] }
 0x6b2   : > { %v10702_v8 = vadd.f32 %v12255_v30, %v10638_v27  ;;  %v7375_v44 = vpop.f32.mrf.mxu3  ;;  %v8921_v48 = vrot.slane %v8920_v25, 4  ;;  %v17097_v25 = vld [vmem:[#allocation55_spill] sm:$0xff] }
 0x6b3   : > { %v10379_v7 = vmul.f32 %v16247_v20, %v10183_v45  ;;  %v7468_v41 = vadd.f32 %v7375_v44, %v6659_v4  ;;  %v8936_v50 = vsel %vm12873_vm8, %v8931_v57, %v8935_v55 }
 0x6b4   : > { %v12404_v39 = vpack.c.bf16 %v10702_v8, %v10701_v10  ;;  %v9008_v35 = vunpack.c.l.b16 %v8936_v50  ;;  %v8926_v24 = vsel %vm12873_vm8, %v8921_v48, %v16336_v21  ;;  %v12259_v21 = vunpack.c.h.bf16 %v12477_v34  ;;  %v17098_v50 = vld [vmem:[#allocation151_spill] sm:$0xff] }
 0x6b5   : > { %v8054_v23 = vadd.f32 %v16265_v49, %v7468_v41  ;;  %v10096_v32 = vpop.f32.mrf.mxu2  ;;  %v10447_v51 = vadd.f32 %v16283_v1, %v10379_v7  ;;  %v9007_v19 = vunpack.c.l.b16 %v8926_v24  ;;  %v7974_v46 = vpop.f32.mrf.mxu0  ;;  %v17095_v7 = vld [vmem:[#allocation148_spill] sm:$0xff] }
 0x6b6   : > { %12507 = vst [vmem:[%s15686_s28 + $0xa8] sm:$0xff] %v12404_v39   ;;  %v5341_v41 = vadd.f32 %v17095_v7, %v17094_v2 }
 0x6b7   : > { %v9375_v5 = vadd.f32 %v16274_v43, %v8054_v23  ;;  %11687 = vmatmul.msk.bf16.gmra.mxu3 %vm3277_vm9, %v7133_v36  ;;  %v10575_v30 = vmul.f32 0.1, %v10447_v51  ;;  %vm10511_vm15 = vcmp.gt.f32.partialorder %v10447_v51, 0.0  ;;  %v9040_v60 = vpack.c.b16 %v9008_v35, %v9007_v19 }
 0x6b8   : > { %v6662_v11 = vadd.f32 %v17096_v42, %v5341_v41  ;;  %v17105_v42 = vld [vmem:[#allocation227_spill] sm:$0xff] }
 0x6b9   : > { %v10184_v49 = vadd.f32 %v16318_v26, %v9375_v5  ;;  %v17091_v26 = vld [vmem:[#allocation48_spill] sm:$0xff]  ;;  %v10639_v4 = vsel %vm10511_vm15, %v10447_v51, %v10575_v30  ;;  %11911 = vmatmul.msk.bf16.gmra.mxu1 %vm3277_vm9, %v9040_v60  ;;  %v17099_v30 = vld [vmem:[#allocation225_spill] sm:$0xff] }
 0x6ba   : > { %v7378_v17 = vpop.f32.mrf.mxu3  ;;  %v5340_v63 = vadd.f32 %v17092_v3, %v17091_v26  ;;  %v10703_v9 = vadd.f32 %v12258_v47, %v10639_v4  ;;  %v17101_v60 = vld [vmem:[#allocation93_spill] sm:$0xff] }
 0x6bb   : > { %v10380_v43 = vmul.f32 %v16247_v20, %v10184_v49  ;;  %v7469_v6 = vadd.f32 %v7378_v17, %v6660_v22  ;;  %v12262_v49 = vunpack.c.l.bf16 %v12478_v14 }
 0x6bc   : > { %v6661_v58 = vadd.f32 %v17093_v38, %v5340_v63 }
 0x6bd   : > { %v10448_v59 = vadd.f32 %v16283_v1, %v10380_v43  ;;  %v8055_v10 = vadd.f32 %v16293_v37, %v7469_v6  ;;  %v10099_v12 = vpop.f32.mrf.mxu2  ;;  %v7976_v48 = vpop.f32.mrf.mxu0 }
 0x6bf   : > { %vm10512_vm8 = vcmp.gt.f32.partialorder %v10448_v59, 0.0  ;;  %v10576_v52 = vmul.f32 0.1, %v10448_v59  ;;  %v9376_v18 = vadd.f32 %v16299_v62, %v8055_v10  ;;  %v9295_v62 = vpop.f32.mrf.mxu1 }
 0x6c1   : > { %v10640_v27 = vsel %vm10512_vm8, %v10448_v59, %v10576_v52  ;;  %v10185_v45 = vadd.f32 %v16345_v33, %v9376_v18  ;;  %v17100_v59 = vld [vmem:[#allocation57_spill] sm:$0xff]  ;;  %v17102_v18 = vld [vmem:[#allocation54_spill] sm:$0xff] }
 0x6c2   : > { %v10704_v57 = vadd.f32 %v12259_v21, %v10640_v27  ;;  %v7380_v37 = vpop.f32.mrf.mxu3  ;;  %v5343_v10 = vadd.f32 %v17101_v60, %v17100_v59 }
 0x6c3   : > { %v10381_v8 = vmul.f32 %v16247_v20, %v10185_v45  ;;  %v7470_v44 = vadd.f32 %v7380_v37, %v6661_v58  ;;  %v12479_v58 = vld [vmem:[%s12820_s23 + $0xc0] sm:$0xff]  }
 0x6c4   : > { %v12409_v29 = vpack.c.bf16 %v10704_v57, %v10703_v9  ;;  %v6664_v27 = vadd.f32 %v17102_v18, %v5343_v10  ;;  %v12266_v7 = vunpack.c.l.bf16 %v12479_v58  ;;  %v17111_v18 = vld [vmem:[#allocation229_spill] sm:$0xff] }
 0x6c5   : > { %v8056_v53 = vadd.f32 %v16315_v13, %v7470_v44  ;;  %v10101_v55 = vpop.f32.mrf.mxu2  ;;  %v10449_v33 = vadd.f32 %v16283_v1, %v10381_v8  ;;  %v5342_v13 = vadd.f32 %v17098_v50, %v17097_v25  ;;  %v7979_v4 = vpop.f32.mrf.mxu0  ;;  %v17103_v8 = vld [vmem:[#allocation60_spill] sm:$0xff] }
 0x6c6   : > { %12508 = vst [vmem:[%s15686_s28 + $0xb0] sm:$0xff] %v12409_v29  }
 0x6c7   : > { %v9377_v39 = vadd.f32 %v16324_v31, %v8056_v53  ;;  %v10577_v23 = vmul.f32 0.1, %v10449_v33  ;;  %vm10513_vm9 = vcmp.gt.f32.partialorder %v10449_v33, 0.0  ;;  %v12263_v31 = vunpack.c.h.bf16 %v12478_v14  ;;  %v9297_v24 = vpop.f32.mrf.mxu1 }
 0x6c8   : > { %v6663_v43 = vadd.f32 %v17099_v30, %v5342_v13  ;;  %v17106_v13 = vld [vmem:[#allocation62_spill] sm:$0xff] }
 0x6c9   : > { %v10186_v16 = vadd.f32 %v10096_v32, %v9377_v39  ;;  %v10641_v35 = vsel %vm10513_vm9, %v10449_v33, %v10577_v23 }
 0x6ca   : > { %v7383_v56 = vpop.f32.mrf.mxu3  ;;  %v10705_v19 = vadd.f32 %v12262_v49, %v10641_v35 }
 0x6cb   : > { %v10382_v0 = vmul.f32 %v16247_v20, %v10186_v16  ;;  %v7471_v36 = vadd.f32 %v7383_v56, %v6662_v11 }
 0x6cd   : > { %v10450_v51 = vadd.f32 %v16283_v1, %v10382_v0  ;;  %v8057_v5 = vadd.f32 %v16351_v15, %v7471_v36  ;;  %v10104_v32 = vpop.f32.mrf.mxu2  ;;  %v7981_v56 = vpop.f32.mrf.mxu0 }
 0x6cf   : > { %vm10514_vm10 = vcmp.gt.f32.partialorder %v10450_v51, 0.0  ;;  %v10578_v40 = vmul.f32 0.1, %v10450_v51  ;;  %v9378_v22 = vadd.f32 %v16355_v61, %v8057_v5  ;;  %v9300_v45 = vpop.f32.mrf.mxu1 }
 0x6d1   : > { %v10642_v17 = vsel %vm10514_vm10, %v10450_v51, %v10578_v40  ;;  %v10187_v34 = vadd.f32 %v10099_v12, %v9378_v22  ;;  %v17107_v51 = vld [vmem:[#allocation158_spill] sm:$0xff]  ;;  %v17108_v40 = vld [vmem:[#allocation228_spill] sm:$0xff] }
 0x6d2   : > { %v10706_v6 = vadd.f32 %v12263_v31, %v10642_v17  ;;  %v7385_v26 = vpop.f32.mrf.mxu3  ;;  %v5345_v5 = vadd.f32 %v17107_v51, %v17106_v13 }
 0x6d3   : > { %v10383_v15 = vmul.f32 %v16247_v20, %v10187_v34  ;;  %v7472_v3 = vadd.f32 %v7385_v26, %v6663_v43  ;;  %v12480_v34 = vld [vmem:[%s12820_s23 + $0xc8] sm:$0xff]   ;;  %v17109_v26 = vld [vmem:[#allocation65_spill] sm:$0xff] }
 0x6d4   : > { %v12414_v63 = vpack.c.bf16 %v10706_v6, %v10705_v19  ;;  %v6666_v22 = vadd.f32 %v17108_v40, %v5345_v5  ;;  %v12270_v60 = vunpack.c.l.bf16 %v12480_v34 }
 0x6d5   : > { %v8058_v47 = vadd.f32 %v16373_v54, %v7472_v3  ;;  %v10106_v61 = vpop.f32.mrf.mxu2  ;;  %v10451_v21 = vadd.f32 %v16283_v1, %v10383_v15  ;;  %v17104_v54 = vld [vmem:[#allocation155_spill] sm:$0xff]  ;;  %v7984_v6 = vpop.f32.mrf.mxu0  ;;  %v17110_v15 = vld [vmem:[#allocation160_spill] sm:$0xff] }
 0x6d6   : > { %12509 = vst [vmem:[%s15686_s28 + $0xb8] sm:$0xff] %v12414_v63   ;;  %v5344_v44 = vadd.f32 %v17104_v54, %v17103_v8  ;;  %v5346_v3 = vadd.f32 %v17110_v15, %v17109_v26  ;;  %v17112_v8 = vld [vmem:[#allocation67_spill] sm:$0xff]  ;;  %v17118_v26 = vld [vmem:[#allocation72_spill] sm:$0xff]  ;;  %v17119_v15 = vld [vmem:[#allocation169_spill] sm:$0xff] }
 0x6d7   : > { %v9379_v12 = vadd.f32 %v16380_v28, %v8058_v47  ;;  %v10579_v9 = vmul.f32 0.1, %v10451_v21  ;;  %vm10515_vm12 = vcmp.gt.f32.partialorder %v10451_v21, 0.0  ;;  %v12267_v28 = vunpack.c.h.bf16 %v12479_v58  ;;  %v9302_v25 = vpop.f32.mrf.mxu1  ;;  %v17113_v54 = vld [vmem:[#allocation163_spill] sm:$0xff] }
 0x6d8   : > { %v6665_v11 = vadd.f32 %v17105_v42, %v5344_v44  ;;  %v5347_v44 = vadd.f32 %v17113_v54, %v17112_v8 }
 0x6d9   : > { %v10188_v52 = vadd.f32 %v10101_v55, %v9379_v12  ;;  %v10643_v53 = vsel %vm10515_vm12, %v10451_v21, %v10579_v9 }
 0x6da   : > { %v7388_v38 = vpop.f32.mrf.mxu3  ;;  %v10707_v14 = vadd.f32 %v12266_v7, %v10643_v53  ;;  %v17114_v53 = vld [vmem:[#allocation64_spill] sm:$0xff] }
 0x6db   : > { %v10384_v57 = vmul.f32 %v16247_v20, %v10188_v52  ;;  %v7473_v37 = vadd.f32 %v7388_v38, %v6664_v27  ;;  %v6667_v27 = vadd.f32 %v17111_v18, %v5346_v3  ;;  %v5349_v3 = vadd.f32 %v17119_v15, %v17118_v26 }
 0x6dd   : > { %v10452_v29 = vadd.f32 %v16283_v1, %v10384_v57  ;;  %v8059_v2 = vadd.f32 %v7974_v46, %v7473_v37  ;;  %v10109_v41 = vpop.f32.mrf.mxu2 }
 0x6df   : > { %vm10516_vm0 = vcmp.gt.f32.partialorder %v10452_v29, 0.0  ;;  %v10580_v55 = vmul.f32 0.1, %v10452_v29  ;;  %v9380_v33 = vadd.f32 %v9295_v62, %v8059_v2  ;;  %v9305_v59 = vpop.f32.mrf.mxu1  ;;  %v7986_v2 = vpop.f32.mrf.mxu0 }
 0x6e1   : > { %v10644_v39 = vsel %vm10516_vm0, %v10452_v29, %v10580_v55  ;;  %v10189_v16 = vadd.f32 %v10104_v32, %v9380_v33  ;;  %v6668_v55 = vadd.f32 %v17114_v53, %v5347_v44 }
 0x6e2   : > { %v10708_v23 = vadd.f32 %v12267_v28, %v10644_v39  ;;  %v7390_v0 = vpop.f32.mrf.mxu3 }
 0x6e3   : > { %v10385_v36 = vmul.f32 %v16247_v20, %v10189_v16  ;;  %v7474_v46 = vadd.f32 %v7390_v0, %v6665_v11  ;;  %v12481_v16 = vld [vmem:[%s12820_s23 + $0xd0] sm:$0xff]   ;;  %v17116_v0 = vld [vmem:[#allocation166_spill] sm:$0xff] }
 0x6e4   : > { %v12419_v50 = vpack.c.bf16 %v10708_v23, %v10707_v14  ;;  %v17115_v23 = vld [vmem:[#allocation70_spill] sm:$0xff] }
 0x6e5   : > { %v8060_v49 = vadd.f32 %v7976_v48, %v7474_v46  ;;  %v10111_v62 = vpop.f32.mrf.mxu2  ;;  %v10453_v31 = vadd.f32 %v16283_v1, %v10385_v36 }
 0x6e6   : > { %12510 = vst [vmem:[%s15686_s28 + $0xc0] sm:$0xff] %v12419_v50   ;;  %v12274_v50 = vunpack.c.l.bf16 %v12481_v16 }
 0x6e7   : > { %v9381_v32 = vadd.f32 %v9297_v24, %v8060_v49  ;;  %v10581_v30 = vmul.f32 0.1, %v10453_v31  ;;  %vm10517_vm11 = vcmp.gt.f32.partialorder %v10453_v31, 0.0  ;;  %v12271_v24 = vunpack.c.h.bf16 %v12480_v34  ;;  %v9307_v28 = vpop.f32.mrf.mxu1  ;;  %v7989_v49 = vpop.f32.mrf.mxu0 }
 0x6e9   : > { %v10190_v35 = vadd.f32 %v10106_v61, %v9381_v32  ;;  %v10645_v10 = vsel %vm10517_vm11, %v10453_v31, %v10581_v30  ;;  %v17117_v32 = vld [vmem:[#allocation233_spill] sm:$0xff] }
 0x6ea   : > { %v7393_v17 = vpop.f32.mrf.mxu3  ;;  %v10709_v38 = vadd.f32 %v12270_v60, %v10645_v10 }
 0x6eb   : > { %v10386_v43 = vmul.f32 %v16247_v20, %v10190_v35  ;;  %v7475_v19 = vadd.f32 %v7393_v17, %v6666_v22 }
 0x6ed   : > { %v10454_v48 = vadd.f32 %v16283_v1, %v10386_v43  ;;  %v8061_v63 = vadd.f32 %v7979_v4, %v7475_v19  ;;  %v10114_v21 = vpop.f32.mrf.mxu2 }
 0x6ef   : > { %vm10518_vm14 = vcmp.gt.f32.partialorder %v10454_v48, 0.0  ;;  %v10582_v47 = vmul.f32 0.1, %v10454_v48  ;;  %v9382_v61 = vadd.f32 %v9300_v45, %v8061_v63  ;;  %v9310_v40 = vpop.f32.mrf.mxu1 }
 0x6f1   : > { %v10646_v12 = vsel %vm10518_vm14, %v10454_v48, %v10582_v47  ;;  %v10191_v52 = vadd.f32 %v10109_v41, %v9382_v61  ;;  %v7991_v47 = vpop.f32.mrf.mxu0 }
 0x6f2   : > { %v10710_v58 = vadd.f32 %v12271_v24, %v10646_v12  ;;  %v7395_v9 = vpop.f32.mrf.mxu3  ;;  %v17120_v24 = vld [vmem:[#allocation235_spill] sm:$0xff] }
 0x6f3   : > { %v10387_v57 = vmul.f32 %v16247_v20, %v10191_v52  ;;  %v7476_v4 = vadd.f32 %v7395_v9, %v6667_v27  ;;  %v6670_v10 = vadd.f32 %v17120_v24, %v5349_v3 }
 0x6f4   : > { %v12424_v37 = vpack.c.bf16 %v10710_v58, %v10709_v38  ;;  %v17121_v38 = vld [vmem:[#allocation75_spill] sm:$0xff]  ;;  %v17122_v58 = vld [vmem:[#allocation172_spill] sm:$0xff] }
 0x6f5   : > { %v8062_v29 = vadd.f32 %v7981_v56, %v7476_v4  ;;  %v10455_v45 = vadd.f32 %v16283_v1, %v10387_v57  ;;  %v10116_v33 = vpop.f32.mrf.mxu2  ;;  %v5348_v56 = vadd.f32 %v17116_v0, %v17115_v23  ;;  %v5350_v9 = vadd.f32 %v17122_v58, %v17121_v38  ;;  %v17125_v23 = vld [vmem:[#allocation175_spill] sm:$0xff]  ;;  %v17131_v38 = vld [vmem:[#allocation182_spill] sm:$0xff] }
 0x6f6   : > { %12511 = vst [vmem:[%s15686_s28 + $0xc8] sm:$0xff] %v12424_v37  }
 0x6f7   : > { %v9383_v7 = vadd.f32 %v9302_v25, %v8062_v29  ;;  %v10583_v42 = vmul.f32 0.1, %v10455_v45  ;;  %vm10519_vm13 = vcmp.gt.f32.partialorder %v10455_v45, 0.0  ;;  %v12275_v25 = vunpack.c.h.bf16 %v12481_v16  ;;  %v9312_v27 = vpop.f32.mrf.mxu1 }
 0x6f8   : > { %v6669_v35 = vadd.f32 %v17117_v32, %v5348_v56 }
 0x6f9   : > { %v10192_v41 = vadd.f32 %v10111_v62, %v9383_v7  ;;  %v10647_v13 = vsel %vm10519_vm13, %v10455_v45, %v10583_v42  ;;  %v7994_v42 = vpop.f32.mrf.mxu0 }
 0x6fa   : > { %v7398_v39 = vpop.f32.mrf.mxu3  ;;  %v10711_v22 = vadd.f32 %v12274_v50, %v10647_v13 }
 0x6fb   : > { %v10388_v11 = vmul.f32 %v16247_v20, %v10192_v41  ;;  %v7477_v14 = vadd.f32 %v7398_v39, %v6668_v55 }
 0x6fd   : > { %v10456_v36 = vadd.f32 %v16283_v1, %v10388_v11  ;;  %v8063_v46 = vadd.f32 %v7984_v6, %v7477_v14  ;;  %v10119_v6 = vpop.f32.mrf.mxu2  ;;  %v17124_v14 = vld [vmem:[#allocation77_spill] sm:$0xff] }
 0x6fe   : > { %v5351_v0 = vadd.f32 %v17125_v23, %v17124_v14 }
 0x6ff   : > { %vm10520_vm1 = vcmp.gt.f32.partialorder %v10456_v36, 0.0  ;;  %v10584_v51 = vmul.f32 0.1, %v10456_v36  ;;  %v9384_v5 = vadd.f32 %v9305_v59, %v8063_v46 }
 0x701   : > { %v10648_v62 = vsel %vm10520_vm1, %v10456_v36, %v10584_v51  ;;  %v10193_v31 = vadd.f32 %v10114_v21, %v9384_v5  ;;  %v12482_v21 = vld [vmem:[%s12820_s23 + $0xd8] sm:$0xff]   ;;  %v9315_v36 = vpop.f32.mrf.mxu1  ;;  %v17126_v51 = vld [vmem:[#allocation238_spill] sm:$0xff] }
 0x702   : > { %v10712_v17 = vadd.f32 %v12275_v25, %v10648_v62  ;;  %v7400_v34 = vpop.f32.mrf.mxu3  ;;  %v12278_v37 = vunpack.c.l.bf16 %v12482_v21  ;;  %v12279_v8 = vunpack.c.h.bf16 %v12482_v21  ;;  %v6672_v5 = vadd.f32 %v17126_v51, %v5351_v0  ;;  %v12483_v62 = vld [vmem:[%s12820_s23 + $0xe0] sm:$0xff]  }
 0x703   : > { %v10389_v30 = vmul.f32 %v16247_v20, %v10193_v31  ;;  %v7478_v43 = vadd.f32 %v7400_v34, %v6669_v35 }
 0x704   : > { %v12429_v19 = vpack.c.bf16 %v10712_v17, %v10711_v22  ;;  %v17128_v22 = vld [vmem:[#allocation179_spill] sm:$0xff] }
 0x705   : > { %v8064_v48 = vadd.f32 %v7986_v2, %v7478_v43  ;;  %v10457_v63 = vadd.f32 %v16283_v1, %v10389_v30  ;;  %v10121_v54 = vpop.f32.mrf.mxu2  ;;  %v7996_v43 = vpop.f32.mrf.mxu0 }
 0x706   : > { %12512 = vst [vmem:[%s15686_s28 + $0xd0] sm:$0xff] %v12429_v19   ;;  %v12282_v19 = vunpack.c.l.bf16 %v12483_v62 }
 0x707   : > { %v9385_v59 = vadd.f32 %v9307_v28, %v8064_v48  ;;  %v10585_v12 = vmul.f32 0.1, %v10457_v63  ;;  %vm10521_vm2 = vcmp.gt.f32.partialorder %v10457_v63, 0.0  ;;  %v17123_v28 = vld [vmem:[#allocation237_spill] sm:$0xff] }
 0x708   : > { %v6671_v41 = vadd.f32 %v17123_v28, %v5350_v9 }
 0x709   : > { %v10194_v60 = vadd.f32 %v10116_v33, %v9385_v59  ;;  %v10649_v44 = vsel %vm10521_vm2, %v10457_v63, %v10585_v12  ;;  %v9317_v48 = vpop.f32.mrf.mxu1 }
 0x70a   : > { %v7403_v61 = vpop.f32.mrf.mxu3  ;;  %v10713_v53 = vadd.f32 %v12278_v37, %v10649_v44 }
 0x70b   : > { %v10390_v52 = vmul.f32 %v16247_v20, %v10194_v60  ;;  %v7479_v18 = vadd.f32 %v7403_v61, %v6670_v10  ;;  %v17129_v60 = vld [vmem:[#allocation239_spill] sm:$0xff] }
 0x70d   : > { %v10458_v57 = vadd.f32 %v16283_v1, %v10390_v52  ;;  %v8065_v4 = vadd.f32 %v7989_v49, %v7479_v18  ;;  %v10124_v25 = vpop.f32.mrf.mxu2  ;;  %v7999_v37 = vpop.f32.mrf.mxu0 }
 0x70f   : > { %vm10522_vm4 = vcmp.gt.f32.partialorder %v10458_v57, 0.0  ;;  %v10586_v29 = vmul.f32 0.1, %v10458_v57  ;;  %v9386_v2 = vadd.f32 %v9310_v40, %v8065_v4  ;;  %v17127_v40 = vld [vmem:[#allocation80_spill] sm:$0xff] }
 0x710   : > { %v5352_v17 = vadd.f32 %v17128_v22, %v17127_v40  ;;  %v17136_v40 = vld [vmem:[#allocation89_spill] sm:$0xff]  ;;  %v17137_v22 = vld [vmem:[#allocation188_spill] sm:$0xff] }
 0x711   : > { %v10650_v45 = vsel %vm10522_vm4, %v10458_v57, %v10586_v29  ;;  %v10195_v7 = vadd.f32 %v10119_v6, %v9386_v2  ;;  %v12283_v6 = vunpack.c.h.bf16 %v12483_v62  ;;  %v9320_v29 = vpop.f32.mrf.mxu1 }
 0x712   : > { %v10714_v55 = vadd.f32 %v12279_v8, %v10650_v45  ;;  %v7405_v33 = vpop.f32.mrf.mxu3  ;;  %v6673_v24 = vadd.f32 %v17129_v60, %v5352_v17  ;;  %v12484_v45 = vld [vmem:[%s12820_s23 + $0xe8] sm:$0xff]   ;;  %v5355_v17 = vadd.f32 %v17137_v22, %v17136_v40 }
 0x713   : > { %v10391_v39 = vmul.f32 %v16247_v20, %v10195_v7  ;;  %v7480_v16 = vadd.f32 %v7405_v33, %v6671_v41  ;;  %v17134_v33 = vld [vmem:[#allocation184_spill] sm:$0xff]  ;;  %v12287_v14 = vunpack.c.h.bf16 %v12484_v45 }
 0x714   : > { %v12434_v11 = vpack.c.bf16 %v10714_v55, %v10713_v53  ;;  %v17133_v55 = vld [vmem:[#allocation86_spill] sm:$0xff] }
 0x715   : > { %v8066_v56 = vadd.f32 %v7991_v47, %v7480_v16  ;;  %v10459_v46 = vadd.f32 %v16283_v1, %v10391_v39  ;;  %v10126_v61 = vpop.f32.mrf.mxu2  ;;  %v5354_v39 = vadd.f32 %v17134_v33, %v17133_v55 }
 0x716   : > { %12513 = vst [vmem:[%s15686_s28 + $0xd8] sm:$0xff] %v12434_v11   ;;  %v12286_v11 = vunpack.c.l.bf16 %v12484_v45 }
 0x717   : > { %v9387_v50 = vadd.f32 %v9312_v27, %v8066_v56  ;;  %v10587_v31 = vmul.f32 0.1, %v10459_v46  ;;  %vm10523_vm6 = vcmp.gt.f32.partialorder %v10459_v46, 0.0  ;;  %v17130_v27 = vld [vmem:[#allocation82_spill] sm:$0xff] }
 0x718   : > { %v5353_v58 = vadd.f32 %v17131_v38, %v17130_v27 }
 0x719   : > { %v10196_v13 = vadd.f32 %v10121_v54, %v9387_v50  ;;  %v10651_v26 = vsel %vm10523_vm6, %v10459_v46, %v10587_v31  ;;  %v17132_v54 = vld [vmem:[#allocation79_spill] sm:$0xff]  ;;  %v17135_v50 = vld [vmem:[#allocation242_spill] sm:$0xff] }
 0x71a   : > { %v7408_v49 = vpop.f32.mrf.mxu3  ;;  %v10715_v10 = vadd.f32 %v12282_v19, %v10651_v26  ;;  %v6674_v44 = vadd.f32 %v17132_v54, %v5353_v58  ;;  %v17138_v26 = vld [vmem:[#allocation84_spill] sm:$0xff] }
 0x71b   : > { %v10392_v32 = vmul.f32 %v16247_v20, %v10196_v13  ;;  %v7481_v35 = vadd.f32 %v7408_v49, %v6672_v5  ;;  %v8001_v13 = vpop.f32.mrf.mxu0 }
 0x71d   : > { %v10460_v34 = vadd.f32 %v16283_v1, %v10392_v32  ;;  %v8067_v30 = vadd.f32 %v7994_v42, %v7481_v35  ;;  %v10129_v53 = vpop.f32.mrf.mxu2  ;;  %v9322_v32 = vpop.f32.mrf.mxu1 }
 0x71f   : > { %vm10524_vm7 = vcmp.gt.f32.partialorder %v10460_v34, 0.0  ;;  %v10588_v15 = vmul.f32 0.1, %v10460_v34  ;;  %v9388_v3 = vadd.f32 %v9315_v36, %v8067_v30 }
 0x721   : > { %v10652_v63 = vsel %vm10524_vm7, %v10460_v34, %v10588_v15  ;;  %v10197_v59 = vadd.f32 %v10124_v25, %v9388_v3  ;;  %v6675_v25 = vadd.f32 %v17135_v50, %v5354_v39  ;;  %v6676_v15 = vadd.f32 %v17138_v26, %v5355_v17 }
 0x722   : > { %v10716_v47 = vadd.f32 %v12283_v6, %v10652_v63  ;;  %v7410_v21 = vpop.f32.mrf.mxu3  ;;  %v12485_v63 = vld [vmem:[%s12820_s23 + $0xf0] sm:$0xff]  }
 0x723   : > { %v10393_v12 = vmul.f32 %v16247_v20, %v10197_v59  ;;  %v7482_v52 = vadd.f32 %v7410_v21, %v6673_v24  ;;  %v12291_v27 = vunpack.c.h.bf16 %v12485_v63 }
 0x724   : > { %v12439_v18 = vpack.c.bf16 %v10716_v47, %v10715_v10  ;;  %v17139_v47 = vld [vmem:[#allocation94_spill] sm:$0xff] }
 0x725   : > { %v8068_v9 = vadd.f32 %v7996_v43, %v7482_v52  ;;  %v10461_v57 = vadd.f32 %v16283_v1, %v10393_v12  ;;  %v10131_v30 = vpop.f32.mrf.mxu2 }
 0x726   : > { %12514 = vst [vmem:[%s15686_s28 + $0xe0] sm:$0xff] %v12439_v18   ;;  %v12290_v18 = vunpack.c.l.bf16 %v12485_v63 }
 0x727   : > { %v9389_v4 = vadd.f32 %v9317_v48, %v8068_v9  ;;  %v10589_v7 = vmul.f32 0.1, %v10461_v57  ;;  %vm10525_vm5 = vcmp.gt.f32.partialorder %v10461_v57, 0.0  ;;  %v8004_v3 = vpop.f32.mrf.mxu0 }
 0x729   : > { %v10198_v8 = vadd.f32 %v10126_v61, %v9389_v4  ;;  %v10653_v23 = vsel %vm10525_vm5, %v10461_v57, %v10589_v7  ;;  %v17140_v61 = vld [vmem:[#allocation191_spill] sm:$0xff] }
 0x72a   : > { %v7413_v2 = vpop.f32.mrf.mxu3  ;;  %v10717_v51 = vadd.f32 %v12286_v11, %v10653_v23  ;;  %v5356_v21 = vadd.f32 %v17140_v61, %v17139_v47  ;;  %v12486_v11 = vld [vmem:[%s12820_s23 + $0xf8] sm:$0xff]  }
 0x72b   : > { %v10394_v28 = vmul.f32 %v16247_v20, %v10198_v8  ;;  %v7483_v41 = vadd.f32 %v7413_v2, %v6674_v44  ;;  %v17141_v8 = vld [vmem:[#allocation245_spill] sm:$0xff] }
 0x72c   : > { %v6677_v54 = vadd.f32 %v17141_v8, %v5356_v21 }
 0x72d   : > { %v10462_v16 = vadd.f32 %v16283_v1, %v10394_v28  ;;  %v8069_v42 = vadd.f32 %v7999_v37, %v7483_v41 }
 0x72f   : > { %vm10526_vm3 = vcmp.gt.f32.partialorder %v10462_v16, 0.0  ;;  %v10590_v0 = vmul.f32 0.1, %v10462_v16  ;;  %v9390_v56 = vadd.f32 %v9320_v29, %v8069_v42  ;;  %v8006_v41 = vpop.f32.mrf.mxu0 }
 0x731   : > { %v10654_v36 = vsel %vm10526_vm3, %v10462_v16, %v10590_v0  ;;  %v10199_v46 = vadd.f32 %v10129_v53, %v9390_v56  ;;  %v12294_v56 = vunpack.c.l.bf16 %v12486_v11 }
 0x732   : > { %v10718_v5 = vadd.f32 %v12287_v14, %v10654_v36  ;;  %v7415_v49 = vpop.f32.mrf.mxu3  ;;  %v12295_v36 = vunpack.c.h.bf16 %v12486_v11 }
 0x733   : > { %v10395_v62 = vmul.f32 %v16247_v20, %v10199_v46  ;;  %v7484_v31 = vadd.f32 %v7415_v49, %v6675_v25  ;;  %v10134_v38 = vpop.f32.mrf.mxu2 }
 0x734   : > { %v12444_v35 = vpack.c.bf16 %v10718_v5, %v10717_v51 }
 0x735   : > { %v8070_v34 = vadd.f32 %v8001_v13, %v7484_v31  ;;  %v10463_v43 = vadd.f32 %v16283_v1, %v10395_v62 }
 0x736   : > { %12515 = vst [vmem:[%s15686_s28 + $0xe8] sm:$0xff] %v12444_v35   ;;  %v9325_v10 = vpop.f32.mrf.mxu1 }
 0x737   : > { %v9391_v19 = vadd.f32 %v9322_v32, %v8070_v34  ;;  %v10591_v59 = vmul.f32 0.1, %v10463_v43  ;;  %vm10527_vm15 = vcmp.gt.f32.partialorder %v10463_v43, 0.0 }
 0x739   : > { %v10200_v6 = vadd.f32 %v10131_v30, %v9391_v19  ;;  %v10655_v58 = vsel %vm10527_vm15, %v10463_v43, %v10591_v59 }
 0x73a   : > { %v7418_v48 = vpop.f32.mrf.mxu3  ;;  %v10719_v44 = vadd.f32 %v12290_v18, %v10655_v58 }
 0x73b   : > { %v10396_v60 = vmul.f32 %v16247_v20, %v10200_v6  ;;  %v7485_v24 = vadd.f32 %v7418_v48, %v6676_v15  ;;  %v10136_v16 = vpop.f32.mrf.mxu2 }
 0x73d   : > { %v10464_v12 = vadd.f32 %v16283_v1, %v10396_v60  ;;  %v8071_v52 = vadd.f32 %v8004_v3, %v7485_v24 }
 0x73e   : > { %v9327_v55 = vpop.f32.mrf.mxu1 }
 0x73f   : > { %vm10528_vm8 = vcmp.gt.f32.partialorder %v10464_v12, 0.0  ;;  %v10592_v9 = vmul.f32 0.1, %v10464_v12  ;;  %v9392_v57 = vadd.f32 %v9325_v10, %v8071_v52 }
 0x741   : > { %v10656_v4 = vsel %vm10528_vm8, %v10464_v12, %v10592_v9  ;;  %v10201_v37 = vadd.f32 %v10134_v38, %v9392_v57 }
 0x742   : > { %v10720_v29 = vadd.f32 %v12291_v27, %v10656_v4  ;;  %v7420_v2 = vpop.f32.mrf.mxu3 }
 0x743   : > { %v10397_v45 = vmul.f32 %v16247_v20, %v10201_v37  ;;  %v7486_v7 = vadd.f32 %v7420_v2, %v6677_v54 }
 0x744   : > { %v12449_v28 = vpack.c.bf16 %v10720_v29, %v10719_v44 }
 0x745   : > { %v8072_v53 = vadd.f32 %v8006_v41, %v7486_v7  ;;  %v10465_v33 = vadd.f32 %v16283_v1, %v10397_v45 }
 0x746   : > { %12516 = vst [vmem:[%s15686_s28 + $0xf0] sm:$0xff] %v12449_v28  }
 0x747   : > { %v9393_v39 = vadd.f32 %v9327_v55, %v8072_v53  ;;  %v10593_v14 = vmul.f32 0.1, %v10465_v33  ;;  %vm10529_vm9 = vcmp.gt.f32.partialorder %v10465_v33, 0.0 }
 0x749   : > { %v10202_v42 = vadd.f32 %v10136_v16, %v9393_v39  ;;  %v10657_v46 = vsel %vm10529_vm9, %v10465_v33, %v10593_v14 }
 0x74a   : > { %v10721_v13 = vadd.f32 %v12294_v56, %v10657_v46 }
 0x74b   : > { %v10398_v23 = vmul.f32 %v16247_v20, %v10202_v42 }
 0x74d   : > { %v10466_v0 = vadd.f32 %v16283_v1, %v10398_v23 }
 0x74f   : > { %vm10530_vm10 = vcmp.gt.f32.partialorder %v10466_v0, 0.0  ;;  %v10594_v50 = vmul.f32 0.1, %v10466_v0 }
 0x751   : > { %v10658_v25 = vsel %vm10530_vm10, %v10466_v0, %v10594_v50 }
 0x752   : > { %v10722_v51 = vadd.f32 %v12295_v36, %v10658_v25 }
 0x754   : > { %v12454_v5 = vpack.c.bf16 %v10722_v51, %v10721_v13 }
 0x756   : > { %12517 = vst [vmem:[%s15686_s28 + $0xf8] sm:$0xff] %v12454_v5  }
 0x757 PF: > { %s17_s24 = sadd.s32 1, %s12737_s24  }
 0x758   : > { %p14_p4 = scmp.ge.s32.totalorder %s17_s24, 6  }
 0x75a   :  { %16 = sbr.rel (!%p14_p4) target bundleno = 1 (0x1), region = 81 }

</bundles_post_ra>
